<compile_context>
chip_gen: v5e
topology: v5e:2x2
jax: 0.10.0
libtpu: 0.0.40
codegen_flags: <defaults>
</compile_context>

<pallas_src>
import functools

import numpy as np
import jax
import jax.numpy as jnp
from jax.experimental import pallas as pl
from jax.experimental.pallas import tpu as pltpu

# ----------------------------- config (small) -------------------------------
IMG = 16          # input spatial size
PATCH = 4         # patch size  -> 4x4 token grid after patch embed
IN_CHANS = 3
EMBED = 32        # stage-0 channel dim
WINDOW = 2        # window size (T = 4 tokens / window)
STAGES = (
    dict(dim=EMBED, depth=2, heads=2, H=IMG // PATCH, W=IMG // PATCH),
    dict(dim=EMBED * 2, depth=2, heads=4, H=IMG // PATCH // 2, W=IMG // PATCH // 2),
)
NUM_FEATURES = STAGES[-1]["dim"]
HEAD_DIM = 128    # self.model.head = Linear(num_features, 128)
TARGET_DIM = 1    # self.dense = Linear(128, 1)
DTYPE = jnp.float32

# TODO(synk): real swin_small uses embed_dim=96, depths=(2,2,18,2), window=7,
# a relative-position-bias table+index and a pretrained checkpoint; this is a
# scaled-down structural stand-in with deterministic synthetic weights.


# ----------------------------- shared math ----------------------------------
def _gelu(x):
    # TODO(synk): timm Swin uses exact-erf GELU; tanh approximation used here.
    return 0.5 * x * (1.0 + jnp.tanh(0.7978845608028654 * (x + 0.044715 * x * x * x)))


# ----------------------------- kernel helpers --------------------------------
def _k_layernorm(x, g_ref, b_ref, eps=1e-5):
    mu = jnp.mean(x, axis=-1, keepdims=True)
    var = jnp.mean(jnp.square(x - mu), axis=-1, keepdims=True)
    return (x - mu) * jax.lax.rsqrt(var + eps) * g_ref[...] + b_ref[...]


def _k_linear(x, w_ref, b_ref=None):
    y = jnp.dot(x, w_ref[...], preferred_element_type=jnp.float32)
    if b_ref is not None:
        y = y + b_ref[...]
    return y


def _dot_nt(a, b):
    """a @ b.T without materializing a transpose (rhs contracts on its last dim)."""
    return jax.lax.dot_general(a, b, (((1,), (1,)), ((), ())),
                               preferred_element_type=jnp.float32)


def _k_softmax_rows(s):
    s = s - jnp.max(s, axis=-1, keepdims=True)
    e = jnp.exp(s)
    return e * pl.reciprocal(jnp.sum(e, axis=-1, keepdims=True), approx=True)


def _k_window_attention(xw, blk, A, M, heads, dh):
    """Block-diagonal windowed MHSA.

    xw : (R, C) tokens already permuted into (batch, window, token) row order.
    A  : (R, T) stacked identities -- tiles the (T, T) rel-pos bias over windows.
    M  : (R, R) static additive mask: -1e9 outside each window's TxT diagonal
         block, plus the Swin shift mask inside the blocks.
    """
    C = xw.shape[-1]
    scale = dh ** -0.5
    qkv = _k_linear(xw, blk["qkv_w"], blk["qkv_b"])            # (R, 3C)
    w_proj = blk["proj_w"][...]                                # (C, C)
    acc = None
    for h in range(heads):                                     # static unroll (2 or 4)
        q = qkv[:, h * dh:(h + 1) * dh] * scale
        k = qkv[:, C + h * dh:C + (h + 1) * dh]
        v = qkv[:, 2 * C + h * dh:2 * C + (h + 1) * dh]
        rel = blk["rel_bias"][h]                               # (T, T)
        # scores + tiled rel-pos bias + static (window / shift) mask
        s = _dot_nt(q, k) \
            + _dot_nt(jnp.dot(A, rel, preferred_element_type=jnp.float32), A) \
            + M
        p = _k_softmax_rows(s)
        oh = jnp.dot(p, v, preferred_element_type=jnp.float32)                # (R, dh)
        contrib = jnp.dot(oh, w_proj[h * dh:(h + 1) * dh, :],
                          preferred_element_type=jnp.float32)                 # (R, C)
        acc = contrib if acc is None else acc + contrib
    return acc + blk["proj_b"][...]


def _k_swin_block(x, blk, P_win, P_inv, A, M, heads, dh):
    h1 = _k_layernorm(x, blk["ln1_g"], blk["ln1_b"])
    if P_win is not None:          # window partition (+ cyclic shift) as a permutation matmul
        h1 = jnp.dot(P_win, h1, preferred_element_type=jnp.float32)
    att = _k_window_attention(h1, blk, A, M, heads, dh)
    if P_inv is not None:          # reverse partition (+ reverse shift)
        att = jnp.dot(P_inv, att, preferred_element_type=jnp.float32)
    x = x + att
    h2 = _k_layernorm(x, blk["ln2_g"], blk["ln2_b"])
    h2 = _gelu(_k_linear(h2, blk["fc1_w"], blk["fc1_b"]))
    h2 = _k_linear(h2, blk["fc2_w"], blk["fc2_b"])
    return x + h2


def _k_patch_merging(x, mp, sels, embeds):
    # cat = [x0|x1|x2|x3] built as sum_q (S_q @ x) @ E_q  (lane-dense 4C = 128)
    cat = None
    for S, E in zip(sels, embeds):
        part = jnp.dot(jnp.dot(S, x, preferred_element_type=jnp.float32), E,
                       preferred_element_type=jnp.float32)
        cat = part if cat is None else cat + part
    cat = _k_layernorm(cat, mp["ln_g"], mp["ln_b"])
    return jnp.dot(cat, mp["red_w"][...], preferred_element_type=jnp.float32)


def _fused_kernel(treedef, x_ref, *rest):
    o_ref = rest[-1]
    tree = jax.tree_util.tree_unflatten(treedef, rest[:-1])
    p, c = tree["p"], tree["c"]

    # ---- patch embedding (4x4 conv == matmul on pre-extracted patches) + LN ----
    x = x_ref[...]                                             # (B*16, 48)
    x = _k_linear(x, p["patch_w"], p["patch_b"])
    x = _k_layernorm(x, p["pe_ln_g"], p["pe_ln_b"])            # (B*16, 32)

    # ---- stage 0: 4x4 token grid, C=32, 2 heads, 2x2 windows (block 1 shifted) ----
    s0 = p["stages"][0]
    h0, d0 = STAGES[0]["heads"], STAGES[0]["dim"] // STAGES[0]["heads"]
    A0 = c["A0"][...]
    x = _k_swin_block(x, s0["blocks"][0], c["P0_ns"][...], c["P0_ns_inv"][...],
                      A0, c["M0_ns"][...], heads=h0, dh=d0)
    x = _k_swin_block(x, s0["blocks"][1], c["P0_sh"][...], c["P0_sh_inv"][...],
                      A0, c["M0_sh"][...], heads=h0, dh=d0)
    x = _k_patch_merging(
        x, s0["merge"],
        [c["sel0"][...], c["sel1"][...], c["sel2"][...], c["sel3"][...]],
        [c["emb0"][...], c["emb1"][...], c["emb2"][...], c["emb3"][...]])

    # ---- stage 1: 2x2 grid == single window, C=64, 4 heads, no shift ----
    s1 = p["stages"][1]
    h1n, d1 = STAGES[1]["heads"], STAGES[1]["dim"] // STAGES[1]["heads"]
    A1, M1 = c["A1"][...], c["M1"][...]
    x = _k_swin_block(x, s1["blocks"][0], None, None, A1, M1, heads=h1n, dh=d1)
    x = _k_swin_block(x, s1["blocks"][1], None, None, A1, M1, heads=h1n, dh=d1)

    # ---- final LN -> token mean (pooling matmul) -> head(128) -> dense(1) ----
    x = _k_layernorm(x, p["norm_g"], p["norm_b"])              # (B*4, 64)
    feat = jnp.dot(c["pool"][...], x, preferred_element_type=jnp.float32)   # (B, 64)
    h = _k_linear(feat, p["head_w"], p["head_b"])              # (B, 128)
    out = _k_linear(h, p["dense_w"], p["dense_b"])             # (B, 1)
    o_ref[...] = out.astype(o_ref.dtype)


# ----------------------------- wrapper ---------------------------------------
def _extract_patches(x_nchw):
    """NCHW image -> (B*Hp*Wp, PATCH*PATCH*IN_CHANS) patch slab (one-time XLA op)."""
    B = x_nchw.shape[0]
    Hp = Wp = IMG // PATCH
    x = jnp.transpose(x_nchw, (0, 2, 3, 1))                    # NHWC
    x = x.reshape(B, Hp, PATCH, Wp, PATCH, IN_CHANS).transpose(0, 1, 3, 2, 4, 5)
    return x.reshape(B * Hp * Wp, PATCH * PATCH * IN_CHANS)


def pet2_forward(x_nchw, inputs):
    """Pet2Model forward: mini-swin backbone -> head(128) -> dense(1) -> squeeze(-1)."""
    B = x_nchw.shape[0]
    flat, treedef = jax.tree_util.tree_flatten(inputs)
    xp = _extract_patches(x_nchw).astype(DTYPE)
    kernel = functools.partial(_fused_kernel, treedef)
    out = pl.pallas_call(
        kernel,
        out_shape=jax.ShapeDtypeStruct((B, TARGET_DIM), DTYPE),
        in_specs=[pl.BlockSpec(memory_space=pltpu.MemorySpace.VMEM)] * (1 + len(flat)),
        out_specs=pl.BlockSpec(memory_space=pltpu.MemorySpace.VMEM),
    )(xp, *flat)
    return jnp.squeeze(out, axis=-1)


# --------------------- static constants (permutations etc.) ------------------
def _window_perm(H, W, win, shift):
    perm = []
    for wh in range(H // win):
        for ww in range(W // win):
            for ph in range(win):
                for pw in range(win):
                    r = (wh * win + ph + shift) % H
                    c = (ww * win + pw + shift) % W
                    perm.append(r * W + c)
    return np.asarray(perm, np.int64)


def _perm_matrix(perm, B):
    L = perm.shape[0]
    P = np.zeros((B * L, B * L), np.float32)
    for b in range(B):
        for i in range(L):
            P[b * L + i, b * L + perm[i]] = 1.0
    return P


def _shift_window_mask(H, W, win, shift):
    img = np.zeros((H, W), np.int32)
    cnt = 0
    for hs in (slice(0, -win), slice(-win, -shift), slice(-shift, None)):
        for ws in (slice(0, -win), slice(-win, -shift), slice(-shift, None)):
            img[hs, ws] = cnt
            cnt += 1
    mw = img.reshape(H // win, win, W // win, win).transpose(0, 2, 1, 3).reshape(-1, win * win)
    diff = mw[:, None, :] - mw[:, :, None]
    return np.where(diff != 0, -100.0, 0.0).astype(np.float32)       # (nW, T, T)


def _block_mask(B, nW, T, win_mask=None):
    R = B * nW * T
    M = np.full((R, R), -1e9, np.float32)
    for b in range(B):
        for w in range(nW):
            o = (b * nW + w) * T
            M[o:o + T, o:o + T] = 0.0 if win_mask is None else win_mask[w]
    return M


def _tile_eye(B, nW, T):
    return np.tile(np.eye(T, dtype=np.float32), (B * nW, 1))         # (B*nW*T, T)


def _merge_selects(B, H, W):
    Ho, Wo = H // 2, W // 2
    sels = []
    for dr, dc in ((0, 0), (1, 0), (0, 1), (1, 1)):                  # x0, x1, x2, x3
        S = np.zeros((B * Ho * Wo, B * H * W), np.float32)
        for b in range(B):
            for r in range(Ho):
                for c in range(Wo):
                    S[b * Ho * Wo + r * Wo + c,
                      b * H * W + (2 * r + dr) * W + (2 * c + dc)] = 1.0
        sels.append(S)
    return sels


def _pool_matrix(B, L):
    P = np.zeros((B, B * L), np.float32)
    for b in range(B):
        P[b, b * L:(b + 1) * L] = 1.0 / L
    return P


def build_consts(batch):
    H0 = W0 = IMG // PATCH
    T = WINDOW * WINDOW
    nW0 = (H0 // WINDOW) * (W0 // WINDOW)
    shift = WINDOW // 2
    H1 = W1 = H0 // 2

    c = {}
    P_ns = _perm_matrix(_window_perm(H0, W0, WINDOW, 0), batch)
    P_sh = _perm_matrix(_window_perm(H0, W0, WINDOW, shift), batch)
    c["P0_ns"] = jnp.asarray(P_ns)
    c["P0_ns_inv"] = jnp.asarray(P_ns.T.copy())
    c["P0_sh"] = jnp.asarray(P_sh)
    c["P0_sh_inv"] = jnp.asarray(P_sh.T.copy())
    c["A0"] = jnp.asarray(_tile_eye(batch, nW0, T))
    c["M0_ns"] = jnp.asarray(_block_mask(batch, nW0, T))
    c["M0_sh"] = jnp.asarray(
        _block_mask(batch, nW0, T, _shift_window_mask(H0, W0, WINDOW, shift)))

    for i, S in enumerate(_merge_selects(batch, H0, W0)):
        c[f"sel{i}"] = jnp.asarray(S)
    for q in range(4):
        E = np.zeros((EMBED, 4 * EMBED), np.float32)
        E[:, q * EMBED:(q + 1) * EMBED] = np.eye(EMBED, dtype=np.float32)
        c[f"emb{q}"] = jnp.asarray(E)

    c["A1"] = jnp.asarray(_tile_eye(batch, 1, T))
    c["M1"] = jnp.asarray(_block_mask(batch, 1, T))
    c["pool"] = jnp.asarray(_pool_matrix(batch, H1 * W1))
    return c


# ----------------------------- parameter init --------------------------------
def init_params(key):
    keys = iter(jax.random.split(key, 256))

    def lin(fi, fo):
        w = (jax.random.normal(next(keys), (fi, fo), DTYPE) * 0.02).astype(DTYPE)
        return w, jnp.zeros((1, fo), DTYPE)

    def ln(c):
        return jnp.ones((1, c), DTYPE), jnp.zeros((1, c), DTYPE)

    T = WINDOW * WINDOW
    params = {}
    params["patch_w"], params["patch_b"] = lin(PATCH * PATCH * IN_CHANS, EMBED)
    params["pe_ln_g"], params["pe_ln_b"] = ln(EMBED)

    params["stages"] = []
    for si, cfg in enumerate(STAGES):
        C, heads = cfg["dim"], cfg["heads"]
        blocks = []
        for _ in range(cfg["depth"]):
            b = {}
            b["ln1_g"], b["ln1_b"] = ln(C)
            b["qkv_w"], b["qkv_b"] = lin(C, 3 * C)
            b["rel_bias"] = (jax.random.normal(next(keys), (heads, T, T), DTYPE) * 0.02).astype(DTYPE)
            b["proj_w"], b["proj_b"] = lin(C, C)
            b["ln2_g"], b["ln2_b"] = ln(C)
            b["fc1_w"], b["fc1_b"] = lin(C, 4 * C)
            b["fc2_w"], b["fc2_b"] = lin(4 * C, C)
            blocks.append(b)
        stage = {"blocks": blocks}
        if si < len(STAGES) - 1:
            m = {}
            m["ln_g"], m["ln_b"] = ln(4 * C)
            m["red_w"], _ = lin(4 * C, 2 * C)                  # bias-free reduction
            stage["merge"] = m
        params["stages"].append(stage)

    params["norm_g"], params["norm_b"] = ln(NUM_FEATURES)
    params["head_w"], params["head_b"] = lin(NUM_FEATURES, HEAD_DIM)   # self.model.head
    params["dense_w"], params["dense_b"] = lin(HEAD_DIM, TARGET_DIM)   # self.dense
    return params


# ------------------ pure-JAX reference (for validation only) -----------------
def _ref_layernorm(x, g, b, eps=1e-5):
    mu = jnp.mean(x, axis=-1, keepdims=True)
    var = jnp.mean(jnp.square(x - mu), axis=-1, keepdims=True)
    return (x - mu) * jax.lax.rsqrt(var + eps) * g + b


def _ref_swin_block(x, p, H, W, heads, window, shift):
    B, L, C = x.shape
    T = window * window
    dh = C // heads
    nWh, nWw = H // window, W // window
    nW = nWh * nWw

    shortcut = x
    h = _ref_layernorm(x, p["ln1_g"], p["ln1_b"]).reshape(B, H, W, C)
    if shift > 0:
        h = jnp.roll(h, (-shift, -shift), axis=(1, 2))
    xw = h.reshape(B, nWh, window, nWw, window, C).transpose(0, 1, 3, 2, 4, 5)
    xw = xw.reshape(B * nW, T, C)

    qkv = jnp.dot(xw.reshape(-1, C), p["qkv_w"], precision="highest") + p["qkv_b"]
    qkv = qkv.reshape(B * nW, T, 3, heads, dh).transpose(2, 0, 3, 1, 4)
    q, k, v = qkv[0], qkv[1], qkv[2]                            # (BnW, heads, T, dh)

    s = jnp.einsum("whtd,whsd->whts", q * (dh ** -0.5), k, precision="highest")
    if shift > 0:
        mask = jnp.asarray(_shift_window_mask(H, W, window, shift))
        s = s.reshape(B, nW, heads, T, T) + p["rel_bias"][None, None] + mask[None, :, None]
        s = s.reshape(B * nW, heads, T, T)
    else:
        s = s + p["rel_bias"][None]
    a = jax.nn.softmax(s, axis=-1)
    o = jnp.einsum("whts,whsd->whtd", a, v, precision="highest")
    o = o.transpose(0, 2, 1, 3).reshape(B * nW * T, C)
    o = jnp.dot(o, p["proj_w"], precision="highest") + p["proj_b"]
    o = o.reshape(B, nWh, nWw, window, window, C).transpose(0, 1, 3, 2, 4, 5).reshape(B, H, W, C)
    if shift > 0:
        o = jnp.roll(o, (shift, shift), axis=(1, 2))
    x = shortcut + o.reshape(B, L, C)

    shortcut = x
    y = _ref_layernorm(x, p["ln2_g"], p["ln2_b"]).reshape(-1, C)
    y = _gelu(jnp.dot(y, p["fc1_w"], precision="highest") + p["fc1_b"])
    y = jnp.dot(y, p["fc2_w"], precision="highest") + p["fc2_b"]
    return shortcut + y.reshape(B, L, C)


def _ref_patch_merging(x, mp, H, W):
    B, L, C = x.shape
    h = x.reshape(B, H, W, C)
    x0 = h[:, 0::2, 0::2]
    x1 = h[:, 1::2, 0::2]
    x2 = h[:, 0::2, 1::2]
    x3 = h[:, 1::2, 1::2]
    cat = jnp.concatenate([x0, x1, x2, x3], axis=-1).reshape(-1, 4 * C)
    cat = _ref_layernorm(cat, mp["ln_g"], mp["ln_b"])
    red = jnp.dot(cat, mp["red_w"], precision="highest")
    return red.reshape(B, (H // 2) * (W // 2), 2 * C)


def pet2_forward_reference(x_nchw, params):
    B = x_nchw.shape[0]
    xp = _extract_patches(x_nchw)
    x = jnp.dot(xp, params["patch_w"], precision="highest") + params["patch_b"]
    x = _ref_layernorm(x, params["pe_ln_g"], params["pe_ln_b"])
    H = W = IMG // PATCH
    C = EMBED
    x = x.reshape(B, H * W, C)
    for si, cfg in enumerate(STAGES):
        for bi in range(cfg["depth"]):
            shift = 0 if (bi % 2 == 0 or WINDOW >= min(H, W)) else WINDOW // 2
            x = _ref_swin_block(x, params["stages"][si]["blocks"][bi], H, W,
                                cfg["heads"], WINDOW, shift)
        if si < len(STAGES) - 1:
            x = _ref_patch_merging(x, params["stages"][si]["merge"], H, W)
            H, W, C = H // 2, W // 2, C * 2
    x = _ref_layernorm(x, params["norm_g"], params["norm_b"])
    feat = jnp.mean(x, axis=1)
    h = jnp.dot(feat, params["head_w"], precision="highest") + params["head_b"]
    out = jnp.dot(h, params["dense_w"], precision="highest") + params["dense_b"]
    return jnp.squeeze(out, axis=-1)


# ----------------------------------- main -------------------------------------
if __name__ == "__main__":
    batch = 2
    params = init_params(jax.random.PRNGKey(42))
    consts = build_consts(batch)
    x = jax.random.normal(jax.random.PRNGKey(0), (batch, IN_CHANS, IMG, IMG), DTYPE)

    fwd = jax.jit(pet2_forward)
    out = jax.block_until_ready(fwd(x, {"p": params, "c": consts}))
    assert out.shape == (batch,), out.shape
    assert out.dtype == DTYPE, out.dtype

    # validate the fused Pallas kernel against a pure-JAX reference
    ref = jax.block_until_ready(jax.jit(pet2_forward_reference)(x, params))
    np.testing.assert_allclose(np.asarray(out), np.asarray(ref), rtol=5e-2, atol=5e-3)

    print("KERNEL_OK")
</pallas_src>

<mosaic_0001>
module attributes {stable_mosaic.version = 11 : i64} {
  func.func @_fused_kernel(%arg0: memref<32x48xf32, #tpu.memory_space<vmem>>, %arg1: memref<32x4xf32, #tpu.memory_space<vmem>>, %arg2: memref<8x4xf32, #tpu.memory_space<vmem>>, %arg3: memref<32x32xf32, #tpu.memory_space<vmem>>, %arg4: memref<32x32xf32, #tpu.memory_space<vmem>>, %arg5: memref<8x8xf32, #tpu.memory_space<vmem>>, %arg6: memref<32x32xf32, #tpu.memory_space<vmem>>, %arg7: memref<32x32xf32, #tpu.memory_space<vmem>>, %arg8: memref<32x32xf32, #tpu.memory_space<vmem>>, %arg9: memref<32x32xf32, #tpu.memory_space<vmem>>, %arg10: memref<32x128xf32, #tpu.memory_space<vmem>>, %arg11: memref<32x128xf32, #tpu.memory_space<vmem>>, %arg12: memref<32x128xf32, #tpu.memory_space<vmem>>, %arg13: memref<32x128xf32, #tpu.memory_space<vmem>>, %arg14: memref<2x8xf32, #tpu.memory_space<vmem>>, %arg15: memref<8x32xf32, #tpu.memory_space<vmem>>, %arg16: memref<8x32xf32, #tpu.memory_space<vmem>>, %arg17: memref<8x32xf32, #tpu.memory_space<vmem>>, %arg18: memref<8x32xf32, #tpu.memory_space<vmem>>, %arg19: memref<1x1xf32, #tpu.memory_space<vmem>>, %arg20: memref<128x1xf32, #tpu.memory_space<vmem>>, %arg21: memref<1x128xf32, #tpu.memory_space<vmem>>, %arg22: memref<64x128xf32, #tpu.memory_space<vmem>>, %arg23: memref<1x64xf32, #tpu.memory_space<vmem>>, %arg24: memref<1x64xf32, #tpu.memory_space<vmem>>, %arg25: memref<1x32xf32, #tpu.memory_space<vmem>>, %arg26: memref<48x32xf32, #tpu.memory_space<vmem>>, %arg27: memref<1x32xf32, #tpu.memory_space<vmem>>, %arg28: memref<1x32xf32, #tpu.memory_space<vmem>>, %arg29: memref<1x128xf32, #tpu.memory_space<vmem>>, %arg30: memref<32x128xf32, #tpu.memory_space<vmem>>, %arg31: memref<1x32xf32, #tpu.memory_space<vmem>>, %arg32: memref<128x32xf32, #tpu.memory_space<vmem>>, %arg33: memref<1x32xf32, #tpu.memory_space<vmem>>, %arg34: memref<1x32xf32, #tpu.memory_space<vmem>>, %arg35: memref<1x32xf32, #tpu.memory_space<vmem>>, %arg36: memref<1x32xf32, #tpu.memory_space<vmem>>, %arg37: memref<1x32xf32, #tpu.memory_space<vmem>>, %arg38: memref<32x32xf32, #tpu.memory_space<vmem>>, %arg39: memref<1x96xf32, #tpu.memory_space<vmem>>, %arg40: memref<32x96xf32, #tpu.memory_space<vmem>>, %arg41: memref<2x4x4xf32, #tpu.memory_space<vmem>>, %arg42: memref<1x128xf32, #tpu.memory_space<vmem>>, %arg43: memref<32x128xf32, #tpu.memory_space<vmem>>, %arg44: memref<1x32xf32, #tpu.memory_space<vmem>>, %arg45: memref<128x32xf32, #tpu.memory_space<vmem>>, %arg46: memref<1x32xf32, #tpu.memory_space<vmem>>, %arg47: memref<1x32xf32, #tpu.memory_space<vmem>>, %arg48: memref<1x32xf32, #tpu.memory_space<vmem>>, %arg49: memref<1x32xf32, #tpu.memory_space<vmem>>, %arg50: memref<1x32xf32, #tpu.memory_space<vmem>>, %arg51: memref<32x32xf32, #tpu.memory_space<vmem>>, %arg52: memref<1x96xf32, #tpu.memory_space<vmem>>, %arg53: memref<32x96xf32, #tpu.memory_space<vmem>>, %arg54: memref<2x4x4xf32, #tpu.memory_space<vmem>>, %arg55: memref<1x128xf32, #tpu.memory_space<vmem>>, %arg56: memref<1x128xf32, #tpu.memory_space<vmem>>, %arg57: memref<128x64xf32, #tpu.memory_space<vmem>>, %arg58: memref<1x256xf32, #tpu.memory_space<vmem>>, %arg59: memref<64x256xf32, #tpu.memory_space<vmem>>, %arg60: memref<1x64xf32, #tpu.memory_space<vmem>>, %arg61: memref<256x64xf32, #tpu.memory_space<vmem>>, %arg62: memref<1x64xf32, #tpu.memory_space<vmem>>, %arg63: memref<1x64xf32, #tpu.memory_space<vmem>>, %arg64: memref<1x64xf32, #tpu.memory_space<vmem>>, %arg65: memref<1x64xf32, #tpu.memory_space<vmem>>, %arg66: memref<1x64xf32, #tpu.memory_space<vmem>>, %arg67: memref<64x64xf32, #tpu.memory_space<vmem>>, %arg68: memref<1x192xf32, #tpu.memory_space<vmem>>, %arg69: memref<64x192xf32, #tpu.memory_space<vmem>>, %arg70: memref<4x4x4xf32, #tpu.memory_space<vmem>>, %arg71: memref<1x256xf32, #tpu.memory_space<vmem>>, %arg72: memref<64x256xf32, #tpu.memory_space<vmem>>, %arg73: memref<1x64xf32, #tpu.memory_space<vmem>>, %arg74: memref<256x64xf32, #tpu.memory_space<vmem>>, %arg75: memref<1x64xf32, #tpu.memory_space<vmem>>, %arg76: memref<1x64xf32, #tpu.memory_space<vmem>>, %arg77: memref<1x64xf32, #tpu.memory_space<vmem>>, %arg78: memref<1x64xf32, #tpu.memory_space<vmem>>, %arg79: memref<1x64xf32, #tpu.memory_space<vmem>>, %arg80: memref<64x64xf32, #tpu.memory_space<vmem>>, %arg81: memref<1x192xf32, #tpu.memory_space<vmem>>, %arg82: memref<64x192xf32, #tpu.memory_space<vmem>>, %arg83: memref<4x4x4xf32, #tpu.memory_space<vmem>>, %arg84: memref<2x1xf32, #tpu.memory_space<vmem>>) attributes {dimension_semantics = [], scalar_prefetch = 0 : i64, scratch_operands = 0 : i64, tpu.core_type = #tpu.core_type<tc>} {
    %c0 = arith.constant 0 : index
    %c0_0 = arith.constant 0 : index
    %0 = vector.load %arg0[%c0, %c0_0] : memref<32x48xf32, #tpu.memory_space<vmem>>, vector<32x48xf32>
    %c0_1 = arith.constant 0 : index
    %c0_2 = arith.constant 0 : index
    %1 = vector.load %arg26[%c0_1, %c0_2] : memref<48x32xf32, #tpu.memory_space<vmem>>, vector<48x32xf32>
    %cst = arith.constant dense<0.000000e+00> : vector<32x32xf32>
    %2 = tpu.matmul %0, %1, %cst {dimension_numbers = #tpu.dot_dimension_numbers<[1], [0], [0], [1], [0, 0, 1, 1], [], []>} : vector<32x48xf32>, vector<48x32xf32>, vector<32x32xf32> -> vector<32x32xf32>
    %c0_3 = arith.constant 0 : index
    %c0_4 = arith.constant 0 : index
    %3 = vector.load %arg25[%c0_3, %c0_4] : memref<1x32xf32, #tpu.memory_space<vmem>>, vector<1x32xf32>
    %4 = vector.broadcast %3 : vector<1x32xf32> to vector<32x32xf32>
    %5 = arith.addf %2, %4 : vector<32x32xf32>
    %cst_5 = arith.constant dense<0.000000e+00> : vector<32xf32>
    %6 = vector.multi_reduction <add>, %5, %cst_5 [1] : vector<32x32xf32> to vector<32xf32>
    %7 = vector.shape_cast %6 : vector<32xf32> to vector<32x1xf32>
    %cst_6 = arith.constant 3.200000e+01 : f32
    %8 = vector.broadcast %cst_6 : f32 to vector<32x1xf32>
    %9 = arith.divf %7, %8 : vector<32x1xf32>
    %10 = vector.broadcast %9 : vector<32x1xf32> to vector<32x32xf32>
    %11 = arith.subf %5, %10 : vector<32x32xf32>
    %12 = arith.mulf %11, %11 : vector<32x32xf32>
    %cst_7 = arith.constant dense<0.000000e+00> : vector<32xf32>
    %13 = vector.multi_reduction <add>, %12, %cst_7 [1] : vector<32x32xf32> to vector<32xf32>
    %14 = vector.shape_cast %13 : vector<32xf32> to vector<32x1xf32>
    %cst_8 = arith.constant 3.200000e+01 : f32
    %15 = vector.broadcast %cst_8 : f32 to vector<32x1xf32>
    %16 = arith.divf %14, %15 : vector<32x1xf32>
    %17 = vector.broadcast %9 : vector<32x1xf32> to vector<32x32xf32>
    %18 = arith.subf %5, %17 : vector<32x32xf32>
    %cst_9 = arith.constant 9.99999974E-6 : f32
    %19 = vector.broadcast %cst_9 : f32 to vector<32x1xf32>
    %20 = arith.addf %16, %19 : vector<32x1xf32>
    %21 = math.rsqrt %20 : vector<32x1xf32>
    %22 = vector.broadcast %21 : vector<32x1xf32> to vector<32x32xf32>
    %23 = arith.mulf %18, %22 : vector<32x32xf32>
    %c0_10 = arith.constant 0 : index
    %c0_11 = arith.constant 0 : index
    %24 = vector.load %arg28[%c0_10, %c0_11] : memref<1x32xf32, #tpu.memory_space<vmem>>, vector<1x32xf32>
    %25 = vector.broadcast %24 : vector<1x32xf32> to vector<32x32xf32>
    %26 = arith.mulf %23, %25 : vector<32x32xf32>
    %c0_12 = arith.constant 0 : index
    %c0_13 = arith.constant 0 : index
    %27 = vector.load %arg27[%c0_12, %c0_13] : memref<1x32xf32, #tpu.memory_space<vmem>>, vector<1x32xf32>
    %28 = vector.broadcast %27 : vector<1x32xf32> to vector<32x32xf32>
    %29 = arith.addf %26, %28 : vector<32x32xf32>
    %c0_14 = arith.constant 0 : index
    %c0_15 = arith.constant 0 : index
    %30 = vector.load %arg1[%c0_14, %c0_15] : memref<32x4xf32, #tpu.memory_space<vmem>>, vector<32x4xf32>
    %c0_16 = arith.constant 0 : index
    %c0_17 = arith.constant 0 : index
    %31 = vector.load %arg6[%c0_16, %c0_17] : memref<32x32xf32, #tpu.memory_space<vmem>>, vector<32x32xf32>
    %c0_18 = arith.constant 0 : index
    %c0_19 = arith.constant 0 : index
    %32 = vector.load %arg7[%c0_18, %c0_19] : memref<32x32xf32, #tpu.memory_space<vmem>>, vector<32x32xf32>
    %c0_20 = arith.constant 0 : index
    %c0_21 = arith.constant 0 : index
    %33 = vector.load %arg3[%c0_20, %c0_21] : memref<32x32xf32, #tpu.memory_space<vmem>>, vector<32x32xf32>
    %cst_22 = arith.constant dense<0.000000e+00> : vector<32xf32>
    %34 = vector.multi_reduction <add>, %29, %cst_22 [1] : vector<32x32xf32> to vector<32xf32>
    %35 = vector.shape_cast %34 : vector<32xf32> to vector<32x1xf32>
    %cst_23 = arith.constant 3.200000e+01 : f32
    %36 = vector.broadcast %cst_23 : f32 to vector<32x1xf32>
    %37 = arith.divf %35, %36 : vector<32x1xf32>
    %38 = vector.broadcast %37 : vector<32x1xf32> to vector<32x32xf32>
    %39 = arith.subf %29, %38 : vector<32x32xf32>
    %40 = arith.mulf %39, %39 : vector<32x32xf32>
    %cst_24 = arith.constant dense<0.000000e+00> : vector<32xf32>
    %41 = vector.multi_reduction <add>, %40, %cst_24 [1] : vector<32x32xf32> to vector<32xf32>
    %42 = vector.shape_cast %41 : vector<32xf32> to vector<32x1xf32>
    %cst_25 = arith.constant 3.200000e+01 : f32
    %43 = vector.broadcast %cst_25 : f32 to vector<32x1xf32>
    %44 = arith.divf %42, %43 : vector<32x1xf32>
    %45 = vector.broadcast %37 : vector<32x1xf32> to vector<32x32xf32>
    %46 = arith.subf %29, %45 : vector<32x32xf32>
    %cst_26 = arith.constant 9.99999974E-6 : f32
    %47 = vector.broadcast %cst_26 : f32 to vector<32x1xf32>
    %48 = arith.addf %44, %47 : vector<32x1xf32>
    %49 = math.rsqrt %48 : vector<32x1xf32>
    %50 = vector.broadcast %49 : vector<32x1xf32> to vector<32x32xf32>
    %51 = arith.mulf %46, %50 : vector<32x32xf32>
    %c0_27 = arith.constant 0 : index
    %c0_28 = arith.constant 0 : index
    %52 = vector.load %arg34[%c0_27, %c0_28] : memref<1x32xf32, #tpu.memory_space<vmem>>, vector<1x32xf32>
    %53 = vector.broadcast %52 : vector<1x32xf32> to vector<32x32xf32>
    %54 = arith.mulf %51, %53 : vector<32x32xf32>
    %c0_29 = arith.constant 0 : index
    %c0_30 = arith.constant 0 : index
    %55 = vector.load %arg33[%c0_29, %c0_30] : memref<1x32xf32, #tpu.memory_space<vmem>>, vector<1x32xf32>
    %56 = vector.broadcast %55 : vector<1x32xf32> to vector<32x32xf32>
    %57 = arith.addf %54, %56 : vector<32x32xf32>
    %cst_31 = arith.constant dense<0.000000e+00> : vector<32x32xf32>
    %58 = tpu.matmul %31, %57, %cst_31 {dimension_numbers = #tpu.dot_dimension_numbers<[1], [0], [0], [1], [0, 0, 1, 1], [], []>} : vector<32x32xf32>, vector<32x32xf32>, vector<32x32xf32> -> vector<32x32xf32>
    %c0_32 = arith.constant 0 : index
    %c0_33 = arith.constant 0 : index
    %59 = vector.load %arg40[%c0_32, %c0_33] : memref<32x96xf32, #tpu.memory_space<vmem>>, vector<32x96xf32>
    %cst_34 = arith.constant dense<0.000000e+00> : vector<32x96xf32>
    %60 = tpu.matmul %58, %59, %cst_34 {dimension_numbers = #tpu.dot_dimension_numbers<[1], [0], [0], [1], [0, 0, 1, 1], [], []>} : vector<32x32xf32>, vector<32x96xf32>, vector<32x96xf32> -> vector<32x96xf32>
    %c0_35 = arith.constant 0 : index
    %c0_36 = arith.constant 0 : index
    %61 = vector.load %arg39[%c0_35, %c0_36] : memref<1x96xf32, #tpu.memory_space<vmem>>, vector<1x96xf32>
    %62 = vector.broadcast %61 : vector<1x96xf32> to vector<32x96xf32>
    %63 = arith.addf %60, %62 : vector<32x96xf32>
    %c0_37 = arith.constant 0 : index
    %c0_38 = arith.constant 0 : index
    %64 = vector.load %arg38[%c0_37, %c0_38] : memref<32x32xf32, #tpu.memory_space<vmem>>, vector<32x32xf32>
    %65 = vector.extract_strided_slice %63 {offsets = [0, 0], sizes = [32, 16], strides = [1, 1]} : vector<32x96xf32> to vector<32x16xf32>
    %cst_39 = arith.constant 2.500000e-01 : f32
    %66 = vector.broadcast %cst_39 : f32 to vector<32x16xf32>
    %67 = arith.mulf %65, %66 : vector<32x16xf32>
    %68 = vector.extract_strided_slice %63 {offsets = [0, 32], sizes = [32, 16], strides = [1, 1]} : vector<32x96xf32> to vector<32x16xf32>
    %69 = vector.extract_strided_slice %63 {offsets = [0, 64], sizes = [32, 16], strides = [1, 1]} : vector<32x96xf32> to vector<32x16xf32>
    %c0_40 = arith.constant 0 : index
    %c0_41 = arith.constant 0 : index
    %c0_42 = arith.constant 0 : index
    %70 = vector.load %arg41[%c0_40, %c0_41, %c0_42] : memref<2x4x4xf32, #tpu.memory_space<vmem>>, vector<1x4x4xf32>
    %71 = vector.shape_cast %70 : vector<1x4x4xf32> to vector<4x4xf32>
    %cst_43 = arith.constant dense<0.000000e+00> : vector<32x32xf32>
    %72 = tpu.matmul %67, %68, %cst_43 {dimension_numbers = #tpu.dot_dimension_numbers<[1], [1], [0], [0], [0, 0, 1, 0], [], []>} : vector<32x16xf32>, vector<32x16xf32>, vector<32x32xf32> -> vector<32x32xf32>
    %cst_44 = arith.constant dense<0.000000e+00> : vector<32x4xf32>
    %73 = tpu.matmul %30, %71, %cst_44 {dimension_numbers = #tpu.dot_dimension_numbers<[1], [0], [0], [1], [0, 0, 1, 1], [], []>} : vector<32x4xf32>, vector<4x4xf32>, vector<32x4xf32> -> vector<32x4xf32>
    %cst_45 = arith.constant dense<0.000000e+00> : vector<32x32xf32>
    %74 = tpu.matmul %73, %30, %cst_45 {dimension_numbers = #tpu.dot_dimension_numbers<[1], [1], [0], [0], [0, 0, 1, 0], [], []>} : vector<32x4xf32>, vector<32x4xf32>, vector<32x32xf32> -> vector<32x32xf32>
    %75 = arith.addf %72, %74 : vector<32x32xf32>
    %76 = arith.addf %75, %33 : vector<32x32xf32>
    %cst_46 = arith.constant dense<0xFF800000> : vector<32xf32>
    %77 = vector.multi_reduction <maximumf>, %76, %cst_46 [1] : vector<32x32xf32> to vector<32xf32>
    %78 = vector.shape_cast %77 : vector<32xf32> to vector<32x1xf32>
    %79 = vector.broadcast %78 : vector<32x1xf32> to vector<32x32xf32>
    %80 = arith.subf %76, %79 : vector<32x32xf32>
    %81 = math.exp %80 : vector<32x32xf32>
    %cst_47 = arith.constant dense<0.000000e+00> : vector<32xf32>
    %82 = vector.multi_reduction <add>, %81, %cst_47 [1] : vector<32x32xf32> to vector<32xf32>
    %83 = vector.shape_cast %82 : vector<32xf32> to vector<32x1xf32>
    %84 = tpu.reciprocal %83 {approx = true} : vector<32x1xf32> -> vector<32x1xf32>
    %85 = vector.broadcast %84 : vector<32x1xf32> to vector<32x32xf32>
    %86 = arith.mulf %81, %85 : vector<32x32xf32>
    %cst_48 = arith.constant dense<0.000000e+00> : vector<32x16xf32>
    %87 = tpu.matmul %86, %69, %cst_48 {dimension_numbers = #tpu.dot_dimension_numbers<[1], [0], [0], [1], [0, 0, 1, 1], [], []>} : vector<32x32xf32>, vector<32x16xf32>, vector<32x16xf32> -> vector<32x16xf32>
    %88 = vector.extract_strided_slice %64 {offsets = [0, 0], sizes = [16, 32], strides = [1, 1]} : vector<32x32xf32> to vector<16x32xf32>
    %cst_49 = arith.constant dense<0.000000e+00> : vector<32x32xf32>
    %89 = tpu.matmul %87, %88, %cst_49 {dimension_numbers = #tpu.dot_dimension_numbers<[1], [0], [0], [1], [0, 0, 1, 1], [], []>} : vector<32x16xf32>, vector<16x32xf32>, vector<32x32xf32> -> vector<32x32xf32>
    %90 = vector.extract_strided_slice %63 {offsets = [0, 16], sizes = [32, 16], strides = [1, 1]} : vector<32x96xf32> to vector<32x16xf32>
    %cst_50 = arith.constant 2.500000e-01 : f32
    %91 = vector.broadcast %cst_50 : f32 to vector<32x16xf32>
    %92 = arith.mulf %90, %91 : vector<32x16xf32>
    %93 = vector.extract_strided_slice %63 {offsets = [0, 48], sizes = [32, 16], strides = [1, 1]} : vector<32x96xf32> to vector<32x16xf32>
    %94 = vector.extract_strided_slice %63 {offsets = [0, 80], sizes = [32, 16], strides = [1, 1]} : vector<32x96xf32> to vector<32x16xf32>
    %c1 = arith.constant 1 : index
    %c0_51 = arith.constant 0 : index
    %c0_52 = arith.constant 0 : index
    %95 = vector.load %arg41[%c1, %c0_51, %c0_52] : memref<2x4x4xf32, #tpu.memory_space<vmem>>, vector<1x4x4xf32>
    %96 = vector.shape_cast %95 : vector<1x4x4xf32> to vector<4x4xf32>
    %cst_53 = arith.constant dense<0.000000e+00> : vector<32x32xf32>
    %97 = tpu.matmul %92, %93, %cst_53 {dimension_numbers = #tpu.dot_dimension_numbers<[1], [1], [0], [0], [0, 0, 1, 0], [], []>} : vector<32x16xf32>, vector<32x16xf32>, vector<32x32xf32> -> vector<32x32xf32>
    %cst_54 = arith.constant dense<0.000000e+00> : vector<32x4xf32>
    %98 = tpu.matmul %30, %96, %cst_54 {dimension_numbers = #tpu.dot_dimension_numbers<[1], [0], [0], [1], [0, 0, 1, 1], [], []>} : vector<32x4xf32>, vector<4x4xf32>, vector<32x4xf32> -> vector<32x4xf32>
    %cst_55 = arith.constant dense<0.000000e+00> : vector<32x32xf32>
    %99 = tpu.matmul %98, %30, %cst_55 {dimension_numbers = #tpu.dot_dimension_numbers<[1], [1], [0], [0], [0, 0, 1, 0], [], []>} : vector<32x4xf32>, vector<32x4xf32>, vector<32x32xf32> -> vector<32x32xf32>
    %100 = arith.addf %97, %99 : vector<32x32xf32>
    %101 = arith.addf %100, %33 : vector<32x32xf32>
    %cst_56 = arith.constant dense<0xFF800000> : vector<32xf32>
    %102 = vector.multi_reduction <maximumf>, %101, %cst_56 [1] : vector<32x32xf32> to vector<32xf32>
    %103 = vector.shape_cast %102 : vector<32xf32> to vector<32x1xf32>
    %104 = vector.broadcast %103 : vector<32x1xf32> to vector<32x32xf32>
    %105 = arith.subf %101, %104 : vector<32x32xf32>
    %106 = math.exp %105 : vector<32x32xf32>
    %cst_57 = arith.constant dense<0.000000e+00> : vector<32xf32>
    %107 = vector.multi_reduction <add>, %106, %cst_57 [1] : vector<32x32xf32> to vector<32xf32>
    %108 = vector.shape_cast %107 : vector<32xf32> to vector<32x1xf32>
    %109 = tpu.reciprocal %108 {approx = true} : vector<32x1xf32> -> vector<32x1xf32>
    %110 = vector.broadcast %109 : vector<32x1xf32> to vector<32x32xf32>
    %111 = arith.mulf %106, %110 : vector<32x32xf32>
    %cst_58 = arith.constant dense<0.000000e+00> : vector<32x16xf32>
    %112 = tpu.matmul %111, %94, %cst_58 {dimension_numbers = #tpu.dot_dimension_numbers<[1], [0], [0], [1], [0, 0, 1, 1], [], []>} : vector<32x32xf32>, vector<32x16xf32>, vector<32x16xf32> -> vector<32x16xf32>
    %113 = vector.extract_strided_slice %64 {offsets = [16, 0], sizes = [16, 32], strides = [1, 1]} : vector<32x32xf32> to vector<16x32xf32>
    %cst_59 = arith.constant dense<0.000000e+00> : vector<32x32xf32>
    %114 = tpu.matmul %112, %113, %cst_59 {dimension_numbers = #tpu.dot_dimension_numbers<[1], [0], [0], [1], [0, 0, 1, 1], [], []>} : vector<32x16xf32>, vector<16x32xf32>, vector<32x32xf32> -> vector<32x32xf32>
    %115 = arith.addf %89, %114 : vector<32x32xf32>
    %c0_60 = arith.constant 0 : index
    %c0_61 = arith.constant 0 : index
    %116 = vector.load %arg37[%c0_60, %c0_61] : memref<1x32xf32, #tpu.memory_space<vmem>>, vector<1x32xf32>
    %117 = vector.broadcast %116 : vector<1x32xf32> to vector<32x32xf32>
    %118 = arith.addf %115, %117 : vector<32x32xf32>
    %cst_62 = arith.constant dense<0.000000e+00> : vector<32x32xf32>
    %119 = tpu.matmul %32, %118, %cst_62 {dimension_numbers = #tpu.dot_dimension_numbers<[1], [0], [0], [1], [0, 0, 1, 1], [], []>} : vector<32x32xf32>, vector<32x32xf32>, vector<32x32xf32> -> vector<32x32xf32>
    %120 = arith.addf %29, %119 : vector<32x32xf32>
    %cst_63 = arith.constant dense<0.000000e+00> : vector<32xf32>
    %121 = vector.multi_reduction <add>, %120, %cst_63 [1] : vector<32x32xf32> to vector<32xf32>
    %122 = vector.shape_cast %121 : vector<32xf32> to vector<32x1xf32>
    %cst_64 = arith.constant 3.200000e+01 : f32
    %123 = vector.broadcast %cst_64 : f32 to vector<32x1xf32>
    %124 = arith.divf %122, %123 : vector<32x1xf32>
    %125 = vector.broadcast %124 : vector<32x1xf32> to vector<32x32xf32>
    %126 = arith.subf %120, %125 : vector<32x32xf32>
    %127 = arith.mulf %126, %126 : vector<32x32xf32>
    %cst_65 = arith.constant dense<0.000000e+00> : vector<32xf32>
    %128 = vector.multi_reduction <add>, %127, %cst_65 [1] : vector<32x32xf32> to vector<32xf32>
    %129 = vector.shape_cast %128 : vector<32xf32> to vector<32x1xf32>
    %cst_66 = arith.constant 3.200000e+01 : f32
    %130 = vector.broadcast %cst_66 : f32 to vector<32x1xf32>
    %131 = arith.divf %129, %130 : vector<32x1xf32>
    %132 = vector.broadcast %124 : vector<32x1xf32> to vector<32x32xf32>
    %133 = arith.subf %120, %132 : vector<32x32xf32>
    %cst_67 = arith.constant 9.99999974E-6 : f32
    %134 = vector.broadcast %cst_67 : f32 to vector<32x1xf32>
    %135 = arith.addf %131, %134 : vector<32x1xf32>
    %136 = math.rsqrt %135 : vector<32x1xf32>
    %137 = vector.broadcast %136 : vector<32x1xf32> to vector<32x32xf32>
    %138 = arith.mulf %133, %137 : vector<32x32xf32>
    %c0_68 = arith.constant 0 : index
    %c0_69 = arith.constant 0 : index
    %139 = vector.load %arg36[%c0_68, %c0_69] : memref<1x32xf32, #tpu.memory_space<vmem>>, vector<1x32xf32>
    %140 = vector.broadcast %139 : vector<1x32xf32> to vector<32x32xf32>
    %141 = arith.mulf %138, %140 : vector<32x32xf32>
    %c0_70 = arith.constant 0 : index
    %c0_71 = arith.constant 0 : index
    %142 = vector.load %arg35[%c0_70, %c0_71] : memref<1x32xf32, #tpu.memory_space<vmem>>, vector<1x32xf32>
    %143 = vector.broadcast %142 : vector<1x32xf32> to vector<32x32xf32>
    %144 = arith.addf %141, %143 : vector<32x32xf32>
    %c0_72 = arith.constant 0 : index
    %c0_73 = arith.constant 0 : index
    %145 = vector.load %arg30[%c0_72, %c0_73] : memref<32x128xf32, #tpu.memory_space<vmem>>, vector<32x128xf32>
    %cst_74 = arith.constant dense<0.000000e+00> : vector<32x128xf32>
    %146 = tpu.matmul %144, %145, %cst_74 {dimension_numbers = #tpu.dot_dimension_numbers<[1], [0], [0], [1], [0, 0, 1, 1], [], []>} : vector<32x32xf32>, vector<32x128xf32>, vector<32x128xf32> -> vector<32x128xf32>
    %c0_75 = arith.constant 0 : index
    %c0_76 = arith.constant 0 : index
    %147 = vector.load %arg29[%c0_75, %c0_76] : memref<1x128xf32, #tpu.memory_space<vmem>>, vector<1x128xf32>
    %148 = vector.broadcast %147 : vector<1x128xf32> to vector<32x128xf32>
    %149 = arith.addf %146, %148 : vector<32x128xf32>
    %cst_77 = arith.constant 5.000000e-01 : f32
    %150 = vector.broadcast %cst_77 : f32 to vector<32x128xf32>
    %151 = arith.mulf %150, %149 : vector<32x128xf32>
    %cst_78 = arith.constant 4.471500e-02 : f32
    %152 = vector.broadcast %cst_78 : f32 to vector<32x128xf32>
    %153 = arith.mulf %152, %149 : vector<32x128xf32>
    %154 = arith.mulf %153, %149 : vector<32x128xf32>
    %155 = arith.mulf %154, %149 : vector<32x128xf32>
    %156 = arith.addf %149, %155 : vector<32x128xf32>
    %cst_79 = arith.constant 0.797884583 : f32
    %157 = vector.broadcast %cst_79 : f32 to vector<32x128xf32>
    %158 = arith.mulf %157, %156 : vector<32x128xf32>
    %159 = math.tanh %158 : vector<32x128xf32>
    %cst_80 = arith.constant 1.000000e+00 : f32
    %160 = vector.broadcast %cst_80 : f32 to vector<32x128xf32>
    %161 = arith.addf %160, %159 : vector<32x128xf32>
    %162 = arith.mulf %151, %161 : vector<32x128xf32>
    %c0_81 = arith.constant 0 : index
    %c0_82 = arith.constant 0 : index
    %163 = vector.load %arg32[%c0_81, %c0_82] : memref<128x32xf32, #tpu.memory_space<vmem>>, vector<128x32xf32>
    %cst_83 = arith.constant dense<0.000000e+00> : vector<32x32xf32>
    %164 = tpu.matmul %162, %163, %cst_83 {dimension_numbers = #tpu.dot_dimension_numbers<[1], [0], [0], [1], [0, 0, 1, 1], [], []>} : vector<32x128xf32>, vector<128x32xf32>, vector<32x32xf32> -> vector<32x32xf32>
    %c0_84 = arith.constant 0 : index
    %c0_85 = arith.constant 0 : index
    %165 = vector.load %arg31[%c0_84, %c0_85] : memref<1x32xf32, #tpu.memory_space<vmem>>, vector<1x32xf32>
    %166 = vector.broadcast %165 : vector<1x32xf32> to vector<32x32xf32>
    %167 = arith.addf %164, %166 : vector<32x32xf32>
    %168 = arith.addf %120, %167 : vector<32x32xf32>
    %c0_86 = arith.constant 0 : index
    %c0_87 = arith.constant 0 : index
    %169 = vector.load %arg8[%c0_86, %c0_87] : memref<32x32xf32, #tpu.memory_space<vmem>>, vector<32x32xf32>
    %c0_88 = arith.constant 0 : index
    %c0_89 = arith.constant 0 : index
    %170 = vector.load %arg9[%c0_88, %c0_89] : memref<32x32xf32, #tpu.memory_space<vmem>>, vector<32x32xf32>
    %c0_90 = arith.constant 0 : index
    %c0_91 = arith.constant 0 : index
    %171 = vector.load %arg4[%c0_90, %c0_91] : memref<32x32xf32, #tpu.memory_space<vmem>>, vector<32x32xf32>
    %cst_92 = arith.constant dense<0.000000e+00> : vector<32xf32>
    %172 = vector.multi_reduction <add>, %168, %cst_92 [1] : vector<32x32xf32> to vector<32xf32>
    %173 = vector.shape_cast %172 : vector<32xf32> to vector<32x1xf32>
    %cst_93 = arith.constant 3.200000e+01 : f32
    %174 = vector.broadcast %cst_93 : f32 to vector<32x1xf32>
    %175 = arith.divf %173, %174 : vector<32x1xf32>
    %176 = vector.broadcast %175 : vector<32x1xf32> to vector<32x32xf32>
    %177 = arith.subf %168, %176 : vector<32x32xf32>
    %178 = arith.mulf %177, %177 : vector<32x32xf32>
    %cst_94 = arith.constant dense<0.000000e+00> : vector<32xf32>
    %179 = vector.multi_reduction <add>, %178, %cst_94 [1] : vector<32x32xf32> to vector<32xf32>
    %180 = vector.shape_cast %179 : vector<32xf32> to vector<32x1xf32>
    %cst_95 = arith.constant 3.200000e+01 : f32
    %181 = vector.broadcast %cst_95 : f32 to vector<32x1xf32>
    %182 = arith.divf %180, %181 : vector<32x1xf32>
    %183 = vector.broadcast %175 : vector<32x1xf32> to vector<32x32xf32>
    %184 = arith.subf %168, %183 : vector<32x32xf32>
    %cst_96 = arith.constant 9.99999974E-6 : f32
    %185 = vector.broadcast %cst_96 : f32 to vector<32x1xf32>
    %186 = arith.addf %182, %185 : vector<32x1xf32>
    %187 = math.rsqrt %186 : vector<32x1xf32>
    %188 = vector.broadcast %187 : vector<32x1xf32> to vector<32x32xf32>
    %189 = arith.mulf %184, %188 : vector<32x32xf32>
    %c0_97 = arith.constant 0 : index
    %c0_98 = arith.constant 0 : index
    %190 = vector.load %arg47[%c0_97, %c0_98] : memref<1x32xf32, #tpu.memory_space<vmem>>, vector<1x32xf32>
    %191 = vector.broadcast %190 : vector<1x32xf32> to vector<32x32xf32>
    %192 = arith.mulf %189, %191 : vector<32x32xf32>
    %c0_99 = arith.constant 0 : index
    %c0_100 = arith.constant 0 : index
    %193 = vector.load %arg46[%c0_99, %c0_100] : memref<1x32xf32, #tpu.memory_space<vmem>>, vector<1x32xf32>
    %194 = vector.broadcast %193 : vector<1x32xf32> to vector<32x32xf32>
    %195 = arith.addf %192, %194 : vector<32x32xf32>
    %cst_101 = arith.constant dense<0.000000e+00> : vector<32x32xf32>
    %196 = tpu.matmul %169, %195, %cst_101 {dimension_numbers = #tpu.dot_dimension_numbers<[1], [0], [0], [1], [0, 0, 1, 1], [], []>} : vector<32x32xf32>, vector<32x32xf32>, vector<32x32xf32> -> vector<32x32xf32>
    %c0_102 = arith.constant 0 : index
    %c0_103 = arith.constant 0 : index
    %197 = vector.load %arg53[%c0_102, %c0_103] : memref<32x96xf32, #tpu.memory_space<vmem>>, vector<32x96xf32>
    %cst_104 = arith.constant dense<0.000000e+00> : vector<32x96xf32>
    %198 = tpu.matmul %196, %197, %cst_104 {dimension_numbers = #tpu.dot_dimension_numbers<[1], [0], [0], [1], [0, 0, 1, 1], [], []>} : vector<32x32xf32>, vector<32x96xf32>, vector<32x96xf32> -> vector<32x96xf32>
    %c0_105 = arith.constant 0 : index
    %c0_106 = arith.constant 0 : index
    %199 = vector.load %arg52[%c0_105, %c0_106] : memref<1x96xf32, #tpu.memory_space<vmem>>, vector<1x96xf32>
    %200 = vector.broadcast %199 : vector<1x96xf32> to vector<32x96xf32>
    %201 = arith.addf %198, %200 : vector<32x96xf32>
    %c0_107 = arith.constant 0 : index
    %c0_108 = arith.constant 0 : index
    %202 = vector.load %arg51[%c0_107, %c0_108] : memref<32x32xf32, #tpu.memory_space<vmem>>, vector<32x32xf32>
    %203 = vector.extract_strided_slice %201 {offsets = [0, 0], sizes = [32, 16], strides = [1, 1]} : vector<32x96xf32> to vector<32x16xf32>
    %cst_109 = arith.constant 2.500000e-01 : f32
    %204 = vector.broadcast %cst_109 : f32 to vector<32x16xf32>
    %205 = arith.mulf %203, %204 : vector<32x16xf32>
    %206 = vector.extract_strided_slice %201 {offsets = [0, 32], sizes = [32, 16], strides = [1, 1]} : vector<32x96xf32> to vector<32x16xf32>
    %207 = vector.extract_strided_slice %201 {offsets = [0, 64], sizes = [32, 16], strides = [1, 1]} : vector<32x96xf32> to vector<32x16xf32>
    %c0_110 = arith.constant 0 : index
    %c0_111 = arith.constant 0 : index
    %c0_112 = arith.constant 0 : index
    %208 = vector.load %arg54[%c0_110, %c0_111, %c0_112] : memref<2x4x4xf32, #tpu.memory_space<vmem>>, vector<1x4x4xf32>
    %209 = vector.shape_cast %208 : vector<1x4x4xf32> to vector<4x4xf32>
    %cst_113 = arith.constant dense<0.000000e+00> : vector<32x32xf32>
    %210 = tpu.matmul %205, %206, %cst_113 {dimension_numbers = #tpu.dot_dimension_numbers<[1], [1], [0], [0], [0, 0, 1, 0], [], []>} : vector<32x16xf32>, vector<32x16xf32>, vector<32x32xf32> -> vector<32x32xf32>
    %cst_114 = arith.constant dense<0.000000e+00> : vector<32x4xf32>
    %211 = tpu.matmul %30, %209, %cst_114 {dimension_numbers = #tpu.dot_dimension_numbers<[1], [0], [0], [1], [0, 0, 1, 1], [], []>} : vector<32x4xf32>, vector<4x4xf32>, vector<32x4xf32> -> vector<32x4xf32>
    %cst_115 = arith.constant dense<0.000000e+00> : vector<32x32xf32>
    %212 = tpu.matmul %211, %30, %cst_115 {dimension_numbers = #tpu.dot_dimension_numbers<[1], [1], [0], [0], [0, 0, 1, 0], [], []>} : vector<32x4xf32>, vector<32x4xf32>, vector<32x32xf32> -> vector<32x32xf32>
    %213 = arith.addf %210, %212 : vector<32x32xf32>
    %214 = arith.addf %213, %171 : vector<32x32xf32>
    %cst_116 = arith.constant dense<0xFF800000> : vector<32xf32>
    %215 = vector.multi_reduction <maximumf>, %214, %cst_116 [1] : vector<32x32xf32> to vector<32xf32>
    %216 = vector.shape_cast %215 : vector<32xf32> to vector<32x1xf32>
    %217 = vector.broadcast %216 : vector<32x1xf32> to vector<32x32xf32>
    %218 = arith.subf %214, %217 : vector<32x32xf32>
    %219 = math.exp %218 : vector<32x32xf32>
    %cst_117 = arith.constant dense<0.000000e+00> : vector<32xf32>
    %220 = vector.multi_reduction <add>, %219, %cst_117 [1] : vector<32x32xf32> to vector<32xf32>
    %221 = vector.shape_cast %220 : vector<32xf32> to vector<32x1xf32>
    %222 = tpu.reciprocal %221 {approx = true} : vector<32x1xf32> -> vector<32x1xf32>
    %223 = vector.broadcast %222 : vector<32x1xf32> to vector<32x32xf32>
    %224 = arith.mulf %219, %223 : vector<32x32xf32>
    %cst_118 = arith.constant dense<0.000000e+00> : vector<32x16xf32>
    %225 = tpu.matmul %224, %207, %cst_118 {dimension_numbers = #tpu.dot_dimension_numbers<[1], [0], [0], [1], [0, 0, 1, 1], [], []>} : vector<32x32xf32>, vector<32x16xf32>, vector<32x16xf32> -> vector<32x16xf32>
    %226 = vector.extract_strided_slice %202 {offsets = [0, 0], sizes = [16, 32], strides = [1, 1]} : vector<32x32xf32> to vector<16x32xf32>
    %cst_119 = arith.constant dense<0.000000e+00> : vector<32x32xf32>
    %227 = tpu.matmul %225, %226, %cst_119 {dimension_numbers = #tpu.dot_dimension_numbers<[1], [0], [0], [1], [0, 0, 1, 1], [], []>} : vector<32x16xf32>, vector<16x32xf32>, vector<32x32xf32> -> vector<32x32xf32>
    %228 = vector.extract_strided_slice %201 {offsets = [0, 16], sizes = [32, 16], strides = [1, 1]} : vector<32x96xf32> to vector<32x16xf32>
    %cst_120 = arith.constant 2.500000e-01 : f32
    %229 = vector.broadcast %cst_120 : f32 to vector<32x16xf32>
    %230 = arith.mulf %228, %229 : vector<32x16xf32>
    %231 = vector.extract_strided_slice %201 {offsets = [0, 48], sizes = [32, 16], strides = [1, 1]} : vector<32x96xf32> to vector<32x16xf32>
    %232 = vector.extract_strided_slice %201 {offsets = [0, 80], sizes = [32, 16], strides = [1, 1]} : vector<32x96xf32> to vector<32x16xf32>
    %c1_121 = arith.constant 1 : index
    %c0_122 = arith.constant 0 : index
    %c0_123 = arith.constant 0 : index
    %233 = vector.load %arg54[%c1_121, %c0_122, %c0_123] : memref<2x4x4xf32, #tpu.memory_space<vmem>>, vector<1x4x4xf32>
    %234 = vector.shape_cast %233 : vector<1x4x4xf32> to vector<4x4xf32>
    %cst_124 = arith.constant dense<0.000000e+00> : vector<32x32xf32>
    %235 = tpu.matmul %230, %231, %cst_124 {dimension_numbers = #tpu.dot_dimension_numbers<[1], [1], [0], [0], [0, 0, 1, 0], [], []>} : vector<32x16xf32>, vector<32x16xf32>, vector<32x32xf32> -> vector<32x32xf32>
    %cst_125 = arith.constant dense<0.000000e+00> : vector<32x4xf32>
    %236 = tpu.matmul %30, %234, %cst_125 {dimension_numbers = #tpu.dot_dimension_numbers<[1], [0], [0], [1], [0, 0, 1, 1], [], []>} : vector<32x4xf32>, vector<4x4xf32>, vector<32x4xf32> -> vector<32x4xf32>
    %cst_126 = arith.constant dense<0.000000e+00> : vector<32x32xf32>
    %237 = tpu.matmul %236, %30, %cst_126 {dimension_numbers = #tpu.dot_dimension_numbers<[1], [1], [0], [0], [0, 0, 1, 0], [], []>} : vector<32x4xf32>, vector<32x4xf32>, vector<32x32xf32> -> vector<32x32xf32>
    %238 = arith.addf %235, %237 : vector<32x32xf32>
    %239 = arith.addf %238, %171 : vector<32x32xf32>
    %cst_127 = arith.constant dense<0xFF800000> : vector<32xf32>
    %240 = vector.multi_reduction <maximumf>, %239, %cst_127 [1] : vector<32x32xf32> to vector<32xf32>
    %241 = vector.shape_cast %240 : vector<32xf32> to vector<32x1xf32>
    %242 = vector.broadcast %241 : vector<32x1xf32> to vector<32x32xf32>
    %243 = arith.subf %239, %242 : vector<32x32xf32>
    %244 = math.exp %243 : vector<32x32xf32>
    %cst_128 = arith.constant dense<0.000000e+00> : vector<32xf32>
    %245 = vector.multi_reduction <add>, %244, %cst_128 [1] : vector<32x32xf32> to vector<32xf32>
    %246 = vector.shape_cast %245 : vector<32xf32> to vector<32x1xf32>
    %247 = tpu.reciprocal %246 {approx = true} : vector<32x1xf32> -> vector<32x1xf32>
    %248 = vector.broadcast %247 : vector<32x1xf32> to vector<32x32xf32>
    %249 = arith.mulf %244, %248 : vector<32x32xf32>
    %cst_129 = arith.constant dense<0.000000e+00> : vector<32x16xf32>
    %250 = tpu.matmul %249, %232, %cst_129 {dimension_numbers = #tpu.dot_dimension_numbers<[1], [0], [0], [1], [0, 0, 1, 1], [], []>} : vector<32x32xf32>, vector<32x16xf32>, vector<32x16xf32> -> vector<32x16xf32>
    %251 = vector.extract_strided_slice %202 {offsets = [16, 0], sizes = [16, 32], strides = [1, 1]} : vector<32x32xf32> to vector<16x32xf32>
    %cst_130 = arith.constant dense<0.000000e+00> : vector<32x32xf32>
    %252 = tpu.matmul %250, %251, %cst_130 {dimension_numbers = #tpu.dot_dimension_numbers<[1], [0], [0], [1], [0, 0, 1, 1], [], []>} : vector<32x16xf32>, vector<16x32xf32>, vector<32x32xf32> -> vector<32x32xf32>
    %253 = arith.addf %227, %252 : vector<32x32xf32>
    %c0_131 = arith.constant 0 : index
    %c0_132 = arith.constant 0 : index
    %254 = vector.load %arg50[%c0_131, %c0_132] : memref<1x32xf32, #tpu.memory_space<vmem>>, vector<1x32xf32>
    %255 = vector.broadcast %254 : vector<1x32xf32> to vector<32x32xf32>
    %256 = arith.addf %253, %255 : vector<32x32xf32>
    %cst_133 = arith.constant dense<0.000000e+00> : vector<32x32xf32>
    %257 = tpu.matmul %170, %256, %cst_133 {dimension_numbers = #tpu.dot_dimension_numbers<[1], [0], [0], [1], [0, 0, 1, 1], [], []>} : vector<32x32xf32>, vector<32x32xf32>, vector<32x32xf32> -> vector<32x32xf32>
    %258 = arith.addf %168, %257 : vector<32x32xf32>
    %cst_134 = arith.constant dense<0.000000e+00> : vector<32xf32>
    %259 = vector.multi_reduction <add>, %258, %cst_134 [1] : vector<32x32xf32> to vector<32xf32>
    %260 = vector.shape_cast %259 : vector<32xf32> to vector<32x1xf32>
    %cst_135 = arith.constant 3.200000e+01 : f32
    %261 = vector.broadcast %cst_135 : f32 to vector<32x1xf32>
    %262 = arith.divf %260, %261 : vector<32x1xf32>
    %263 = vector.broadcast %262 : vector<32x1xf32> to vector<32x32xf32>
    %264 = arith.subf %258, %263 : vector<32x32xf32>
    %265 = arith.mulf %264, %264 : vector<32x32xf32>
    %cst_136 = arith.constant dense<0.000000e+00> : vector<32xf32>
    %266 = vector.multi_reduction <add>, %265, %cst_136 [1] : vector<32x32xf32> to vector<32xf32>
    %267 = vector.shape_cast %266 : vector<32xf32> to vector<32x1xf32>
    %cst_137 = arith.constant 3.200000e+01 : f32
    %268 = vector.broadcast %cst_137 : f32 to vector<32x1xf32>
    %269 = arith.divf %267, %268 : vector<32x1xf32>
    %270 = vector.broadcast %262 : vector<32x1xf32> to vector<32x32xf32>
    %271 = arith.subf %258, %270 : vector<32x32xf32>
    %cst_138 = arith.constant 9.99999974E-6 : f32
    %272 = vector.broadcast %cst_138 : f32 to vector<32x1xf32>
    %273 = arith.addf %269, %272 : vector<32x1xf32>
    %274 = math.rsqrt %273 : vector<32x1xf32>
    %275 = vector.broadcast %274 : vector<32x1xf32> to vector<32x32xf32>
    %276 = arith.mulf %271, %275 : vector<32x32xf32>
    %c0_139 = arith.constant 0 : index
    %c0_140 = arith.constant 0 : index
    %277 = vector.load %arg49[%c0_139, %c0_140] : memref<1x32xf32, #tpu.memory_space<vmem>>, vector<1x32xf32>
    %278 = vector.broadcast %277 : vector<1x32xf32> to vector<32x32xf32>
    %279 = arith.mulf %276, %278 : vector<32x32xf32>
    %c0_141 = arith.constant 0 : index
    %c0_142 = arith.constant 0 : index
    %280 = vector.load %arg48[%c0_141, %c0_142] : memref<1x32xf32, #tpu.memory_space<vmem>>, vector<1x32xf32>
    %281 = vector.broadcast %280 : vector<1x32xf32> to vector<32x32xf32>
    %282 = arith.addf %279, %281 : vector<32x32xf32>
    %c0_143 = arith.constant 0 : index
    %c0_144 = arith.constant 0 : index
    %283 = vector.load %arg43[%c0_143, %c0_144] : memref<32x128xf32, #tpu.memory_space<vmem>>, vector<32x128xf32>
    %cst_145 = arith.constant dense<0.000000e+00> : vector<32x128xf32>
    %284 = tpu.matmul %282, %283, %cst_145 {dimension_numbers = #tpu.dot_dimension_numbers<[1], [0], [0], [1], [0, 0, 1, 1], [], []>} : vector<32x32xf32>, vector<32x128xf32>, vector<32x128xf32> -> vector<32x128xf32>
    %c0_146 = arith.constant 0 : index
    %c0_147 = arith.constant 0 : index
    %285 = vector.load %arg42[%c0_146, %c0_147] : memref<1x128xf32, #tpu.memory_space<vmem>>, vector<1x128xf32>
    %286 = vector.broadcast %285 : vector<1x128xf32> to vector<32x128xf32>
    %287 = arith.addf %284, %286 : vector<32x128xf32>
    %cst_148 = arith.constant 5.000000e-01 : f32
    %288 = vector.broadcast %cst_148 : f32 to vector<32x128xf32>
    %289 = arith.mulf %288, %287 : vector<32x128xf32>
    %cst_149 = arith.constant 4.471500e-02 : f32
    %290 = vector.broadcast %cst_149 : f32 to vector<32x128xf32>
    %291 = arith.mulf %290, %287 : vector<32x128xf32>
    %292 = arith.mulf %291, %287 : vector<32x128xf32>
    %293 = arith.mulf %292, %287 : vector<32x128xf32>
    %294 = arith.addf %287, %293 : vector<32x128xf32>
    %cst_150 = arith.constant 0.797884583 : f32
    %295 = vector.broadcast %cst_150 : f32 to vector<32x128xf32>
    %296 = arith.mulf %295, %294 : vector<32x128xf32>
    %297 = math.tanh %296 : vector<32x128xf32>
    %cst_151 = arith.constant 1.000000e+00 : f32
    %298 = vector.broadcast %cst_151 : f32 to vector<32x128xf32>
    %299 = arith.addf %298, %297 : vector<32x128xf32>
    %300 = arith.mulf %289, %299 : vector<32x128xf32>
    %c0_152 = arith.constant 0 : index
    %c0_153 = arith.constant 0 : index
    %301 = vector.load %arg45[%c0_152, %c0_153] : memref<128x32xf32, #tpu.memory_space<vmem>>, vector<128x32xf32>
    %cst_154 = arith.constant dense<0.000000e+00> : vector<32x32xf32>
    %302 = tpu.matmul %300, %301, %cst_154 {dimension_numbers = #tpu.dot_dimension_numbers<[1], [0], [0], [1], [0, 0, 1, 1], [], []>} : vector<32x128xf32>, vector<128x32xf32>, vector<32x32xf32> -> vector<32x32xf32>
    %c0_155 = arith.constant 0 : index
    %c0_156 = arith.constant 0 : index
    %303 = vector.load %arg44[%c0_155, %c0_156] : memref<1x32xf32, #tpu.memory_space<vmem>>, vector<1x32xf32>
    %304 = vector.broadcast %303 : vector<1x32xf32> to vector<32x32xf32>
    %305 = arith.addf %302, %304 : vector<32x32xf32>
    %306 = arith.addf %258, %305 : vector<32x32xf32>
    %c0_157 = arith.constant 0 : index
    %c0_158 = arith.constant 0 : index
    %307 = vector.load %arg15[%c0_157, %c0_158] : memref<8x32xf32, #tpu.memory_space<vmem>>, vector<8x32xf32>
    %c0_159 = arith.constant 0 : index
    %c0_160 = arith.constant 0 : index
    %308 = vector.load %arg16[%c0_159, %c0_160] : memref<8x32xf32, #tpu.memory_space<vmem>>, vector<8x32xf32>
    %c0_161 = arith.constant 0 : index
    %c0_162 = arith.constant 0 : index
    %309 = vector.load %arg17[%c0_161, %c0_162] : memref<8x32xf32, #tpu.memory_space<vmem>>, vector<8x32xf32>
    %c0_163 = arith.constant 0 : index
    %c0_164 = arith.constant 0 : index
    %310 = vector.load %arg18[%c0_163, %c0_164] : memref<8x32xf32, #tpu.memory_space<vmem>>, vector<8x32xf32>
    %c0_165 = arith.constant 0 : index
    %c0_166 = arith.constant 0 : index
    %311 = vector.load %arg10[%c0_165, %c0_166] : memref<32x128xf32, #tpu.memory_space<vmem>>, vector<32x128xf32>
    %c0_167 = arith.constant 0 : index
    %c0_168 = arith.constant 0 : index
    %312 = vector.load %arg11[%c0_167, %c0_168] : memref<32x128xf32, #tpu.memory_space<vmem>>, vector<32x128xf32>
    %c0_169 = arith.constant 0 : index
    %c0_170 = arith.constant 0 : index
    %313 = vector.load %arg12[%c0_169, %c0_170] : memref<32x128xf32, #tpu.memory_space<vmem>>, vector<32x128xf32>
    %c0_171 = arith.constant 0 : index
    %c0_172 = arith.constant 0 : index
    %314 = vector.load %arg13[%c0_171, %c0_172] : memref<32x128xf32, #tpu.memory_space<vmem>>, vector<32x128xf32>
    %cst_173 = arith.constant dense<0.000000e+00> : vector<8x32xf32>
    %315 = tpu.matmul %307, %306, %cst_173 {dimension_numbers = #tpu.dot_dimension_numbers<[1], [0], [0], [1], [0, 0, 1, 1], [], []>} : vector<8x32xf32>, vector<32x32xf32>, vector<8x32xf32> -> vector<8x32xf32>
    %cst_174 = arith.constant dense<0.000000e+00> : vector<8x128xf32>
    %316 = tpu.matmul %315, %311, %cst_174 {dimension_numbers = #tpu.dot_dimension_numbers<[1], [0], [0], [1], [0, 0, 1, 1], [], []>} : vector<8x32xf32>, vector<32x128xf32>, vector<8x128xf32> -> vector<8x128xf32>
    %cst_175 = arith.constant dense<0.000000e+00> : vector<8x32xf32>
    %317 = tpu.matmul %308, %306, %cst_175 {dimension_numbers = #tpu.dot_dimension_numbers<[1], [0], [0], [1], [0, 0, 1, 1], [], []>} : vector<8x32xf32>, vector<32x32xf32>, vector<8x32xf32> -> vector<8x32xf32>
    %cst_176 = arith.constant dense<0.000000e+00> : vector<8x128xf32>
    %318 = tpu.matmul %317, %312, %cst_176 {dimension_numbers = #tpu.dot_dimension_numbers<[1], [0], [0], [1], [0, 0, 1, 1], [], []>} : vector<8x32xf32>, vector<32x128xf32>, vector<8x128xf32> -> vector<8x128xf32>
    %319 = arith.addf %316, %318 : vector<8x128xf32>
    %cst_177 = arith.constant dense<0.000000e+00> : vector<8x32xf32>
    %320 = tpu.matmul %309, %306, %cst_177 {dimension_numbers = #tpu.dot_dimension_numbers<[1], [0], [0], [1], [0, 0, 1, 1], [], []>} : vector<8x32xf32>, vector<32x32xf32>, vector<8x32xf32> -> vector<8x32xf32>
    %cst_178 = arith.constant dense<0.000000e+00> : vector<8x128xf32>
    %321 = tpu.matmul %320, %313, %cst_178 {dimension_numbers = #tpu.dot_dimension_numbers<[1], [0], [0], [1], [0, 0, 1, 1], [], []>} : vector<8x32xf32>, vector<32x128xf32>, vector<8x128xf32> -> vector<8x128xf32>
    %322 = arith.addf %319, %321 : vector<8x128xf32>
    %cst_179 = arith.constant dense<0.000000e+00> : vector<8x32xf32>
    %323 = tpu.matmul %310, %306, %cst_179 {dimension_numbers = #tpu.dot_dimension_numbers<[1], [0], [0], [1], [0, 0, 1, 1], [], []>} : vector<8x32xf32>, vector<32x32xf32>, vector<8x32xf32> -> vector<8x32xf32>
    %cst_180 = arith.constant dense<0.000000e+00> : vector<8x128xf32>
    %324 = tpu.matmul %323, %314, %cst_180 {dimension_numbers = #tpu.dot_dimension_numbers<[1], [0], [0], [1], [0, 0, 1, 1], [], []>} : vector<8x32xf32>, vector<32x128xf32>, vector<8x128xf32> -> vector<8x128xf32>
    %325 = arith.addf %322, %324 : vector<8x128xf32>
    %cst_181 = arith.constant dense<0.000000e+00> : vector<8xf32>
    %326 = vector.multi_reduction <add>, %325, %cst_181 [1] : vector<8x128xf32> to vector<8xf32>
    %327 = vector.shape_cast %326 : vector<8xf32> to vector<8x1xf32>
    %cst_182 = arith.constant 1.280000e+02 : f32
    %328 = vector.broadcast %cst_182 : f32 to vector<8x1xf32>
    %329 = arith.divf %327, %328 : vector<8x1xf32>
    %330 = vector.broadcast %329 : vector<8x1xf32> to vector<8x128xf32>
    %331 = arith.subf %325, %330 : vector<8x128xf32>
    %332 = arith.mulf %331, %331 : vector<8x128xf32>
    %cst_183 = arith.constant dense<0.000000e+00> : vector<8xf32>
    %333 = vector.multi_reduction <add>, %332, %cst_183 [1] : vector<8x128xf32> to vector<8xf32>
    %334 = vector.shape_cast %333 : vector<8xf32> to vector<8x1xf32>
    %cst_184 = arith.constant 1.280000e+02 : f32
    %335 = vector.broadcast %cst_184 : f32 to vector<8x1xf32>
    %336 = arith.divf %334, %335 : vector<8x1xf32>
    %337 = vector.broadcast %329 : vector<8x1xf32> to vector<8x128xf32>
    %338 = arith.subf %325, %337 : vector<8x128xf32>
    %cst_185 = arith.constant 9.99999974E-6 : f32
    %339 = vector.broadcast %cst_185 : f32 to vector<8x1xf32>
    %340 = arith.addf %336, %339 : vector<8x1xf32>
    %341 = math.rsqrt %340 : vector<8x1xf32>
    %342 = vector.broadcast %341 : vector<8x1xf32> to vector<8x128xf32>
    %343 = arith.mulf %338, %342 : vector<8x128xf32>
    %c0_186 = arith.constant 0 : index
    %c0_187 = arith.constant 0 : index
    %344 = vector.load %arg56[%c0_186, %c0_187] : memref<1x128xf32, #tpu.memory_space<vmem>>, vector<1x128xf32>
    %345 = vector.broadcast %344 : vector<1x128xf32> to vector<8x128xf32>
    %346 = arith.mulf %343, %345 : vector<8x128xf32>
    %c0_188 = arith.constant 0 : index
    %c0_189 = arith.constant 0 : index
    %347 = vector.load %arg55[%c0_188, %c0_189] : memref<1x128xf32, #tpu.memory_space<vmem>>, vector<1x128xf32>
    %348 = vector.broadcast %347 : vector<1x128xf32> to vector<8x128xf32>
    %349 = arith.addf %346, %348 : vector<8x128xf32>
    %c0_190 = arith.constant 0 : index
    %c0_191 = arith.constant 0 : index
    %350 = vector.load %arg57[%c0_190, %c0_191] : memref<128x64xf32, #tpu.memory_space<vmem>>, vector<128x64xf32>
    %cst_192 = arith.constant dense<0.000000e+00> : vector<8x64xf32>
    %351 = tpu.matmul %349, %350, %cst_192 {dimension_numbers = #tpu.dot_dimension_numbers<[1], [0], [0], [1], [0, 0, 1, 1], [], []>} : vector<8x128xf32>, vector<128x64xf32>, vector<8x64xf32> -> vector<8x64xf32>
    %c0_193 = arith.constant 0 : index
    %c0_194 = arith.constant 0 : index
    %352 = vector.load %arg2[%c0_193, %c0_194] : memref<8x4xf32, #tpu.memory_space<vmem>>, vector<8x4xf32>
    %c0_195 = arith.constant 0 : index
    %c0_196 = arith.constant 0 : index
    %353 = vector.load %arg5[%c0_195, %c0_196] : memref<8x8xf32, #tpu.memory_space<vmem>>, vector<8x8xf32>
    %cst_197 = arith.constant dense<0.000000e+00> : vector<8xf32>
    %354 = vector.multi_reduction <add>, %351, %cst_197 [1] : vector<8x64xf32> to vector<8xf32>
    %355 = vector.shape_cast %354 : vector<8xf32> to vector<8x1xf32>
    %cst_198 = arith.constant 6.400000e+01 : f32
    %356 = vector.broadcast %cst_198 : f32 to vector<8x1xf32>
    %357 = arith.divf %355, %356 : vector<8x1xf32>
    %358 = vector.broadcast %357 : vector<8x1xf32> to vector<8x64xf32>
    %359 = arith.subf %351, %358 : vector<8x64xf32>
    %360 = arith.mulf %359, %359 : vector<8x64xf32>
    %cst_199 = arith.constant dense<0.000000e+00> : vector<8xf32>
    %361 = vector.multi_reduction <add>, %360, %cst_199 [1] : vector<8x64xf32> to vector<8xf32>
    %362 = vector.shape_cast %361 : vector<8xf32> to vector<8x1xf32>
    %cst_200 = arith.constant 6.400000e+01 : f32
    %363 = vector.broadcast %cst_200 : f32 to vector<8x1xf32>
    %364 = arith.divf %362, %363 : vector<8x1xf32>
    %365 = vector.broadcast %357 : vector<8x1xf32> to vector<8x64xf32>
    %366 = arith.subf %351, %365 : vector<8x64xf32>
    %cst_201 = arith.constant 9.99999974E-6 : f32
    %367 = vector.broadcast %cst_201 : f32 to vector<8x1xf32>
    %368 = arith.addf %364, %367 : vector<8x1xf32>
    %369 = math.rsqrt %368 : vector<8x1xf32>
    %370 = vector.broadcast %369 : vector<8x1xf32> to vector<8x64xf32>
    %371 = arith.mulf %366, %370 : vector<8x64xf32>
    %c0_202 = arith.constant 0 : index
    %c0_203 = arith.constant 0 : index
    %372 = vector.load %arg63[%c0_202, %c0_203] : memref<1x64xf32, #tpu.memory_space<vmem>>, vector<1x64xf32>
    %373 = vector.broadcast %372 : vector<1x64xf32> to vector<8x64xf32>
    %374 = arith.mulf %371, %373 : vector<8x64xf32>
    %c0_204 = arith.constant 0 : index
    %c0_205 = arith.constant 0 : index
    %375 = vector.load %arg62[%c0_204, %c0_205] : memref<1x64xf32, #tpu.memory_space<vmem>>, vector<1x64xf32>
    %376 = vector.broadcast %375 : vector<1x64xf32> to vector<8x64xf32>
    %377 = arith.addf %374, %376 : vector<8x64xf32>
    %c0_206 = arith.constant 0 : index
    %c0_207 = arith.constant 0 : index
    %378 = vector.load %arg69[%c0_206, %c0_207] : memref<64x192xf32, #tpu.memory_space<vmem>>, vector<64x192xf32>
    %cst_208 = arith.constant dense<0.000000e+00> : vector<8x192xf32>
    %379 = tpu.matmul %377, %378, %cst_208 {dimension_numbers = #tpu.dot_dimension_numbers<[1], [0], [0], [1], [0, 0, 1, 1], [], []>} : vector<8x64xf32>, vector<64x192xf32>, vector<8x192xf32> -> vector<8x192xf32>
    %c0_209 = arith.constant 0 : index
    %c0_210 = arith.constant 0 : index
    %380 = vector.load %arg68[%c0_209, %c0_210] : memref<1x192xf32, #tpu.memory_space<vmem>>, vector<1x192xf32>
    %381 = vector.broadcast %380 : vector<1x192xf32> to vector<8x192xf32>
    %382 = arith.addf %379, %381 : vector<8x192xf32>
    %c0_211 = arith.constant 0 : index
    %c0_212 = arith.constant 0 : index
    %383 = vector.load %arg67[%c0_211, %c0_212] : memref<64x64xf32, #tpu.memory_space<vmem>>, vector<64x64xf32>
    %384 = vector.extract_strided_slice %382 {offsets = [0, 0], sizes = [8, 16], strides = [1, 1]} : vector<8x192xf32> to vector<8x16xf32>
    %cst_213 = arith.constant 2.500000e-01 : f32
    %385 = vector.broadcast %cst_213 : f32 to vector<8x16xf32>
    %386 = arith.mulf %384, %385 : vector<8x16xf32>
    %387 = vector.extract_strided_slice %382 {offsets = [0, 64], sizes = [8, 16], strides = [1, 1]} : vector<8x192xf32> to vector<8x16xf32>
    %388 = vector.extract_strided_slice %382 {offsets = [0, 128], sizes = [8, 16], strides = [1, 1]} : vector<8x192xf32> to vector<8x16xf32>
    %c0_214 = arith.constant 0 : index
    %c0_215 = arith.constant 0 : index
    %c0_216 = arith.constant 0 : index
    %389 = vector.load %arg70[%c0_214, %c0_215, %c0_216] : memref<4x4x4xf32, #tpu.memory_space<vmem>>, vector<1x4x4xf32>
    %390 = vector.shape_cast %389 : vector<1x4x4xf32> to vector<4x4xf32>
    %cst_217 = arith.constant dense<0.000000e+00> : vector<8x8xf32>
    %391 = tpu.matmul %386, %387, %cst_217 {dimension_numbers = #tpu.dot_dimension_numbers<[1], [1], [0], [0], [0, 0, 1, 0], [], []>} : vector<8x16xf32>, vector<8x16xf32>, vector<8x8xf32> -> vector<8x8xf32>
    %cst_218 = arith.constant dense<0.000000e+00> : vector<8x4xf32>
    %392 = tpu.matmul %352, %390, %cst_218 {dimension_numbers = #tpu.dot_dimension_numbers<[1], [0], [0], [1], [0, 0, 1, 1], [], []>} : vector<8x4xf32>, vector<4x4xf32>, vector<8x4xf32> -> vector<8x4xf32>
    %cst_219 = arith.constant dense<0.000000e+00> : vector<8x8xf32>
    %393 = tpu.matmul %392, %352, %cst_219 {dimension_numbers = #tpu.dot_dimension_numbers<[1], [1], [0], [0], [0, 0, 1, 0], [], []>} : vector<8x4xf32>, vector<8x4xf32>, vector<8x8xf32> -> vector<8x8xf32>
    %394 = arith.addf %391, %393 : vector<8x8xf32>
    %395 = arith.addf %394, %353 : vector<8x8xf32>
    %cst_220 = arith.constant dense<0xFF800000> : vector<8xf32>
    %396 = vector.multi_reduction <maximumf>, %395, %cst_220 [1] : vector<8x8xf32> to vector<8xf32>
    %397 = vector.shape_cast %396 : vector<8xf32> to vector<8x1xf32>
    %398 = vector.broadcast %397 : vector<8x1xf32> to vector<8x8xf32>
    %399 = arith.subf %395, %398 : vector<8x8xf32>
    %400 = math.exp %399 : vector<8x8xf32>
    %cst_221 = arith.constant dense<0.000000e+00> : vector<8xf32>
    %401 = vector.multi_reduction <add>, %400, %cst_221 [1] : vector<8x8xf32> to vector<8xf32>
    %402 = vector.shape_cast %401 : vector<8xf32> to vector<8x1xf32>
    %403 = tpu.reciprocal %402 {approx = true} : vector<8x1xf32> -> vector<8x1xf32>
    %404 = vector.broadcast %403 : vector<8x1xf32> to vector<8x8xf32>
    %405 = arith.mulf %400, %404 : vector<8x8xf32>
    %cst_222 = arith.constant dense<0.000000e+00> : vector<8x16xf32>
    %406 = tpu.matmul %405, %388, %cst_222 {dimension_numbers = #tpu.dot_dimension_numbers<[1], [0], [0], [1], [0, 0, 1, 1], [], []>} : vector<8x8xf32>, vector<8x16xf32>, vector<8x16xf32> -> vector<8x16xf32>
    %407 = vector.extract_strided_slice %383 {offsets = [0, 0], sizes = [16, 64], strides = [1, 1]} : vector<64x64xf32> to vector<16x64xf32>
    %cst_223 = arith.constant dense<0.000000e+00> : vector<8x64xf32>
    %408 = tpu.matmul %406, %407, %cst_223 {dimension_numbers = #tpu.dot_dimension_numbers<[1], [0], [0], [1], [0, 0, 1, 1], [], []>} : vector<8x16xf32>, vector<16x64xf32>, vector<8x64xf32> -> vector<8x64xf32>
    %409 = vector.extract_strided_slice %382 {offsets = [0, 16], sizes = [8, 16], strides = [1, 1]} : vector<8x192xf32> to vector<8x16xf32>
    %cst_224 = arith.constant 2.500000e-01 : f32
    %410 = vector.broadcast %cst_224 : f32 to vector<8x16xf32>
    %411 = arith.mulf %409, %410 : vector<8x16xf32>
    %412 = vector.extract_strided_slice %382 {offsets = [0, 80], sizes = [8, 16], strides = [1, 1]} : vector<8x192xf32> to vector<8x16xf32>
    %413 = vector.extract_strided_slice %382 {offsets = [0, 144], sizes = [8, 16], strides = [1, 1]} : vector<8x192xf32> to vector<8x16xf32>
    %c1_225 = arith.constant 1 : index
    %c0_226 = arith.constant 0 : index
    %c0_227 = arith.constant 0 : index
    %414 = vector.load %arg70[%c1_225, %c0_226, %c0_227] : memref<4x4x4xf32, #tpu.memory_space<vmem>>, vector<1x4x4xf32>
    %415 = vector.shape_cast %414 : vector<1x4x4xf32> to vector<4x4xf32>
    %cst_228 = arith.constant dense<0.000000e+00> : vector<8x8xf32>
    %416 = tpu.matmul %411, %412, %cst_228 {dimension_numbers = #tpu.dot_dimension_numbers<[1], [1], [0], [0], [0, 0, 1, 0], [], []>} : vector<8x16xf32>, vector<8x16xf32>, vector<8x8xf32> -> vector<8x8xf32>
    %cst_229 = arith.constant dense<0.000000e+00> : vector<8x4xf32>
    %417 = tpu.matmul %352, %415, %cst_229 {dimension_numbers = #tpu.dot_dimension_numbers<[1], [0], [0], [1], [0, 0, 1, 1], [], []>} : vector<8x4xf32>, vector<4x4xf32>, vector<8x4xf32> -> vector<8x4xf32>
    %cst_230 = arith.constant dense<0.000000e+00> : vector<8x8xf32>
    %418 = tpu.matmul %417, %352, %cst_230 {dimension_numbers = #tpu.dot_dimension_numbers<[1], [1], [0], [0], [0, 0, 1, 0], [], []>} : vector<8x4xf32>, vector<8x4xf32>, vector<8x8xf32> -> vector<8x8xf32>
    %419 = arith.addf %416, %418 : vector<8x8xf32>
    %420 = arith.addf %419, %353 : vector<8x8xf32>
    %cst_231 = arith.constant dense<0xFF800000> : vector<8xf32>
    %421 = vector.multi_reduction <maximumf>, %420, %cst_231 [1] : vector<8x8xf32> to vector<8xf32>
    %422 = vector.shape_cast %421 : vector<8xf32> to vector<8x1xf32>
    %423 = vector.broadcast %422 : vector<8x1xf32> to vector<8x8xf32>
    %424 = arith.subf %420, %423 : vector<8x8xf32>
    %425 = math.exp %424 : vector<8x8xf32>
    %cst_232 = arith.constant dense<0.000000e+00> : vector<8xf32>
    %426 = vector.multi_reduction <add>, %425, %cst_232 [1] : vector<8x8xf32> to vector<8xf32>
    %427 = vector.shape_cast %426 : vector<8xf32> to vector<8x1xf32>
    %428 = tpu.reciprocal %427 {approx = true} : vector<8x1xf32> -> vector<8x1xf32>
    %429 = vector.broadcast %428 : vector<8x1xf32> to vector<8x8xf32>
    %430 = arith.mulf %425, %429 : vector<8x8xf32>
    %cst_233 = arith.constant dense<0.000000e+00> : vector<8x16xf32>
    %431 = tpu.matmul %430, %413, %cst_233 {dimension_numbers = #tpu.dot_dimension_numbers<[1], [0], [0], [1], [0, 0, 1, 1], [], []>} : vector<8x8xf32>, vector<8x16xf32>, vector<8x16xf32> -> vector<8x16xf32>
    %432 = vector.extract_strided_slice %383 {offsets = [16, 0], sizes = [16, 64], strides = [1, 1]} : vector<64x64xf32> to vector<16x64xf32>
    %cst_234 = arith.constant dense<0.000000e+00> : vector<8x64xf32>
    %433 = tpu.matmul %431, %432, %cst_234 {dimension_numbers = #tpu.dot_dimension_numbers<[1], [0], [0], [1], [0, 0, 1, 1], [], []>} : vector<8x16xf32>, vector<16x64xf32>, vector<8x64xf32> -> vector<8x64xf32>
    %434 = arith.addf %408, %433 : vector<8x64xf32>
    %435 = vector.extract_strided_slice %382 {offsets = [0, 32], sizes = [8, 16], strides = [1, 1]} : vector<8x192xf32> to vector<8x16xf32>
    %cst_235 = arith.constant 2.500000e-01 : f32
    %436 = vector.broadcast %cst_235 : f32 to vector<8x16xf32>
    %437 = arith.mulf %435, %436 : vector<8x16xf32>
    %438 = vector.extract_strided_slice %382 {offsets = [0, 96], sizes = [8, 16], strides = [1, 1]} : vector<8x192xf32> to vector<8x16xf32>
    %439 = vector.extract_strided_slice %382 {offsets = [0, 160], sizes = [8, 16], strides = [1, 1]} : vector<8x192xf32> to vector<8x16xf32>
    %c2 = arith.constant 2 : index
    %c0_236 = arith.constant 0 : index
    %c0_237 = arith.constant 0 : index
    %440 = vector.load %arg70[%c2, %c0_236, %c0_237] : memref<4x4x4xf32, #tpu.memory_space<vmem>>, vector<1x4x4xf32>
    %441 = vector.shape_cast %440 : vector<1x4x4xf32> to vector<4x4xf32>
    %cst_238 = arith.constant dense<0.000000e+00> : vector<8x8xf32>
    %442 = tpu.matmul %437, %438, %cst_238 {dimension_numbers = #tpu.dot_dimension_numbers<[1], [1], [0], [0], [0, 0, 1, 0], [], []>} : vector<8x16xf32>, vector<8x16xf32>, vector<8x8xf32> -> vector<8x8xf32>
    %cst_239 = arith.constant dense<0.000000e+00> : vector<8x4xf32>
    %443 = tpu.matmul %352, %441, %cst_239 {dimension_numbers = #tpu.dot_dimension_numbers<[1], [0], [0], [1], [0, 0, 1, 1], [], []>} : vector<8x4xf32>, vector<4x4xf32>, vector<8x4xf32> -> vector<8x4xf32>
    %cst_240 = arith.constant dense<0.000000e+00> : vector<8x8xf32>
    %444 = tpu.matmul %443, %352, %cst_240 {dimension_numbers = #tpu.dot_dimension_numbers<[1], [1], [0], [0], [0, 0, 1, 0], [], []>} : vector<8x4xf32>, vector<8x4xf32>, vector<8x8xf32> -> vector<8x8xf32>
    %445 = arith.addf %442, %444 : vector<8x8xf32>
    %446 = arith.addf %445, %353 : vector<8x8xf32>
    %cst_241 = arith.constant dense<0xFF800000> : vector<8xf32>
    %447 = vector.multi_reduction <maximumf>, %446, %cst_241 [1] : vector<8x8xf32> to vector<8xf32>
    %448 = vector.shape_cast %447 : vector<8xf32> to vector<8x1xf32>
    %449 = vector.broadcast %448 : vector<8x1xf32> to vector<8x8xf32>
    %450 = arith.subf %446, %449 : vector<8x8xf32>
    %451 = math.exp %450 : vector<8x8xf32>
    %cst_242 = arith.constant dense<0.000000e+00> : vector<8xf32>
    %452 = vector.multi_reduction <add>, %451, %cst_242 [1] : vector<8x8xf32> to vector<8xf32>
    %453 = vector.shape_cast %452 : vector<8xf32> to vector<8x1xf32>
    %454 = tpu.reciprocal %453 {approx = true} : vector<8x1xf32> -> vector<8x1xf32>
    %455 = vector.broadcast %454 : vector<8x1xf32> to vector<8x8xf32>
    %456 = arith.mulf %451, %455 : vector<8x8xf32>
    %cst_243 = arith.constant dense<0.000000e+00> : vector<8x16xf32>
    %457 = tpu.matmul %456, %439, %cst_243 {dimension_numbers = #tpu.dot_dimension_numbers<[1], [0], [0], [1], [0, 0, 1, 1], [], []>} : vector<8x8xf32>, vector<8x16xf32>, vector<8x16xf32> -> vector<8x16xf32>
    %458 = vector.extract_strided_slice %383 {offsets = [32, 0], sizes = [16, 64], strides = [1, 1]} : vector<64x64xf32> to vector<16x64xf32>
    %cst_244 = arith.constant dense<0.000000e+00> : vector<8x64xf32>
    %459 = tpu.matmul %457, %458, %cst_244 {dimension_numbers = #tpu.dot_dimension_numbers<[1], [0], [0], [1], [0, 0, 1, 1], [], []>} : vector<8x16xf32>, vector<16x64xf32>, vector<8x64xf32> -> vector<8x64xf32>
    %460 = arith.addf %434, %459 : vector<8x64xf32>
    %461 = vector.extract_strided_slice %382 {offsets = [0, 48], sizes = [8, 16], strides = [1, 1]} : vector<8x192xf32> to vector<8x16xf32>
    %cst_245 = arith.constant 2.500000e-01 : f32
    %462 = vector.broadcast %cst_245 : f32 to vector<8x16xf32>
    %463 = arith.mulf %461, %462 : vector<8x16xf32>
    %464 = vector.extract_strided_slice %382 {offsets = [0, 112], sizes = [8, 16], strides = [1, 1]} : vector<8x192xf32> to vector<8x16xf32>
    %465 = vector.extract_strided_slice %382 {offsets = [0, 176], sizes = [8, 16], strides = [1, 1]} : vector<8x192xf32> to vector<8x16xf32>
    %c3 = arith.constant 3 : index
    %c0_246 = arith.constant 0 : index
    %c0_247 = arith.constant 0 : index
    %466 = vector.load %arg70[%c3, %c0_246, %c0_247] : memref<4x4x4xf32, #tpu.memory_space<vmem>>, vector<1x4x4xf32>
    %467 = vector.shape_cast %466 : vector<1x4x4xf32> to vector<4x4xf32>
    %cst_248 = arith.constant dense<0.000000e+00> : vector<8x8xf32>
    %468 = tpu.matmul %463, %464, %cst_248 {dimension_numbers = #tpu.dot_dimension_numbers<[1], [1], [0], [0], [0, 0, 1, 0], [], []>} : vector<8x16xf32>, vector<8x16xf32>, vector<8x8xf32> -> vector<8x8xf32>
    %cst_249 = arith.constant dense<0.000000e+00> : vector<8x4xf32>
    %469 = tpu.matmul %352, %467, %cst_249 {dimension_numbers = #tpu.dot_dimension_numbers<[1], [0], [0], [1], [0, 0, 1, 1], [], []>} : vector<8x4xf32>, vector<4x4xf32>, vector<8x4xf32> -> vector<8x4xf32>
    %cst_250 = arith.constant dense<0.000000e+00> : vector<8x8xf32>
    %470 = tpu.matmul %469, %352, %cst_250 {dimension_numbers = #tpu.dot_dimension_numbers<[1], [1], [0], [0], [0, 0, 1, 0], [], []>} : vector<8x4xf32>, vector<8x4xf32>, vector<8x8xf32> -> vector<8x8xf32>
    %471 = arith.addf %468, %470 : vector<8x8xf32>
    %472 = arith.addf %471, %353 : vector<8x8xf32>
    %cst_251 = arith.constant dense<0xFF800000> : vector<8xf32>
    %473 = vector.multi_reduction <maximumf>, %472, %cst_251 [1] : vector<8x8xf32> to vector<8xf32>
    %474 = vector.shape_cast %473 : vector<8xf32> to vector<8x1xf32>
    %475 = vector.broadcast %474 : vector<8x1xf32> to vector<8x8xf32>
    %476 = arith.subf %472, %475 : vector<8x8xf32>
    %477 = math.exp %476 : vector<8x8xf32>
    %cst_252 = arith.constant dense<0.000000e+00> : vector<8xf32>
    %478 = vector.multi_reduction <add>, %477, %cst_252 [1] : vector<8x8xf32> to vector<8xf32>
    %479 = vector.shape_cast %478 : vector<8xf32> to vector<8x1xf32>
    %480 = tpu.reciprocal %479 {approx = true} : vector<8x1xf32> -> vector<8x1xf32>
    %481 = vector.broadcast %480 : vector<8x1xf32> to vector<8x8xf32>
    %482 = arith.mulf %477, %481 : vector<8x8xf32>
    %cst_253 = arith.constant dense<0.000000e+00> : vector<8x16xf32>
    %483 = tpu.matmul %482, %465, %cst_253 {dimension_numbers = #tpu.dot_dimension_numbers<[1], [0], [0], [1], [0, 0, 1, 1], [], []>} : vector<8x8xf32>, vector<8x16xf32>, vector<8x16xf32> -> vector<8x16xf32>
    %484 = vector.extract_strided_slice %383 {offsets = [48, 0], sizes = [16, 64], strides = [1, 1]} : vector<64x64xf32> to vector<16x64xf32>
    %cst_254 = arith.constant dense<0.000000e+00> : vector<8x64xf32>
    %485 = tpu.matmul %483, %484, %cst_254 {dimension_numbers = #tpu.dot_dimension_numbers<[1], [0], [0], [1], [0, 0, 1, 1], [], []>} : vector<8x16xf32>, vector<16x64xf32>, vector<8x64xf32> -> vector<8x64xf32>
    %486 = arith.addf %460, %485 : vector<8x64xf32>
    %c0_255 = arith.constant 0 : index
    %c0_256 = arith.constant 0 : index
    %487 = vector.load %arg66[%c0_255, %c0_256] : memref<1x64xf32, #tpu.memory_space<vmem>>, vector<1x64xf32>
    %488 = vector.broadcast %487 : vector<1x64xf32> to vector<8x64xf32>
    %489 = arith.addf %486, %488 : vector<8x64xf32>
    %490 = arith.addf %351, %489 : vector<8x64xf32>
    %cst_257 = arith.constant dense<0.000000e+00> : vector<8xf32>
    %491 = vector.multi_reduction <add>, %490, %cst_257 [1] : vector<8x64xf32> to vector<8xf32>
    %492 = vector.shape_cast %491 : vector<8xf32> to vector<8x1xf32>
    %cst_258 = arith.constant 6.400000e+01 : f32
    %493 = vector.broadcast %cst_258 : f32 to vector<8x1xf32>
    %494 = arith.divf %492, %493 : vector<8x1xf32>
    %495 = vector.broadcast %494 : vector<8x1xf32> to vector<8x64xf32>
    %496 = arith.subf %490, %495 : vector<8x64xf32>
    %497 = arith.mulf %496, %496 : vector<8x64xf32>
    %cst_259 = arith.constant dense<0.000000e+00> : vector<8xf32>
    %498 = vector.multi_reduction <add>, %497, %cst_259 [1] : vector<8x64xf32> to vector<8xf32>
    %499 = vector.shape_cast %498 : vector<8xf32> to vector<8x1xf32>
    %cst_260 = arith.constant 6.400000e+01 : f32
    %500 = vector.broadcast %cst_260 : f32 to vector<8x1xf32>
    %501 = arith.divf %499, %500 : vector<8x1xf32>
    %502 = vector.broadcast %494 : vector<8x1xf32> to vector<8x64xf32>
    %503 = arith.subf %490, %502 : vector<8x64xf32>
    %cst_261 = arith.constant 9.99999974E-6 : f32
    %504 = vector.broadcast %cst_261 : f32 to vector<8x1xf32>
    %505 = arith.addf %501, %504 : vector<8x1xf32>
    %506 = math.rsqrt %505 : vector<8x1xf32>
    %507 = vector.broadcast %506 : vector<8x1xf32> to vector<8x64xf32>
    %508 = arith.mulf %503, %507 : vector<8x64xf32>
    %c0_262 = arith.constant 0 : index
    %c0_263 = arith.constant 0 : index
    %509 = vector.load %arg65[%c0_262, %c0_263] : memref<1x64xf32, #tpu.memory_space<vmem>>, vector<1x64xf32>
    %510 = vector.broadcast %509 : vector<1x64xf32> to vector<8x64xf32>
    %511 = arith.mulf %508, %510 : vector<8x64xf32>
    %c0_264 = arith.constant 0 : index
    %c0_265 = arith.constant 0 : index
    %512 = vector.load %arg64[%c0_264, %c0_265] : memref<1x64xf32, #tpu.memory_space<vmem>>, vector<1x64xf32>
    %513 = vector.broadcast %512 : vector<1x64xf32> to vector<8x64xf32>
    %514 = arith.addf %511, %513 : vector<8x64xf32>
    %c0_266 = arith.constant 0 : index
    %c0_267 = arith.constant 0 : index
    %515 = vector.load %arg59[%c0_266, %c0_267] : memref<64x256xf32, #tpu.memory_space<vmem>>, vector<64x256xf32>
    %cst_268 = arith.constant dense<0.000000e+00> : vector<8x256xf32>
    %516 = tpu.matmul %514, %515, %cst_268 {dimension_numbers = #tpu.dot_dimension_numbers<[1], [0], [0], [1], [0, 0, 1, 1], [], []>} : vector<8x64xf32>, vector<64x256xf32>, vector<8x256xf32> -> vector<8x256xf32>
    %c0_269 = arith.constant 0 : index
    %c0_270 = arith.constant 0 : index
    %517 = vector.load %arg58[%c0_269, %c0_270] : memref<1x256xf32, #tpu.memory_space<vmem>>, vector<1x256xf32>
    %518 = vector.broadcast %517 : vector<1x256xf32> to vector<8x256xf32>
    %519 = arith.addf %516, %518 : vector<8x256xf32>
    %cst_271 = arith.constant 5.000000e-01 : f32
    %520 = vector.broadcast %cst_271 : f32 to vector<8x256xf32>
    %521 = arith.mulf %520, %519 : vector<8x256xf32>
    %cst_272 = arith.constant 4.471500e-02 : f32
    %522 = vector.broadcast %cst_272 : f32 to vector<8x256xf32>
    %523 = arith.mulf %522, %519 : vector<8x256xf32>
    %524 = arith.mulf %523, %519 : vector<8x256xf32>
    %525 = arith.mulf %524, %519 : vector<8x256xf32>
    %526 = arith.addf %519, %525 : vector<8x256xf32>
    %cst_273 = arith.constant 0.797884583 : f32
    %527 = vector.broadcast %cst_273 : f32 to vector<8x256xf32>
    %528 = arith.mulf %527, %526 : vector<8x256xf32>
    %529 = math.tanh %528 : vector<8x256xf32>
    %cst_274 = arith.constant 1.000000e+00 : f32
    %530 = vector.broadcast %cst_274 : f32 to vector<8x256xf32>
    %531 = arith.addf %530, %529 : vector<8x256xf32>
    %532 = arith.mulf %521, %531 : vector<8x256xf32>
    %c0_275 = arith.constant 0 : index
    %c0_276 = arith.constant 0 : index
    %533 = vector.load %arg61[%c0_275, %c0_276] : memref<256x64xf32, #tpu.memory_space<vmem>>, vector<256x64xf32>
    %cst_277 = arith.constant dense<0.000000e+00> : vector<8x64xf32>
    %534 = tpu.matmul %532, %533, %cst_277 {dimension_numbers = #tpu.dot_dimension_numbers<[1], [0], [0], [1], [0, 0, 1, 1], [], []>} : vector<8x256xf32>, vector<256x64xf32>, vector<8x64xf32> -> vector<8x64xf32>
    %c0_278 = arith.constant 0 : index
    %c0_279 = arith.constant 0 : index
    %535 = vector.load %arg60[%c0_278, %c0_279] : memref<1x64xf32, #tpu.memory_space<vmem>>, vector<1x64xf32>
    %536 = vector.broadcast %535 : vector<1x64xf32> to vector<8x64xf32>
    %537 = arith.addf %534, %536 : vector<8x64xf32>
    %538 = arith.addf %490, %537 : vector<8x64xf32>
    %cst_280 = arith.constant dense<0.000000e+00> : vector<8xf32>
    %539 = vector.multi_reduction <add>, %538, %cst_280 [1] : vector<8x64xf32> to vector<8xf32>
    %540 = vector.shape_cast %539 : vector<8xf32> to vector<8x1xf32>
    %cst_281 = arith.constant 6.400000e+01 : f32
    %541 = vector.broadcast %cst_281 : f32 to vector<8x1xf32>
    %542 = arith.divf %540, %541 : vector<8x1xf32>
    %543 = vector.broadcast %542 : vector<8x1xf32> to vector<8x64xf32>
    %544 = arith.subf %538, %543 : vector<8x64xf32>
    %545 = arith.mulf %544, %544 : vector<8x64xf32>
    %cst_282 = arith.constant dense<0.000000e+00> : vector<8xf32>
    %546 = vector.multi_reduction <add>, %545, %cst_282 [1] : vector<8x64xf32> to vector<8xf32>
    %547 = vector.shape_cast %546 : vector<8xf32> to vector<8x1xf32>
    %cst_283 = arith.constant 6.400000e+01 : f32
    %548 = vector.broadcast %cst_283 : f32 to vector<8x1xf32>
    %549 = arith.divf %547, %548 : vector<8x1xf32>
    %550 = vector.broadcast %542 : vector<8x1xf32> to vector<8x64xf32>
    %551 = arith.subf %538, %550 : vector<8x64xf32>
    %cst_284 = arith.constant 9.99999974E-6 : f32
    %552 = vector.broadcast %cst_284 : f32 to vector<8x1xf32>
    %553 = arith.addf %549, %552 : vector<8x1xf32>
    %554 = math.rsqrt %553 : vector<8x1xf32>
    %555 = vector.broadcast %554 : vector<8x1xf32> to vector<8x64xf32>
    %556 = arith.mulf %551, %555 : vector<8x64xf32>
    %c0_285 = arith.constant 0 : index
    %c0_286 = arith.constant 0 : index
    %557 = vector.load %arg76[%c0_285, %c0_286] : memref<1x64xf32, #tpu.memory_space<vmem>>, vector<1x64xf32>
    %558 = vector.broadcast %557 : vector<1x64xf32> to vector<8x64xf32>
    %559 = arith.mulf %556, %558 : vector<8x64xf32>
    %c0_287 = arith.constant 0 : index
    %c0_288 = arith.constant 0 : index
    %560 = vector.load %arg75[%c0_287, %c0_288] : memref<1x64xf32, #tpu.memory_space<vmem>>, vector<1x64xf32>
    %561 = vector.broadcast %560 : vector<1x64xf32> to vector<8x64xf32>
    %562 = arith.addf %559, %561 : vector<8x64xf32>
    %c0_289 = arith.constant 0 : index
    %c0_290 = arith.constant 0 : index
    %563 = vector.load %arg82[%c0_289, %c0_290] : memref<64x192xf32, #tpu.memory_space<vmem>>, vector<64x192xf32>
    %cst_291 = arith.constant dense<0.000000e+00> : vector<8x192xf32>
    %564 = tpu.matmul %562, %563, %cst_291 {dimension_numbers = #tpu.dot_dimension_numbers<[1], [0], [0], [1], [0, 0, 1, 1], [], []>} : vector<8x64xf32>, vector<64x192xf32>, vector<8x192xf32> -> vector<8x192xf32>
    %c0_292 = arith.constant 0 : index
    %c0_293 = arith.constant 0 : index
    %565 = vector.load %arg81[%c0_292, %c0_293] : memref<1x192xf32, #tpu.memory_space<vmem>>, vector<1x192xf32>
    %566 = vector.broadcast %565 : vector<1x192xf32> to vector<8x192xf32>
    %567 = arith.addf %564, %566 : vector<8x192xf32>
    %c0_294 = arith.constant 0 : index
    %c0_295 = arith.constant 0 : index
    %568 = vector.load %arg80[%c0_294, %c0_295] : memref<64x64xf32, #tpu.memory_space<vmem>>, vector<64x64xf32>
    %569 = vector.extract_strided_slice %567 {offsets = [0, 0], sizes = [8, 16], strides = [1, 1]} : vector<8x192xf32> to vector<8x16xf32>
    %cst_296 = arith.constant 2.500000e-01 : f32
    %570 = vector.broadcast %cst_296 : f32 to vector<8x16xf32>
    %571 = arith.mulf %569, %570 : vector<8x16xf32>
    %572 = vector.extract_strided_slice %567 {offsets = [0, 64], sizes = [8, 16], strides = [1, 1]} : vector<8x192xf32> to vector<8x16xf32>
    %573 = vector.extract_strided_slice %567 {offsets = [0, 128], sizes = [8, 16], strides = [1, 1]} : vector<8x192xf32> to vector<8x16xf32>
    %c0_297 = arith.constant 0 : index
    %c0_298 = arith.constant 0 : index
    %c0_299 = arith.constant 0 : index
    %574 = vector.load %arg83[%c0_297, %c0_298, %c0_299] : memref<4x4x4xf32, #tpu.memory_space<vmem>>, vector<1x4x4xf32>
    %575 = vector.shape_cast %574 : vector<1x4x4xf32> to vector<4x4xf32>
    %cst_300 = arith.constant dense<0.000000e+00> : vector<8x8xf32>
    %576 = tpu.matmul %571, %572, %cst_300 {dimension_numbers = #tpu.dot_dimension_numbers<[1], [1], [0], [0], [0, 0, 1, 0], [], []>} : vector<8x16xf32>, vector<8x16xf32>, vector<8x8xf32> -> vector<8x8xf32>
    %cst_301 = arith.constant dense<0.000000e+00> : vector<8x4xf32>
    %577 = tpu.matmul %352, %575, %cst_301 {dimension_numbers = #tpu.dot_dimension_numbers<[1], [0], [0], [1], [0, 0, 1, 1], [], []>} : vector<8x4xf32>, vector<4x4xf32>, vector<8x4xf32> -> vector<8x4xf32>
    %cst_302 = arith.constant dense<0.000000e+00> : vector<8x8xf32>
    %578 = tpu.matmul %577, %352, %cst_302 {dimension_numbers = #tpu.dot_dimension_numbers<[1], [1], [0], [0], [0, 0, 1, 0], [], []>} : vector<8x4xf32>, vector<8x4xf32>, vector<8x8xf32> -> vector<8x8xf32>
    %579 = arith.addf %576, %578 : vector<8x8xf32>
    %580 = arith.addf %579, %353 : vector<8x8xf32>
    %cst_303 = arith.constant dense<0xFF800000> : vector<8xf32>
    %581 = vector.multi_reduction <maximumf>, %580, %cst_303 [1] : vector<8x8xf32> to vector<8xf32>
    %582 = vector.shape_cast %581 : vector<8xf32> to vector<8x1xf32>
    %583 = vector.broadcast %582 : vector<8x1xf32> to vector<8x8xf32>
    %584 = arith.subf %580, %583 : vector<8x8xf32>
    %585 = math.exp %584 : vector<8x8xf32>
    %cst_304 = arith.constant dense<0.000000e+00> : vector<8xf32>
    %586 = vector.multi_reduction <add>, %585, %cst_304 [1] : vector<8x8xf32> to vector<8xf32>
    %587 = vector.shape_cast %586 : vector<8xf32> to vector<8x1xf32>
    %588 = tpu.reciprocal %587 {approx = true} : vector<8x1xf32> -> vector<8x1xf32>
    %589 = vector.broadcast %588 : vector<8x1xf32> to vector<8x8xf32>
    %590 = arith.mulf %585, %589 : vector<8x8xf32>
    %cst_305 = arith.constant dense<0.000000e+00> : vector<8x16xf32>
    %591 = tpu.matmul %590, %573, %cst_305 {dimension_numbers = #tpu.dot_dimension_numbers<[1], [0], [0], [1], [0, 0, 1, 1], [], []>} : vector<8x8xf32>, vector<8x16xf32>, vector<8x16xf32> -> vector<8x16xf32>
    %592 = vector.extract_strided_slice %568 {offsets = [0, 0], sizes = [16, 64], strides = [1, 1]} : vector<64x64xf32> to vector<16x64xf32>
    %cst_306 = arith.constant dense<0.000000e+00> : vector<8x64xf32>
    %593 = tpu.matmul %591, %592, %cst_306 {dimension_numbers = #tpu.dot_dimension_numbers<[1], [0], [0], [1], [0, 0, 1, 1], [], []>} : vector<8x16xf32>, vector<16x64xf32>, vector<8x64xf32> -> vector<8x64xf32>
    %594 = vector.extract_strided_slice %567 {offsets = [0, 16], sizes = [8, 16], strides = [1, 1]} : vector<8x192xf32> to vector<8x16xf32>
    %cst_307 = arith.constant 2.500000e-01 : f32
    %595 = vector.broadcast %cst_307 : f32 to vector<8x16xf32>
    %596 = arith.mulf %594, %595 : vector<8x16xf32>
    %597 = vector.extract_strided_slice %567 {offsets = [0, 80], sizes = [8, 16], strides = [1, 1]} : vector<8x192xf32> to vector<8x16xf32>
    %598 = vector.extract_strided_slice %567 {offsets = [0, 144], sizes = [8, 16], strides = [1, 1]} : vector<8x192xf32> to vector<8x16xf32>
    %c1_308 = arith.constant 1 : index
    %c0_309 = arith.constant 0 : index
    %c0_310 = arith.constant 0 : index
    %599 = vector.load %arg83[%c1_308, %c0_309, %c0_310] : memref<4x4x4xf32, #tpu.memory_space<vmem>>, vector<1x4x4xf32>
    %600 = vector.shape_cast %599 : vector<1x4x4xf32> to vector<4x4xf32>
    %cst_311 = arith.constant dense<0.000000e+00> : vector<8x8xf32>
    %601 = tpu.matmul %596, %597, %cst_311 {dimension_numbers = #tpu.dot_dimension_numbers<[1], [1], [0], [0], [0, 0, 1, 0], [], []>} : vector<8x16xf32>, vector<8x16xf32>, vector<8x8xf32> -> vector<8x8xf32>
    %cst_312 = arith.constant dense<0.000000e+00> : vector<8x4xf32>
    %602 = tpu.matmul %352, %600, %cst_312 {dimension_numbers = #tpu.dot_dimension_numbers<[1], [0], [0], [1], [0, 0, 1, 1], [], []>} : vector<8x4xf32>, vector<4x4xf32>, vector<8x4xf32> -> vector<8x4xf32>
    %cst_313 = arith.constant dense<0.000000e+00> : vector<8x8xf32>
    %603 = tpu.matmul %602, %352, %cst_313 {dimension_numbers = #tpu.dot_dimension_numbers<[1], [1], [0], [0], [0, 0, 1, 0], [], []>} : vector<8x4xf32>, vector<8x4xf32>, vector<8x8xf32> -> vector<8x8xf32>
    %604 = arith.addf %601, %603 : vector<8x8xf32>
    %605 = arith.addf %604, %353 : vector<8x8xf32>
    %cst_314 = arith.constant dense<0xFF800000> : vector<8xf32>
    %606 = vector.multi_reduction <maximumf>, %605, %cst_314 [1] : vector<8x8xf32> to vector<8xf32>
    %607 = vector.shape_cast %606 : vector<8xf32> to vector<8x1xf32>
    %608 = vector.broadcast %607 : vector<8x1xf32> to vector<8x8xf32>
    %609 = arith.subf %605, %608 : vector<8x8xf32>
    %610 = math.exp %609 : vector<8x8xf32>
    %cst_315 = arith.constant dense<0.000000e+00> : vector<8xf32>
    %611 = vector.multi_reduction <add>, %610, %cst_315 [1] : vector<8x8xf32> to vector<8xf32>
    %612 = vector.shape_cast %611 : vector<8xf32> to vector<8x1xf32>
    %613 = tpu.reciprocal %612 {approx = true} : vector<8x1xf32> -> vector<8x1xf32>
    %614 = vector.broadcast %613 : vector<8x1xf32> to vector<8x8xf32>
    %615 = arith.mulf %610, %614 : vector<8x8xf32>
    %cst_316 = arith.constant dense<0.000000e+00> : vector<8x16xf32>
    %616 = tpu.matmul %615, %598, %cst_316 {dimension_numbers = #tpu.dot_dimension_numbers<[1], [0], [0], [1], [0, 0, 1, 1], [], []>} : vector<8x8xf32>, vector<8x16xf32>, vector<8x16xf32> -> vector<8x16xf32>
    %617 = vector.extract_strided_slice %568 {offsets = [16, 0], sizes = [16, 64], strides = [1, 1]} : vector<64x64xf32> to vector<16x64xf32>
    %cst_317 = arith.constant dense<0.000000e+00> : vector<8x64xf32>
    %618 = tpu.matmul %616, %617, %cst_317 {dimension_numbers = #tpu.dot_dimension_numbers<[1], [0], [0], [1], [0, 0, 1, 1], [], []>} : vector<8x16xf32>, vector<16x64xf32>, vector<8x64xf32> -> vector<8x64xf32>
    %619 = arith.addf %593, %618 : vector<8x64xf32>
    %620 = vector.extract_strided_slice %567 {offsets = [0, 32], sizes = [8, 16], strides = [1, 1]} : vector<8x192xf32> to vector<8x16xf32>
    %cst_318 = arith.constant 2.500000e-01 : f32
    %621 = vector.broadcast %cst_318 : f32 to vector<8x16xf32>
    %622 = arith.mulf %620, %621 : vector<8x16xf32>
    %623 = vector.extract_strided_slice %567 {offsets = [0, 96], sizes = [8, 16], strides = [1, 1]} : vector<8x192xf32> to vector<8x16xf32>
    %624 = vector.extract_strided_slice %567 {offsets = [0, 160], sizes = [8, 16], strides = [1, 1]} : vector<8x192xf32> to vector<8x16xf32>
    %c2_319 = arith.constant 2 : index
    %c0_320 = arith.constant 0 : index
    %c0_321 = arith.constant 0 : index
    %625 = vector.load %arg83[%c2_319, %c0_320, %c0_321] : memref<4x4x4xf32, #tpu.memory_space<vmem>>, vector<1x4x4xf32>
    %626 = vector.shape_cast %625 : vector<1x4x4xf32> to vector<4x4xf32>
    %cst_322 = arith.constant dense<0.000000e+00> : vector<8x8xf32>
    %627 = tpu.matmul %622, %623, %cst_322 {dimension_numbers = #tpu.dot_dimension_numbers<[1], [1], [0], [0], [0, 0, 1, 0], [], []>} : vector<8x16xf32>, vector<8x16xf32>, vector<8x8xf32> -> vector<8x8xf32>
    %cst_323 = arith.constant dense<0.000000e+00> : vector<8x4xf32>
    %628 = tpu.matmul %352, %626, %cst_323 {dimension_numbers = #tpu.dot_dimension_numbers<[1], [0], [0], [1], [0, 0, 1, 1], [], []>} : vector<8x4xf32>, vector<4x4xf32>, vector<8x4xf32> -> vector<8x4xf32>
    %cst_324 = arith.constant dense<0.000000e+00> : vector<8x8xf32>
    %629 = tpu.matmul %628, %352, %cst_324 {dimension_numbers = #tpu.dot_dimension_numbers<[1], [1], [0], [0], [0, 0, 1, 0], [], []>} : vector<8x4xf32>, vector<8x4xf32>, vector<8x8xf32> -> vector<8x8xf32>
    %630 = arith.addf %627, %629 : vector<8x8xf32>
    %631 = arith.addf %630, %353 : vector<8x8xf32>
    %cst_325 = arith.constant dense<0xFF800000> : vector<8xf32>
    %632 = vector.multi_reduction <maximumf>, %631, %cst_325 [1] : vector<8x8xf32> to vector<8xf32>
    %633 = vector.shape_cast %632 : vector<8xf32> to vector<8x1xf32>
    %634 = vector.broadcast %633 : vector<8x1xf32> to vector<8x8xf32>
    %635 = arith.subf %631, %634 : vector<8x8xf32>
    %636 = math.exp %635 : vector<8x8xf32>
    %cst_326 = arith.constant dense<0.000000e+00> : vector<8xf32>
    %637 = vector.multi_reduction <add>, %636, %cst_326 [1] : vector<8x8xf32> to vector<8xf32>
    %638 = vector.shape_cast %637 : vector<8xf32> to vector<8x1xf32>
    %639 = tpu.reciprocal %638 {approx = true} : vector<8x1xf32> -> vector<8x1xf32>
    %640 = vector.broadcast %639 : vector<8x1xf32> to vector<8x8xf32>
    %641 = arith.mulf %636, %640 : vector<8x8xf32>
    %cst_327 = arith.constant dense<0.000000e+00> : vector<8x16xf32>
    %642 = tpu.matmul %641, %624, %cst_327 {dimension_numbers = #tpu.dot_dimension_numbers<[1], [0], [0], [1], [0, 0, 1, 1], [], []>} : vector<8x8xf32>, vector<8x16xf32>, vector<8x16xf32> -> vector<8x16xf32>
    %643 = vector.extract_strided_slice %568 {offsets = [32, 0], sizes = [16, 64], strides = [1, 1]} : vector<64x64xf32> to vector<16x64xf32>
    %cst_328 = arith.constant dense<0.000000e+00> : vector<8x64xf32>
    %644 = tpu.matmul %642, %643, %cst_328 {dimension_numbers = #tpu.dot_dimension_numbers<[1], [0], [0], [1], [0, 0, 1, 1], [], []>} : vector<8x16xf32>, vector<16x64xf32>, vector<8x64xf32> -> vector<8x64xf32>
    %645 = arith.addf %619, %644 : vector<8x64xf32>
    %646 = vector.extract_strided_slice %567 {offsets = [0, 48], sizes = [8, 16], strides = [1, 1]} : vector<8x192xf32> to vector<8x16xf32>
    %cst_329 = arith.constant 2.500000e-01 : f32
    %647 = vector.broadcast %cst_329 : f32 to vector<8x16xf32>
    %648 = arith.mulf %646, %647 : vector<8x16xf32>
    %649 = vector.extract_strided_slice %567 {offsets = [0, 112], sizes = [8, 16], strides = [1, 1]} : vector<8x192xf32> to vector<8x16xf32>
    %650 = vector.extract_strided_slice %567 {offsets = [0, 176], sizes = [8, 16], strides = [1, 1]} : vector<8x192xf32> to vector<8x16xf32>
    %c3_330 = arith.constant 3 : index
    %c0_331 = arith.constant 0 : index
    %c0_332 = arith.constant 0 : index
    %651 = vector.load %arg83[%c3_330, %c0_331, %c0_332] : memref<4x4x4xf32, #tpu.memory_space<vmem>>, vector<1x4x4xf32>
    %652 = vector.shape_cast %651 : vector<1x4x4xf32> to vector<4x4xf32>
    %cst_333 = arith.constant dense<0.000000e+00> : vector<8x8xf32>
    %653 = tpu.matmul %648, %649, %cst_333 {dimension_numbers = #tpu.dot_dimension_numbers<[1], [1], [0], [0], [0, 0, 1, 0], [], []>} : vector<8x16xf32>, vector<8x16xf32>, vector<8x8xf32> -> vector<8x8xf32>
    %cst_334 = arith.constant dense<0.000000e+00> : vector<8x4xf32>
    %654 = tpu.matmul %352, %652, %cst_334 {dimension_numbers = #tpu.dot_dimension_numbers<[1], [0], [0], [1], [0, 0, 1, 1], [], []>} : vector<8x4xf32>, vector<4x4xf32>, vector<8x4xf32> -> vector<8x4xf32>
    %cst_335 = arith.constant dense<0.000000e+00> : vector<8x8xf32>
    %655 = tpu.matmul %654, %352, %cst_335 {dimension_numbers = #tpu.dot_dimension_numbers<[1], [1], [0], [0], [0, 0, 1, 0], [], []>} : vector<8x4xf32>, vector<8x4xf32>, vector<8x8xf32> -> vector<8x8xf32>
    %656 = arith.addf %653, %655 : vector<8x8xf32>
    %657 = arith.addf %656, %353 : vector<8x8xf32>
    %cst_336 = arith.constant dense<0xFF800000> : vector<8xf32>
    %658 = vector.multi_reduction <maximumf>, %657, %cst_336 [1] : vector<8x8xf32> to vector<8xf32>
    %659 = vector.shape_cast %658 : vector<8xf32> to vector<8x1xf32>
    %660 = vector.broadcast %659 : vector<8x1xf32> to vector<8x8xf32>
    %661 = arith.subf %657, %660 : vector<8x8xf32>
    %662 = math.exp %661 : vector<8x8xf32>
    %cst_337 = arith.constant dense<0.000000e+00> : vector<8xf32>
    %663 = vector.multi_reduction <add>, %662, %cst_337 [1] : vector<8x8xf32> to vector<8xf32>
    %664 = vector.shape_cast %663 : vector<8xf32> to vector<8x1xf32>
    %665 = tpu.reciprocal %664 {approx = true} : vector<8x1xf32> -> vector<8x1xf32>
    %666 = vector.broadcast %665 : vector<8x1xf32> to vector<8x8xf32>
    %667 = arith.mulf %662, %666 : vector<8x8xf32>
    %cst_338 = arith.constant dense<0.000000e+00> : vector<8x16xf32>
    %668 = tpu.matmul %667, %650, %cst_338 {dimension_numbers = #tpu.dot_dimension_numbers<[1], [0], [0], [1], [0, 0, 1, 1], [], []>} : vector<8x8xf32>, vector<8x16xf32>, vector<8x16xf32> -> vector<8x16xf32>
    %669 = vector.extract_strided_slice %568 {offsets = [48, 0], sizes = [16, 64], strides = [1, 1]} : vector<64x64xf32> to vector<16x64xf32>
    %cst_339 = arith.constant dense<0.000000e+00> : vector<8x64xf32>
    %670 = tpu.matmul %668, %669, %cst_339 {dimension_numbers = #tpu.dot_dimension_numbers<[1], [0], [0], [1], [0, 0, 1, 1], [], []>} : vector<8x16xf32>, vector<16x64xf32>, vector<8x64xf32> -> vector<8x64xf32>
    %671 = arith.addf %645, %670 : vector<8x64xf32>
    %c0_340 = arith.constant 0 : index
    %c0_341 = arith.constant 0 : index
    %672 = vector.load %arg79[%c0_340, %c0_341] : memref<1x64xf32, #tpu.memory_space<vmem>>, vector<1x64xf32>
    %673 = vector.broadcast %672 : vector<1x64xf32> to vector<8x64xf32>
    %674 = arith.addf %671, %673 : vector<8x64xf32>
    %675 = arith.addf %538, %674 : vector<8x64xf32>
    %cst_342 = arith.constant dense<0.000000e+00> : vector<8xf32>
    %676 = vector.multi_reduction <add>, %675, %cst_342 [1] : vector<8x64xf32> to vector<8xf32>
    %677 = vector.shape_cast %676 : vector<8xf32> to vector<8x1xf32>
    %cst_343 = arith.constant 6.400000e+01 : f32
    %678 = vector.broadcast %cst_343 : f32 to vector<8x1xf32>
    %679 = arith.divf %677, %678 : vector<8x1xf32>
    %680 = vector.broadcast %679 : vector<8x1xf32> to vector<8x64xf32>
    %681 = arith.subf %675, %680 : vector<8x64xf32>
    %682 = arith.mulf %681, %681 : vector<8x64xf32>
    %cst_344 = arith.constant dense<0.000000e+00> : vector<8xf32>
    %683 = vector.multi_reduction <add>, %682, %cst_344 [1] : vector<8x64xf32> to vector<8xf32>
    %684 = vector.shape_cast %683 : vector<8xf32> to vector<8x1xf32>
    %cst_345 = arith.constant 6.400000e+01 : f32
    %685 = vector.broadcast %cst_345 : f32 to vector<8x1xf32>
    %686 = arith.divf %684, %685 : vector<8x1xf32>
    %687 = vector.broadcast %679 : vector<8x1xf32> to vector<8x64xf32>
    %688 = arith.subf %675, %687 : vector<8x64xf32>
    %cst_346 = arith.constant 9.99999974E-6 : f32
    %689 = vector.broadcast %cst_346 : f32 to vector<8x1xf32>
    %690 = arith.addf %686, %689 : vector<8x1xf32>
    %691 = math.rsqrt %690 : vector<8x1xf32>
    %692 = vector.broadcast %691 : vector<8x1xf32> to vector<8x64xf32>
    %693 = arith.mulf %688, %692 : vector<8x64xf32>
    %c0_347 = arith.constant 0 : index
    %c0_348 = arith.constant 0 : index
    %694 = vector.load %arg78[%c0_347, %c0_348] : memref<1x64xf32, #tpu.memory_space<vmem>>, vector<1x64xf32>
    %695 = vector.broadcast %694 : vector<1x64xf32> to vector<8x64xf32>
    %696 = arith.mulf %693, %695 : vector<8x64xf32>
    %c0_349 = arith.constant 0 : index
    %c0_350 = arith.constant 0 : index
    %697 = vector.load %arg77[%c0_349, %c0_350] : memref<1x64xf32, #tpu.memory_space<vmem>>, vector<1x64xf32>
    %698 = vector.broadcast %697 : vector<1x64xf32> to vector<8x64xf32>
    %699 = arith.addf %696, %698 : vector<8x64xf32>
    %c0_351 = arith.constant 0 : index
    %c0_352 = arith.constant 0 : index
    %700 = vector.load %arg72[%c0_351, %c0_352] : memref<64x256xf32, #tpu.memory_space<vmem>>, vector<64x256xf32>
    %cst_353 = arith.constant dense<0.000000e+00> : vector<8x256xf32>
    %701 = tpu.matmul %699, %700, %cst_353 {dimension_numbers = #tpu.dot_dimension_numbers<[1], [0], [0], [1], [0, 0, 1, 1], [], []>} : vector<8x64xf32>, vector<64x256xf32>, vector<8x256xf32> -> vector<8x256xf32>
    %c0_354 = arith.constant 0 : index
    %c0_355 = arith.constant 0 : index
    %702 = vector.load %arg71[%c0_354, %c0_355] : memref<1x256xf32, #tpu.memory_space<vmem>>, vector<1x256xf32>
    %703 = vector.broadcast %702 : vector<1x256xf32> to vector<8x256xf32>
    %704 = arith.addf %701, %703 : vector<8x256xf32>
    %cst_356 = arith.constant 5.000000e-01 : f32
    %705 = vector.broadcast %cst_356 : f32 to vector<8x256xf32>
    %706 = arith.mulf %705, %704 : vector<8x256xf32>
    %cst_357 = arith.constant 4.471500e-02 : f32
    %707 = vector.broadcast %cst_357 : f32 to vector<8x256xf32>
    %708 = arith.mulf %707, %704 : vector<8x256xf32>
    %709 = arith.mulf %708, %704 : vector<8x256xf32>
    %710 = arith.mulf %709, %704 : vector<8x256xf32>
    %711 = arith.addf %704, %710 : vector<8x256xf32>
    %cst_358 = arith.constant 0.797884583 : f32
    %712 = vector.broadcast %cst_358 : f32 to vector<8x256xf32>
    %713 = arith.mulf %712, %711 : vector<8x256xf32>
    %714 = math.tanh %713 : vector<8x256xf32>
    %cst_359 = arith.constant 1.000000e+00 : f32
    %715 = vector.broadcast %cst_359 : f32 to vector<8x256xf32>
    %716 = arith.addf %715, %714 : vector<8x256xf32>
    %717 = arith.mulf %706, %716 : vector<8x256xf32>
    %c0_360 = arith.constant 0 : index
    %c0_361 = arith.constant 0 : index
    %718 = vector.load %arg74[%c0_360, %c0_361] : memref<256x64xf32, #tpu.memory_space<vmem>>, vector<256x64xf32>
    %cst_362 = arith.constant dense<0.000000e+00> : vector<8x64xf32>
    %719 = tpu.matmul %717, %718, %cst_362 {dimension_numbers = #tpu.dot_dimension_numbers<[1], [0], [0], [1], [0, 0, 1, 1], [], []>} : vector<8x256xf32>, vector<256x64xf32>, vector<8x64xf32> -> vector<8x64xf32>
    %c0_363 = arith.constant 0 : index
    %c0_364 = arith.constant 0 : index
    %720 = vector.load %arg73[%c0_363, %c0_364] : memref<1x64xf32, #tpu.memory_space<vmem>>, vector<1x64xf32>
    %721 = vector.broadcast %720 : vector<1x64xf32> to vector<8x64xf32>
    %722 = arith.addf %719, %721 : vector<8x64xf32>
    %723 = arith.addf %675, %722 : vector<8x64xf32>
    %cst_365 = arith.constant dense<0.000000e+00> : vector<8xf32>
    %724 = vector.multi_reduction <add>, %723, %cst_365 [1] : vector<8x64xf32> to vector<8xf32>
    %725 = vector.shape_cast %724 : vector<8xf32> to vector<8x1xf32>
    %cst_366 = arith.constant 6.400000e+01 : f32
    %726 = vector.broadcast %cst_366 : f32 to vector<8x1xf32>
    %727 = arith.divf %725, %726 : vector<8x1xf32>
    %728 = vector.broadcast %727 : vector<8x1xf32> to vector<8x64xf32>
    %729 = arith.subf %723, %728 : vector<8x64xf32>
    %730 = arith.mulf %729, %729 : vector<8x64xf32>
    %cst_367 = arith.constant dense<0.000000e+00> : vector<8xf32>
    %731 = vector.multi_reduction <add>, %730, %cst_367 [1] : vector<8x64xf32> to vector<8xf32>
    %732 = vector.shape_cast %731 : vector<8xf32> to vector<8x1xf32>
    %cst_368 = arith.constant 6.400000e+01 : f32
    %733 = vector.broadcast %cst_368 : f32 to vector<8x1xf32>
    %734 = arith.divf %732, %733 : vector<8x1xf32>
    %735 = vector.broadcast %727 : vector<8x1xf32> to vector<8x64xf32>
    %736 = arith.subf %723, %735 : vector<8x64xf32>
    %cst_369 = arith.constant 9.99999974E-6 : f32
    %737 = vector.broadcast %cst_369 : f32 to vector<8x1xf32>
    %738 = arith.addf %734, %737 : vector<8x1xf32>
    %739 = math.rsqrt %738 : vector<8x1xf32>
    %740 = vector.broadcast %739 : vector<8x1xf32> to vector<8x64xf32>
    %741 = arith.mulf %736, %740 : vector<8x64xf32>
    %c0_370 = arith.constant 0 : index
    %c0_371 = arith.constant 0 : index
    %742 = vector.load %arg24[%c0_370, %c0_371] : memref<1x64xf32, #tpu.memory_space<vmem>>, vector<1x64xf32>
    %743 = vector.broadcast %742 : vector<1x64xf32> to vector<8x64xf32>
    %744 = arith.mulf %741, %743 : vector<8x64xf32>
    %c0_372 = arith.constant 0 : index
    %c0_373 = arith.constant 0 : index
    %745 = vector.load %arg23[%c0_372, %c0_373] : memref<1x64xf32, #tpu.memory_space<vmem>>, vector<1x64xf32>
    %746 = vector.broadcast %745 : vector<1x64xf32> to vector<8x64xf32>
    %747 = arith.addf %744, %746 : vector<8x64xf32>
    %c0_374 = arith.constant 0 : index
    %c0_375 = arith.constant 0 : index
    %748 = vector.load %arg14[%c0_374, %c0_375] : memref<2x8xf32, #tpu.memory_space<vmem>>, vector<2x8xf32>
    %cst_376 = arith.constant dense<0.000000e+00> : vector<2x64xf32>
    %749 = tpu.matmul %748, %747, %cst_376 {dimension_numbers = #tpu.dot_dimension_numbers<[1], [0], [0], [1], [0, 0, 1, 1], [], []>} : vector<2x8xf32>, vector<8x64xf32>, vector<2x64xf32> -> vector<2x64xf32>
    %c0_377 = arith.constant 0 : index
    %c0_378 = arith.constant 0 : index
    %750 = vector.load %arg22[%c0_377, %c0_378] : memref<64x128xf32, #tpu.memory_space<vmem>>, vector<64x128xf32>
    %cst_379 = arith.constant dense<0.000000e+00> : vector<2x128xf32>
    %751 = tpu.matmul %749, %750, %cst_379 {dimension_numbers = #tpu.dot_dimension_numbers<[1], [0], [0], [1], [0, 0, 1, 1], [], []>} : vector<2x64xf32>, vector<64x128xf32>, vector<2x128xf32> -> vector<2x128xf32>
    %c0_380 = arith.constant 0 : index
    %c0_381 = arith.constant 0 : index
    %752 = vector.load %arg21[%c0_380, %c0_381] : memref<1x128xf32, #tpu.memory_space<vmem>>, vector<1x128xf32>
    %753 = vector.broadcast %752 : vector<1x128xf32> to vector<2x128xf32>
    %754 = arith.addf %751, %753 : vector<2x128xf32>
    %c0_382 = arith.constant 0 : index
    %c0_383 = arith.constant 0 : index
    %755 = vector.load %arg20[%c0_382, %c0_383] : memref<128x1xf32, #tpu.memory_space<vmem>>, vector<128x1xf32>
    %cst_384 = arith.constant dense<0.000000e+00> : vector<2x1xf32>
    %756 = tpu.matmul %754, %755, %cst_384 {dimension_numbers = #tpu.dot_dimension_numbers<[1], [0], [0], [1], [0, 0, 1, 1], [], []>} : vector<2x128xf32>, vector<128x1xf32>, vector<2x1xf32> -> vector<2x1xf32>
    %c0_385 = arith.constant 0 : index
    %c0_386 = arith.constant 0 : index
    %757 = vector.load %arg19[%c0_385, %c0_386] : memref<1x1xf32, #tpu.memory_space<vmem>>, vector<1x1xf32>
    %758 = vector.broadcast %757 : vector<1x1xf32> to vector<2x1xf32>
    %759 = arith.addf %756, %758 : vector<2x1xf32>
    %c0_387 = arith.constant 0 : index
    %c0_388 = arith.constant 0 : index
    %760 = vector.load %arg84[%c0_387, %c0_388] : memref<2x1xf32, #tpu.memory_space<vmem>>, vector<2x1xf32>
    tpu.vector_store %arg84[%c0_387, %c0_388], %759 {strides = array<i32>} : memref<2x1xf32, #tpu.memory_space<vmem>>, vector<2x1xf32>,
    return
  }
}

</mosaic_0001>

<bundles_post_ra>
// kernel: pet2_forward.1
= control target key start
LH: loop header
LB: loop body
LE: loop exit
PB: predicated region body
PF: predicated region fallthrough
CT: control target
= control target key end

     0   :  { %s7121_s6 = smov 1   ;;  %s7122_s10 = smov 2   ;;  %s8928_s0 = inlined_call_operand.smem [shape: u32[85], index: -1, kind: input, shape index: {}] }
   0x1   :  { %s7265_s5 = sld [smem:[%s8928_s0]]   ;;  %s7123_s14 = smov 3  }
   0x2   :  { %s7270_s9 = sld [smem:[%s8928_s0 + %s7121_s6]]   ;;  %s7124_s18 = smov 4  }
   0x3   :  { %s7275_s13 = sld [smem:[%s8928_s0 + %s7122_s10]]   ;;  %s7125_s22 = smov 5  }
   0x4   :  { %s7280_s17 = sld [smem:[%s8928_s0 + %s7123_s14]]   ;;  %s7126_s26 = smov 6  }
   0x5   :  { %s7285_s21 = sld [smem:[%s8928_s0 + %s7124_s18]]   ;;  %s7127_s30 = smov 7  }
   0x6   :  { %s7290_s25 = sld [smem:[%s8928_s0 + %s7125_s22]]   ;;  %s7128_s4 = smov 8  }
   0x7   :  { %8989 = sst [smem:[#allocation86_spill]] %s7265_s5  ;;  %s7129_s10 = smov 9  }
   0x8   :  { %8990 = sst [smem:[#allocation87_spill]] %s7270_s9  ;;  %s7130_s15 = smov 10  }
   0x9   :  { %8991 = sst [smem:[#allocation88_spill]] %s7275_s13  ;;  %s7131_s20 = smov 11  }
   0xa   :  { %8992 = sst [smem:[#allocation89_spill]] %s7280_s17  ;;  %s7133_s1 = smov 13  }
   0xb   :  { %8993 = sst [smem:[#allocation90_spill]] %s7285_s21  ;;  %s7134_s7 = smov 14  }
   0xc   :  { %8994 = sst [smem:[#allocation91_spill]] %s7290_s25  ;;  %s7136_s22 = smov 16  }
   0xd   :  { %s7295_s29 = sld [smem:[%s8928_s0 + %s7126_s26]]   ;;  %s7132_s26 = smov 12  }
   0xe   :  { %s7300_s3 = sld [smem:[%s8928_s0 + %s7127_s30]]   ;;  %s7137_s28 = smov 17  }
   0xf   :  { %s7305_s8 = sld [smem:[%s8928_s0 + %s7128_s4]]  }
  0x10   :  { %s7310_s14 = sld [smem:[%s8928_s0 + %s7129_s10]]  }
  0x11   :  { %s7315_s19 = sld [smem:[%s8928_s0 + %s7130_s15]]   ;;  %s7135_s15 = smov 15  }
  0x12   :  { %s7320_s24 = sld [smem:[%s8928_s0 + %s7131_s20]]  }
  0x13   :  { %8995 = sst [smem:[#allocation92_spill]] %s7295_s29 }
  0x14   :  { %8996 = sst [smem:[#allocation93_spill]] %s7300_s3 }
  0x15   :  { %8997 = sst [smem:[#allocation94_spill]] %s7305_s8 }
  0x16   :  { %8998 = sst [smem:[#allocation95_spill]] %s7310_s14 }
  0x17   :  { %8999 = sst [smem:[#allocation96_spill]] %s7315_s19 }
  0x18   :  { %9000 = sst [smem:[#allocation97_spill]] %s7320_s24 }
  0x19   :  { %s7325_s30 = sld [smem:[%s8928_s0 + %s7132_s26]]  }
  0x1a   :  { %s7330_s6 = sld [smem:[%s8928_s0 + %s7133_s1]]  }
  0x1b   :  { %s7335_s12 = sld [smem:[%s8928_s0 + %s7134_s7]]   ;;  %s7138_s7 = smov 18  }
  0x1c   :  { %s7340_s20 = sld [smem:[%s8928_s0 + %s7135_s15]]   ;;  %s7139_s15 = smov 19  }
  0x1d   :  { %s7345_s27 = sld [smem:[%s8928_s0 + %s7136_s22]]   ;;  %s7140_s22 = smov 20  }
  0x1e   :  { %s7350_s4 = sld [smem:[%s8928_s0 + %s7137_s28]]   ;;  %s7141_s28 = smov 21  }
  0x1f   :  { %9001 = sst [smem:[#allocation98_spill]] %s7325_s30 }
  0x20   :  { %9002 = sst [smem:[#allocation99_spill]] %s7330_s6 }
  0x21   :  { %9003 = sst [smem:[#allocation100_spill]] %s7335_s12 }
  0x22   :  { %9004 = sst [smem:[#allocation101_spill]] %s7340_s20 }
  0x23   :  { %9005 = sst [smem:[#allocation102_spill]] %s7345_s27 }
  0x24   :  { %9006 = sst [smem:[#allocation103_spill]] %s7350_s4 }
  0x25   :  { %s7355_s12 = sld [smem:[%s8928_s0 + %s7138_s7]]   ;;  %s7142_s7 = smov 22  }
  0x26   :  { %s7360_s25 = sld [smem:[%s8928_s0 + %s7139_s15]]   ;;  %s7143_s15 = smov 23  }
  0x27   :  { %s7365_s13 = sld [smem:[%s8928_s0 + %s7140_s22]]   ;;  %s7144_s22 = smov 24  }
  0x28   :  { %s7370_s6 = sld [smem:[%s8928_s0 + %s7141_s28]]   ;;  %s7145_s28 = smov 25  }
  0x29   :  { %s7375_s30 = sld [smem:[%s8928_s0 + %s7142_s7]]   ;;  %s7146_s7 = smov 26  }
  0x2a   :  { %s7380_s4 = sld [smem:[%s8928_s0 + %s7143_s15]]   ;;  %s7147_s15 = smov 27  }
  0x2b   :  { %9007 = sst [smem:[#allocation104_spill]] %s7355_s12 }
  0x2c   :  { %s7390_s12 = sld [smem:[%s8928_s0 + %s7145_s28]]   ;;  %s7149_s28 = smov 29   ;;  %v174_v0 = vstv %s7360_s25 }
  0x2d   :  { %9008 = sst [smem:[#allocation105_spill]] %s7365_s13  ;;  %175 = vst [vmem:[#allocation2] sm:$0x1] %v174_v0  ;;  %s7175_s25 = smov 55  }
  0x2e   :  { %9009 = sst [smem:[#allocation106_spill]] %s7370_s6 }
  0x2f   :  { %9010 = sst [smem:[#allocation107_spill]] %s7375_s30 }
  0x30   :  { %s7385_s13 = sld [smem:[%s8928_s0 + %s7144_s22]]   ;;  %s7148_s22 = smov 28  }
  0x31   :  { %s7395_s30 = sld [smem:[%s8928_s0 + %s7146_s7]]   ;;  %s7150_s7 = smov 30  }
  0x32   :  { %s7400_s19 = sld [smem:[%s8928_s0 + %s7147_s15]]   ;;  %s7151_s15 = smov 31  }
  0x33   :  { %s7405_s20 = sld [smem:[%s8928_s0 + %s7148_s22]]   ;;  %s7152_s22 = smov 32  }
  0x34   :  { %s7410_s24 = sld [smem:[%s8928_s0 + %s7149_s28]]   ;;  %s7153_s28 = smov 33  }
  0x35   :  { %s7415_s27 = sld [smem:[%s8928_s0 + %s7150_s7]]   ;;  %s7154_s7 = smov 34  }
  0x36   :  { %9011 = sst [smem:[#allocation108_spill]] %s7385_s13 }
  0x37   :  { %9012 = sst [smem:[#allocation109_spill]] %s7395_s30 }
  0x38   :  { %9013 = sst [smem:[#allocation110_spill]] %s7400_s19 }
  0x39   :  { %s7420_s14 = sld [smem:[%s8928_s0 + %s7151_s15]]   ;;  %s7155_s15 = smov 35  }
  0x3a   :  { %9014 = sst [smem:[#allocation111_spill]] %s7410_s24 }
  0x3b   :  { %9015 = sst [smem:[#allocation112_spill]] %s7415_s27 }
  0x3c   :  { %s7425_s21 = sld [smem:[%s8928_s0 + %s7152_s22]]   ;;  %s7156_s22 = smov 36  }
  0x3d   :  { %s7430_s8 = sld [smem:[%s8928_s0 + %s7153_s28]]   ;;  %s7157_s28 = smov 37  }
  0x3e   :  { %s7435_s27 = sld [smem:[%s8928_s0 + %s7154_s7]]   ;;  %s7158_s7 = smov 38  }
  0x3f   :  { %s7440_s3 = sld [smem:[%s8928_s0 + %s7155_s15]]   ;;  %s7159_s15 = smov 39  }
  0x40   :  { %s7450_s17 = sld [smem:[%s8928_s0 + %s7157_s28]]   ;;  %s7161_s28 = smov 41  }
  0x41   :  { %s7455_s9 = sld [smem:[%s8928_s0 + %s7158_s7]]   ;;  %s7162_s7 = smov 42  }
  0x42   :  { %9016 = sst [smem:[#allocation113_spill]] %s7425_s21 }
  0x43   :  { %9017 = sst [smem:[#allocation114_spill]] %s7430_s8 }
  0x44   :  { %s7445_s21 = sld [smem:[%s8928_s0 + %s7156_s22]]   ;;  %s7160_s22 = smov 40  }
  0x45   :  { %9018 = sst [smem:[#allocation115_spill]] %s7440_s3 }
  0x46   :  { %9019 = sst [smem:[#allocation116_spill]] %s7450_s17 }
  0x47   :  { %9020 = sst [smem:[#allocation117_spill]] %s7455_s9 }
  0x48   :  { %s7460_s29 = sld [smem:[%s8928_s0 + %s7159_s15]]   ;;  %s7163_s15 = smov 43  }
  0x49   :  { %s7465_s5 = sld [smem:[%s8928_s0 + %s7160_s22]]   ;;  %s7164_s22 = smov 44  }
  0x4a   :  { %s7470_s30 = sld [smem:[%s8928_s0 + %s7161_s28]]   ;;  %s7165_s28 = smov 45  }
  0x4b   :  { %s7475_s9 = sld [smem:[%s8928_s0 + %s7162_s7]]   ;;  %s7166_s7 = smov 46  }
  0x4c   :  { %s7480_s17 = sld [smem:[%s8928_s0 + %s7163_s15]]   ;;  %s7167_s15 = smov 47  }
  0x4d   :  { %s7485_s1 = sld [smem:[%s8928_s0 + %s7164_s22]]   ;;  %s7168_s22 = smov 48  }
  0x4e   :  { %s7490_s10 = sld [smem:[%s8928_s0 + %s7165_s28]]  }
  0x4f   :  { %9021 = sst [smem:[#allocation118_spill]] %s7465_s5  ;;  %s7170_s5 = smov 50  }
  0x50   :  { %9022 = sst [smem:[#allocation119_spill]] %s7470_s30  ;;  %s7169_s30 = smov 49  }
  0x51   :  { %9023 = sst [smem:[#allocation120_spill]] %s7475_s9  ;;  %s7172_s9 = smov 52  }
  0x52   :  { %9024 = sst [smem:[#allocation121_spill]] %s7480_s17  ;;  %s7171_s17 = smov 51  }
  0x53   :  { %s7495_s16 = sld [smem:[%s8928_s0 + %s7166_s7]]   ;;  %s7174_s7 = smov 54  }
  0x54   :  { %9025 = sst [smem:[#allocation122_spill]] %s7490_s10 }
  0x55   :  { %s7500_s23 = sld [smem:[%s8928_s0 + %s7167_s15]]  }
  0x56   :  { %s7505_s3 = sld [smem:[%s8928_s0 + %s7168_s22]]  }
  0x57   :  { %s7510_s10 = sld [smem:[%s8928_s0 + %s7169_s30]]   ;;  %s7173_s30 = smov 53  }
  0x58   :  { %s7520_s8 = sld [smem:[%s8928_s0 + %s7171_s17]]  }
  0x59   :  { %9026 = sst [smem:[#allocation123_spill]] %s7495_s16 }
  0x5a   :  { %s7515_s16 = sld [smem:[%s8928_s0 + %s7170_s5]]  }
  0x5b   :  { %s7526_s28 = sld [smem:[%s8928_s0 + %s7172_s9]]   ;;  %s7176_s9 = smov 56  }
  0x5c   :  { %9027 = sst [smem:[#allocation124_spill]] %s7505_s3  ;;  %s7177_s3 = smov 57  }
  0x5d   :  { %s7531_s5 = sld [smem:[%s8928_s0 + %s7173_s30]]  }
  0x5e   :  { %9029 = sst [smem:[#allocation126_spill]] %s7520_s8  ;;  %s7180_s8 = smov 60  }
  0x5f   :  { %s7536_s17 = sld [smem:[%s8928_s0 + %s7174_s7]]  }
  0x60   :  { %9028 = sst [smem:[#allocation125_spill]] %s7515_s16  ;;  %s7178_s16 = smov 58  }
  0x61   :  { %s7541_s22 = sld [smem:[%s8928_s0 + %s7175_s25]]   ;;  %s7179_s25 = smov 59  }
  0x62   :  { %s7546_s24 = sld [smem:[%s8928_s0 + %s7176_s9]]  }
  0x63   :  { %9030 = sst [smem:[#allocation127_spill]] %s7531_s5 }
  0x64   :  { %s7551_s5 = sld [smem:[%s8928_s0 + %s7177_s3]]   ;;  %s7181_s3 = smov 61  }
  0x65   :  { %9031 = sst [smem:[#allocation128_spill]] %s7536_s17 }
  0x66   :  { %s7556_s17 = sld [smem:[%s8928_s0 + %s7178_s16]]   ;;  %s7182_s16 = smov 62  }
  0x67   :  { %s7561_s19 = sld [smem:[%s8928_s0 + %s7179_s25]]   ;;  %s7183_s25 = smov 63  }
  0x68   :  { %9032 = sst [smem:[#allocation129_spill]] %s7546_s24 }
  0x69   :  { %s7566_s24 = sld [smem:[%s8928_s0 + %s7180_s8]]   ;;  %s7184_s8 = smov 64  }
  0x6a   :  { %9033 = sst [smem:[#allocation130_spill]] %s7551_s5 }
  0x6b   :  { %s7571_s5 = sld [smem:[%s8928_s0 + %s7181_s3]]   ;;  %s7185_s3 = smov 65  }
  0x6c   :  { %s7576_s13 = sld [smem:[%s8928_s0 + %s7182_s16]]   ;;  %s7186_s16 = smov 66  }
  0x6d   :  { %9034 = sst [smem:[#allocation131_spill]] %s7561_s19 }
  0x6e   :  { %s7581_s19 = sld [smem:[%s8928_s0 + %s7183_s25]]   ;;  %s7187_s25 = smov 67  }
  0x6f   :  { %9035 = sst [smem:[#allocation132_spill]] %s7566_s24 }
  0x70   :  { %s7586_s24 = sld [smem:[%s8928_s0 + %s7184_s8]]   ;;  %s7188_s8 = smov 68  }
  0x71   :  { %9036 = sst [smem:[#allocation133_spill]] %s7571_s5 }
  0x72   :  { %s7591_s5 = sld [smem:[%s8928_s0 + %s7185_s3]]   ;;  %s7189_s3 = smov 69  }
  0x73   :  { %s7596_s6 = sld [smem:[%s8928_s0 + %s7186_s16]]   ;;  %s7190_s16 = smov 70  }
  0x74   :  { %9037 = sst [smem:[#allocation134_spill]] %s7581_s19 }
  0x75   :  { %s7601_s19 = sld [smem:[%s8928_s0 + %s7187_s25]]   ;;  %s7191_s25 = smov 71  }
  0x76   :  { %9038 = sst [smem:[#allocation135_spill]] %s7586_s24 }
  0x77   :  { %s7606_s24 = sld [smem:[%s8928_s0 + %s7188_s8]]   ;;  %s7192_s8 = smov 72  }
  0x78   :  { %9039 = sst [smem:[#allocation136_spill]] %s7591_s5 }
  0x79   :  { %9040 = sst [smem:[#allocation137_spill]] %s7596_s6 }
  0x7a   :  { %s7611_s5 = sld [smem:[%s8928_s0 + %s7189_s3]]   ;;  %s7193_s3 = smov 73  }
  0x7b   :  { %9041 = sst [smem:[#allocation138_spill]] %s7601_s19 }
  0x7c   :  { %s7616_s6 = sld [smem:[%s8928_s0 + %s7190_s16]]   ;;  %s7194_s16 = smov 74  }
  0x7d   :  { %9042 = sst [smem:[#allocation139_spill]] %s7606_s24 }
  0x7e   :  { %s7621_s19 = sld [smem:[%s8928_s0 + %s7191_s25]]   ;;  %s7195_s25 = smov 75  }
  0x7f   :  { %s7626_s24 = sld [smem:[%s8928_s0 + %s7192_s8]]   ;;  %s7196_s8 = smov 76  }
  0x80   :  { %9043 = sst [smem:[#allocation140_spill]] %s7611_s5 }
  0x81   :  { %s7631_s5 = sld [smem:[%s8928_s0 + %s7193_s3]]   ;;  %s7197_s3 = smov 77  }
  0x82   :  { %9044 = sst [smem:[#allocation141_spill]] %s7616_s6 }
  0x83   :  { %s7636_s6 = sld [smem:[%s8928_s0 + %s7194_s16]]   ;;  %s7198_s16 = smov 78  }
  0x84   :  { %9045 = sst [smem:[#allocation142_spill]] %s7621_s19 }
  0x85   :  { %9046 = sst [smem:[#allocation143_spill]] %s7626_s24 }
  0x86   :  { %s7641_s19 = sld [smem:[%s8928_s0 + %s7195_s25]]   ;;  %s7199_s25 = smov 79  }
  0x87   :  { %9047 = sst [smem:[#allocation144_spill]] %s7631_s5 }
  0x88   :  { %s7646_s24 = sld [smem:[%s8928_s0 + %s7196_s8]]   ;;  %s7200_s8 = smov 80  }
  0x89   :  { %9048 = sst [smem:[#allocation145_spill]] %s7636_s6 }
  0x8a   :  { %s7651_s5 = sld [smem:[%s8928_s0 + %s7197_s3]]   ;;  %s7201_s3 = smov 81  }
  0x8b   :  { %s7656_s6 = sld [smem:[%s8928_s0 + %s7198_s16]]   ;;  %s7202_s16 = smov 82  }
  0x8c   :  { %9049 = sst [smem:[#allocation146_spill]] %s7641_s19 }
  0x8d   :  { %s7661_s19 = sld [smem:[%s8928_s0 + %s7199_s25]]   ;;  %s7203_s25 = smov 83  }
  0x8e   :  { %9050 = sst [smem:[#allocation147_spill]] %s7646_s24 }
  0x8f   :  { %s7666_s24 = sld [smem:[%s8928_s0 + %s7200_s8]]   ;;  %s7204_s8 = smov 84  }
  0x90   :  { %9051 = sst [smem:[#allocation148_spill]] %s7651_s5 }
  0x91   :  { %9052 = sst [smem:[#allocation149_spill]] %s7656_s6 }
  0x92   :  { %s7671_s5 = sld [smem:[%s8928_s0 + %s7201_s3]]  }
  0x93   :  { %9053 = sst [smem:[#allocation150_spill]] %s7661_s19 }
  0x94   :  { %s7676_s6 = sld [smem:[%s8928_s0 + %s7202_s16]]  }
  0x95   :  { %9054 = sst [smem:[#allocation151_spill]] %s7666_s24 }
  0x96   :  { %s7681_s19 = sld [smem:[%s8928_s0 + %s7203_s25]]  }
  0x97   :  { %s7686_s24 = sld [smem:[%s8928_s0 + %s7204_s8]]  }
  0x98   :  { %176 = vsyncpa [#allocation4], 0 }
  0x99   :  { %177 = vsyncpa [#allocation6], 0 }
  0x9a   :  { %178 = vsyncpa [#allocation9], 0 }
  0x9b   :  { %179 = vsyncpa [#allocation12], 0 }
  0x9c   :  { %180 = vsyncpa [#allocation15], 0 }
  0x9d   :  { %181 = vsyncpa [#allocation18], 0 }
  0x9e   :  { %182 = vsyncpa [#allocation21], 0 }
  0x9f   :  { %183 = vsyncpa [#allocation24], 0 }
  0xa0   :  { %184 = vsyncpa [#allocation27], 0 }
  0xa1   :  { %185 = vsyncpa [#allocation30], 0 }
  0xa2   :  { %186 = vsyncpa [#allocation33], 0 }
  0xa3   :  { %187 = vsyncpa [#allocation36], 0 }
  0xa4   :  { %188 = vsyncpa [#allocation39], 0 }
  0xa5   :  { %189 = vsyncpa [#allocation42], 0 }
  0xa6   :  { %190 = vsyncpa [#allocation45], 0 }
  0xa7   :  { %191 = vsyncpa [#allocation48], 0 }
  0xa8   :  { %192 = vsyncpa [#allocation51], 0 }
  0xa9   :  { %193 = vsyncpa [#allocation54], 0 }
  0xaa   :  { %194 = vsyncpa [#allocation57], 0 }
  0xab   :  { %195 = vsyncpa [#allocation60], 0  ;;  %s257_s0 = sshll.u32 %s7380_s4, 4  ;;  %s258_s0 = int_to_ptr.hbm [resolvable:$true] %s257_s0 }
  0xac   :  { %196 = vsyncpa [#allocation63], 0  ;;  %s7205_s3 = smov [#allocation5]   ;;  %s279_s2 = sshll.u32 %s7390_s12, 4  ;;  %s280_s2 = int_to_ptr.hbm [resolvable:$true] %s279_s2 }
  0xad   :  { %s259_s30 = sshll.u32 %s7205_s3, 4  ;;  %s6095_s16 = sshra.s32 %s258_s0, 4  ;;  %s260_s30 = int_to_ptr.vmem [resolvable:$true] %s259_s30  ;;  %s6096_s16 = int_to_ptr.hbm [resolvable:$true] %s6095_s16 }
  0xae   :  { %s6097_s7 = scalar_lea.hbm %s6096_s16, 1  ;;  %s6099_s11 = scalar_lea.hbm %s7380_s4, 1 }
  0xaf   :  { %p6098_p0 = scmp.ne.s32.totalorder %s6096_s16, %s6097_s7  ;;  %p6100_p1 = scmp.lt.s32.totalorder %s6096_s16, %s7380_s4 }
  0xb0   :  { %p6101_p2 = scmp.lt.s32.totalorder %s6099_s11, %s6097_s7 }
  0xb2   :  { %p6102_p3 = por %p6101_p2, %p6100_p1 }
  0xb4   :  { %p6103_p4 = pnand %p6102_p3, %p6098_p0 }
  0xb6   :  { %6106 = shalt.err (!%p6103_p4)
}
  0xb7   :  { %262 = dma.hbm_to_vmem [thread:$0]  %s258_s0, 16, %s260_s30, [#allocation6]  }
  0xb8   :  { %s7206_s25 = smov [#allocation8]   ;;  %s303_s18 = sshll.u32 %s7405_s20, 4  ;;  %s304_s18 = int_to_ptr.hbm [resolvable:$true] %s303_s18 }
  0xb9   :  { %s281_s15 = sshll.u32 %s7206_s25, 4  ;;  %s6119_s8 = sshra.s32 %s280_s2, 4  ;;  %s282_s15 = int_to_ptr.vmem [resolvable:$true] %s281_s15  ;;  %s6120_s8 = int_to_ptr.hbm [resolvable:$true] %s6119_s8 }
  0xba   :  { %s6121_s9 = scalar_lea.hbm %s6120_s8, 1  ;;  %s6123_s26 = scalar_lea.hbm %s7390_s12, 1 }
  0xbb   :  { %p6122_p5 = scmp.ne.s32.totalorder %s6120_s8, %s6121_s9  ;;  %p6124_p6 = scmp.lt.s32.totalorder %s6120_s8, %s7390_s12 }
  0xbc   :  { %p6125_p7 = scmp.lt.s32.totalorder %s6123_s26, %s6121_s9 }
  0xbe   :  { %p6126_p8 = por %p6125_p7, %p6124_p6 }
  0xc0   :  { %p6127_p9 = pnand %p6126_p8, %p6122_p5 }
  0xc2   :  { %6130 = shalt.err (!%p6127_p9)
}
  0xc3   :  { %284 = dma.hbm_to_vmem [thread:$0]  %s280_s2, 16, %s282_s15, [#allocation9]  }
  0xc4   :  { %s327_s4 = sshll.u32 %s7420_s14, 4  ;;  %s7207_s0 = smov [#allocation11]   ;;  %s328_s4 = int_to_ptr.hbm [resolvable:$true] %s327_s4 }
  0xc5   :  { %s305_s3 = sshll.u32 %s7207_s0, 4  ;;  %s6143_s30 = sshra.s32 %s304_s18, 4  ;;  %s306_s3 = int_to_ptr.vmem [resolvable:$true] %s305_s3  ;;  %s6144_s30 = int_to_ptr.hbm [resolvable:$true] %s6143_s30 }
  0xc6   :  { %s6145_s16 = scalar_lea.hbm %s6144_s30, 1  ;;  %s6147_s7 = scalar_lea.hbm %s7405_s20, 1 }
  0xc7   :  { %p6146_p10 = scmp.ne.s32.totalorder %s6144_s30, %s6145_s16  ;;  %p6148_p11 = scmp.lt.s32.totalorder %s6144_s30, %s7405_s20 }
  0xc8   :  { %p6149_p12 = scmp.lt.s32.totalorder %s6147_s7, %s6145_s16 }
  0xca   :  { %p6150_p13 = por %p6149_p12, %p6148_p11 }
  0xcc   :  { %p6151_p0 = pnand %p6150_p13, %p6146_p10 }
  0xce   :  { %6154 = shalt.err (!%p6151_p0)
}
  0xcf   :  { %308 = dma.hbm_to_vmem [thread:$0]  %s304_s18, 16, %s306_s3, [#allocation12]  }
  0xd0   :  { %s7208_s12 = smov [#allocation14]   ;;  %s351_s11 = sshll.u32 %s7435_s27, 4  ;;  %s352_s11 = int_to_ptr.hbm [resolvable:$true] %s351_s11 }
  0xd1   :  { %s329_s2 = sshll.u32 %s7208_s12, 4  ;;  %s6167_s25 = sshra.s32 %s328_s4, 4  ;;  %s330_s2 = int_to_ptr.vmem [resolvable:$true] %s329_s2  ;;  %s6168_s25 = int_to_ptr.hbm [resolvable:$true] %s6167_s25 }
  0xd2   :  { %s6169_s15 = scalar_lea.hbm %s6168_s25, 1  ;;  %s6171_s8 = scalar_lea.hbm %s7420_s14, 1 }
  0xd3   :  { %p6170_p1 = scmp.ne.s32.totalorder %s6168_s25, %s6169_s15  ;;  %p6172_p2 = scmp.lt.s32.totalorder %s6168_s25, %s7420_s14 }
  0xd4   :  { %p6173_p3 = scmp.lt.s32.totalorder %s6171_s8, %s6169_s15 }
  0xd6   :  { %p6174_p4 = por %p6173_p3, %p6172_p2 }
  0xd8   :  { %p6175_p5 = pnand %p6174_p4, %p6170_p1 }
  0xda   :  { %6178 = shalt.err (!%p6175_p5)
}
  0xdb   :  { %332 = dma.hbm_to_vmem [thread:$0]  %s328_s4, 16, %s330_s2, [#allocation15]  }
  0xdc   :  { %s373_s20 = sshll.u32 %s7445_s21, 4  ;;  %s7209_s18 = smov [#allocation17]   ;;  %s374_s20 = int_to_ptr.hbm [resolvable:$true] %s373_s20 }
  0xdd   :  { %s353_s9 = sshll.u32 %s7209_s18, 4  ;;  %s6191_s26 = sshra.s32 %s352_s11, 4  ;;  %s354_s9 = int_to_ptr.vmem [resolvable:$true] %s353_s9  ;;  %s6192_s26 = int_to_ptr.hbm [resolvable:$true] %s6191_s26 }
  0xde   :  { %s6193_s0 = scalar_lea.hbm %s6192_s26, 1  ;;  %s6195_s3 = scalar_lea.hbm %s7435_s27, 1 }
  0xdf   :  { %p6194_p6 = scmp.ne.s32.totalorder %s6192_s26, %s6193_s0  ;;  %p6196_p7 = scmp.lt.s32.totalorder %s6192_s26, %s7435_s27 }
  0xe0   :  { %p6197_p8 = scmp.lt.s32.totalorder %s6195_s3, %s6193_s0 }
  0xe2   :  { %p6198_p9 = por %p6197_p8, %p6196_p7 }
  0xe4   :  { %p6199_p10 = pnand %p6198_p9, %p6194_p6 }
  0xe6   :  { %6202 = shalt.err (!%p6199_p10)
}
  0xe7   :  { %356 = dma.hbm_to_vmem [thread:$0]  %s352_s11, 16, %s354_s9, [#allocation18]  }
  0xe8   :  { %s7210_s14 = smov [#allocation20]   ;;  %s397_s30 = sshll.u32 %s7460_s29, 4  ;;  %s398_s30 = int_to_ptr.hbm [resolvable:$true] %s397_s30 }
  0xe9   :  { %s375_s4 = sshll.u32 %s7210_s14, 4  ;;  %s6215_s16 = sshra.s32 %s374_s20, 4  ;;  %s376_s4 = int_to_ptr.vmem [resolvable:$true] %s375_s4  ;;  %s6216_s16 = int_to_ptr.hbm [resolvable:$true] %s6215_s16 }
  0xea   :  { %s6217_s7 = scalar_lea.hbm %s6216_s16, 1  ;;  %s6219_s12 = scalar_lea.hbm %s7445_s21, 1 }
  0xeb   :  { %p6218_p11 = scmp.ne.s32.totalorder %s6216_s16, %s6217_s7  ;;  %p6220_p12 = scmp.lt.s32.totalorder %s6216_s16, %s7445_s21 }
  0xec   :  { %p6221_p13 = scmp.lt.s32.totalorder %s6219_s12, %s6217_s7 }
  0xee   :  { %p6222_p0 = por %p6221_p13, %p6220_p12 }
  0xf0   :  { %p6223_p1 = pnand %p6222_p0, %p6218_p11 }
  0xf2   :  { %6226 = shalt.err (!%p6223_p1)
}
  0xf3   :  { %378 = dma.hbm_to_vmem [thread:$0]  %s374_s20, 16, %s376_s4, [#allocation21]  }
  0xf4   :  { %s425_s27 = sshll.u32 %s7485_s1, 4  ;;  %s7211_s2 = smov [#allocation23]   ;;  %s426_s27 = int_to_ptr.hbm [resolvable:$true] %s425_s27 }
  0xf5   :  { %s399_s11 = sshll.u32 %s7211_s2, 4  ;;  %s6239_s25 = sshra.s32 %s398_s30, 4  ;;  %s400_s11 = int_to_ptr.vmem [resolvable:$true] %s399_s11  ;;  %s6240_s25 = int_to_ptr.hbm [resolvable:$true] %s6239_s25 }
  0xf6   :  { %s6241_s15 = scalar_lea.hbm %s6240_s25, 1  ;;  %s6243_s8 = scalar_lea.hbm %s7460_s29, 1 }
  0xf7   :  { %p6242_p2 = scmp.ne.s32.totalorder %s6240_s25, %s6241_s15  ;;  %p6244_p3 = scmp.lt.s32.totalorder %s6240_s25, %s7460_s29 }
  0xf8   :  { %p6245_p4 = scmp.lt.s32.totalorder %s6243_s8, %s6241_s15 }
  0xfa   :  { %p6246_p5 = por %p6245_p4, %p6244_p3 }
  0xfc   :  { %p6247_p6 = pnand %p6246_p5, %p6242_p2 }
  0xfe   :  { %6250 = shalt.err (!%p6247_p6)
}
  0xff   :  { %402 = dma.hbm_to_vmem [thread:$0]  %s398_s30, 16, %s400_s11, [#allocation24]  }
 0x100   :  { %s7212_s21 = smov [#allocation26]   ;;  %s449_s18 = sshll.u32 %s7500_s23, 4  ;;  %s450_s18 = int_to_ptr.hbm [resolvable:$true] %s449_s18 }
 0x101   :  { %s427_s20 = sshll.u32 %s7212_s21, 4  ;;  %s6263_s9 = sshra.s32 %s426_s27, 4  ;;  %s428_s20 = int_to_ptr.vmem [resolvable:$true] %s427_s20  ;;  %s6264_s9 = int_to_ptr.hbm [resolvable:$true] %s6263_s9 }
 0x102   :  { %s6265_s26 = scalar_lea.hbm %s6264_s9, 1  ;;  %s6267_s0 = scalar_lea.hbm %s7485_s1, 1 }
 0x103   :  { %p6266_p7 = scmp.ne.s32.totalorder %s6264_s9, %s6265_s26  ;;  %p6268_p8 = scmp.lt.s32.totalorder %s6264_s9, %s7485_s1 }
 0x104   :  { %p6269_p9 = scmp.lt.s32.totalorder %s6267_s0, %s6265_s26 }
 0x106   :  { %p6270_p10 = por %p6269_p9, %p6268_p8 }
 0x108   :  { %p6271_p11 = pnand %p6270_p10, %p6266_p7 }
 0x10a   :  { %6274 = shalt.err (!%p6271_p11)
}
 0x10b   :  { %430 = dma.hbm_to_vmem [thread:$0]  %s426_s27, 16, %s428_s20, [#allocation27]  }
 0x10c   :  { %s471_s29 = sshll.u32 %s7510_s10, 4  ;;  %s7213_s3 = smov [#allocation29]   ;;  %s472_s29 = int_to_ptr.hbm [resolvable:$true] %s471_s29 }
 0x10d   :  { %s451_s14 = sshll.u32 %s7213_s3, 4  ;;  %s6287_s4 = sshra.s32 %s450_s18, 4  ;;  %s452_s14 = int_to_ptr.vmem [resolvable:$true] %s451_s14  ;;  %s6288_s4 = int_to_ptr.hbm [resolvable:$true] %s6287_s4 }
 0x10e   :  { %s6289_s30 = scalar_lea.hbm %s6288_s4, 1  ;;  %s6291_s16 = scalar_lea.hbm %s7500_s23, 1 }
 0x10f   :  { %p6290_p12 = scmp.ne.s32.totalorder %s6288_s4, %s6289_s30  ;;  %p6292_p13 = scmp.lt.s32.totalorder %s6288_s4, %s7500_s23 }
 0x110   :  { %p6293_p0 = scmp.lt.s32.totalorder %s6291_s16, %s6289_s30 }
 0x112   :  { %p6294_p1 = por %p6293_p0, %p6292_p13 }
 0x114   :  { %p6295_p2 = pnand %p6294_p1, %p6290_p12 }
 0x116   :  { %6298 = shalt.err (!%p6295_p2)
}
 0x117   :  { %454 = dma.hbm_to_vmem [thread:$0]  %s450_s18, 16, %s452_s14, [#allocation30]  }
 0x118   :  { %s7214_s1 = smov [#allocation32]   ;;  %s495_s12 = sshll.u32 %s7526_s28, 4  ;;  %s496_s12 = int_to_ptr.hbm [resolvable:$true] %s495_s12 }
 0x119   :  { %s473_s7 = sshll.u32 %s7214_s1, 4  ;;  %s6311_s27 = sshra.s32 %s472_s29, 4  ;;  %s474_s7 = int_to_ptr.vmem [resolvable:$true] %s473_s7  ;;  %s6312_s27 = int_to_ptr.hbm [resolvable:$true] %s6311_s27 }
 0x11a   :  { %s6313_s2 = scalar_lea.hbm %s6312_s27, 1  ;;  %s6315_s11 = scalar_lea.hbm %s7510_s10, 1 }
 0x11b   :  { %p6314_p3 = scmp.ne.s32.totalorder %s6312_s27, %s6313_s2  ;;  %p6316_p4 = scmp.lt.s32.totalorder %s6312_s27, %s7510_s10 }
 0x11c   :  { %p6317_p5 = scmp.lt.s32.totalorder %s6315_s11, %s6313_s2 }
 0x11e   :  { %p6318_p6 = por %p6317_p5, %p6316_p4 }
 0x120   :  { %p6319_p7 = pnand %p6318_p6, %p6314_p3 }
 0x122   :  { %6322 = shalt.err (!%p6319_p7)
}
 0x123   :  { %476 = dma.hbm_to_vmem [thread:$0]  %s472_s29, 16, %s474_s7, [#allocation33]  }
 0x124   :  { %s521_s23 = sshll.u32 %s7541_s22, 4  ;;  %s7215_s25 = smov [#allocation35]   ;;  %s522_s23 = int_to_ptr.hbm [resolvable:$true] %s521_s23 }
 0x125   :  { %s497_s15 = sshll.u32 %s7215_s25, 4  ;;  %s6335_s8 = sshra.s32 %s496_s12, 4  ;;  %s498_s15 = int_to_ptr.vmem [resolvable:$true] %s497_s15  ;;  %s6336_s8 = int_to_ptr.hbm [resolvable:$true] %s6335_s8 }
 0x126   :  { %s6337_s21 = scalar_lea.hbm %s6336_s8, 1  ;;  %s6339_s20 = scalar_lea.hbm %s7526_s28, 1 }
 0x127   :  { %p6338_p8 = scmp.ne.s32.totalorder %s6336_s8, %s6337_s21  ;;  %p6340_p9 = scmp.lt.s32.totalorder %s6336_s8, %s7526_s28 }
 0x128   :  { %p6341_p10 = scmp.lt.s32.totalorder %s6339_s20, %s6337_s21 }
 0x12a   :  { %p6342_p11 = por %p6341_p10, %p6340_p9 }
 0x12c   :  { %p6343_p12 = pnand %p6342_p11, %p6338_p8 }
 0x12e   :  { %6346 = shalt.err (!%p6343_p12)
}
 0x12f   :  { %500 = dma.hbm_to_vmem [thread:$0]  %s496_s12, 16, %s498_s15, [#allocation36]  }
 0x130   :  { %s7216_s10 = smov [#allocation38]   ;;  %s545_s9 = sshll.u32 %s7556_s17, 4  ;;  %s546_s9 = int_to_ptr.hbm [resolvable:$true] %s545_s9 }
 0x131   :  { %s523_s18 = sshll.u32 %s7216_s10, 4  ;;  %s6359_s26 = sshra.s32 %s522_s23, 4  ;;  %s524_s18 = int_to_ptr.vmem [resolvable:$true] %s523_s18  ;;  %s6360_s26 = int_to_ptr.hbm [resolvable:$true] %s6359_s26 }
 0x132   :  { %s6361_s0 = scalar_lea.hbm %s6360_s26, 1  ;;  %s6363_s29 = scalar_lea.hbm %s7541_s22, 1 }
 0x133   :  { %p6362_p13 = scmp.ne.s32.totalorder %s6360_s26, %s6361_s0  ;;  %p6364_p0 = scmp.lt.s32.totalorder %s6360_s26, %s7541_s22 }
 0x134   :  { %p6365_p1 = scmp.lt.s32.totalorder %s6363_s29, %s6361_s0 }
 0x136   :  { %p6366_p2 = por %p6365_p1, %p6364_p0 }
 0x138   :  { %p6367_p3 = pnand %p6366_p2, %p6362_p13 }
 0x13a   :  { %6370 = shalt.err (!%p6367_p3)
}
 0x13b   :  { %526 = dma.hbm_to_vmem [thread:$0]  %s522_s23, 16, %s524_s18, [#allocation39]  }
 0x13c   :  { %s571_s28 = sshll.u32 %s7576_s13, 4  ;;  %s7217_s3 = smov [#allocation41]   ;;  %s572_s28 = int_to_ptr.hbm [resolvable:$true] %s571_s28 }
 0x13d   :  { %s547_s14 = sshll.u32 %s7217_s3, 4  ;;  %s6383_s4 = sshra.s32 %s546_s9, 4  ;;  %s548_s14 = int_to_ptr.vmem [resolvable:$true] %s547_s14  ;;  %s6384_s4 = int_to_ptr.hbm [resolvable:$true] %s6383_s4 }
 0x13e   :  { %s6385_s30 = scalar_lea.hbm %s6384_s4, 2  ;;  %s6387_s16 = scalar_lea.hbm %s7556_s17, 2 }
 0x13f   :  { %p6386_p4 = scmp.ne.s32.totalorder %s6384_s4, %s6385_s30  ;;  %p6388_p5 = scmp.lt.s32.totalorder %s6384_s4, %s7556_s17 }
 0x140   :  { %p6389_p6 = scmp.lt.s32.totalorder %s6387_s16, %s6385_s30 }
 0x142   :  { %p6390_p7 = por %p6389_p6, %p6388_p5 }
 0x144   :  { %p6391_p8 = pnand %p6390_p7, %p6386_p4 }
 0x146   :  { %6394 = shalt.err (!%p6391_p8)
}
 0x147   :  { %550 = dma.hbm_to_vmem [thread:$0]  %s546_s9, 32, %s548_s14, [#allocation42]  }
 0x148   :  { %s9055_s22 = sld [smem:[#allocation135_spill]]  ;;  %s7218_s1 = smov [#allocation44]  }
 0x149   :  { %s573_s7 = sshll.u32 %s7218_s1, 4  ;;  %s6407_s27 = sshra.s32 %s572_s28, 4  ;;  %s574_s7 = int_to_ptr.vmem [resolvable:$true] %s573_s7  ;;  %s6408_s27 = int_to_ptr.hbm [resolvable:$true] %s6407_s27 }
 0x14a   :  { %s6409_s2 = scalar_lea.hbm %s6408_s27, 1  ;;  %s6411_s11 = scalar_lea.hbm %s7576_s13, 1 }
 0x14b   :  { %p6410_p9 = scmp.ne.s32.totalorder %s6408_s27, %s6409_s2  ;;  %p6412_p10 = scmp.lt.s32.totalorder %s6408_s27, %s7576_s13 }
 0x14c   :  { %p6413_p11 = scmp.lt.s32.totalorder %s6411_s11, %s6409_s2 }
 0x14e   :  { %s593_s12 = sshll.u32 %s9055_s22, 4  ;;  %p6414_p12 = por %p6413_p11, %p6412_p10  ;;  %s594_s12 = int_to_ptr.hbm [resolvable:$true] %s593_s12 }
 0x150   :  { %p6415_p13 = pnand %p6414_p12, %p6410_p9 }
 0x152   :  { %6418 = shalt.err (!%p6415_p13)
}
 0x153   :  { %576 = dma.hbm_to_vmem [thread:$0]  %s572_s28, 16, %s574_s7, [#allocation45]  }
 0x154   :  { %s9056_s17 = sld [smem:[#allocation137_spill]]  ;;  %s7219_s25 = smov [#allocation47]  }
 0x155   :  { %s595_s15 = sshll.u32 %s7219_s25, 4  ;;  %s6431_s8 = sshra.s32 %s594_s12, 4  ;;  %s596_s15 = int_to_ptr.vmem [resolvable:$true] %s595_s15  ;;  %s6432_s8 = int_to_ptr.hbm [resolvable:$true] %s6431_s8 }
 0x156   :  { %s6433_s21 = scalar_lea.hbm %s6432_s8, 1  ;;  %s6435_s20 = scalar_lea.hbm %s9055_s22, 1 }
 0x157   :  { %p6434_p0 = scmp.ne.s32.totalorder %s6432_s8, %s6433_s21  ;;  %p6436_p1 = scmp.lt.s32.totalorder %s6432_s8, %s9055_s22 }
 0x158   :  { %p6437_p2 = scmp.lt.s32.totalorder %s6435_s20, %s6433_s21 }
 0x15a   :  { %s615_s23 = sshll.u32 %s9056_s17, 4  ;;  %p6438_p3 = por %p6437_p2, %p6436_p1  ;;  %s616_s23 = int_to_ptr.hbm [resolvable:$true] %s615_s23 }
 0x15c   :  { %p6439_p4 = pnand %p6438_p3, %p6434_p0 }
 0x15e   :  { %6442 = shalt.err (!%p6439_p4)
}
 0x15f   :  { %598 = dma.hbm_to_vmem [thread:$0]  %s594_s12, 16, %s596_s15, [#allocation48]  }
 0x160   :  { %s9057_s13 = sld [smem:[#allocation142_spill]]  ;;  %s7220_s10 = smov [#allocation50]  }
 0x161   :  { %s617_s18 = sshll.u32 %s7220_s10, 4  ;;  %s6455_s26 = sshra.s32 %s616_s23, 4  ;;  %s618_s18 = int_to_ptr.vmem [resolvable:$true] %s617_s18  ;;  %s6456_s26 = int_to_ptr.hbm [resolvable:$true] %s6455_s26 }
 0x162   :  { %s6457_s0 = scalar_lea.hbm %s6456_s26, 1  ;;  %s6459_s29 = scalar_lea.hbm %s9056_s17, 1 }
 0x163   :  { %p6458_p5 = scmp.ne.s32.totalorder %s6456_s26, %s6457_s0  ;;  %p6460_p6 = scmp.lt.s32.totalorder %s6456_s26, %s9056_s17 }
 0x164   :  { %p6461_p7 = scmp.lt.s32.totalorder %s6459_s29, %s6457_s0 }
 0x166   :  { %s643_s9 = sshll.u32 %s9057_s13, 4  ;;  %p6462_p8 = por %p6461_p7, %p6460_p6  ;;  %s644_s9 = int_to_ptr.hbm [resolvable:$true] %s643_s9 }
 0x168   :  { %p6463_p9 = pnand %p6462_p8, %p6458_p5 }
 0x16a   :  { %6466 = shalt.err (!%p6463_p9)
}
 0x16b   :  { %620 = dma.hbm_to_vmem [thread:$0]  %s616_s23, 16, %s618_s18, [#allocation51]  }
 0x16c   :  { %s9058_s28 = sld [smem:[#allocation146_spill]]  ;;  %s7221_s14 = smov [#allocation53]  }
 0x16d   :  { %s645_s4 = sshll.u32 %s7221_s14, 4  ;;  %s6479_s30 = sshra.s32 %s644_s9, 4  ;;  %s646_s4 = int_to_ptr.vmem [resolvable:$true] %s645_s4  ;;  %s6480_s30 = int_to_ptr.hbm [resolvable:$true] %s6479_s30 }
 0x16e   :  { %s6481_s16 = scalar_lea.hbm %s6480_s30, 2  ;;  %s6483_s22 = scalar_lea.hbm %s9057_s13, 2 }
 0x16f   :  { %p6482_p10 = scmp.ne.s32.totalorder %s6480_s30, %s6481_s16  ;;  %p6484_p11 = scmp.lt.s32.totalorder %s6480_s30, %s9057_s13 }
 0x170   :  { %p6485_p12 = scmp.lt.s32.totalorder %s6483_s22, %s6481_s16 }
 0x172   :  { %s669_s3 = sshll.u32 %s9058_s28, 4  ;;  %p6486_p13 = por %p6485_p12, %p6484_p11  ;;  %s670_s3 = int_to_ptr.hbm [resolvable:$true] %s669_s3 }
 0x174   :  { %p6487_p0 = pnand %p6486_p13, %p6482_p10 }
 0x176   :  { %6490 = shalt.err (!%p6487_p0)
}
 0x177   :  { %648 = dma.hbm_to_vmem [thread:$0]  %s644_s9, 32, %s646_s4, [#allocation54]  }
 0x178   :  { %s9059_s1 = sld [smem:[#allocation148_spill]]  ;;  %s7222_s7 = smov [#allocation56]  }
 0x179   :  { %s671_s12 = sshll.u32 %s7222_s7, 4  ;;  %s6503_s2 = sshra.s32 %s670_s3, 4  ;;  %s672_s12 = int_to_ptr.vmem [resolvable:$true] %s671_s12  ;;  %s6504_s2 = int_to_ptr.hbm [resolvable:$true] %s6503_s2 }
 0x17a   :  { %s6505_s11 = scalar_lea.hbm %s6504_s2, 1  ;;  %s6507_s17 = scalar_lea.hbm %s9058_s28, 1 }
 0x17b   :  { %p6506_p1 = scmp.ne.s32.totalorder %s6504_s2, %s6505_s11  ;;  %p6508_p2 = scmp.lt.s32.totalorder %s6504_s2, %s9058_s28 }
 0x17c   :  { %p6509_p3 = scmp.lt.s32.totalorder %s6507_s17, %s6505_s11 }
 0x17e   :  { %s691_s27 = sshll.u32 %s9059_s1, 4  ;;  %p6510_p4 = por %p6509_p3, %p6508_p2  ;;  %s692_s27 = int_to_ptr.hbm [resolvable:$true] %s691_s27 }
 0x180   :  { %p6511_p5 = pnand %p6510_p4, %p6506_p1 }
 0x182   :  { %6514 = shalt.err (!%p6511_p5)
}
 0x183   :  { %674 = dma.hbm_to_vmem [thread:$0]  %s670_s3, 16, %s672_s12, [#allocation57]  }
 0x184   :  { %s9060_s23 = sld [smem:[#allocation150_spill]]  ;;  %s7223_s15 = smov [#allocation59]  }
 0x185   :  { %s693_s8 = sshll.u32 %s7223_s15, 4  ;;  %s6527_s21 = sshra.s32 %s692_s27, 4  ;;  %s694_s8 = int_to_ptr.vmem [resolvable:$true] %s693_s8  ;;  %s6528_s21 = int_to_ptr.hbm [resolvable:$true] %s6527_s21 }
 0x186   :  { %s6529_s20 = scalar_lea.hbm %s6528_s21, 1  ;;  %s6531_s13 = scalar_lea.hbm %s9059_s1, 1 }
 0x187   :  { %p6530_p6 = scmp.ne.s32.totalorder %s6528_s21, %s6529_s20  ;;  %p6532_p7 = scmp.lt.s32.totalorder %s6528_s21, %s9059_s1 }
 0x188   :  { %p6533_p8 = scmp.lt.s32.totalorder %s6531_s13, %s6529_s20 }
 0x18a   :  { %s713_s25 = sshll.u32 %s9060_s23, 4  ;;  %p6534_p9 = por %p6533_p8, %p6532_p7  ;;  %s714_s25 = int_to_ptr.hbm [resolvable:$true] %s713_s25 }
 0x18c   :  { %p6535_p10 = pnand %p6534_p9, %p6530_p6 }
 0x18e   :  { %6538 = shalt.err (!%p6535_p10)
}
 0x18f   :  { %696 = dma.hbm_to_vmem [thread:$0]  %s692_s27, 16, %s694_s8, [#allocation60]  }
 0x190   :  { %s9061_s10 = sld [smem:[#allocation106_spill]]  ;;  %s7224_s18 = smov [#allocation62]  }
 0x191   :  { %s715_s9 = sshll.u32 %s7224_s18, 4  ;;  %s6551_s0 = sshra.s32 %s714_s25, 4  ;;  %s716_s9 = int_to_ptr.vmem [resolvable:$true] %s715_s9  ;;  %s6552_s0 = int_to_ptr.hbm [resolvable:$true] %s6551_s0 }
 0x192   :  { %s6553_s29 = scalar_lea.hbm %s6552_s0, 1  ;;  %s6555_s28 = scalar_lea.hbm %s9060_s23, 1 }
 0x193   :  { %p6554_p11 = scmp.ne.s32.totalorder %s6552_s0, %s6553_s29  ;;  %p6556_p12 = scmp.lt.s32.totalorder %s6552_s0, %s9060_s23 }
 0x194   :  { %p6557_p13 = scmp.lt.s32.totalorder %s6555_s28, %s6553_s29 }
 0x196   :  { %s244_s26 = sshll.u32 %s9061_s10, 4  ;;  %p6558_p0 = por %p6557_p13, %p6556_p12  ;;  %s245_s26 = int_to_ptr.hbm [resolvable:$true] %s244_s26 }
 0x198   :  { %p6559_p1 = pnand %p6558_p0, %p6554_p11 }
 0x19a   :  { %6562 = shalt.err (!%p6559_p1)
}
 0x19b   :  { %718 = dma.hbm_to_vmem [thread:$0]  %s714_s25, 16, %s716_s9, [#allocation63]  }
 0x19c   :  { %s9062_s3 = sld [smem:[#allocation108_spill]]  ;;  %s7225_s4 = smov [#allocation3]  }
 0x19d   :  { %s246_s30 = sshll.u32 %s7225_s4, 4  ;;  %s6575_s16 = sshra.s32 %s245_s26, 4  ;;  %s247_s30 = int_to_ptr.vmem [resolvable:$true] %s246_s30  ;;  %s6576_s16 = int_to_ptr.hbm [resolvable:$true] %s6575_s16 }
 0x19e   :  { %s6577_s22 = scalar_lea.hbm %s6576_s16, 1  ;;  %s6579_s1 = scalar_lea.hbm %s9061_s10, 1 }
 0x19f   :  { %p6578_p2 = scmp.ne.s32.totalorder %s6576_s16, %s6577_s22  ;;  %p6580_p3 = scmp.lt.s32.totalorder %s6576_s16, %s9061_s10 }
 0x1a0   :  { %p6581_p4 = scmp.lt.s32.totalorder %s6579_s1, %s6577_s22 }
 0x1a2   :  { %s268_s14 = sshll.u32 %s9062_s3, 4  ;;  %p6582_p5 = por %p6581_p4, %p6580_p3  ;;  %s269_s14 = int_to_ptr.hbm [resolvable:$true] %s268_s14 }
 0x1a4   :  { %p6583_p6 = pnand %p6582_p5, %p6578_p2 }
 0x1a6   :  { %6586 = shalt.err (!%p6583_p6)
}
 0x1a7   :  { %249 = dma.hbm_to_vmem [thread:$0]  %s245_s26, 16, %s247_s30, [#allocation4]  }
 0x1a8   :  { %s9063_s7 = sld [smem:[#allocation110_spill]]  ;;  %s7226_s12 = smov [#allocation7]  }
 0x1a9   :  { %s270_s27 = sshll.u32 %s7226_s12, 4  ;;  %s6599_s11 = sshra.s32 %s269_s14, 4  ;;  %s271_s27 = int_to_ptr.vmem [resolvable:$true] %s270_s27  ;;  %s6600_s11 = int_to_ptr.hbm [resolvable:$true] %s6599_s11 }
 0x1aa   :  { %s6601_s17 = scalar_lea.hbm %s6600_s11, 1  ;;  %s6603_s23 = scalar_lea.hbm %s9062_s3, 1 }
 0x1ab   :  { %p6602_p7 = scmp.ne.s32.totalorder %s6600_s11, %s6601_s17  ;;  %p6604_p8 = scmp.lt.s32.totalorder %s6600_s11, %s9062_s3 }
 0x1ac   :  { %p6605_p9 = scmp.lt.s32.totalorder %s6603_s23, %s6601_s17 }
 0x1ae   :  { %s292_s2 = sshll.u32 %s9063_s7, 4  ;;  %p6606_p10 = por %p6605_p9, %p6604_p8  ;;  %s293_s2 = int_to_ptr.hbm [resolvable:$true] %s292_s2 }
 0x1b0   :  { %p6607_p11 = pnand %p6606_p10, %p6602_p7 }
 0x1b2   :  { %6610 = shalt.err (!%p6607_p11)
}
 0x1b3   :  { %273 = dma.hbm_to_vmem [thread:$0]  %s269_s14, 16, %s271_s27, [#allocation6]  }
 0x1b4   :  { %s9064_s25 = sld [smem:[#allocation111_spill]]  ;;  %s7227_s8 = smov [#allocation10]  }
 0x1b5   :  { %s294_s21 = sshll.u32 %s7227_s8, 4  ;;  %s6623_s20 = sshra.s32 %s293_s2, 4  ;;  %s295_s21 = int_to_ptr.vmem [resolvable:$true] %s294_s21  ;;  %s6624_s20 = int_to_ptr.hbm [resolvable:$true] %s6623_s20 }
 0x1b6   :  { %s6625_s13 = scalar_lea.hbm %s6624_s20, 1  ;;  %s6627_s10 = scalar_lea.hbm %s9063_s7, 1 }
 0x1b7   :  { %p6626_p12 = scmp.ne.s32.totalorder %s6624_s20, %s6625_s13  ;;  %p6628_p13 = scmp.lt.s32.totalorder %s6624_s20, %s9063_s7 }
 0x1b8   :  { %p6629_p0 = scmp.lt.s32.totalorder %s6627_s10, %s6625_s13 }
 0x1ba   :  { %s314_s15 = sshll.u32 %s9064_s25, 4  ;;  %p6630_p1 = por %p6629_p0, %p6628_p13  ;;  %s315_s15 = int_to_ptr.hbm [resolvable:$true] %s314_s15 }
 0x1bc   :  { %p6631_p2 = pnand %p6630_p1, %p6626_p12 }
 0x1be   :  { %6634 = shalt.err (!%p6631_p2)
}
 0x1bf   :  { %297 = dma.hbm_to_vmem [thread:$0]  %s293_s2, 16, %s295_s21, [#allocation9]  }
 0x1c0   :  { %s9065_s18 = sld [smem:[#allocation114_spill]]  ;;  %s7228_s9 = smov [#allocation13]  }
 0x1c1   :  { %s316_s26 = sshll.u32 %s7228_s9, 4  ;;  %s6647_s29 = sshra.s32 %s315_s15, 4  ;;  %s317_s26 = int_to_ptr.vmem [resolvable:$true] %s316_s26  ;;  %s6648_s29 = int_to_ptr.hbm [resolvable:$true] %s6647_s29 }
 0x1c2   :  { %s6649_s28 = scalar_lea.hbm %s6648_s29, 1  ;;  %s6651_s3 = scalar_lea.hbm %s9064_s25, 1 }
 0x1c3   :  { %p6650_p3 = scmp.ne.s32.totalorder %s6648_s29, %s6649_s28  ;;  %p6652_p4 = scmp.lt.s32.totalorder %s6648_s29, %s9064_s25 }
 0x1c4   :  { %p6653_p5 = scmp.lt.s32.totalorder %s6651_s3, %s6649_s28 }
 0x1c6   :  { %s340_s0 = sshll.u32 %s9065_s18, 4  ;;  %p6654_p6 = por %p6653_p5, %p6652_p4  ;;  %s341_s0 = int_to_ptr.hbm [resolvable:$true] %s340_s0 }
 0x1c8   :  { %p6655_p7 = pnand %p6654_p6, %p6650_p3 }
 0x1ca   :  { %6658 = shalt.err (!%p6655_p7)
}
 0x1cb   :  { %319 = dma.hbm_to_vmem [thread:$0]  %s315_s15, 16, %s317_s26, [#allocation12]  }
 0x1cc   :  { %s9066_s14 = sld [smem:[#allocation115_spill]]  ;;  %s7229_s30 = smov [#allocation16]  }
 0x1cd   :  { %s342_s16 = sshll.u32 %s7229_s30, 4  ;;  %s6671_s22 = sshra.s32 %s341_s0, 4  ;;  %s343_s16 = int_to_ptr.vmem [resolvable:$true] %s342_s16  ;;  %s6672_s22 = int_to_ptr.hbm [resolvable:$true] %s6671_s22 }
 0x1ce   :  { %s6673_s1 = scalar_lea.hbm %s6672_s22, 1  ;;  %s6675_s7 = scalar_lea.hbm %s9065_s18, 1 }
 0x1cf   :  { %p6674_p8 = scmp.ne.s32.totalorder %s6672_s22, %s6673_s1  ;;  %p6676_p9 = scmp.lt.s32.totalorder %s6672_s22, %s9065_s18 }
 0x1d0   :  { %p6677_p10 = scmp.lt.s32.totalorder %s6675_s7, %s6673_s1 }
 0x1d2   :  { %s362_s4 = sshll.u32 %s9066_s14, 4  ;;  %p6678_p11 = por %p6677_p10, %p6676_p9  ;;  %s363_s4 = int_to_ptr.hbm [resolvable:$true] %s362_s4 }
 0x1d4   :  { %p6679_p12 = pnand %p6678_p11, %p6674_p8 }
 0x1d6   :  { %6682 = shalt.err (!%p6679_p12)
}
 0x1d7   :  { %345 = dma.hbm_to_vmem [thread:$0]  %s341_s0, 16, %s343_s16, [#allocation15]  }
 0x1d8   :  { %s9067_s12 = sld [smem:[#allocation116_spill]]  ;;  %s7230_s27 = smov [#allocation19]  }
 0x1d9   :  { %s364_s2 = sshll.u32 %s7230_s27, 4  ;;  %s6695_s17 = sshra.s32 %s363_s4, 4  ;;  %s365_s2 = int_to_ptr.vmem [resolvable:$true] %s364_s2  ;;  %s6696_s17 = int_to_ptr.hbm [resolvable:$true] %s6695_s17 }
 0x1da   :  { %s6697_s23 = scalar_lea.hbm %s6696_s17, 1  ;;  %s6699_s25 = scalar_lea.hbm %s9066_s14, 1 }
 0x1db   :  { %p6698_p13 = scmp.ne.s32.totalorder %s6696_s17, %s6697_s23  ;;  %p6700_p0 = scmp.lt.s32.totalorder %s6696_s17, %s9066_s14 }
 0x1dc   :  { %p6701_p1 = scmp.lt.s32.totalorder %s6699_s25, %s6697_s23 }
 0x1de   :  { %s384_s11 = sshll.u32 %s9067_s12, 4  ;;  %p6702_p2 = por %p6701_p1, %p6700_p0  ;;  %s385_s11 = int_to_ptr.hbm [resolvable:$true] %s384_s11 }
 0x1e0   :  { %p6703_p3 = pnand %p6702_p2, %p6698_p13 }
 0x1e2   :  { %6706 = shalt.err (!%p6703_p3)
}
 0x1e3   :  { %367 = dma.hbm_to_vmem [thread:$0]  %s363_s4, 16, %s365_s2, [#allocation18]  }
 0x1e4   :  { %s9068_s15 = sld [smem:[#allocation120_spill]]  ;;  %s7231_s21 = smov [#allocation22]  }
 0x1e5   :  { %s386_s20 = sshll.u32 %s7231_s21, 4  ;;  %s6719_s13 = sshra.s32 %s385_s11, 4  ;;  %s387_s20 = int_to_ptr.vmem [resolvable:$true] %s386_s20  ;;  %s6720_s13 = int_to_ptr.hbm [resolvable:$true] %s6719_s13 }
 0x1e6   :  { %s6721_s10 = scalar_lea.hbm %s6720_s13, 1  ;;  %s6723_s18 = scalar_lea.hbm %s9067_s12, 1 }
 0x1e7   :  { %p6722_p4 = scmp.ne.s32.totalorder %s6720_s13, %s6721_s10  ;;  %p6724_p5 = scmp.lt.s32.totalorder %s6720_s13, %s9067_s12 }
 0x1e8   :  { %p6725_p6 = scmp.lt.s32.totalorder %s6723_s18, %s6721_s10 }
 0x1ea   :  { %s412_s8 = sshll.u32 %s9068_s15, 4  ;;  %p6726_p7 = por %p6725_p6, %p6724_p5  ;;  %s413_s8 = int_to_ptr.hbm [resolvable:$true] %s412_s8 }
 0x1ec   :  { %p6727_p8 = pnand %p6726_p7, %p6722_p4 }
 0x1ee   :  { %6730 = shalt.err (!%p6727_p8)
}
 0x1ef   :  { %389 = dma.hbm_to_vmem [thread:$0]  %s385_s11, 16, %s387_s20, [#allocation21]  }
 0x1f0   :  { %s9069_s9 = sld [smem:[#allocation123_spill]]  ;;  %s7232_s26 = smov [#allocation25]  }
 0x1f1   :  { %s414_s0 = sshll.u32 %s7232_s26, 4  ;;  %s6743_s28 = sshra.s32 %s413_s8, 4  ;;  %s415_s0 = int_to_ptr.vmem [resolvable:$true] %s414_s0  ;;  %s6744_s28 = int_to_ptr.hbm [resolvable:$true] %s6743_s28 }
 0x1f2   :  { %s6745_s3 = scalar_lea.hbm %s6744_s28, 1  ;;  %s6747_s14 = scalar_lea.hbm %s9068_s15, 1 }
 0x1f3   :  { %p6746_p9 = scmp.ne.s32.totalorder %s6744_s28, %s6745_s3  ;;  %p6748_p10 = scmp.lt.s32.totalorder %s6744_s28, %s9068_s15 }
 0x1f4   :  { %p6749_p11 = scmp.lt.s32.totalorder %s6747_s14, %s6745_s3 }
 0x1f6   :  { %s438_s29 = sshll.u32 %s9069_s9, 4  ;;  %p6750_p12 = por %p6749_p11, %p6748_p10  ;;  %s439_s29 = int_to_ptr.hbm [resolvable:$true] %s438_s29 }
 0x1f8   :  { %p6751_p13 = pnand %p6750_p12, %p6746_p9 }
 0x1fa   :  { %6754 = shalt.err (!%p6751_p13)
}
 0x1fb   :  { %417 = dma.hbm_to_vmem [thread:$0]  %s413_s8, 16, %s415_s0, [#allocation24]  }
 0x1fc   :  { %s9070_s4 = sld [smem:[#allocation124_spill]]  ;;  %s7233_s16 = smov [#allocation28]  }
 0x1fd   :  { %s440_s22 = sshll.u32 %s7233_s16, 4  ;;  %s6767_s1 = sshra.s32 %s439_s29, 4  ;;  %s441_s22 = int_to_ptr.vmem [resolvable:$true] %s440_s22  ;;  %s6768_s1 = int_to_ptr.hbm [resolvable:$true] %s6767_s1 }
 0x1fe   :  { %s6769_s7 = scalar_lea.hbm %s6768_s1, 1  ;;  %s6771_s12 = scalar_lea.hbm %s9069_s9, 1 }
 0x1ff   :  { %p6770_p0 = scmp.ne.s32.totalorder %s6768_s1, %s6769_s7  ;;  %p6772_p1 = scmp.lt.s32.totalorder %s6768_s1, %s9069_s9 }
 0x200   :  { %p6773_p2 = scmp.lt.s32.totalorder %s6771_s12, %s6769_s7 }
 0x202   :  { %s460_s30 = sshll.u32 %s9070_s4, 4  ;;  %p6774_p3 = por %p6773_p2, %p6772_p1  ;;  %s461_s30 = int_to_ptr.hbm [resolvable:$true] %s460_s30 }
 0x204   :  { %p6775_p4 = pnand %p6774_p3, %p6770_p0 }
 0x206   :  { %6778 = shalt.err (!%p6775_p4)
}
 0x207   :  { %443 = dma.hbm_to_vmem [thread:$0]  %s439_s29, 16, %s441_s22, [#allocation27]  }
 0x208   :  { %s9071_s27 = sld [smem:[#allocation125_spill]]  ;;  %s7234_s2 = smov [#allocation31]  }
 0x209   :  { %s462_s11 = sshll.u32 %s7234_s2, 4  ;;  %s6791_s23 = sshra.s32 %s461_s30, 4  ;;  %s463_s11 = int_to_ptr.vmem [resolvable:$true] %s462_s11  ;;  %s6792_s23 = int_to_ptr.hbm [resolvable:$true] %s6791_s23 }
 0x20a   :  { %s6793_s25 = scalar_lea.hbm %s6792_s23, 1  ;;  %s6795_s15 = scalar_lea.hbm %s9070_s4, 1 }
 0x20b   :  { %p6794_p5 = scmp.ne.s32.totalorder %s6792_s23, %s6793_s25  ;;  %p6796_p6 = scmp.lt.s32.totalorder %s6792_s23, %s9070_s4 }
 0x20c   :  { %p6797_p7 = scmp.lt.s32.totalorder %s6795_s15, %s6793_s25 }
 0x20e   :  { %s482_s17 = sshll.u32 %s9071_s27, 4  ;;  %p6798_p8 = por %p6797_p7, %p6796_p6  ;;  %s483_s17 = int_to_ptr.hbm [resolvable:$true] %s482_s17 }
 0x210   :  { %p6799_p9 = pnand %p6798_p8, %p6794_p5 }
 0x212   :  { %6802 = shalt.err (!%p6799_p9)
}
 0x213   :  { %465 = dma.hbm_to_vmem [thread:$0]  %s461_s30, 16, %s463_s11, [#allocation30]  }
 0x214   :  { %s9072_s8 = sld [smem:[#allocation128_spill]]  ;;  %s7235_s20 = smov [#allocation34]  }
 0x215   :  { %s484_s13 = sshll.u32 %s7235_s20, 4  ;;  %s6815_s10 = sshra.s32 %s483_s17, 4  ;;  %s485_s13 = int_to_ptr.vmem [resolvable:$true] %s484_s13  ;;  %s6816_s10 = int_to_ptr.hbm [resolvable:$true] %s6815_s10 }
 0x216   :  { %s6817_s18 = scalar_lea.hbm %s6816_s10, 1  ;;  %s6819_s9 = scalar_lea.hbm %s9071_s27, 1 }
 0x217   :  { %p6818_p10 = scmp.ne.s32.totalorder %s6816_s10, %s6817_s18  ;;  %p6820_p11 = scmp.lt.s32.totalorder %s6816_s10, %s9071_s27 }
 0x218   :  { %p6821_p12 = scmp.lt.s32.totalorder %s6819_s9, %s6817_s18 }
 0x21a   :  { %s507_s21 = sshll.u32 %s9072_s8, 4  ;;  %p6822_p13 = por %p6821_p12, %p6820_p11  ;;  %s7780_s21 = int_to_ptr.hbm [resolvable:$true] %s507_s21 }
 0x21c   :  { %p6823_p0 = pnand %p6822_p13, %p6818_p10 }
 0x21e   :  { %6826 = shalt.err (!%p6823_p0)
}
 0x21f   :  { %487 = dma.hbm_to_vmem [thread:$0]  %s483_s17, 16, %s485_s13, [#allocation33]  }
 0x220   :  { %s7236_s26 = smov [#allocation37]   ;;  %s6839_s29 = sshra.s32 %s7780_s21, 4  ;;  %s6840_s29 = int_to_ptr.hbm [resolvable:$true] %s6839_s29 }
 0x221   :  { %s509_s0 = sshll.u32 %s7236_s26, 4  ;;  %s6841_s28 = scalar_lea.hbm %s6840_s29, 8  ;;  %s510_s0 = int_to_ptr.vmem [resolvable:$true] %s509_s0 }
 0x222   :  { %p6842_p1 = scmp.ne.s32.totalorder %s6840_s29, %s6841_s28  ;;  %s6843_s3 = scalar_lea.hbm %s9072_s8, 8 }
 0x223   :  { %p6844_p2 = scmp.lt.s32.totalorder %s6840_s29, %s9072_s8  ;;  %p6845_p3 = scmp.lt.s32.totalorder %s6843_s3, %s6841_s28 }
 0x225   :  { %p6846_p4 = por %p6845_p3, %p6844_p2 }
 0x227   :  { %p6847_p5 = pnand %p6846_p4, %p6842_p1 }
 0x229   :  { %6850 = shalt.err (!%p6847_p5)
}
 0x22a   :  { %s7237_s14 = smov 64   ;;  %s9073_s4 = sld [smem:[#allocation129_spill]] }
 0x22b   :  { %s9074_s30 = sld [smem:[#allocation132_spill]]  ;;  %s7238_s16 = smov 4  }
 0x22c   :  { %515 = dma.hbm_to_vmem [thread:$0]  %s7780_s21, 128, %s510_s0, [#allocation36], %s7237_s14, %s7237_s14, %s7238_s16  }
 0x22d   :  { %s7239_s1 = smov [#allocation40]  }
 0x22e   :  { %s534_s7 = sshll.u32 %s7239_s1, 4  ;;  %s535_s7 = int_to_ptr.vmem [resolvable:$true] %s534_s7 }
 0x230   :  { %s532_s22 = sshll.u32 %s9073_s4, 4  ;;  %s6867_s11 = scalar_lea.hbm %s9073_s4, 1  ;;  %s533_s22 = int_to_ptr.hbm [resolvable:$true] %s532_s22 }
 0x231   :  { %s558_s12 = sshll.u32 %s9074_s30, 4  ;;  %s6863_s27 = sshra.s32 %s533_s22, 4  ;;  %s6864_s27 = int_to_ptr.hbm [resolvable:$true] %s6863_s27  ;;  %s559_s12 = int_to_ptr.hbm [resolvable:$true] %s558_s12 }
 0x232   :  { %s6865_s2 = scalar_lea.hbm %s6864_s27, 1  ;;  %p6868_p7 = scmp.lt.s32.totalorder %s6864_s27, %s9073_s4 }
 0x233   :  { %p6866_p6 = scmp.ne.s32.totalorder %s6864_s27, %s6865_s2  ;;  %p6869_p8 = scmp.lt.s32.totalorder %s6867_s11, %s6865_s2 }
 0x235   :  { %p6870_p9 = por %p6869_p8, %p6868_p7 }
 0x237   :  { %p6871_p10 = pnand %p6870_p9, %p6866_p6 }
 0x239   :  { %6874 = shalt.err (!%p6871_p10)
}
 0x23a   :  { %537 = dma.hbm_to_vmem [thread:$0]  %s533_s22, 16, %s535_s7, [#allocation39]  }
 0x23b   :  { %s9075_s17 = sld [smem:[#allocation134_spill]]  ;;  %s7240_s23 = smov [#allocation43]  }
 0x23c   :  { %s560_s25 = sshll.u32 %s7240_s23, 4  ;;  %s6887_s8 = sshra.s32 %s559_s12, 4  ;;  %s561_s25 = int_to_ptr.vmem [resolvable:$true] %s560_s25  ;;  %s6888_s8 = int_to_ptr.hbm [resolvable:$true] %s6887_s8 }
 0x23d   :  { %s6889_s21 = scalar_lea.hbm %s6888_s8, 1  ;;  %s6891_s20 = scalar_lea.hbm %s9074_s30, 1 }
 0x23e   :  { %p6890_p11 = scmp.ne.s32.totalorder %s6888_s8, %s6889_s21  ;;  %p6892_p12 = scmp.lt.s32.totalorder %s6888_s8, %s9074_s30 }
 0x23f   :  { %p6893_p13 = scmp.lt.s32.totalorder %s6891_s20, %s6889_s21 }
 0x241   :  { %s582_s15 = sshll.u32 %s9075_s17, 4  ;;  %p6894_p0 = por %p6893_p13, %p6892_p12  ;;  %s583_s15 = int_to_ptr.hbm [resolvable:$true] %s582_s15 }
 0x243   :  { %p6895_p1 = pnand %p6894_p0, %p6890_p11 }
 0x245   :  { %6898 = shalt.err (!%p6895_p1)
}
 0x246   :  { %563 = dma.hbm_to_vmem [thread:$0]  %s559_s12, 16, %s561_s25, [#allocation42]  }
 0x247   :  { %s9076_s13 = sld [smem:[#allocation136_spill]]  ;;  %s7241_s18 = smov [#allocation46]  }
 0x248   :  { %s584_s9 = sshll.u32 %s7241_s18, 4  ;;  %s6911_s26 = sshra.s32 %s583_s15, 4  ;;  %s585_s9 = int_to_ptr.vmem [resolvable:$true] %s584_s9  ;;  %s6912_s26 = int_to_ptr.hbm [resolvable:$true] %s6911_s26 }
 0x249   :  { %s6913_s0 = scalar_lea.hbm %s6912_s26, 1  ;;  %s6915_s29 = scalar_lea.hbm %s9075_s17, 1 }
 0x24a   :  { %p6914_p2 = scmp.ne.s32.totalorder %s6912_s26, %s6913_s0  ;;  %p6916_p3 = scmp.lt.s32.totalorder %s6912_s26, %s9075_s17 }
 0x24b   :  { %p6917_p4 = scmp.lt.s32.totalorder %s6915_s29, %s6913_s0 }
 0x24d   :  { %s604_s10 = sshll.u32 %s9076_s13, 4  ;;  %p6918_p5 = por %p6917_p4, %p6916_p3  ;;  %s605_s10 = int_to_ptr.hbm [resolvable:$true] %s604_s10 }
 0x24f   :  { %p6919_p6 = pnand %p6918_p5, %p6914_p2 }
 0x251   :  { %6922 = shalt.err (!%p6919_p6)
}
 0x252   :  { %587 = dma.hbm_to_vmem [thread:$0]  %s583_s15, 16, %s585_s9, [#allocation45]  }
 0x253   :  { %s9077_s28 = sld [smem:[#allocation139_spill]]  ;;  %s7242_s3 = smov [#allocation49]  }
 0x254   :  { %s606_s4 = sshll.u32 %s7242_s3, 4  ;;  %s6935_s16 = sshra.s32 %s605_s10, 4  ;;  %s607_s4 = int_to_ptr.vmem [resolvable:$true] %s606_s4  ;;  %s6936_s16 = int_to_ptr.hbm [resolvable:$true] %s6935_s16 }
 0x255   :  { %s6937_s22 = scalar_lea.hbm %s6936_s16, 1  ;;  %s6939_s1 = scalar_lea.hbm %s9076_s13, 1 }
 0x256   :  { %p6938_p7 = scmp.ne.s32.totalorder %s6936_s16, %s6937_s22  ;;  %p6940_p8 = scmp.lt.s32.totalorder %s6936_s16, %s9076_s13 }
 0x257   :  { %p6941_p9 = scmp.lt.s32.totalorder %s6939_s1, %s6937_s22 }
 0x259   :  { %s628_s30 = sshll.u32 %s9077_s28, 4  ;;  %p6942_p10 = por %p6941_p9, %p6940_p8  ;;  %s629_s30 = int_to_ptr.hbm [resolvable:$true] %s628_s30 }
 0x25b   :  { %p6943_p11 = pnand %p6942_p10, %p6938_p7 }
 0x25d   :  { %6946 = shalt.err (!%p6943_p11)
}
 0x25e   :  { %609 = dma.hbm_to_vmem [thread:$0]  %s605_s10, 16, %s607_s4, [#allocation48]  }
 0x25f   :  { %s9078_s7 = sld [smem:[#allocation144_spill]]  ;;  %s7243_s27 = smov [#allocation52]  }
 0x260   :  { %s630_s2 = sshll.u32 %s7243_s27, 4  ;;  %s6959_s11 = sshra.s32 %s629_s30, 4  ;;  %s631_s2 = int_to_ptr.vmem [resolvable:$true] %s630_s2  ;;  %s6960_s11 = int_to_ptr.hbm [resolvable:$true] %s6959_s11 }
 0x261   :  { %s6961_s17 = scalar_lea.hbm %s6960_s11, 2  ;;  %s6963_s23 = scalar_lea.hbm %s9077_s28, 2 }
 0x262   :  { %p6962_p12 = scmp.ne.s32.totalorder %s6960_s11, %s6961_s17  ;;  %p6964_p13 = scmp.lt.s32.totalorder %s6960_s11, %s9077_s28 }
 0x263   :  { %p6965_p0 = scmp.lt.s32.totalorder %s6963_s23, %s6961_s17 }
 0x265   :  { %s656_s12 = sshll.u32 %s9078_s7, 4  ;;  %p6966_p1 = por %p6965_p0, %p6964_p13  ;;  %s657_s12 = int_to_ptr.hbm [resolvable:$true] %s656_s12 }
 0x267   :  { %p6967_p2 = pnand %p6966_p1, %p6962_p12 }
 0x269   :  { %6970 = shalt.err (!%p6967_p2)
}
 0x26a   :  { %633 = dma.hbm_to_vmem [thread:$0]  %s629_s30, 32, %s631_s2, [#allocation51]  }
 0x26b   :  { %s9079_s25 = sld [smem:[#allocation147_spill]]  ;;  %s7244_s15 = smov [#allocation55]  }
 0x26c   :  { %s658_s8 = sshll.u32 %s7244_s15, 4  ;;  %s6983_s20 = sshra.s32 %s657_s12, 4  ;;  %s659_s8 = int_to_ptr.vmem [resolvable:$true] %s658_s8  ;;  %s6984_s20 = int_to_ptr.hbm [resolvable:$true] %s6983_s20 }
 0x26d   :  { %s6985_s13 = scalar_lea.hbm %s6984_s20, 1  ;;  %s6987_s10 = scalar_lea.hbm %s9078_s7, 1 }
 0x26e   :  { %p6986_p3 = scmp.ne.s32.totalorder %s6984_s20, %s6985_s13  ;;  %p6988_p4 = scmp.lt.s32.totalorder %s6984_s20, %s9078_s7 }
 0x26f   :  { %p6989_p5 = scmp.lt.s32.totalorder %s6987_s10, %s6985_s13 }
 0x271   :  { %s680_s21 = sshll.u32 %s9079_s25, 4  ;;  %p6990_p6 = por %p6989_p5, %p6988_p4  ;;  %s681_s21 = int_to_ptr.hbm [resolvable:$true] %s680_s21 }
 0x273   :  { %p6991_p7 = pnand %p6990_p6, %p6986_p3 }
 0x275   :  { %6994 = shalt.err (!%p6991_p7)
}
 0x276   :  { %661 = dma.hbm_to_vmem [thread:$0]  %s657_s12, 16, %s659_s8, [#allocation54]  }
 0x277   :  { %s9080_s18 = sld [smem:[#allocation149_spill]]  ;;  %s7245_s26 = smov [#allocation58]  }
 0x278   :  { %s682_s0 = sshll.u32 %s7245_s26, 4  ;;  %s7007_s29 = sshra.s32 %s681_s21, 4  ;;  %s683_s0 = int_to_ptr.vmem [resolvable:$true] %s682_s0  ;;  %s7008_s29 = int_to_ptr.hbm [resolvable:$true] %s7007_s29 }
 0x279   :  { %s7009_s28 = scalar_lea.hbm %s7008_s29, 1  ;;  %s7011_s3 = scalar_lea.hbm %s9079_s25, 1 }
 0x27a   :  { %p7010_p8 = scmp.ne.s32.totalorder %s7008_s29, %s7009_s28  ;;  %p7012_p9 = scmp.lt.s32.totalorder %s7008_s29, %s9079_s25 }
 0x27b   :  { %p7013_p10 = scmp.lt.s32.totalorder %s7011_s3, %s7009_s28 }
 0x27d   :  { %s702_s9 = sshll.u32 %s9080_s18, 4  ;;  %p7014_p11 = por %p7013_p10, %p7012_p9  ;;  %s703_s9 = int_to_ptr.hbm [resolvable:$true] %s702_s9 }
 0x27f   :  { %p7015_p12 = pnand %p7014_p11, %p7010_p8 }
 0x281   :  { %7018 = shalt.err (!%p7015_p12)
}
 0x282   :  { %685 = dma.hbm_to_vmem [thread:$0]  %s681_s21, 16, %s683_s0, [#allocation57]  }
 0x283   :  { %s7246_s4 = smov [#allocation61]   ;;  %s726_s16 = sshll.u32 %s7671_s5, 4  ;;  %s727_s16 = int_to_ptr.hbm [resolvable:$true] %s726_s16 }
 0x284   :  { %s704_s30 = sshll.u32 %s7246_s4, 4  ;;  %s7031_s22 = sshra.s32 %s703_s9, 4  ;;  %s705_s30 = int_to_ptr.vmem [resolvable:$true] %s704_s30  ;;  %s7032_s22 = int_to_ptr.hbm [resolvable:$true] %s7031_s22 }
 0x285   :  { %s7033_s1 = scalar_lea.hbm %s7032_s22, 1  ;;  %s7035_s7 = scalar_lea.hbm %s9080_s18, 1 }
 0x286   :  { %p7034_p13 = scmp.ne.s32.totalorder %s7032_s22, %s7033_s1  ;;  %p7036_p0 = scmp.lt.s32.totalorder %s7032_s22, %s9080_s18 }
 0x287   :  { %p7037_p1 = scmp.lt.s32.totalorder %s7035_s7, %s7033_s1 }
 0x289   :  { %p7038_p2 = por %p7037_p1, %p7036_p0 }
 0x28b   :  { %p7039_p3 = pnand %p7038_p2, %p7034_p13 }
 0x28d   :  { %7042 = shalt.err (!%p7039_p3)
}
 0x28e   :  { %707 = dma.hbm_to_vmem [thread:$0]  %s703_s9, 16, %s705_s30, [#allocation60]  }
 0x28f   :  { %s7247_s12 = smov [#allocation64]   ;;  %s7055_s2 = sshra.s32 %s727_s16, 4  ;;  %s7056_s2 = int_to_ptr.hbm [resolvable:$true] %s7055_s2 }
 0x290   :  { %s728_s27 = sshll.u32 %s7247_s12, 4  ;;  %s7057_s11 = scalar_lea.hbm %s7056_s2, 2  ;;  %s729_s27 = int_to_ptr.vmem [resolvable:$true] %s728_s27 }
 0x291   :  { %p7058_p4 = scmp.ne.s32.totalorder %s7056_s2, %s7057_s11  ;;  %s7059_s17 = scalar_lea.hbm %s7671_s5, 2 }
 0x292   :  { %p7060_p5 = scmp.lt.s32.totalorder %s7056_s2, %s7671_s5  ;;  %p7061_p6 = scmp.lt.s32.totalorder %s7059_s17, %s7057_s11 }
 0x294   :  { %p7062_p7 = por %p7061_p6, %p7060_p5 }
 0x296   :  { %p7063_p8 = pnand %p7062_p7, %p7058_p4 }
 0x298   :  { %7066 = shalt.err (!%p7063_p8)
}
 0x299   :  { %731 = dma.hbm_to_vmem [thread:$0]  %s727_s16, 32, %s729_s27, [#allocation63]  }
 0x29a   :  { %7079 = dma.done.wait [#allocation4], 16  }
 0x29b   :  { %7080 = vsyncadd [#allocation4], 4294967280 }
 0x29c   :  { %7081 = dma.done.wait [#allocation6], 32  }
 0x29d   :  { %7082 = vsyncadd [#allocation6], 4294967264 }
 0x29e   :  { %7083 = dma.done.wait [#allocation9], 32  }
 0x29f   :  { %7084 = vsyncadd [#allocation9], 4294967264 }
 0x2a0   :  { %7085 = dma.done.wait [#allocation12], 32  }
 0x2a1   :  { %7086 = vsyncadd [#allocation12], 4294967264 }
 0x2a2   :  { %7087 = dma.done.wait [#allocation15], 32  }
 0x2a3   :  { %7088 = vsyncadd [#allocation15], 4294967264 }
 0x2a4   :  { %7089 = dma.done.wait [#allocation18], 32  }
 0x2a5   :  { %7090 = vsyncadd [#allocation18], 4294967264 }
 0x2a6   :  { %7091 = dma.done.wait [#allocation21], 32  }
 0x2a7   :  { %7092 = vsyncadd [#allocation21], 4294967264 }
 0x2a8   :  { %7093 = dma.done.wait [#allocation24], 32  }
 0x2a9   :  { %7094 = vsyncadd [#allocation24], 4294967264 }
 0x2aa   :  { %7095 = dma.done.wait [#allocation27], 32  }
 0x2ab   :  { %7096 = vsyncadd [#allocation27], 4294967264 }
 0x2ac   :  { %7097 = dma.done.wait [#allocation30], 32  }
 0x2ad   :  { %7098 = vsyncadd [#allocation30], 4294967264 }
 0x2ae   :  { %7099 = dma.done.wait [#allocation33], 32  }
 0x2af   :  { %7100 = vsyncadd [#allocation33], 4294967264 }
 0x2b0   :  { %7101 = dma.done.wait [#allocation36], 144  }
 0x2b1   :  { %7102 = vsyncadd [#allocation36], 4294967152 }
 0x2b2   :  { %7103 = dma.done.wait [#allocation39], 32  }
 0x2b3   :  { %7104 = vsyncadd [#allocation39], 4294967264 }
 0x2b4   :  { %7105 = dma.done.wait [#allocation42], 48  }
 0x2b5   :  { %7106 = vsyncadd [#allocation42], 4294967248 }
 0x2b6   :  { %7107 = dma.done.wait [#allocation45], 32  }
 0x2b7   :  { %7108 = vsyncadd [#allocation45], 4294967264 }
 0x2b8   :  { %7109 = dma.done.wait [#allocation48], 32  }
 0x2b9   :  { %7110 = vsyncadd [#allocation48], 4294967264 }
 0x2ba   :  { %7111 = dma.done.wait [#allocation51], 48  }
 0x2bb   :  { %7112 = vsyncadd [#allocation51], 4294967248 }
 0x2bc   :  { %7113 = dma.done.wait [#allocation54], 48  }
 0x2bd   :  { %7114 = vsyncadd [#allocation54], 4294967248 }
 0x2be   :  { %7115 = dma.done.wait [#allocation57], 32  }
 0x2bf   :  { %7116 = vsyncadd [#allocation57], 4294967264 }
 0x2c0   :  { %7117 = dma.done.wait [#allocation60], 32  }
 0x2c1   :  { %7118 = vsyncadd [#allocation60], 4294967264 }
 0x2c2   :  { %7119 = dma.done.wait [#allocation63], 48  }
 0x2c3   :  { %7120 = vsyncadd [#allocation63], 4294967248  ;;  %s9081_s5 = sld [smem:[#allocation109_spill]]  ;;  %vm914_vm0 = vcmask 392192   ;;  %v5875_v11 = vld [vmem:[#allocation8] ss:$0 sm:$0xff] }
 0x2c4   :  { %s9082_s23 = sld [smem:[#allocation86_spill]]  ;;  %vm956_vm1 = vcmask 261120   ;;  %v7248_v24 = vmov 32.0   ;;  %s7249_s20 = smov 96  }
 0x2c5   :  { %5912 = vrcp.f32 %v7248_v24  ;;  %s9083_s25 = sld [smem:[#allocation118_spill]]  ;;  %s7250_s13 = smov 80  }
 0x2c6   :  { %s9084_s15 = sld [smem:[#allocation92_spill]]  ;;  %s7251_s10 = smov 112  }
 0x2c7   :  { %s9085_s8 = sld [smem:[#allocation119_spill]]  ;;  %s7252_s9 = smov 48  }
 0x2c8   :  { %s9086_s21 = sld [smem:[#allocation87_spill]] }
 0x2c9   :  { %v909_v1 = vld [vmem:[%s9081_s5 + $0x28] sm:$0xff]  ;;  %v908_v2 = vld [vmem:[%s9081_s5 + $0x20] sm:$0xff]  ;;  %v907_v3 = vld [vmem:[%s9081_s5 + $0x18] sm:$0xff]  ;;  %s9087_s18 = sld [smem:[#allocation89_spill]] }
 0x2ca   :  { %937 = vmatpush.msra.mxu0 %v909_v1  ;;  %5693 = vmatpush.msra.mxu1 %v909_v1  ;;  %v906_v4 = vld [vmem:[%s9081_s5 + $0x10] sm:$0xff]  ;;  %v905_v5 = vld [vmem:[%s9081_s5 + $0x8] sm:$0xff]  ;;  %v904_v6 = vld [vmem:[%s9081_s5] sm:$0xff]  ;;  %s9088_s26 = sld [smem:[#allocation117_spill]] }
 0x2cb   :  { %v900_v7 = vld [vmem:[%s9082_s23] sm:$0xff]  ;;  %v903_v8 = vld [vmem:[%s9082_s23 + $0x18] sm:$0xff]  ;;  %v901_v9 = vld [vmem:[%s9082_s23 + $0x8] sm:$0xff]  ;;  %v5913_v25 = vpop.eup %5912  ;;  %s9089_s0 = sld [smem:[#allocation93_spill]] }
 0x2cc   :  { %938 = vmatpush.msra.mxu0 %v908_v2  ;;  %5694 = vmatpush.msra.mxu1 %v908_v2  ;;  %v902_v10 = vld [vmem:[%s9082_s23 + $0x10] sm:$0xff]  ;;  %v970_v26 = vmul.f32 32.0, %v5913_v25  ;;  %vm974_vm2 = vweird.f32 %v5913_v25  ;;  %s9090_s29 = sld [smem:[#allocation112_spill]] }
 0x2cd   :  { %s9091_s28 = sld [smem:[#allocation113_spill]] }
 0x2ce   :  { %939 = vmatpush.msra.mxu0 %v907_v3  ;;  %5695 = vmatpush.msra.mxu1 %v907_v3  ;;  %v971_v27 = vsub.f32 1.0, %v970_v26  ;;  %s9092_s3 = sld [smem:[#allocation127_spill]] }
 0x2cf   :  { %s9093_s4 = sld [smem:[#allocation94_spill]] }
 0x2d0   :  { %940 = vmatpush.msra.mxu0 %v906_v4  ;;  %5696 = vmatpush.msra.mxu1 %v906_v4  ;;  %v972_v28 = vmul.f32 %v5913_v25, %v971_v27  ;;  %s9094_s30 = sld [smem:[#allocation90_spill]] }
 0x2d1   :  { %s9095_s16 = sld [smem:[#allocation126_spill]] }
 0x2d2   :  { %941 = vmatpush.msra.mxu0 %v905_v5  ;;  %5697 = vmatpush.msra.mxu1 %v905_v5  ;;  %v973_v29 = vadd.f32 %v5913_v25, %v972_v28  ;;  %s9096_s22 = sld [smem:[#allocation95_spill]] }
 0x2d3   :  { %s9097_s1 = sld [smem:[#allocation121_spill]] }
 0x2d4   :  { %942 = vmatpush.msra.mxu0 %v904_v6  ;;  %5698 = vmatpush.msra.mxu1 %v904_v6  ;;  %v7835_v30 = vsel %vm974_vm2, %v5913_v25, %v973_v29  ;;  %s9098_s7 = sld [smem:[#allocation122_spill]] }
 0x2d5   :  { %5452 = vmatmul.msk.f32.vlgmr.msra.gmra.mxu0 %vm914_vm0, %v900_v7  ;;  %5455 = vmatmul.msk.f32.vlgmr.msra.gmra.mxu1 %vm914_vm0, %v903_v8  ;;  %v5876_v7 = vld [vmem:[#allocation11] ss:$0 sm:$0xff]  ;;  %s9099_s12 = sld [smem:[#allocation102_spill]] }
 0x2d6   :  { %s9100_s27 = sld [smem:[#allocation97_spill]] }
 0x2d7   :  { %s9101_s2 = sld [smem:[#allocation101_spill]] }
 0x2d8   :  { %s9102_s11 = sld [smem:[#allocation96_spill]] }
 0x2d9   :  { %s9103_s17 = sld [smem:[#allocation104_spill]] }
 0x2da   :  { %s9104_s5 = sld [smem:[#allocation103_spill]] }
 0x2db   :  { %s9105_s23 = sld [smem:[#allocation98_spill]] }
 0x2dd   :  { %5453 = vmatmul.msk.f32.gmra.mxu0 %vm914_vm0, %v901_v9 }
 0x2e5   :  { %5454 = vmatmul.msk.f32.gmra.mxu0 %vm914_vm0, %v902_v10 }
 0x352   :  { %v944_v12 = vpop.f32.mrf.mxu0  ;;  %v953_v13 = vpop.f32.mrf.mxu1 }
 0x353   :  { %v954_v14 = vadd.f32 %v5875_v11, %v953_v13  ;;  %v945_v19 = vadd.f32 %v5875_v11, %v944_v12 }
 0x355   :  { %v966_v15 = vsel %vm956_vm1, %v954_v14, 0.0  ;;  %v957_v23 = vsel %vm956_vm1, %v945_v19, 0.0 }
 0x356   :  { %967 = vadd.xlane.f32.xlu0 %v966_v15 }
 0x35a   :  { %v947_v16 = vpop.f32.mrf.mxu0 }
 0x35b   :  { %v948_v17 = vadd.f32 %v5875_v11, %v947_v16 }
 0x35d   :  { %v960_v18 = vsel %vm956_vm1, %v948_v17, 0.0 }
 0x35e   :  { %961 = vadd.xlane.f32.xlu1 %v960_v18 }
 0x362   :  { %v950_v20 = vpop.f32.mrf.mxu0 }
 0x363   :  { %v951_v21 = vadd.f32 %v5875_v11, %v950_v20  ;;  %v5877_v11 = vld [vmem:[#allocation10] ss:$0 sm:$0xff] }
 0x365   :  { %v963_v22 = vsel %vm956_vm1, %v951_v21, 0.0 }
 0x366   :  { %964 = vadd.xlane.f32.xlu0 %v963_v22  ;;  %958 = vadd.xlane.f32.xlu1 %v957_v23 }
 0x3c9   :  { %v968_v31 = vpop.xlane.xlu0 %967 }
 0x3ca   :  { %v979_v32 = vmul.f32 %v7835_v30, %v968_v31 }
 0x3cc   :  { %v983_v33 = vsub.f32 %v954_v14, %v979_v32 }
 0x3ce   :  { %v987_v34 = vmul.f32 %v983_v33, %v983_v33 }
 0x3d0   :  { %v997_v35 = vsel %vm956_vm1, %v987_v34, 0.0 }
 0x3d1   :  { %998 = vadd.xlane.f32.xlu2 %v997_v35  ;;  %v962_v36 = vpop.xlane.xlu1 %961 }
 0x3d2   :  { %v977_v37 = vmul.f32 %v7835_v30, %v962_v36 }
 0x3d4   :  { %v7840_v38 = vsub.f32 %v948_v17, %v977_v37 }
 0x3d6   :  { %v985_v39 = vmul.f32 %v7840_v38, %v7840_v38 }
 0x3d8   :  { %v991_v40 = vsel %vm956_vm1, %v985_v39, 0.0 }
 0x3d9   :  { %v965_v41 = vpop.xlane.xlu0 %964  ;;  %992 = vadd.xlane.f32.xlu0 %v991_v40  ;;  %v959_v42 = vpop.xlane.xlu1 %958 }
 0x3da   :  { %v978_v43 = vmul.f32 %v7835_v30, %v965_v41  ;;  %v976_v44 = vmul.f32 %v7835_v30, %v959_v42 }
 0x3dc   :  { %v7847_v45 = vsub.f32 %v951_v21, %v978_v43  ;;  %v7849_v46 = vsub.f32 %v945_v19, %v976_v44 }
 0x3de   :  { %v986_v47 = vmul.f32 %v7847_v45, %v7847_v45  ;;  %v984_v48 = vmul.f32 %v7849_v46, %v7849_v46 }
 0x3e0   :  { %v994_v49 = vsel %vm956_vm1, %v986_v47, 0.0  ;;  %v988_v50 = vsel %vm956_vm1, %v984_v48, 0.0 }
 0x3e1   :  { %995 = vadd.xlane.f32.xlu2 %v994_v49  ;;  %989 = vadd.xlane.f32.xlu1 %v988_v50 }
 0x444   :  { %v999_v51 = vpop.xlane.xlu2 %998 }
 0x445   :  { %v1003_v52 = vmul.f32 %v999_v51, %v7835_v30 }
 0x447   :  { %v1007_v53 = vadd.f32 1e-05, %v1003_v52 }
 0x449   :  { %5914 = vrsqrt.f32 %v1007_v53  ;;  %vm1044_vm4 = vweird.f32 %v1007_v53 }
 0x44c   :  { %v993_v54 = vpop.xlane.xlu0 %992 }
 0x44d   :  { %v1001_v55 = vmul.f32 %v993_v54, %v7835_v30 }
 0x44f   :  { %v5915_v56 = vpop.eup %5914  ;;  %v1005_v57 = vadd.f32 1e-05, %v1001_v55 }
 0x450   :  { %v1039_v58 = vmul.f32 %v5915_v56, %v1007_v53  ;;  %vm1045_vm3 = vweird.f32 %v5915_v56 }
 0x451   :  { %5916 = vrsqrt.f32 %v1005_v57  ;;  %vm1046_vm5 = vmor %vm1044_vm4, %vm1045_vm3  ;;  %vm1024_vm7 = vweird.f32 %v1005_v57 }
 0x452   :  { %v1040_v59 = vmul.f32 %v5915_v56, %v1039_v58 }
 0x454   :  { %v1041_v60 = vmul.f32 0.5, %v1040_v59  ;;  %v996_v61 = vpop.xlane.xlu2 %995  ;;  %v990_v62 = vpop.xlane.xlu1 %989 }
 0x455   :  { %v1002_v63 = vmul.f32 %v996_v61, %v7835_v30  ;;  %v1000_v0 = vmul.f32 %v990_v62, %v7835_v30 }
 0x456   :  { %v1042_v1 = vsub.f32 1.5, %v1041_v60 }
 0x457   :  { %v5917_v2 = vpop.eup %5916  ;;  %v1006_v3 = vadd.f32 1e-05, %v1002_v63  ;;  %v1004_v4 = vadd.f32 1e-05, %v1000_v0 }
 0x458   :  { %v1043_v5 = vmul.f32 %v5915_v56, %v1042_v1  ;;  %v1019_v6 = vmul.f32 %v5917_v2, %v1005_v57  ;;  %vm1025_vm6 = vweird.f32 %v5917_v2 }
 0x459   :  { %5918 = vrsqrt.f32 %v1006_v3  ;;  %vm1026_vm8 = vmor %vm1024_vm7, %vm1025_vm6  ;;  %vm1034_vm11 = vweird.f32 %v1006_v3  ;;  %vm1014_vm13 = vweird.f32 %v1004_v4 }
 0x45a   :  { %v1020_v8 = vmul.f32 %v5917_v2, %v1019_v6  ;;  %5920 = vrsqrt.f32 %v1004_v4  ;;  %v1047_v9 = vsel %vm1046_vm5, %v5915_v56, %v1043_v5 }
 0x45b   :  { %v1051_v10 = vmul.f32 %v1047_v9, %v983_v33 }
 0x45c   :  { %v1021_v12 = vmul.f32 0.5, %v1020_v8 }
 0x45d   :  { %v1059_v13 = vmul.f32 %v5876_v7, %v1051_v10 }
 0x45e   :  { %v1022_v14 = vsub.f32 1.5, %v1021_v12 }
 0x45f   :  { %v5919_v15 = vpop.eup %5918  ;;  %v7861_v16 = vadd.f32 %v5877_v11, %v1059_v13 }
 0x460   :  { %v5921_v17 = vpop.eup %5920  ;;  %v1023_v18 = vmul.f32 %v5917_v2, %v1022_v14  ;;  %v1029_v19 = vmul.f32 %v5919_v15, %v1006_v3  ;;  %vm1035_vm9 = vweird.f32 %v5919_v15 }
 0x461   :  { %v1009_v20 = vmul.f32 %v5921_v17, %v1004_v4  ;;  %v1093_v21 = vsel %vm956_vm1, %v7861_v16, 0.0  ;;  %vm1015_vm10 = vweird.f32 %v5921_v17  ;;  %vm1036_vm12 = vmor %vm1034_vm11, %vm1035_vm9 }
 0x462   :  { %v1030_v22 = vmul.f32 %v5919_v15, %v1029_v19  ;;  %1094 = vadd.xlane.f32.xlu2 %v1093_v21  ;;  %v1027_v23 = vsel %vm1026_vm8, %v5917_v2, %v1023_v18  ;;  %vm1016_vm14 = vmor %vm1014_vm13, %vm1015_vm10  ;;  %vm1287_vm13 = vcmask 31744  }
 0x463   :  { %v1010_v24 = vmul.f32 %v5921_v17, %v1009_v20  ;;  %v1049_v25 = vmul.f32 %v1027_v23, %v7840_v38  ;;  %v5878_v23 = vld [vmem:[#allocation17] ss:$0 sm:$0xff] }
 0x464   :  { %v1031_v26 = vmul.f32 0.5, %v1030_v22 }
 0x465   :  { %v1011_v27 = vmul.f32 0.5, %v1010_v24  ;;  %v1057_v28 = vmul.f32 %v5876_v7, %v1049_v25 }
 0x466   :  { %v1032_v29 = vsub.f32 1.5, %v1031_v26 }
 0x467   :  { %v1012_v31 = vsub.f32 1.5, %v1011_v27  ;;  %v7866_v32 = vadd.f32 %v5877_v11, %v1057_v28  ;;  %v5879_v27 = vld [vmem:[#allocation16] ss:$0 sm:$0xff] }
 0x468   :  { %v1033_v33 = vmul.f32 %v5919_v15, %v1032_v29 }
 0x469   :  { %v1013_v34 = vmul.f32 %v5921_v17, %v1012_v31  ;;  %v1087_v35 = vsel %vm956_vm1, %v7866_v32, 0.0 }
 0x46a   :  { %v1037_v36 = vsel %vm1036_vm12, %v5919_v15, %v1033_v33  ;;  %1088 = vadd.xlane.f32.xlu1 %v1087_v35  ;;  %vm1300_vm12 = vcmask 1043456  }
 0x46b   :  { %v1017_v37 = vsel %vm1016_vm14, %v5921_v17, %v1013_v34  ;;  %v1050_v38 = vmul.f32 %v1037_v36, %v7847_v45  ;;  %vm1386_vm14 = vcmask 130048  }
 0x46c   :  { %v1048_v39 = vmul.f32 %v1017_v37, %v7849_v46 }
 0x46d   :  { %v1058_v40 = vmul.f32 %v5876_v7, %v1050_v38 }
 0x46e   :  { %v1056_v41 = vmul.f32 %v5876_v7, %v1048_v39 }
 0x46f   :  { %v7872_v42 = vadd.f32 %v5877_v11, %v1058_v40 }
 0x470   :  { %v7874_v43 = vadd.f32 %v5877_v11, %v1056_v41 }
 0x471   :  { %v1090_v44 = vsel %vm956_vm1, %v7872_v42, 0.0 }
 0x472   :  { %1091 = vadd.xlane.f32.xlu0 %v1090_v44  ;;  %v1084_v47 = vsel %vm956_vm1, %v7874_v43, 0.0 }
 0x473   :  { %1085 = vadd.xlane.f32.xlu2 %v1084_v47 }
 0x4d5   :  { %v1095_v48 = vpop.xlane.xlu2 %1094 }
 0x4d6   :  { %v1099_v49 = vmul.f32 %v1095_v48, %v7835_v30 }
 0x4d8   :  { %v1103_v45 = vsub.f32 %v7861_v16, %v1099_v49 }
 0x4da   :  { %v1107_v46 = vmul.f32 %v1103_v45, %v1103_v45 }
 0x4dc   :  { %v1117_v50 = vsel %vm956_vm1, %v1107_v46, 0.0 }
 0x4dd   :  { %1118 = vadd.xlane.f32.xlu0 %v1117_v50  ;;  %v1089_v51 = vpop.xlane.xlu1 %1088 }
 0x4de   :  { %v1097_v52 = vmul.f32 %v1089_v51, %v7835_v30 }
 0x4e0   :  { %v7885_v53 = vsub.f32 %v7866_v32, %v1097_v52 }
 0x4e2   :  { %v1105_v54 = vmul.f32 %v7885_v53, %v7885_v53 }
 0x4e4   :  { %v1111_v55 = vsel %vm956_vm1, %v1105_v54, 0.0 }
 0x4e5   :  { %v1092_v56 = vpop.xlane.xlu0 %1091  ;;  %1112 = vadd.xlane.f32.xlu2 %v1111_v55 }
 0x4e6   :  { %v1098_v57 = vmul.f32 %v1092_v56, %v7835_v30  ;;  %v1086_v58 = vpop.xlane.xlu2 %1085 }
 0x4e7   :  { %v1096_v59 = vmul.f32 %v1086_v58, %v7835_v30  ;;  %v1232_v58 = vld [vmem:[%s9083_s25 + $0x18] sm:$0xff] }
 0x4e8   :  { %v7893_v60 = vsub.f32 %v7872_v42, %v1098_v57  ;;  %1261 = vmatpush.msra.mxu2 %v1232_v58 }
 0x4e9   :  { %v7896_v61 = vsub.f32 %v7874_v43, %v1096_v59  ;;  %v1231_v59 = vld [vmem:[%s9083_s25 + $0x10] sm:$0xff] }
 0x4ea   :  { %v1106_v62 = vmul.f32 %v7893_v60, %v7893_v60  ;;  %1262 = vmatpush.msra.mxu2 %v1231_v59  ;;  %v1080_v59 = vld [vmem:[%s9087_s18] sm:$0xff] }
 0x4eb   :  { %v1104_v63 = vmul.f32 %v7896_v61, %v7896_v61 }
 0x4ec   :  { %v1114_v0 = vsel %vm956_vm1, %v1106_v62, 0.0 }
 0x4ed   :  { %1115 = vadd.xlane.f32.xlu1 %v1114_v0  ;;  %v1108_v1 = vsel %vm956_vm1, %v1104_v63, 0.0  ;;  %v1230_v0 = vld [vmem:[%s9083_s25 + $0x8] sm:$0xff] }
 0x4ee   :  { %1109 = vadd.xlane.f32.xlu0 %v1108_v1  ;;  %v1072_v1 = vld [vmem:[%s9084_s15] sm:$0xff]  ;;  %1263 = vmatpush.msra.mxu2 %v1230_v0 }
 0x550   :  { %v1119_v2 = vpop.xlane.xlu0 %1118 }
 0x551   :  { %v1123_v3 = vmul.f32 %v1119_v2, %v7835_v30  ;;  %v1074_v2 = vld [vmem:[%s9084_s15 + $0x10] sm:$0xff] }
 0x553   :  { %v1127_v4 = vadd.f32 1e-05, %v1123_v3  ;;  %v1075_v3 = vld [vmem:[%s9084_s15 + $0x18] sm:$0xff] }
 0x555   :  { %5922 = vrsqrt.f32 %v1127_v4  ;;  %vm1164_vm0 = vweird.f32 %v1127_v4 }
 0x558   :  { %v1113_v5 = vpop.xlane.xlu2 %1112 }
 0x559   :  { %v1121_v6 = vmul.f32 %v1113_v5, %v7835_v30 }
 0x55b   :  { %v5923_v7 = vpop.eup %5922  ;;  %v1125_v8 = vadd.f32 1e-05, %v1121_v6 }
 0x55c   :  { %v1159_v9 = vmul.f32 %v5923_v7, %v1127_v4  ;;  %vm1165_vm15 = vweird.f32 %v5923_v7  ;;  %v1229_v4 = vld [vmem:[%s9083_s25] sm:$0xff]  ;;  %s9106_s25 = sld [smem:[#allocation99_spill]] }
 0x55d   :  { %5924 = vrsqrt.f32 %v1125_v8  ;;  %vm1166_vm2 = vmor %vm1164_vm0, %vm1165_vm15  ;;  %vm1144_vm4 = vweird.f32 %v1125_v8  ;;  %1264 = vmatpush.msra.mxu2 %v1229_v4 }
 0x55e   :  { %v1160_v10 = vmul.f32 %v5923_v7, %v1159_v9  ;;  %v1286_v9 = vld [vmem:[%s9085_s8] sm:$0xf] }
 0x55f   :  { %5464 = vmatpush.msk.msra.mxu3 %vm1300_vm12, %v1286_v9 }
 0x560   :  { %v1161_v11 = vmul.f32 0.5, %v1160_v10  ;;  %v1116_v12 = vpop.xlane.xlu1 %1115  ;;  %v7929_v10 = vld [vmem:[%s9086_s21] sm:$0xff] }
 0x561   :  { %v1110_v13 = vpop.xlane.xlu0 %1109  ;;  %v1122_v14 = vmul.f32 %v1116_v12, %v7835_v30  ;;  %5465 = vmatmul.msk.f32.vlgmr.msra.gmra.mxu3 %vm1287_vm13, %v7929_v10 }
 0x562   :  { %v1162_v15 = vsub.f32 1.5, %v1161_v11  ;;  %v1120_v17 = vmul.f32 %v1110_v13, %v7835_v30  ;;  %v7935_v11 = vld [vmem:[%s9086_s21 + $0x8] sm:$0xff]  ;;  %v7940_v13 = vld [vmem:[%s9086_s21 + $0x10] sm:$0xff] }
 0x563   :  { %v5925_v18 = vpop.eup %5924  ;;  %v1126_v19 = vadd.f32 1e-05, %v1122_v14  ;;  %v7945_v14 = vld [vmem:[%s9086_s21 + $0x18] sm:$0xff] }
 0x564   :  { %v1163_v20 = vmul.f32 %v5923_v7, %v1162_v15  ;;  %v1139_v21 = vmul.f32 %v5925_v18, %v1125_v8  ;;  %v1124_v22 = vadd.f32 1e-05, %v1120_v17  ;;  %vm1145_vm3 = vweird.f32 %v5925_v18  ;;  %v5880_v15 = vld [vmem:[#allocation23] ss:$0 sm:$0xff]  ;;  %5469 = vmatpush.xpose.msk.msrb.mxu3 %vm1287_vm13, %v7945_v14 }
 0x565   :  { %5926 = vrsqrt.f32 %v1126_v19  ;;  %vm1146_vm5 = vmor %vm1144_vm4, %vm1145_vm3  ;;  %vm1154_vm8 = vweird.f32 %v1126_v19 }
 0x566   :  { %v1140_v24 = vmul.f32 %v5925_v18, %v1139_v21  ;;  %5928 = vrsqrt.f32 %v1124_v22  ;;  %v1167_v25 = vsel %vm1166_vm2, %v5923_v7, %v1163_v20  ;;  %vm1134_vm9 = vweird.f32 %v1124_v22 }
 0x567   :  { %v1171_v26 = vmul.f32 %v1167_v25, %v1103_v45 }
 0x568   :  { %v1141_v28 = vmul.f32 0.5, %v1140_v24  ;;  %5470 = vmatpush.xpose.msk.msrb.mxu3 %vm1287_vm13, %v7940_v13 }
 0x569   :  { %v1179_v29 = vmul.f32 %v5878_v23, %v1171_v26  ;;  %5466 = vmatmul.msk.f32.gmra.mxu3 %vm1287_vm13, %v7935_v11 }
 0x56a   :  { %v1142_v31 = vsub.f32 1.5, %v1141_v28 }
 0x56b   :  { %v5927_v33 = vpop.eup %5926  ;;  %v1187_v34 = vadd.f32 %v5879_v27, %v1179_v29 }
 0x56c   :  { %v5929_v35 = vpop.eup %5928  ;;  %v1149_v36 = vmul.f32 %v5927_v33, %v1126_v19  ;;  %v1143_v38 = vmul.f32 %v5925_v18, %v1142_v31  ;;  %vm1155_vm6 = vweird.f32 %v5927_v33  ;;  %5471 = vmatpush.xpose.msk.msrb.mxu3 %vm1287_vm13, %v7935_v11 }
 0x56d   :  { %v1129_v37 = vmul.f32 %v5929_v35, %v1124_v22  ;;  %1212 = vmatpush.msrb.mxu1 %v1187_v34  ;;  %vm1135_vm7 = vweird.f32 %v5929_v35  ;;  %vm1156_vm10 = vmor %vm1154_vm8, %vm1155_vm6 }
 0x56e   :  { %v1150_v39 = vmul.f32 %v5927_v33, %v1149_v36  ;;  %v1147_v48 = vsel %vm1146_vm5, %v5925_v18, %v1143_v38  ;;  %vm1136_vm11 = vmor %vm1134_vm9, %vm1135_vm7 }
 0x56f   :  { %v1130_v40 = vmul.f32 %v5929_v35, %v1129_v37  ;;  %v1169_v50 = vmul.f32 %v1147_v48, %v7885_v53 }
 0x570   :  { %v1151_v41 = vmul.f32 0.5, %v1150_v39  ;;  %5472 = vmatpush.xpose.msk.msrb.mxu3 %vm1287_vm13, %v7929_v10 }
 0x571   :  { %v1131_v44 = vmul.f32 0.5, %v1130_v40  ;;  %v1177_v57 = vmul.f32 %v5878_v23, %v1169_v50  ;;  %5467 = vmatmul.msk.f32.gmra.mxu3 %vm1287_vm13, %v7940_v13 }
 0x572   :  { %v1152_v47 = vsub.f32 1.5, %v1151_v41 }
 0x573   :  { %v1132_v49 = vsub.f32 1.5, %v1131_v44  ;;  %v1185_v53 = vadd.f32 %v5879_v27, %v1177_v57 }
 0x574   :  { %v1153_v45 = vmul.f32 %v5927_v33, %v1152_v47  ;;  %5495 = vmatpush.xpose.msk.msra.mxu3 %vm1287_vm13, %v7945_v14 }
 0x575   :  { %v1133_v46 = vmul.f32 %v5929_v35, %v1132_v49 }
 0x576   :  { %v1157_v51 = vsel %vm1156_vm10, %v5927_v33, %v1153_v45 }
 0x577   :  { %v1170_v52 = vmul.f32 %v1157_v51, %v7893_v60  ;;  %v1137_v54 = vsel %vm1136_vm11, %v5929_v35, %v1133_v46 }
 0x578   :  { %v1168_v55 = vmul.f32 %v1137_v54, %v7896_v61  ;;  %v1073_v61 = vld [vmem:[%s9084_s15 + $0x8] sm:$0xff]  ;;  %5496 = vmatpush.xpose.msk.msra.mxu3 %vm1287_vm13, %v7940_v13  ;;  %s9107_s15 = sld [smem:[#allocation130_spill]] }
 0x579   :  { %v1178_v56 = vmul.f32 %v5878_v23, %v1170_v52  ;;  %5468 = vmatmul.msk.f32.gmra.mxu3 %vm1287_vm13, %v7945_v14 }
 0x57a   :  { %v1176_v63 = vmul.f32 %v5878_v23, %v1168_v55  ;;  %v5489_v23 = vld [vmem:[%s9085_s8 + $0x4] sm:$0xf]  ;;  %s9108_s8 = sld [smem:[#allocation140_spill]] }
 0x57b   :  { %v1186_v62 = vadd.f32 %v5879_v27, %v1178_v56  ;;  %5490 = vmatpush.msk.msrb.mxu0 %vm1300_vm12, %v5489_v23 }
 0x57c   :  { %v1184_v60 = vadd.f32 %v5879_v27, %v1176_v63  ;;  %5491 = vmatmul.msk.f32.vlgmr.msrb.gmra.mxu0 %vm1287_vm13, %v7929_v10  ;;  %5497 = vmatpush.xpose.msk.msra.mxu3 %vm1287_vm13, %v7935_v11 }
 0x57d   :  { %1213 = vmatpush.msrb.mxu1 %v1186_v62 }
 0x57f   :  { %1214 = vmatpush.msrb.mxu1 %v1185_v53 }
 0x580   :  { %5498 = vmatpush.xpose.msk.msra.mxu3 %vm1287_vm13, %v7929_v10 }
 0x581   :  { %1215 = vmatpush.msrb.mxu1 %v1184_v60 }
 0x582   :  { %5456 = vmatmul.msk.f32.vlgmr.msrb.gmra.mxu1 %vm956_vm1, %v1072_v1  ;;  %v1081_v1 = vld [vmem:[%s9087_s18 + $0x8] sm:$0xff] }
 0x584   :  { %5492 = vmatmul.msk.f32.gmra.mxu0 %vm1287_vm13, %v7935_v11 }
 0x58a   :  { %5457 = vmatmul.msk.f32.gmra.mxu1 %vm956_vm1, %v1073_v61 }
 0x58c   :  { %5493 = vmatmul.msk.f32.gmra.mxu0 %vm1287_vm13, %v7940_v13 }
 0x592   :  { %5458 = vmatmul.msk.f32.gmra.mxu1 %vm956_vm1, %v1074_v2 }
 0x594   :  { %5494 = vmatmul.msk.f32.gmra.mxu0 %vm1287_vm13, %v7945_v14 }
 0x59a   :  { %5459 = vmatmul.msk.f32.gmra.mxu1 %vm956_vm1, %v1075_v3 }
 0x5e4   :  { %v1321_v33 = vpop.f32.mrf.mxu3 }
 0x5e5   :  { %5473 = vmatmul.msk.f32.vlgmr.msrb.gmra.mxu3 %vm1287_vm13, %v1321_v33 }
 0x5ec   :  { %v1324_v34 = vpop.f32.mrf.mxu3 }
 0x5ed   :  { %5474 = vmatmul.msk.f32.gmra.mxu3 %vm1287_vm13, %v1324_v34 }
 0x5f4   :  { %v1327_v35 = vpop.f32.mrf.mxu3 }
 0x5f5   :  { %5475 = vmatmul.msk.f32.gmra.mxu3 %vm1287_vm13, %v1327_v35 }
 0x5f9   :  { %v1559_v40 = vpop.f32.mrf.mxu0 }
 0x5fc   :  { %v1330_v37 = vpop.f32.mrf.mxu3 }
 0x5fd   :  { %5476 = vmatmul.msk.f32.gmra.mxu3 %vm1287_vm13, %v1330_v37 }
 0x5ff   :  { %v1217_v5 = vpop.f32.mrf.mxu1 }
 0x600   :  { %5460 = vmatmul.msk.f32.vlgmr.msra.gmra.mxu2 %vm956_vm1, %v1217_v5 }
 0x601   :  { %v1562_v47 = vpop.f32.mrf.mxu0 }
 0x605   :  { %5499 = vmatmul.msk.f32.vlgmr.msra.gmra.mxu3 %vm1287_vm13, %v1559_v40 }
 0x607   :  { %v1220_v6 = vpop.f32.mrf.mxu1 }
 0x608   :  { %5461 = vmatmul.msk.f32.gmra.mxu2 %vm956_vm1, %v1220_v6  ;;  %v1082_v6 = vld [vmem:[%s9087_s18 + $0x10] sm:$0xff] }
 0x609   :  { %v1565_v45 = vpop.f32.mrf.mxu0 }
 0x60d   :  { %5500 = vmatmul.msk.f32.gmra.mxu3 %vm1287_vm13, %v1562_v47 }
 0x60f   :  { %v1223_v7 = vpop.f32.mrf.mxu1 }
 0x610   :  { %5462 = vmatmul.msk.f32.gmra.mxu2 %vm956_vm1, %v1223_v7 }
 0x611   :  { %v1568_v50 = vpop.f32.mrf.mxu0 }
 0x615   :  { %5501 = vmatmul.msk.f32.gmra.mxu3 %vm1287_vm13, %v1565_v45 }
 0x617   :  { %v1226_v8 = vpop.f32.mrf.mxu1 }
 0x618   :  { %5463 = vmatmul.msk.f32.gmra.mxu2 %vm956_vm1, %v1226_v8 }
 0x61d   :  { %5502 = vmatmul.msk.f32.gmra.mxu3 %vm1287_vm13, %v1568_v50 }
 0x668   :  { %v1362_v56 = vpop.f32.mrf.mxu3 }
 0x670   :  { %v1365_v57 = vpop.f32.mrf.mxu3 }
 0x678   :  { %v1368_v0 = vpop.f32.mrf.mxu3 }
 0x680   :  { %v1371_v4 = vpop.f32.mrf.mxu3 }
 0x683   :  { %v1266_v12 = vpop.f32.mrf.mxu2 }
 0x684   :  { %v1267_v18 = vadd.f32 %v5880_v15, %v1266_v12 }
 0x686   :  { %v1282_v26 = vmul.f32 0.25, %v1267_v18 }
 0x68b   :  { %v1269_v17 = vpop.f32.mrf.mxu2 }
 0x68c   :  { %v1270_v19 = vadd.f32 %v5880_v15, %v1269_v17  ;;  %v1600_v17 = vpop.f32.mrf.mxu3 }
 0x68e   :  { %1380 = vrot.lane.b32.xlu0 %v1270_v19, %s7249_s20  ;;  %v7954_v20 = vpack.i.bf16 %v1267_v18, %v1270_v19  ;;  %v1283_v29 = vmul.f32 0.25, %v1270_v19 }
 0x693   :  { %v1272_v21 = vpop.f32.mrf.mxu2 }
 0x694   :  { %v1273_v22 = vadd.f32 %v5880_v15, %v1272_v21 }
 0x696   :  { %1624 = vrot.lane.b32.xlu0 %v1273_v22, %s7250_s13  ;;  %1382 = vrot.lane.b32.xlu2 %v1273_v22, %s7249_s20  ;;  %v1284_v31 = vmul.f32 0.25, %v1273_v22 }
 0x69b   :  { %v1275_v24 = vpop.f32.mrf.mxu2 }
 0x69c   :  { %v1276_v25 = vadd.f32 %v5880_v15, %v1275_v24  ;;  %v1083_v15 = vld [vmem:[%s9087_s18 + $0x18] sm:$0xff]  ;;  %v1603_v24 = vpop.f32.mrf.mxu3  ;;  %s9110_s18 = sld [smem:[#allocation88_spill]] }
 0x69e   :  { %1612 = vrot.lane.b32.xlu0 %v1282_v26, %s7251_s10  ;;  %1378 = vrot.lane.b32.xlu2 %v1267_v18, %s7249_s20  ;;  %v7974_v27 = vpack.i.bf16 %v1273_v22, %v1276_v25  ;;  %v1285_v28 = vmul.f32 0.25, %v1276_v25 }
 0x69f   :  { %1384 = vrot.lane.b32.xlu1 %v1276_v25, %s7249_s20 }
 0x6a4   :  { %v1606_v33 = vpop.f32.mrf.mxu3 }
 0x6a6   :  { %1622 = vrot.lane.b32.xlu2 %v1270_v19, %s7250_s13  ;;  %1618 = vrot.lane.b32.xlu0 %v1285_v28, %s7251_s10 }
 0x6a7   :  { %1626 = vrot.lane.b32.xlu1 %v1276_v25, %s7250_s13 }
 0x6ae   :  { %1614 = vrot.lane.b32.xlu2 %v1283_v29, %s7251_s10 }
 0x6af   :  { %1620 = vrot.lane.b32.xlu1 %v1267_v18, %s7250_s13 }
 0x6b7   :  { %1616 = vrot.lane.b32.xlu1 %v1284_v31, %s7251_s10 }
 0x6f0   :  { %v1383_v38 = vpop.permute.xlu2 %1382 }
 0x6f8   :  { %v1379_v41 = vpop.permute.xlu2 %1378 }
 0x700   :  { %v1381_v39 = vpop.permute.xlu0 %1380  ;;  %v1623_v49 = vpop.permute.xlu2 %1622 }
 0x708   :  { %v1625_v48 = vpop.permute.xlu0 %1624  ;;  %v1615_v52 = vpop.permute.xlu2 %1614 }
 0x710   :  { %v1613_v51 = vpop.permute.xlu0 %1612 }
 0x711   :  { %v1385_v36 = vpop.permute.xlu1 %1384 }
 0x712   :  { %5477 = vmatpush.xpose.msk.msra.mxu1 %vm1386_vm14, %v1385_v36 }
 0x716   :  { %5478 = vmatpush.xpose.msk.msra.mxu1 %vm1386_vm14, %v1383_v38 }
 0x718   :  { %v1619_v55 = vpop.permute.xlu0 %1618 }
 0x719   :  { %v1627_v44 = vpop.permute.xlu1 %1626 }
 0x71a   :  { %5479 = vmatpush.xpose.msk.msra.mxu1 %vm1386_vm14, %v1381_v39  ;;  %v1609_v39 = vpop.f32.mrf.mxu3 }
 0x71e   :  { %5480 = vmatpush.xpose.msk.msra.mxu1 %vm1386_vm14, %v1379_v41 }
 0x721   :  { %5481 = vmatmul.msk.f32.vlgmr.msra.gmra.mxu1 %vm1386_vm14, %v1282_v26  ;;  %v1621_v46 = vpop.permute.xlu1 %1620 }
 0x722   :  { %5503 = vmatpush.xpose.msk.msrb.mxu1 %vm1386_vm14, %v1627_v44 }
 0x726   :  { %5504 = vmatpush.xpose.msk.msrb.mxu1 %vm1386_vm14, %v1625_v48 }
 0x729   :  { %5482 = vmatmul.msk.f32.gmra.mxu1 %vm1386_vm14, %v1283_v29  ;;  %v1617_v54 = vpop.permute.xlu1 %1616 }
 0x72a   :  { %5505 = vmatpush.xpose.msk.msrb.mxu1 %vm1386_vm14, %v1623_v49 }
 0x72e   :  { %5506 = vmatpush.xpose.msk.msrb.mxu1 %vm1386_vm14, %v1621_v46 }
 0x731   :  { %5483 = vmatmul.msk.f32.gmra.mxu1 %vm1386_vm14, %v1284_v31 }
 0x739   :  { %5484 = vmatmul.msk.f32.gmra.mxu1 %vm1386_vm14, %v1285_v28 }
 0x741   :  { %5507 = vmatmul.msk.f32.vlgmr.msrb.gmra.mxu1 %vm1386_vm14, %v1613_v51 }
 0x749   :  { %5508 = vmatmul.msk.f32.gmra.mxu1 %vm1386_vm14, %v1615_v52 }
 0x751   :  { %5509 = vmatmul.msk.f32.gmra.mxu1 %vm1386_vm14, %v1617_v54 }
 0x759   :  { %5510 = vmatmul.msk.f32.gmra.mxu1 %vm1386_vm14, %v1619_v55 }
 0x79e   :  { %v1424_v58 = vpop.f32.mrf.mxu1 }
 0x79f   :  { %v1425_v62 = vadd.f32 %v1424_v58, %v1362_v56 }
 0x7a1   :  { %v1436_v63 = vadd.f32 %v1425_v62, %v1080_v59 }
 0x7a3   :  { %v1440_v53 = vsel %vm956_vm1, %v1436_v63, -inf }
 0x7a4   :  { %1441 = vmax.xlane.f32.xlu2 %v1440_v53 }
 0x7a6   :  { %v1427_v60 = vpop.f32.mrf.mxu1 }
 0x7a7   :  { %v1428_v61 = vadd.f32 %v1427_v60, %v1365_v57 }
 0x7a9   :  { %v1437_v2 = vadd.f32 %v1428_v61, %v1081_v1 }
 0x7ab   :  { %v1443_v3 = vsel %vm956_vm1, %v1437_v2, -inf }
 0x7ac   :  { %1444 = vmax.xlane.f32.xlu1 %v1443_v3 }
 0x7ae   :  { %v1430_v5 = vpop.f32.mrf.mxu1 }
 0x7af   :  { %v1431_v7 = vadd.f32 %v1430_v5, %v1368_v0 }
 0x7b1   :  { %v1438_v8 = vadd.f32 %v1431_v7, %v1082_v6 }
 0x7b3   :  { %v1446_v9 = vsel %vm956_vm1, %v1438_v8, -inf }
 0x7b4   :  { %1447 = vmax.xlane.f32.xlu0 %v1446_v9 }
 0x7b6   :  { %v1433_v12 = vpop.f32.mrf.mxu1 }
 0x7b7   :  { %v1434_v18 = vadd.f32 %v1433_v12, %v1371_v4 }
 0x7b9   :  { %v1439_v19 = vadd.f32 %v1434_v18, %v1083_v15 }
 0x7bb   :  { %v1449_v21 = vsel %vm956_vm1, %v1439_v19, -inf }
 0x7bc   :  { %1450 = vmax.xlane.f32.xlu2 %v1449_v21 }
 0x7be   :  { %v1661_v22 = vpop.f32.mrf.mxu1 }
 0x7bf   :  { %v1662_v23 = vadd.f32 %v1661_v22, %v1600_v17 }
 0x7c1   :  { %v1673_v25 = vadd.f32 %v1662_v23, %v1080_v59 }
 0x7c3   :  { %v1677_v26 = vsel %vm956_vm1, %v1673_v25, -inf }
 0x7c4   :  { %1678 = vmax.xlane.f32.xlu1 %v1677_v26 }
 0x7c6   :  { %v1664_v28 = vpop.f32.mrf.mxu1 }
 0x7c7   :  { %v1665_v29 = vadd.f32 %v1664_v28, %v1603_v24 }
 0x7c9   :  { %v8024_v31 = vadd.f32 %v1665_v29, %v1081_v1 }
 0x7cb   :  { %v1680_v34 = vsel %vm956_vm1, %v8024_v31, -inf }
 0x7cc   :  { %1681 = vmax.xlane.f32.xlu0 %v1680_v34 }
 0x7ce   :  { %v1667_v35 = vpop.f32.mrf.mxu1 }
 0x7cf   :  { %v1668_v36 = vadd.f32 %v1667_v35, %v1606_v33 }
 0x7d1   :  { %v8028_v37 = vadd.f32 %v1668_v36, %v1082_v6 }
 0x7d3   :  { %v1683_v38 = vsel %vm956_vm1, %v8028_v37, -inf }
 0x7d4   :  { %1684 = vmax.xlane.f32.xlu2 %v1683_v38 }
 0x7d6   :  { %v1670_v40 = vpop.f32.mrf.mxu1 }
 0x7d7   :  { %v1671_v41 = vadd.f32 %v1670_v40, %v1609_v39 }
 0x7d9   :  { %v1676_v44 = vadd.f32 %v1671_v41, %v1083_v15 }
 0x7db   :  { %v1686_v47 = vsel %vm956_vm1, %v1676_v44, -inf }
 0x7dc   :  { %1687 = vmax.xlane.f32.xlu2 %v1686_v47 }
 0x7dd   :  { %5841 = vrot.lane.b32.xlu1 %v7954_v20, %s7237_s14 }
 0x7e0   :  { %5836 = vrot.lane.b32.xlu0 %v7974_v27, %s7237_s14 }
 0x817   :  { %v1442_v48 = vpop.xlane.xlu2 %1441 }
 0x818   :  { %v1452_v49 = vsub.f32 %v1436_v63, %v1442_v48 }
 0x81a   :  { %v1456_v45 = vmul.f32 1.442695, %v1452_v49 }
 0x81c   :  { %5930 = vpow2.f32 %v1456_v45 }
 0x81f   :  { %v1445_v46 = vpop.xlane.xlu1 %1444 }
 0x820   :  { %v1453_v50 = vsub.f32 %v1437_v2, %v1445_v46 }
 0x822   :  { %v8037_v51 = vpop.eup %5930  ;;  %v1458_v52 = vmul.f32 1.442695, %v1453_v50 }
 0x823   :  { %v1464_v54 = vsel %vm956_vm1, %v8037_v51, 0.0 }
 0x824   :  { %5932 = vpow2.f32 %v1458_v52  ;;  %1465 = vadd.xlane.f32.xlu1 %v1464_v54 }
 0x827   :  { %v1448_v55 = vpop.xlane.xlu0 %1447 }
 0x828   :  { %v1454_v56 = vsub.f32 %v1438_v8, %v1448_v55 }
 0x82a   :  { %v8041_v57 = vpop.eup %5932  ;;  %v1460_v58 = vmul.f32 1.442695, %v1454_v56 }
 0x82b   :  { %v1467_v59 = vsel %vm956_vm1, %v8041_v57, 0.0 }
 0x82c   :  { %5934 = vpow2.f32 %v1460_v58  ;;  %1468 = vadd.xlane.f32.xlu2 %v1467_v59 }
 0x82f   :  { %v1451_v62 = vpop.xlane.xlu2 %1450 }
 0x830   :  { %v1455_v63 = vsub.f32 %v1439_v19, %v1451_v62 }
 0x832   :  { %v8045_v0 = vpop.eup %5934  ;;  %v1462_v53 = vmul.f32 1.442695, %v1455_v63 }
 0x833   :  { %v1470_v60 = vsel %vm956_vm1, %v8045_v0, 0.0 }
 0x834   :  { %5936 = vpow2.f32 %v1462_v53  ;;  %1471 = vadd.xlane.f32.xlu2 %v1470_v60 }
 0x837   :  { %v1679_v1 = vpop.xlane.xlu1 %1678 }
 0x838   :  { %v1689_v61 = vsub.f32 %v1673_v25, %v1679_v1 }
 0x83a   :  { %v8049_v2 = vpop.eup %5936  ;;  %v1693_v3 = vmul.f32 1.442695, %v1689_v61 }
 0x83b   :  { %v1473_v4 = vsel %vm956_vm1, %v8049_v2, 0.0 }
 0x83c   :  { %5938 = vpow2.f32 %v1693_v3  ;;  %1474 = vadd.xlane.f32.xlu0 %v1473_v4 }
 0x83d   :  { %5846 = vrot.lane.b32.xlu1 %v7974_v27, %s7252_s9 }
 0x83f   :  { %v1682_v8 = vpop.xlane.xlu0 %1681 }
 0x840   :  { %v1690_v21 = vsub.f32 %v8024_v31, %v1682_v8 }
 0x842   :  { %v8055_v5 = vpop.eup %5938  ;;  %v1695_v23 = vmul.f32 1.442695, %v1690_v21 }
 0x843   :  { %v1701_v6 = vsel %vm956_vm1, %v8055_v5, 0.0 }
 0x844   :  { %1702 = vadd.xlane.f32.xlu2 %v1701_v6 }
 0x847   :  { %v1685_v7 = vpop.xlane.xlu2 %1684 }
 0x848   :  { %v1691_v31 = vsub.f32 %v8028_v37, %v1685_v7  ;;  %v1280_v7 = vld [vmem:[%s9088_s26 + $0x10] sm:$0xff] }
 0x84a   :  { %v1697_v33 = vmul.f32 1.442695, %v1691_v31 }
 0x84f   :  { %v1688_v9 = vpop.xlane.xlu2 %1687  ;;  %v5842_v19 = vpop.permute.xlu1 %5841 }
 0x850   :  { %v1692_v12 = vsub.f32 %v1676_v44, %v1688_v9  ;;  %v5843_v27 = vunpack.i.l.bf16 %v5842_v19  ;;  %v5844_v24 = vunpack.i.h.bf16 %v5842_v19 }
 0x852   :  { %v1699_v15 = vmul.f32 1.442695, %v1692_v12  ;;  %v5837_v17 = vpop.permute.xlu0 %5836 }
 0x853   :  { %v5838_v18 = vunpack.i.l.bf16 %v5837_v17  ;;  %v5839_v22 = vunpack.i.h.bf16 %v5837_v17 }
 0x854   :  { %5940 = vpow2.f32 %v1699_v15 }
 0x855   :  { %1520 = vmatpush.msrb.mxu2 %v5838_v18  ;;  %5942 = vpow2.f32 %v1695_v23 }
 0x856   :  { %5944 = vpow2.f32 %v1697_v33 }
 0x857   :  { %1521 = vmatpush.msrb.mxu2 %v5839_v22 }
 0x859   :  { %1522 = vmatpush.msrb.mxu2 %v5843_v27 }
 0x85a   :  { %v8060_v25 = vpop.eup %5940 }
 0x85b   :  { %1523 = vmatpush.msrb.mxu2 %v5844_v24  ;;  %v1710_v26 = vsel %vm956_vm1, %v8060_v25, 0.0  ;;  %v5943_v28 = vpop.eup %5942 }
 0x85c   :  { %5851 = vrot.lane.b32.xlu2 %v7954_v20, %s7252_s9  ;;  %1711 = vadd.xlane.f32.xlu0 %v1710_v26  ;;  %v1704_v29 = vsel %vm956_vm1, %v5943_v28, 0.0  ;;  %v5945_v34 = vpop.eup %5944 }
 0x85d   :  { %v1707_v35 = vsel %vm956_vm1, %v5945_v34, 0.0 }
 0x867   :  { %1705 = vadd.xlane.f32.xlu1 %v1704_v29  ;;  %v5881_v29 = vld [vmem:[#allocation22] ss:$0 sm:$0xff] }
 0x885   :  { %1708 = vadd.xlane.f32.xlu2 %v1707_v35 }
 0x897   :  { %v1466_v36 = vpop.xlane.xlu1 %1465 }
 0x898   :  { %5946 = vrcp.f32 %v1466_v36 }
 0x89e   :  { %v5947_v38 = vpop.eup %5946 }
 0x89f   :  { %v1469_v39 = vpop.xlane.xlu2 %1468  ;;  %v1480_v20 = vmul.f32 %v5947_v38, %v8037_v51 }
 0x8a0   :  { %5948 = vrcp.f32 %v1469_v39 }
 0x8a1   :  { %5485 = vmatmul.msk.f32.vlgmr.msrb.gmra.mxu2 %vm956_vm1, %v1480_v20 }
 0x8a6   :  { %v5949_v40 = vpop.eup %5948 }
 0x8a7   :  { %v1472_v41 = vpop.xlane.xlu2 %1471  ;;  %v1481_v44 = vmul.f32 %v5949_v40, %v8041_v57  ;;  %v1076_v40 = vld [vmem:[%s9089_s0] sm:$0xff] }
 0x8a8   :  { %5950 = vrcp.f32 %v1472_v41  ;;  %v1077_v41 = vld [vmem:[%s9089_s0 + $0x8] sm:$0xff] }
 0x8a9   :  { %5486 = vmatmul.msk.f32.gmra.mxu2 %vm956_vm1, %v1481_v44  ;;  %v1078_v44 = vld [vmem:[%s9089_s0 + $0x10] sm:$0xff] }
 0x8ae   :  { %v5951_v37 = vpop.eup %5950 }
 0x8af   :  { %v5847_v47 = vpop.permute.xlu1 %5846  ;;  %v1475_v48 = vpop.xlane.xlu0 %1474  ;;  %v1482_v49 = vmul.f32 %v5951_v37, %v8045_v0  ;;  %v1279_v0 = vld [vmem:[%s9088_s26 + $0x8] sm:$0xff]  ;;  %v1079_v37 = vld [vmem:[%s9089_s0 + $0x18] sm:$0xff]  ;;  %s9112_s0 = sld [smem:[#allocation138_spill]] }
 0x8b0   :  { %v5848_v45 = vunpack.i.l.bf16 %v5847_v47  ;;  %5952 = vrcp.f32 %v1475_v48  ;;  %v5849_v46 = vunpack.i.h.bf16 %v5847_v47  ;;  %1841 = vmatpush.msrb.mxu3 %v1279_v0 }
 0x8b1   :  { %5487 = vmatmul.msk.f32.gmra.mxu2 %vm956_vm1, %v1482_v49 }
 0x8b2   :  { %1757 = vmatpush.msra.mxu2 %v5848_v45 }
 0x8b4   :  { %1758 = vmatpush.msra.mxu2 %v5849_v46 }
 0x8b6   :  { %v5953_v50 = vpop.eup %5952 }
 0x8b7   :  { %v1703_v51 = vpop.xlane.xlu2 %1702  ;;  %v1483_v52 = vmul.f32 %v5953_v50, %v8049_v2  ;;  %v1278_v2 = vld [vmem:[%s9088_s26] sm:$0xff] }
 0x8b8   :  { %5954 = vrcp.f32 %v1703_v51  ;;  %1842 = vmatpush.msrb.mxu3 %v1278_v2 }
 0x8b9   :  { %5488 = vmatmul.msk.f32.gmra.mxu2 %vm956_vm1, %v1483_v52 }
 0x8be   :  { %v5955_v55 = vpop.eup %5954 }
 0x8bf   :  { %v5852_v54 = vpop.permute.xlu2 %5851  ;;  %v1717_v58 = vmul.f32 %v5955_v55, %v8055_v5  ;;  %v1281_v5 = vld [vmem:[%s9088_s26 + $0x18] sm:$0xff]  ;;  %s9111_s26 = sld [smem:[#allocation91_spill]] }
 0x8c0   :  { %v5853_v56 = vunpack.i.l.bf16 %v5852_v54  ;;  %v5854_v57 = vunpack.i.h.bf16 %v5852_v54  ;;  %1800 = vmatpush.msra.mxu0 %v1281_v5 }
 0x8c2   :  { %1759 = vmatpush.msra.mxu2 %v5853_v56  ;;  %1801 = vmatpush.msra.mxu0 %v1280_v7 }
 0x8c4   :  { %1760 = vmatpush.msra.mxu2 %v5854_v57 }
 0x8c5   :  { %5511 = vmatmul.msk.f32.vlgmr.msra.gmra.mxu2 %vm956_vm1, %v1717_v58 }
 0x8cf   :  { %v1712_v60 = vpop.xlane.xlu0 %1711 }
 0x8da   :  { %v1706_v59 = vpop.xlane.xlu1 %1705 }
 0x8db   :  { %5956 = vrcp.f32 %v1706_v59 }
 0x8e1   :  { %v5957_v62 = vpop.eup %5956 }
 0x8e2   :  { %v1718_v63 = vmul.f32 %v5957_v62, %v5943_v28 }
 0x8e4   :  { %5512 = vmatmul.msk.f32.gmra.mxu2 %vm956_vm1, %v1718_v63 }
 0x8f8   :  { %v1709_v53 = vpop.xlane.xlu2 %1708 }
 0x8f9   :  { %5958 = vrcp.f32 %v1709_v53 }
 0x8fa   :  { %5960 = vrcp.f32 %v1712_v60 }
 0x8ff   :  { %v5959_v1 = vpop.eup %5958 }
 0x900   :  { %v1719_v61 = vmul.f32 %v5959_v1, %v5945_v34  ;;  %v5961_v3 = vpop.eup %5960 }
 0x901   :  { %v1720_v4 = vmul.f32 %v5961_v3, %v8060_v25 }
 0x902   :  { %5513 = vmatmul.msk.f32.gmra.mxu2 %vm956_vm1, %v1719_v61 }
 0x90a   :  { %5514 = vmatmul.msk.f32.gmra.mxu2 %vm956_vm1, %v1720_v4 }
 0x924   :  { %v1525_v6 = vpop.f32.mrf.mxu2 }
 0x925   :  { %5519 = vmatmul.msk.f32.vlgmr.msrb.gmra.mxu3 %vm1386_vm14, %v1525_v6 }
 0x92c   :  { %v1528_v8 = vpop.f32.mrf.mxu2 }
 0x92d   :  { %5520 = vmatmul.msk.f32.gmra.mxu3 %vm1386_vm14, %v1528_v8 }
 0x934   :  { %v1531_v9 = vpop.f32.mrf.mxu2 }
 0x935   :  { %5521 = vmatmul.msk.f32.gmra.mxu3 %vm1386_vm14, %v1531_v9  ;;  %v2016_v9 = vld [vmem:[%s9090_s29 + $0x18] sm:$0xff] }
 0x936   :  { %2045 = vmatpush.msrb.mxu2 %v2016_v9 }
 0x93c   :  { %v1534_v12 = vpop.f32.mrf.mxu2 }
 0x93d   :  { %5522 = vmatmul.msk.f32.gmra.mxu3 %vm1386_vm14, %v1534_v12  ;;  %v2015_v12 = vld [vmem:[%s9090_s29 + $0x10] sm:$0xff] }
 0x93e   :  { %2046 = vmatpush.msrb.mxu2 %v2015_v12 }
 0x948   :  { %v1762_v15 = vpop.f32.mrf.mxu2 }
 0x949   :  { %5515 = vmatmul.msk.f32.vlgmr.msra.gmra.mxu0 %vm1386_vm14, %v1762_v15  ;;  %v2014_v15 = vld [vmem:[%s9090_s29 + $0x8] sm:$0xff] }
 0x94a   :  { %2047 = vmatpush.msrb.mxu2 %v2014_v15 }
 0x967   :  { %v1765_v17 = vpop.f32.mrf.mxu2 }
 0x968   :  { %5516 = vmatmul.msk.f32.gmra.mxu0 %vm1386_vm14, %v1765_v17  ;;  %v2013_v17 = vld [vmem:[%s9090_s29] sm:$0xff]  ;;  %s7255_s29 = smov 32  }
 0x969   :  { %2048 = vmatpush.msrb.mxu2 %v2013_v17 }
 0x985   :  { %v1768_v18 = vpop.f32.mrf.mxu2 }
 0x986   :  { %5517 = vmatmul.msk.f32.gmra.mxu0 %vm1386_vm14, %v1768_v18 }
 0x98d   :  { %v1771_v19 = vpop.f32.mrf.mxu2 }
 0x98e   :  { %5518 = vmatmul.msk.f32.gmra.mxu0 %vm1386_vm14, %v1771_v19 }
 0x9a8   :  { %v1844_v21 = vpop.f32.mrf.mxu3 }
 0x9b0   :  { %v1847_v27 = vpop.f32.mrf.mxu3 }
 0x9b8   :  { %v1850_v24 = vpop.f32.mrf.mxu3 }
 0x9c0   :  { %v1853_v26 = vpop.f32.mrf.mxu3 }
 0x9c6   :  { %v1803_v22 = vpop.f32.mrf.mxu0 }
 0x9c7   :  { %v1845_v36 = vadd.f32 %v1844_v21, %v1803_v22 }
 0x9c9   :  { %v1860_v20 = vadd.f32 %v5881_v29, %v1845_v36  ;;  %v5882_v36 = vld [vmem:[#allocation20] ss:$0 sm:$0xff] }
 0x9e5   :  { %v1806_v23 = vpop.f32.mrf.mxu0 }
 0x9e6   :  { %v1848_v34 = vadd.f32 %v1847_v27, %v1806_v23 }
 0x9e8   :  { %v1861_v39 = vadd.f32 %v5881_v29, %v1848_v34 }
 0xa03   :  { %v1809_v25 = vpop.f32.mrf.mxu0 }
 0xa04   :  { %v1851_v31 = vadd.f32 %v1850_v24, %v1809_v25 }
 0xa06   :  { %v1862_v38 = vadd.f32 %v5881_v29, %v1851_v31 }
 0xa0b   :  { %v1812_v28 = vpop.f32.mrf.mxu0 }
 0xa0c   :  { %v1854_v33 = vadd.f32 %v1853_v26, %v1812_v28 }
 0xa0e   :  { %v1863_v35 = vadd.f32 %v5881_v29, %v1854_v33 }
 0xa10   :  { %1888 = vmatpush.msra.mxu1 %v1863_v35 }
 0xa12   :  { %1889 = vmatpush.msra.mxu1 %v1862_v38 }
 0xa14   :  { %1890 = vmatpush.msra.mxu1 %v1861_v39 }
 0xa16   :  { %1891 = vmatpush.msra.mxu1 %v1860_v20  ;;  %v2113_v20 = vld [vmem:[%s9091_s28 + $0x78] sm:$0xff] }
 0xa17   :  { %5523 = vmatmul.msk.f32.vlgmr.msra.gmra.mxu1 %vm956_vm1, %v1076_v40  ;;  %v2112_v40 = vld [vmem:[%s9091_s28 + $0x70] sm:$0xff]  ;;  %2118 = vmatpush.msrb.mxu0 %v2113_v20 }
 0xa19   :  { %2119 = vmatpush.msrb.mxu0 %v2112_v40 }
 0xa1f   :  { %5524 = vmatmul.msk.f32.gmra.mxu1 %vm956_vm1, %v1077_v41 }
 0xa27   :  { %5525 = vmatmul.msk.f32.gmra.mxu1 %vm956_vm1, %v1078_v44 }
 0xa2f   :  { %5526 = vmatmul.msk.f32.gmra.mxu1 %vm956_vm1, %v1079_v37 }
 0xa94   :  { %v1893_v47 = vpop.f32.mrf.mxu1 }
 0xa95   :  { %v8104_v48 = vadd.f32 %v1893_v47, %v7874_v43  ;;  %v5883_v47 = vld [vmem:[#allocation19] ss:$0 sm:$0xff] }
 0xa97   :  { %v1909_v49 = vsel %vm956_vm1, %v8104_v48, 0.0 }
 0xa98   :  { %1910 = vadd.xlane.f32.xlu0 %v1909_v49  ;;  %v2111_v49 = vld [vmem:[%s9091_s28 + $0x68] sm:$0xff] }
 0xa99   :  { %2120 = vmatpush.msrb.mxu0 %v2111_v49 }
 0xa9c   :  { %v1896_v45 = vpop.f32.mrf.mxu1 }
 0xa9d   :  { %v8109_v46 = vadd.f32 %v1896_v45, %v7866_v32 }
 0xa9f   :  { %v1912_v50 = vsel %vm956_vm1, %v8109_v46, 0.0 }
 0xaa0   :  { %1913 = vadd.xlane.f32.xlu0 %v1912_v50 }
 0xaa4   :  { %v1899_v51 = vpop.f32.mrf.mxu1 }
 0xaa5   :  { %v8114_v52 = vadd.f32 %v1899_v51, %v7872_v42 }
 0xaa7   :  { %v1915_v43 = vsel %vm956_vm1, %v8114_v52, 0.0 }
 0xaa8   :  { %1916 = vadd.xlane.f32.xlu1 %v1915_v43 }
 0xaac   :  { %v1902_v54 = vpop.f32.mrf.mxu1 }
 0xaad   :  { %v8119_v55 = vadd.f32 %v1902_v54, %v7861_v16  ;;  %v2110_v54 = vld [vmem:[%s9091_s28 + $0x60] sm:$0xff] }
 0xaae   :  { %2121 = vmatpush.msrb.mxu0 %v2110_v54 }
 0xaaf   :  { %v1918_v32 = vsel %vm956_vm1, %v8119_v55, 0.0 }
 0xab0   :  { %1919 = vadd.xlane.f32.xlu0 %v1918_v32 }
 0xb0b   :  { %v1911_v56 = vpop.xlane.xlu0 %1910 }
 0xb0c   :  { %v1921_v57 = vmul.f32 %v1911_v56, %v7835_v30 }
 0xb0e   :  { %v1925_v58 = vsub.f32 %v8104_v48, %v1921_v57 }
 0xb10   :  { %v1929_v59 = vmul.f32 %v1925_v58, %v1925_v58 }
 0xb12   :  { %v1933_v42 = vsel %vm956_vm1, %v1929_v59, 0.0 }
 0xb13   :  { %v1914_v62 = vpop.xlane.xlu0 %1913  ;;  %1934 = vadd.xlane.f32.xlu1 %v1933_v42 }
 0xb14   :  { %v1922_v63 = vmul.f32 %v1914_v62, %v7835_v30 }
 0xb16   :  { %v8128_v0 = vsub.f32 %v8109_v46, %v1922_v63 }
 0xb18   :  { %v1930_v16 = vmul.f32 %v8128_v0, %v8128_v0 }
 0xb1a   :  { %v1936_v53 = vsel %vm956_vm1, %v1930_v16, 0.0 }
 0xb1b   :  { %v1917_v60 = vpop.xlane.xlu1 %1916  ;;  %1937 = vadd.xlane.f32.xlu0 %v1936_v53 }
 0xb1c   :  { %v1923_v1 = vmul.f32 %v1917_v60, %v7835_v30 }
 0xb1e   :  { %v8135_v61 = vsub.f32 %v8114_v52, %v1923_v1 }
 0xb20   :  { %v1931_v2 = vmul.f32 %v8135_v61, %v8135_v61 }
 0xb22   :  { %v1939_v3 = vsel %vm956_vm1, %v1931_v2, 0.0 }
 0xb23   :  { %1940 = vadd.xlane.f32.xlu1 %v1939_v3  ;;  %v1920_v4 = vpop.xlane.xlu0 %1919 }
 0xb24   :  { %v1924_v5 = vmul.f32 %v1920_v4, %v7835_v30 }
 0xb26   :  { %v8142_v6 = vsub.f32 %v8119_v55, %v1924_v5 }
 0xb28   :  { %v1932_v7 = vmul.f32 %v8142_v6, %v8142_v6 }
 0xb2a   :  { %v1942_v8 = vsel %vm956_vm1, %v1932_v7, 0.0 }
 0xb2b   :  { %1943 = vadd.xlane.f32.xlu2 %v1942_v8 }
 0xb86   :  { %v1935_v18 = vpop.xlane.xlu1 %1934 }
 0xb87   :  { %v1945_v19 = vmul.f32 %v1935_v18, %v7835_v30 }
 0xb89   :  { %v1949_v21 = vadd.f32 1e-05, %v1945_v19 }
 0xb8b   :  { %5962 = vrsqrt.f32 %v1949_v21  ;;  %vm1959_vm0 = vweird.f32 %v1949_v21 }
 0xb8e   :  { %v1938_v22 = vpop.xlane.xlu0 %1937 }
 0xb8f   :  { %v1946_v27 = vmul.f32 %v1938_v22, %v7835_v30 }
 0xb91   :  { %v5963_v23 = vpop.eup %5962  ;;  %v1950_v24 = vadd.f32 1e-05, %v1946_v27  ;;  %v2109_v27 = vld [vmem:[%s9091_s28 + $0x58] sm:$0xff] }
 0xb92   :  { %v1954_v25 = vmul.f32 %v5963_v23, %v1949_v21  ;;  %vm1960_vm15 = vweird.f32 %v5963_v23  ;;  %2122 = vmatpush.msrb.mxu0 %v2109_v27 }
 0xb93   :  { %5964 = vrsqrt.f32 %v1950_v24  ;;  %vm1961_vm2 = vmor %vm1959_vm0, %vm1960_vm15  ;;  %vm1969_vm4 = vweird.f32 %v1950_v24 }
 0xb94   :  { %v1955_v26 = vmul.f32 %v5963_v23, %v1954_v25  ;;  %v2106_v25 = vld [vmem:[%s9091_s28 + $0x40] sm:$0xff] }
 0xb96   :  { %v1956_v28 = vmul.f32 0.5, %v1955_v26  ;;  %v1941_v29 = vpop.xlane.xlu1 %1940  ;;  %v2105_v26 = vld [vmem:[%s9091_s28 + $0x38] sm:$0xff] }
 0xb97   :  { %v1947_v31 = vmul.f32 %v1941_v29, %v7835_v30  ;;  %v2102_v29 = vld [vmem:[%s9091_s28 + $0x20] sm:$0xff] }
 0xb98   :  { %v1957_v33 = vsub.f32 1.5, %v1956_v28  ;;  %v2103_v28 = vld [vmem:[%s9091_s28 + $0x28] sm:$0xff] }
 0xb99   :  { %v5965_v34 = vpop.eup %5964  ;;  %v1951_v35 = vadd.f32 1e-05, %v1947_v31  ;;  %v2101_v31 = vld [vmem:[%s9091_s28 + $0x18] sm:$0xff] }
 0xb9a   :  { %v1958_v38 = vmul.f32 %v5963_v23, %v1957_v33  ;;  %v1964_v39 = vmul.f32 %v5965_v34, %v1950_v24  ;;  %vm1970_vm3 = vweird.f32 %v5965_v34  ;;  %v2107_v24 = vld [vmem:[%s9091_s28 + $0x48] sm:$0xff]  ;;  %v2100_v33 = vld [vmem:[%s9091_s28 + $0x10] sm:$0xff] }
 0xb9b   :  { %5966 = vrsqrt.f32 %v1951_v35  ;;  %vm1971_vm5 = vmor %vm1969_vm4, %vm1970_vm3  ;;  %vm1979_vm7 = vweird.f32 %v1951_v35 }
 0xb9c   :  { %v1962_v41 = vsel %vm1961_vm2, %v5963_v23, %v1958_v38  ;;  %v1965_v44 = vmul.f32 %v5965_v34, %v1964_v39  ;;  %v2108_v23 = vld [vmem:[%s9091_s28 + $0x50] sm:$0xff] }
 0xb9d   :  { %v1993_v37 = vmul.f32 %v1962_v41, %v1925_v58  ;;  %2123 = vmatpush.msrb.mxu0 %v2108_v23 }
 0xb9e   :  { %v1966_v45 = vmul.f32 0.5, %v1965_v44  ;;  %v1944_v50 = vpop.xlane.xlu2 %1943 }
 0xb9f   :  { %v2001_v51 = vmul.f32 %v5882_v36, %v1993_v37  ;;  %v1948_v43 = vmul.f32 %v1944_v50, %v7835_v30  ;;  %2124 = vmatpush.msrb.mxu0 %v2107_v24  ;;  %v5885_v24 = vld [vmem:[#allocation14] ss:$0 sm:$0xff] }
 0xba0   :  { %v1967_v32 = vsub.f32 1.5, %v1966_v45 }
 0xba1   :  { %v5967_v56 = vpop.eup %5966  ;;  %v1952_v57 = vadd.f32 1e-05, %v1948_v43  ;;  %v2009_v59 = vadd.f32 %v5883_v47, %v2001_v51  ;;  %2125 = vmatpush.msrb.mxu0 %v2106_v25 }
 0xba2   :  { %v1968_v42 = vmul.f32 %v5965_v34, %v1967_v32  ;;  %v1974_v62 = vmul.f32 %v5967_v56, %v1951_v35  ;;  %vm1980_vm6 = vweird.f32 %v5967_v56  ;;  %v2098_v35 = vld [vmem:[%s9091_s28] sm:$0xff] }
 0xba3   :  { %5968 = vrsqrt.f32 %v1952_v57  ;;  %5527 = vmatmul.msk.f32.vlgmr.msrb.gmra.mxu2 %vm956_vm1, %v2009_v59  ;;  %vm1981_vm8 = vmor %vm1979_vm7, %vm1980_vm6  ;;  %vm1989_vm10 = vweird.f32 %v1952_v57  ;;  %2126 = vmatpush.msrb.mxu0 %v2105_v26 }
 0xba4   :  { %v1972_v58 = vsel %vm1971_vm5, %v5965_v34, %v1968_v42  ;;  %v1975_v63 = vmul.f32 %v5967_v56, %v1974_v62  ;;  %v2099_v34 = vld [vmem:[%s9091_s28 + $0x8] sm:$0xff] }
 0xba5   :  { %v1994_v16 = vmul.f32 %v1972_v58, %v8128_v0 }
 0xba6   :  { %v1976_v53 = vmul.f32 0.5, %v1975_v63 }
 0xba7   :  { %v2002_v60 = vmul.f32 %v5882_v36, %v1994_v16 }
 0xba8   :  { %v1977_v1 = vsub.f32 1.5, %v1976_v53 }
 0xba9   :  { %v5969_v2 = vpop.eup %5968  ;;  %v2010_v3 = vadd.f32 %v5883_v47, %v2002_v60 }
 0xbaa   :  { %v1978_v4 = vmul.f32 %v5967_v56, %v1977_v1  ;;  %v1984_v5 = vmul.f32 %v5969_v2, %v1952_v57  ;;  %vm1990_vm9 = vweird.f32 %v5969_v2 }
 0xbab   :  { %5528 = vmatmul.msk.f32.gmra.mxu2 %vm956_vm1, %v2010_v3  ;;  %vm1991_vm11 = vmor %vm1989_vm10, %vm1990_vm9 }
 0xbac   :  { %v1982_v7 = vsel %vm1981_vm8, %v5967_v56, %v1978_v4  ;;  %v1985_v8 = vmul.f32 %v5969_v2, %v1984_v5  ;;  %v8189_v5 = vld [vmem:[%s9086_s21 + $0x10] sm:$0xff] }
 0xbad   :  { %v1995_v9 = vmul.f32 %v1982_v7, %v8135_v61 }
 0xbae   :  { %v1986_v12 = vmul.f32 0.5, %v1985_v8 }
 0xbaf   :  { %v2003_v0 = vmul.f32 %v5882_v36, %v1995_v9 }
 0xbb0   :  { %v1987_v15 = vsub.f32 1.5, %v1986_v12  ;;  %v8194_v12 = vld [vmem:[%s9086_s21 + $0x8] sm:$0xff] }
 0xbb1   :  { %v2011_v17 = vadd.f32 %v5883_v47, %v2003_v0 }
 0xbb2   :  { %v1988_v18 = vmul.f32 %v5969_v2, %v1987_v15 }
 0xbb3   :  { %5529 = vmatmul.msk.f32.gmra.mxu2 %vm956_vm1, %v2011_v17 }
 0xbb4   :  { %v1992_v19 = vsel %vm1991_vm11, %v5969_v2, %v1988_v18  ;;  %v8199_v18 = vld [vmem:[%s9086_s21] sm:$0xff] }
 0xbb5   :  { %v1996_v21 = vmul.f32 %v1992_v19, %v8142_v6  ;;  %v2104_v6 = vld [vmem:[%s9091_s28 + $0x30] sm:$0xff]  ;;  %s7256_s28 = smov 16  }
 0xbb6   :  { %2127 = vmatpush.msrb.mxu0 %v2104_v6 }
 0xbb7   :  { %v2004_v61 = vmul.f32 %v5882_v36, %v1996_v21  ;;  %v5884_v36 = vld [vmem:[#allocation13] ss:$0 sm:$0xff] }
 0xbb8   :  { %2128 = vmatpush.msrb.mxu0 %v2103_v28 }
 0xbb9   :  { %v2012_v22 = vadd.f32 %v5883_v47, %v2004_v61 }
 0xbba   :  { %2129 = vmatpush.msrb.mxu0 %v2102_v29 }
 0xbbb   :  { %5530 = vmatmul.msk.f32.gmra.mxu2 %vm956_vm1, %v2012_v22 }
 0xbbc   :  { %2130 = vmatpush.msrb.mxu0 %v2101_v31 }
 0xbbe   :  { %2131 = vmatpush.msrb.mxu0 %v2100_v33 }
 0xbc0   :  { %2132 = vmatpush.msrb.mxu0 %v2099_v34 }
 0xbc2   :  { %2133 = vmatpush.msrb.mxu0 %v2098_v35 }
 0xbc4   :  { %5544 = vmatpush.xpose.msk.msra.mxu0 %vm1287_vm13, %v7945_v14 }
 0xbc8   :  { %5545 = vmatpush.xpose.msk.msra.mxu0 %vm1287_vm13, %v7940_v13 }
 0xbcc   :  { %5546 = vmatpush.xpose.msk.msra.mxu0 %vm1287_vm13, %v7935_v11 }
 0xbd0   :  { %5547 = vmatpush.xpose.msk.msra.mxu0 %vm1287_vm13, %v7929_v10 }
 0xc26   :  { %v2050_v38 = vpop.f32.mrf.mxu2 }
 0xc27   :  { %v2051_v39 = vadd.f32 %v5884_v36, %v2050_v38 }
 0xc29   :  { %v2066_v20 = vmul.f32 0.044715, %v2051_v39  ;;  %v2062_v57 = vmul.f32 0.5, %v2051_v39 }
 0xc2b   :  { %v2070_v40 = vmul.f32 %v2066_v20, %v2051_v39 }
 0xc2d   :  { %v2074_v41 = vmul.f32 %v2070_v40, %v2051_v39 }
 0xc2e   :  { %v2053_v44 = vpop.f32.mrf.mxu2 }
 0xc2f   :  { %v2054_v37 = vadd.f32 %v5884_v36, %v2053_v44  ;;  %v2078_v47 = vadd.f32 %v2074_v41, %v2051_v39 }
 0xc31   :  { %v2082_v49 = vmul.f32 0.7978846, %v2078_v47  ;;  %v2067_v45 = vmul.f32 0.044715, %v2054_v37  ;;  %v2063_v2 = vmul.f32 0.5, %v2054_v37 }
 0xc33   :  { %5970 = vtanh.f32 %v2082_v49  ;;  %v2071_v50 = vmul.f32 %v2067_v45, %v2054_v37 }
 0xc35   :  { %v2075_v13 = vmul.f32 %v2071_v50, %v2054_v37 }
 0xc36   :  { %v2056_v51 = vpop.f32.mrf.mxu2 }
 0xc37   :  { %v2057_v43 = vadd.f32 %v5884_v36, %v2056_v51  ;;  %v2079_v54 = vadd.f32 %v2075_v13, %v2054_v37 }
 0xc39   :  { %v5971_v32 = vpop.eup %5970  ;;  %v2083_v11 = vmul.f32 0.7978846, %v2079_v54  ;;  %v2068_v56 = vmul.f32 0.044715, %v2057_v43  ;;  %v2064_v15 = vmul.f32 0.5, %v2057_v43 }
 0xc3a   :  { %v2090_v59 = vadd.f32 1.0, %v5971_v32 }
 0xc3b   :  { %5972 = vtanh.f32 %v2083_v11  ;;  %v2072_v10 = vmul.f32 %v2068_v56, %v2057_v43 }
 0xc3c   :  { %v2094_v42 = vmul.f32 %v2090_v59, %v2062_v57 }
 0xc3d   :  { %v2076_v62 = vmul.f32 %v2072_v10, %v2057_v43 }
 0xc3e   :  { %v2059_v58 = vpop.f32.mrf.mxu2  ;;  %2134 = vmatmul.f32.vlgmr.msrb.gmra.mxu0 %v2094_v42 }
 0xc3f   :  { %v2060_v63 = vadd.f32 %v5884_v36, %v2059_v58  ;;  %v2080_v16 = vadd.f32 %v2076_v62, %v2057_v43  ;;  %5569 = vmatpush.xpose.msk.msrb.mxu0 %vm1287_vm13, %v7945_v14 }
 0xc41   :  { %v5973_v53 = vpop.eup %5972  ;;  %v2084_v60 = vmul.f32 0.7978846, %v2080_v16  ;;  %v2069_v1 = vmul.f32 0.044715, %v2060_v63  ;;  %v2065_v61 = vmul.f32 0.5, %v2060_v63 }
 0xc42   :  { %v2091_v3 = vadd.f32 1.0, %v5973_v53 }
 0xc43   :  { %5974 = vtanh.f32 %v2084_v60  ;;  %v2073_v4 = vmul.f32 %v2069_v1, %v2060_v63  ;;  %5570 = vmatpush.xpose.msk.msrb.mxu0 %vm1287_vm13, %v8189_v5 }
 0xc44   :  { %v2095_v7 = vmul.f32 %v2091_v3, %v2063_v2 }
 0xc45   :  { %v2077_v8 = vmul.f32 %v2073_v4, %v2060_v63 }
 0xc46   :  { %2137 = vmatmul.f32.gmra.mxu0 %v2095_v7 }
 0xc47   :  { %v2081_v9 = vadd.f32 %v2077_v8, %v2060_v63  ;;  %5571 = vmatpush.xpose.msk.msrb.mxu0 %vm1287_vm13, %v8194_v12 }
 0xc49   :  { %v5975_v14 = vpop.eup %5974  ;;  %v2085_v0 = vmul.f32 0.7978846, %v2081_v9 }
 0xc4a   :  { %v2092_v17 = vadd.f32 1.0, %v5975_v14 }
 0xc4b   :  { %5976 = vtanh.f32 %v2085_v0  ;;  %5572 = vmatpush.xpose.msk.msrb.mxu0 %vm1287_vm13, %v8199_v18 }
 0xc4c   :  { %v2096_v19 = vmul.f32 %v2092_v17, %v2064_v15 }
 0xc4e   :  { %2140 = vmatmul.f32.gmra.mxu0 %v2096_v19 }
 0xc51   :  { %v5977_v21 = vpop.eup %5976 }
 0xc52   :  { %v2093_v22 = vadd.f32 1.0, %v5977_v21 }
 0xc54   :  { %v2097_v27 = vmul.f32 %v2093_v22, %v2065_v61 }
 0xc56   :  { %2143 = vmatmul.f32.gmra.mxu0 %v2097_v27 }
 0xcbb   :  { %v2135_v23 = vpop.f32.mrf.mxu0 }
 0xcc3   :  { %v2138_v25 = vpop.f32.mrf.mxu0 }
 0xcc4   :  { %v2139_v26 = vadd.f32 %v5885_v24, %v2138_v25 }
 0xcc6   :  { %v8204_v6 = vadd.f32 %v2139_v26, %v8109_v46  ;;  %v2136_v46 = vadd.f32 %v5885_v24, %v2135_v23 }
 0xcc8   :  { %v2166_v28 = vsel %vm956_vm1, %v8204_v6, 0.0  ;;  %v8219_v20 = vadd.f32 %v2136_v46, %v8104_v48 }
 0xcc9   :  { %2167 = vadd.xlane.f32.xlu2 %v2166_v28 }
 0xccb   :  { %v2141_v29 = vpop.f32.mrf.mxu0 }
 0xccc   :  { %v2142_v31 = vadd.f32 %v5885_v24, %v2141_v29 }
 0xcce   :  { %v8209_v33 = vadd.f32 %v2142_v31, %v8114_v52  ;;  %v2163_v52 = vsel %vm956_vm1, %v8219_v20, 0.0 }
 0xcd0   :  { %v2169_v34 = vsel %vm956_vm1, %v8209_v33, 0.0 }
 0xcd1   :  { %2170 = vadd.xlane.f32.xlu1 %v2169_v34 }
 0xcd3   :  { %v2144_v35 = vpop.f32.mrf.mxu0 }
 0xcd4   :  { %v2145_v36 = vadd.f32 %v5885_v24, %v2144_v35 }
 0xcd6   :  { %v8214_v38 = vadd.f32 %v2145_v36, %v8119_v55 }
 0xcd8   :  { %v2172_v39 = vsel %vm956_vm1, %v8214_v38, 0.0 }
 0xcd9   :  { %2173 = vadd.xlane.f32.xlu0 %v2172_v39 }
 0xce1   :  { %2164 = vadd.xlane.f32.xlu0 %v2163_v52 }
 0xd3c   :  { %v2168_v40 = vpop.xlane.xlu2 %2167 }
 0xd3d   :  { %v2176_v41 = vmul.f32 %v2168_v40, %v7835_v30 }
 0xd3f   :  { %v8225_v44 = vsub.f32 %v8204_v6, %v2176_v41 }
 0xd41   :  { %v2184_v55 = vmul.f32 %v8225_v44, %v8225_v44 }
 0xd43   :  { %v2190_v37 = vsel %vm956_vm1, %v2184_v55, 0.0  ;;  %v5886_v55 = vld [vmem:[#allocation29] ss:$0 sm:$0xff] }
 0xd44   :  { %v2171_v47 = vpop.xlane.xlu1 %2170  ;;  %2191 = vadd.xlane.f32.xlu0 %v2190_v37 }
 0xd45   :  { %v2177_v48 = vmul.f32 %v2171_v47, %v7835_v30 }
 0xd47   :  { %v8232_v49 = vsub.f32 %v8209_v33, %v2177_v48 }
 0xd49   :  { %v2185_v45 = vmul.f32 %v8232_v49, %v8232_v49 }
 0xd4b   :  { %v2193_v50 = vsel %vm956_vm1, %v2185_v45, 0.0  ;;  %v5887_v45 = vld [vmem:[#allocation28] ss:$0 sm:$0xff] }
 0xd4c   :  { %v2174_v13 = vpop.xlane.xlu0 %2173  ;;  %2194 = vadd.xlane.f32.xlu2 %v2193_v50 }
 0xd4d   :  { %v2178_v51 = vmul.f32 %v2174_v13, %v7835_v30 }
 0xd4f   :  { %v2182_v43 = vsub.f32 %v8214_v38, %v2178_v51 }
 0xd51   :  { %v2186_v54 = vmul.f32 %v2182_v43, %v2182_v43 }
 0xd53   :  { %v2196_v32 = vsel %vm956_vm1, %v2186_v54, 0.0 }
 0xd54   :  { %v2165_v11 = vpop.xlane.xlu0 %2164  ;;  %2197 = vadd.xlane.f32.xlu1 %v2196_v32 }
 0xd55   :  { %v2175_v56 = vmul.f32 %v2165_v11, %v7835_v30  ;;  %v2311_v11 = vld [vmem:[%s9092_s3 + $0x18] sm:$0xff] }
 0xd56   :  { %2340 = vmatpush.msrb.mxu1 %v2311_v11 }
 0xd57   :  { %v8242_v57 = vsub.f32 %v8219_v20, %v2175_v56 }
 0xd59   :  { %v2183_v59 = vmul.f32 %v8242_v57, %v8242_v57 }
 0xd5b   :  { %v2187_v10 = vsel %vm956_vm1, %v2183_v59, 0.0 }
 0xd5c   :  { %2188 = vadd.xlane.f32.xlu1 %v2187_v10  ;;  %v2309_v10 = vld [vmem:[%s9092_s3 + $0x8] sm:$0xff] }
 0xdb7   :  { %v2192_v42 = vpop.xlane.xlu0 %2191 }
 0xdb8   :  { %v2200_v62 = vmul.f32 %v2192_v42, %v7835_v30 }
 0xdba   :  { %v2204_v58 = vadd.f32 1e-05, %v2200_v62 }
 0xdbc   :  { %5978 = vrsqrt.f32 %v2204_v58  ;;  %vm2223_vm4 = vweird.f32 %v2204_v58 }
 0xdbf   :  { %v2195_v63 = vpop.xlane.xlu2 %2194 }
 0xdc0   :  { %v2201_v16 = vmul.f32 %v2195_v63, %v7835_v30  ;;  %v2152_v63 = vld [vmem:[%s9093_s4 + $0x8] sm:$0xff] }
 0xdc2   :  { %v2205_v53 = vadd.f32 1e-05, %v2201_v16  ;;  %v5979_v60 = vpop.eup %5978  ;;  %v2153_v16 = vld [vmem:[%s9093_s4 + $0x10] sm:$0xff] }
 0xdc3   :  { %v2218_v1 = vmul.f32 %v5979_v60, %v2204_v58  ;;  %vm2224_vm0 = vweird.f32 %v5979_v60  ;;  %v2151_v58 = vld [vmem:[%s9093_s4] sm:$0xff] }
 0xdc4   :  { %5980 = vrsqrt.f32 %v2205_v53  ;;  %vm2233_vm2 = vweird.f32 %v2205_v53  ;;  %vm2225_vm6 = vmor %vm2223_vm4, %vm2224_vm0 }
 0xdc5   :  { %v2219_v8 = vmul.f32 %v5979_v60, %v2218_v1 }
 0xdc7   :  { %v2198_v2 = vpop.xlane.xlu1 %2197  ;;  %v2220_v0 = vmul.f32 0.5, %v2219_v8  ;;  %v5888_v8 = vld [vmem:[#allocation35] ss:$0 sm:$0xff] }
 0xdc8   :  { %v2202_v3 = vmul.f32 %v2198_v2, %v7835_v30 }
 0xdc9   :  { %v2221_v27 = vsub.f32 1.5, %v2220_v0 }
 0xdca   :  { %v5981_v4 = vpop.eup %5980  ;;  %v2206_v7 = vadd.f32 1e-05, %v2202_v3 }
 0xdcb   :  { %v2228_v9 = vmul.f32 %v5981_v4, %v2205_v53  ;;  %vm2234_vm15 = vweird.f32 %v5981_v4  ;;  %v2222_v26 = vmul.f32 %v5979_v60, %v2221_v27  ;;  %v2154_v53 = vld [vmem:[%s9093_s4 + $0x18] sm:$0xff]  ;;  %s9114_s4 = sld [smem:[#allocation133_spill]] }
 0xdcc   :  { %5982 = vrsqrt.f32 %v2206_v7  ;;  %vm2235_vm3 = vmor %vm2233_vm2, %vm2234_vm15  ;;  %vm2243_vm7 = vweird.f32 %v2206_v7 }
 0xdcd   :  { %v2229_v14 = vmul.f32 %v5981_v4, %v2228_v9  ;;  %v2226_v35 = vsel %vm2225_vm6, %v5979_v60, %v2222_v26  ;;  %v6093_v9 = vld [vmem:[%s9086_s21 + $0x18] sm:$0xff]  ;;  %s9109_s21 = sld [smem:[#allocation141_spill]] }
 0xdce   :  { %v2248_v37 = vmul.f32 %v2226_v35, %v8225_v44  ;;  %v2310_v44 = vld [vmem:[%s9092_s3 + $0x10] sm:$0xff] }
 0xdcf   :  { %v2230_v15 = vmul.f32 0.5, %v2229_v14  ;;  %v2189_v17 = vpop.xlane.xlu1 %2188  ;;  %2341 = vmatpush.msrb.mxu1 %v2310_v44 }
 0xdd0   :  { %v2199_v19 = vmul.f32 %v2189_v17, %v7835_v30  ;;  %v2256_v54 = vmul.f32 %v5886_v55, %v2248_v37 }
 0xdd1   :  { %v2231_v21 = vsub.f32 1.5, %v2230_v15  ;;  %2342 = vmatpush.msrb.mxu1 %v2309_v10  ;;  %v2160_v10 = vld [vmem:[%s9094_s30 + $0x8] sm:$0xff] }
 0xdd2   :  { %v5983_v61 = vpop.eup %5982  ;;  %v2203_v22 = vadd.f32 1e-05, %v2199_v19  ;;  %v2264_v56 = vadd.f32 %v5887_v45, %v2256_v54  ;;  %v2602_v19 = vld [vmem:[#allocation37 + $0x4] sm:$0xf] }
 0xdd3   :  { %v2238_v23 = vmul.f32 %v5983_v61, %v2206_v7  ;;  %v2232_v24 = vmul.f32 %v5981_v4, %v2231_v21  ;;  %vm2244_vm5 = vweird.f32 %v5983_v61 }
 0xdd4   :  { %5984 = vrsqrt.f32 %v2203_v22  ;;  %vm2245_vm8 = vmor %vm2243_vm7, %vm2244_vm5  ;;  %vm2213_vm10 = vweird.f32 %v2203_v22 }
 0xdd5   :  { %v2239_v25 = vmul.f32 %v5983_v61, %v2238_v23  ;;  %v2236_v29 = vsel %vm2235_vm3, %v5981_v4, %v2232_v24  ;;  %v2365_v4 = vld [vmem:[#allocation37] sm:$0xf] }
 0xdd6   :  { %v2249_v39 = vmul.f32 %v2236_v29, %v8232_v49  ;;  %5539 = vmatpush.msk.msra.mxu2 %vm1300_vm12, %v2365_v4 }
 0xdd7   :  { %v2240_v28 = vmul.f32 0.5, %v2239_v25  ;;  %5540 = vmatmul.msk.f32.vlgmr.msra.gmra.mxu2 %vm1287_vm13, %v8199_v18 }
 0xdd8   :  { %v2257_v50 = vmul.f32 %v5886_v55, %v2249_v39  ;;  %5564 = vmatpush.msk.msrb.mxu2 %vm1300_vm12, %v2602_v19 }
 0xdd9   :  { %v2241_v31 = vsub.f32 1.5, %v2240_v28 }
 0xdda   :  { %v5985_v34 = vpop.eup %5984  ;;  %v2265_v49 = vadd.f32 %v5887_v45, %v2257_v50 }
 0xddb   :  { %v2242_v36 = vmul.f32 %v5983_v61, %v2241_v31  ;;  %v2208_v46 = vmul.f32 %v5985_v34, %v2203_v22  ;;  %vm2214_vm9 = vweird.f32 %v5985_v34 }
 0xddc   :  { %vm2215_vm11 = vmor %vm2213_vm10, %vm2214_vm9 }
 0xddd   :  { %v2246_v52 = vsel %vm2245_vm8, %v5983_v61, %v2242_v36  ;;  %v2209_v40 = vmul.f32 %v5985_v34, %v2208_v46 }
 0xdde   :  { %v2250_v41 = vmul.f32 %v2246_v52, %v2182_v43 }
 0xddf   :  { %v2210_v47 = vmul.f32 0.5, %v2209_v40  ;;  %5541 = vmatmul.msk.f32.gmra.mxu2 %vm1287_vm13, %v8194_v12 }
 0xde0   :  { %v2258_v48 = vmul.f32 %v5886_v55, %v2250_v41 }
 0xde1   :  { %v2211_v13 = vsub.f32 1.5, %v2210_v47 }
 0xde2   :  { %v2266_v51 = vadd.f32 %v5887_v45, %v2258_v48 }
 0xde3   :  { %v2212_v32 = vmul.f32 %v5985_v34, %v2211_v13 }
 0xde4   :  { %2291 = vmatpush.msra.mxu3 %v2266_v51 }
 0xde5   :  { %v2216_v43 = vsel %vm2215_vm11, %v5985_v34, %v2212_v32 }
 0xde6   :  { %2292 = vmatpush.msra.mxu3 %v2265_v49  ;;  %v2247_v59 = vmul.f32 %v2216_v43, %v8242_v57  ;;  %v2308_v57 = vld [vmem:[%s9092_s3] sm:$0xff]  ;;  %s9113_s3 = sld [smem:[#allocation131_spill]] }
 0xde7   :  { %2343 = vmatpush.msrb.mxu1 %v2308_v57  ;;  %5542 = vmatmul.msk.f32.gmra.mxu2 %vm1287_vm13, %v8189_v5  ;;  %v2159_v49 = vld [vmem:[%s9094_s30] sm:$0xff] }
 0xde8   :  { %2293 = vmatpush.msra.mxu3 %v2264_v56  ;;  %v2255_v42 = vmul.f32 %v5886_v55, %v2247_v59 }
 0xdea   :  { %v2263_v62 = vadd.f32 %v5887_v45, %v2255_v42 }
 0xdec   :  { %2294 = vmatpush.msra.mxu3 %v2263_v62 }
 0xded   :  { %5531 = vmatmul.msk.f32.vlgmr.msra.gmra.mxu3 %vm956_vm1, %v2151_v58 }
 0xdef   :  { %5543 = vmatmul.msk.f32.gmra.mxu2 %vm1287_vm13, %v6093_v9 }
 0xdf5   :  { %5532 = vmatmul.msk.f32.gmra.mxu3 %vm956_vm1, %v2152_v63 }
 0xdf7   :  { %5565 = vmatmul.msk.f32.vlgmr.msrb.gmra.mxu2 %vm1287_vm13, %v8199_v18 }
 0xdfd   :  { %5533 = vmatmul.msk.f32.gmra.mxu3 %vm956_vm1, %v2153_v16 }
 0xdff   :  { %5566 = vmatmul.msk.f32.gmra.mxu2 %vm1287_vm13, %v8194_v12 }
 0xe05   :  { %5534 = vmatmul.msk.f32.gmra.mxu3 %vm956_vm1, %v2154_v53  ;;  %v2161_v53 = vld [vmem:[%s9094_s30 + $0x10] sm:$0xff] }
 0xe07   :  { %5567 = vmatmul.msk.f32.gmra.mxu2 %vm1287_vm13, %v8189_v5 }
 0xe0f   :  { %5568 = vmatmul.msk.f32.gmra.mxu2 %vm1287_vm13, %v6093_v9 }
 0xe5a   :  { %v2386_v26 = vpop.f32.mrf.mxu2 }
 0xe5b   :  { %5548 = vmatmul.msk.f32.vlgmr.msra.gmra.mxu0 %vm1287_vm13, %v2386_v26 }
 0xe62   :  { %v2389_v5 = vpop.f32.mrf.mxu2 }
 0xe63   :  { %5549 = vmatmul.msk.f32.gmra.mxu0 %vm1287_vm13, %v2389_v5 }
 0xe6a   :  { %v2392_v31 = vpop.f32.mrf.mxu2 }
 0xe6b   :  { %5550 = vmatmul.msk.f32.gmra.mxu0 %vm1287_vm13, %v2392_v31 }
 0xe70   :  { %v2296_v60 = vpop.f32.mrf.mxu3 }
 0xe71   :  { %5535 = vmatmul.msk.f32.vlgmr.msrb.gmra.mxu1 %vm956_vm1, %v2296_v60 }
 0xe72   :  { %v2395_v46 = vpop.f32.mrf.mxu2 }
 0xe73   :  { %5551 = vmatmul.msk.f32.gmra.mxu0 %vm1287_vm13, %v2395_v46 }
 0xe78   :  { %v2299_v1 = vpop.f32.mrf.mxu3 }
 0xe79   :  { %5536 = vmatmul.msk.f32.gmra.mxu1 %vm956_vm1, %v2299_v1 }
 0xe7a   :  { %v2623_v40 = vpop.f32.mrf.mxu2 }
 0xe7b   :  { %5573 = vmatmul.msk.f32.vlgmr.msrb.gmra.mxu0 %vm1287_vm13, %v2623_v40 }
 0xe80   :  { %v2302_v2 = vpop.f32.mrf.mxu3 }
 0xe81   :  { %5537 = vmatmul.msk.f32.gmra.mxu1 %vm956_vm1, %v2302_v2 }
 0xe82   :  { %v2626_v55 = vpop.f32.mrf.mxu2 }
 0xe83   :  { %5574 = vmatmul.msk.f32.gmra.mxu0 %vm1287_vm13, %v2626_v55 }
 0xe88   :  { %v2305_v3 = vpop.f32.mrf.mxu3 }
 0xe89   :  { %5538 = vmatmul.msk.f32.gmra.mxu1 %vm956_vm1, %v2305_v3  ;;  %v2162_v3 = vld [vmem:[%s9094_s30 + $0x18] sm:$0xff] }
 0xe8a   :  { %v2629_v37 = vpop.f32.mrf.mxu2 }
 0xe8b   :  { %5575 = vmatmul.msk.f32.gmra.mxu0 %vm1287_vm13, %v2629_v37 }
 0xe92   :  { %v2632_v47 = vpop.f32.mrf.mxu2 }
 0xe93   :  { %5576 = vmatmul.msk.f32.gmra.mxu0 %vm1287_vm13, %v2632_v47 }
 0xed8   :  { %v2427_v51 = vpop.f32.mrf.mxu0 }
 0xee0   :  { %v2430_v54 = vpop.f32.mrf.mxu0 }
 0xee8   :  { %v2433_v44 = vpop.f32.mrf.mxu0 }
 0xeee   :  { %v2345_v7 = vpop.f32.mrf.mxu1 }
 0xeef   :  { %v2346_v0 = vadd.f32 %v5888_v8, %v2345_v7 }
 0xef0   :  { %v2436_v63 = vpop.f32.mrf.mxu0 }
 0xef1   :  { %v2361_v23 = vmul.f32 0.25, %v2346_v0 }
 0xef6   :  { %v2348_v14 = vpop.f32.mrf.mxu1 }
 0xef7   :  { %v2349_v15 = vadd.f32 %v5888_v8, %v2348_v14 }
 0xef8   :  { %v2664_v4 = vpop.f32.mrf.mxu0 }
 0xef9   :  { %2445 = vrot.lane.b32.xlu1 %v2349_v15, %s7249_s20  ;;  %v8280_v17 = vpack.i.bf16 %v2346_v0, %v2349_v15  ;;  %v2362_v12 = vmul.f32 0.25, %v2349_v15 }
 0xefe   :  { %v2351_v21 = vpop.f32.mrf.mxu1 }
 0xeff   :  { %v2352_v61 = vadd.f32 %v5888_v8, %v2351_v21 }
 0xf01   :  { %2688 = vrot.lane.b32.xlu1 %v2352_v61, %s7250_s13  ;;  %2447 = vrot.lane.b32.xlu0 %v2352_v61, %s7249_s20  ;;  %v2363_v25 = vmul.f32 0.25, %v2352_v61 }
 0xf06   :  { %v2354_v22 = vpop.f32.mrf.mxu1 }
 0xf07   :  { %v2355_v27 = vadd.f32 %v5888_v8, %v2354_v22 }
 0xf09   :  { %2676 = vrot.lane.b32.xlu1 %v2361_v23, %s7251_s10  ;;  %2443 = vrot.lane.b32.xlu0 %v2346_v0, %s7249_s20  ;;  %v8291_v24 = vpack.i.bf16 %v2352_v61, %v2355_v27  ;;  %v2364_v18 = vmul.f32 0.25, %v2355_v27 }
 0xf0a   :  { %2449 = vrot.lane.b32.xlu2 %v2355_v27, %s7249_s20 }
 0xf11   :  { %2686 = vrot.lane.b32.xlu0 %v2349_v15, %s7250_s13  ;;  %2682 = vrot.lane.b32.xlu1 %v2364_v18, %s7251_s10  ;;  %v2667_v15 = vpop.f32.mrf.mxu0 }
 0xf12   :  { %2690 = vrot.lane.b32.xlu2 %v2355_v27, %s7250_s13 }
 0xf19   :  { %2678 = vrot.lane.b32.xlu0 %v2362_v12, %s7251_s10 }
 0xf1a   :  { %2684 = vrot.lane.b32.xlu2 %v2346_v0, %s7250_s13 }
 0xf22   :  { %2680 = vrot.lane.b32.xlu2 %v2363_v25, %s7251_s10 }
 0xf64   :  { %v2450_v28 = vpop.permute.xlu2 %2449 }
 0xf65   :  { %5552 = vmatpush.xpose.msk.msrb.mxu3 %vm1386_vm14, %v2450_v28 }
 0xf6b   :  { %v2446_v34 = vpop.permute.xlu1 %2445 }
 0xf6c   :  { %v2691_v36 = vpop.permute.xlu2 %2690 }
 0xf73   :  { %v2448_v29 = vpop.permute.xlu0 %2447  ;;  %v2689_v39 = vpop.permute.xlu1 %2688 }
 0xf74   :  { %5553 = vmatpush.xpose.msk.msrb.mxu3 %vm1386_vm14, %v2448_v29  ;;  %v2685_v41 = vpop.permute.xlu2 %2684 }
 0xf78   :  { %5554 = vmatpush.xpose.msk.msrb.mxu3 %vm1386_vm14, %v2446_v34 }
 0xf7b   :  { %v2444_v35 = vpop.permute.xlu0 %2443  ;;  %v2677_v48 = vpop.permute.xlu1 %2676 }
 0xf7c   :  { %5555 = vmatpush.xpose.msk.msrb.mxu3 %vm1386_vm14, %v2444_v35  ;;  %v2681_v50 = vpop.permute.xlu2 %2680 }
 0xf7f   :  { %5556 = vmatmul.msk.f32.vlgmr.msrb.gmra.mxu3 %vm1386_vm14, %v2361_v23  ;;  %v2670_v23 = vpop.f32.mrf.mxu0 }
 0xf80   :  { %5577 = vmatpush.xpose.msk.msra.mxu3 %vm1386_vm14, %v2691_v36 }
 0xf83   :  { %v2687_v52 = vpop.permute.xlu0 %2686  ;;  %v2683_v13 = vpop.permute.xlu1 %2682 }
 0xf84   :  { %5578 = vmatpush.xpose.msk.msra.mxu3 %vm1386_vm14, %v2689_v39 }
 0xf87   :  { %5557 = vmatmul.msk.f32.gmra.mxu3 %vm1386_vm14, %v2362_v12  ;;  %v2673_v5 = vpop.f32.mrf.mxu0 }
 0xf88   :  { %5579 = vmatpush.xpose.msk.msra.mxu3 %vm1386_vm14, %v2687_v52 }
 0xf8b   :  { %v2679_v45 = vpop.permute.xlu0 %2678 }
 0xf8c   :  { %5580 = vmatpush.xpose.msk.msra.mxu3 %vm1386_vm14, %v2685_v41 }
 0xf8f   :  { %5558 = vmatmul.msk.f32.gmra.mxu3 %vm1386_vm14, %v2363_v25 }
 0xf97   :  { %5559 = vmatmul.msk.f32.gmra.mxu3 %vm1386_vm14, %v2364_v18 }
 0xf9f   :  { %5581 = vmatmul.msk.f32.vlgmr.msra.gmra.mxu3 %vm1386_vm14, %v2677_v48 }
 0xfa7   :  { %5582 = vmatmul.msk.f32.gmra.mxu3 %vm1386_vm14, %v2679_v45 }
 0xfaf   :  { %5583 = vmatmul.msk.f32.gmra.mxu3 %vm1386_vm14, %v2681_v50 }
 0xfb7   :  { %5584 = vmatmul.msk.f32.gmra.mxu3 %vm1386_vm14, %v2683_v13 }
0x1002   :  { %v2488_v32 = vpop.f32.mrf.mxu3 }
0x1003   :  { %v2489_v43 = vadd.f32 %v2488_v32, %v2427_v51 }
0x1005   :  { %v2500_v11 = vadd.f32 %v2489_v43, %v2159_v49 }
0x1007   :  { %v2504_v56 = vsel %vm956_vm1, %v2500_v11, -inf }
0x1008   :  { %2505 = vmax.xlane.f32.xlu0 %v2504_v56 }
0x100a   :  { %v2491_v59 = vpop.f32.mrf.mxu3 }
0x100b   :  { %v2492_v42 = vadd.f32 %v2491_v59, %v2430_v54 }
0x100d   :  { %v2501_v62 = vadd.f32 %v2492_v42, %v2160_v10 }
0x100f   :  { %v2507_v58 = vsel %vm956_vm1, %v2501_v62, -inf }
0x1010   :  { %2508 = vmax.xlane.f32.xlu2 %v2507_v58 }
0x1012   :  { %v2494_v16 = vpop.f32.mrf.mxu3 }
0x1013   :  { %v2495_v57 = vadd.f32 %v2494_v16, %v2433_v44 }
0x1015   :  { %v2502_v60 = vadd.f32 %v2495_v57, %v2161_v53 }
0x1017   :  { %v2510_v1 = vsel %vm956_vm1, %v2502_v60, -inf }
0x1018   :  { %2511 = vmax.xlane.f32.xlu1 %v2510_v1 }
0x101a   :  { %v2497_v2 = vpop.f32.mrf.mxu3 }
0x101b   :  { %v2498_v7 = vadd.f32 %v2497_v2, %v2436_v63 }
0x101d   :  { %v2503_v8 = vadd.f32 %v2498_v7, %v2162_v3 }
0x101f   :  { %v2513_v9 = vsel %vm956_vm1, %v2503_v8, -inf }
0x1020   :  { %2514 = vmax.xlane.f32.xlu0 %v2513_v9 }
0x1022   :  { %v2725_v14 = vpop.f32.mrf.mxu3 }
0x1023   :  { %v2726_v0 = vadd.f32 %v2725_v14, %v2664_v4 }
0x1025   :  { %v2737_v19 = vadd.f32 %v2726_v0, %v2159_v49 }
0x1027   :  { %v2741_v21 = vsel %vm956_vm1, %v2737_v19, -inf }
0x1028   :  { %2742 = vmax.xlane.f32.xlu2 %v2741_v21 }
0x102a   :  { %v2728_v61 = vpop.f32.mrf.mxu3 }
0x102b   :  { %v2729_v22 = vadd.f32 %v2728_v61, %v2667_v15 }
0x102d   :  { %v2738_v27 = vadd.f32 %v2729_v22, %v2160_v10 }
0x102f   :  { %v2744_v18 = vsel %vm956_vm1, %v2738_v27, -inf }
0x1030   :  { %2745 = vmax.xlane.f32.xlu1 %v2744_v18 }
0x1032   :  { %v2731_v12 = vpop.f32.mrf.mxu3 }
0x1033   :  { %v2732_v25 = vadd.f32 %v2731_v12, %v2670_v23 }
0x1035   :  { %v8337_v26 = vadd.f32 %v2732_v25, %v2161_v53 }
0x1037   :  { %v2747_v28 = vsel %vm956_vm1, %v8337_v26, -inf }
0x1038   :  { %2748 = vmax.xlane.f32.xlu0 %v2747_v28 }
0x103a   :  { %v2734_v29 = vpop.f32.mrf.mxu3 }
0x103b   :  { %v2735_v31 = vadd.f32 %v2734_v29, %v2673_v5 }
0x103d   :  { %v2740_v34 = vadd.f32 %v2735_v31, %v2162_v3 }
0x103f   :  { %v2750_v35 = vsel %vm956_vm1, %v2740_v34, -inf }
0x1040   :  { %5861 = vrot.lane.b32.xlu2 %v8280_v17, %s7237_s14  ;;  %2751 = vmax.xlane.f32.xlu0 %v2750_v35 }
0x1049   :  { %5856 = vrot.lane.b32.xlu1 %v8291_v24, %s7237_s14 }
0x107b   :  { %v2506_v36 = vpop.xlane.xlu0 %2505 }
0x107c   :  { %v2516_v46 = vsub.f32 %v2500_v11, %v2506_v36 }
0x107e   :  { %v2520_v39 = vmul.f32 1.442695, %v2516_v46 }
0x1080   :  { %5986 = vpow2.f32 %v2520_v39 }
0x1083   :  { %v2509_v52 = vpop.xlane.xlu2 %2508 }
0x1084   :  { %v2517_v40 = vsub.f32 %v2501_v62, %v2509_v52 }
0x1086   :  { %v8346_v41 = vpop.eup %5986  ;;  %v2522_v55 = vmul.f32 1.442695, %v2517_v40 }
0x1087   :  { %v2528_v37 = vsel %vm956_vm1, %v8346_v41, 0.0 }
0x1088   :  { %5988 = vpow2.f32 %v2522_v55  ;;  %2529 = vadd.xlane.f32.xlu2 %v2528_v37 }
0x108b   :  { %v2512_v47 = vpop.xlane.xlu1 %2511 }
0x108c   :  { %v2518_v48 = vsub.f32 %v2502_v60, %v2512_v47 }
0x108e   :  { %v8350_v45 = vpop.eup %5988  ;;  %v2524_v50 = vmul.f32 1.442695, %v2518_v48 }
0x108f   :  { %v2531_v13 = vsel %vm956_vm1, %v8350_v45, 0.0 }
0x1090   :  { %5990 = vpow2.f32 %v2524_v50  ;;  %2532 = vadd.xlane.f32.xlu0 %v2531_v13 }
0x1093   :  { %v2515_v51 = vpop.xlane.xlu0 %2514 }
0x1094   :  { %v2519_v54 = vsub.f32 %v2503_v8, %v2515_v51 }
0x1096   :  { %v8354_v32 = vpop.eup %5990  ;;  %v2526_v49 = vmul.f32 1.442695, %v2519_v54 }
0x1097   :  { %v2534_v43 = vsel %vm956_vm1, %v8354_v32, 0.0 }
0x1098   :  { %5992 = vpow2.f32 %v2526_v49  ;;  %2535 = vadd.xlane.f32.xlu0 %v2534_v43 }
0x109b   :  { %v2743_v11 = vpop.xlane.xlu2 %2742 }
0x109c   :  { %v2753_v44 = vsub.f32 %v2737_v19, %v2743_v11  ;;  %v2357_v11 = vld [vmem:[%s9095_s16] sm:$0xff] }
0x109e   :  { %v8358_v56 = vpop.eup %5992  ;;  %v2757_v59 = vmul.f32 1.442695, %v2753_v44  ;;  %v2360_v44 = vld [vmem:[%s9095_s16 + $0x18] sm:$0xff] }
0x109f   :  { %v2537_v10 = vsel %vm956_vm1, %v8358_v56, 0.0  ;;  %2864 = vmatpush.msra.mxu2 %v2360_v44  ;;  %v3080_v44 = vld [vmem:[%s9097_s1 + $0x18] sm:$0xff] }
0x10a0   :  { %5994 = vpow2.f32 %v2757_v59  ;;  %5866 = vrot.lane.b32.xlu2 %v8291_v24, %s7252_s9  ;;  %2538 = vadd.xlane.f32.xlu0 %v2537_v10  ;;  %v2359_v59 = vld [vmem:[%s9095_s16 + $0x10] sm:$0xff] }
0x10a1   :  { %2865 = vmatpush.msra.mxu2 %v2359_v59  ;;  %v3078_v59 = vld [vmem:[%s9097_s1 + $0x8] sm:$0xff] }
0x10a3   :  { %v2746_v63 = vpop.xlane.xlu1 %2745  ;;  %v5862_v3 = vpop.permute.xlu2 %5861 }
0x10a4   :  { %v2754_v60 = vsub.f32 %v2738_v27, %v2746_v63  ;;  %v5863_v9 = vunpack.i.l.bf16 %v5862_v3  ;;  %v5864_v14 = vunpack.i.h.bf16 %v5862_v3 }
0x10a6   :  { %v8364_v42 = vpop.eup %5994  ;;  %v2759_v1 = vmul.f32 1.442695, %v2754_v60 }
0x10a7   :  { %v2765_v62 = vsel %vm956_vm1, %v8364_v42, 0.0 }
0x10a8   :  { %2766 = vadd.xlane.f32.xlu1 %v2765_v62 }
0x10ab   :  { %v2749_v58 = vpop.xlane.xlu0 %2748 }
0x10ac   :  { %v2755_v15 = vsub.f32 %v8337_v26, %v2749_v58 }
0x10ae   :  { %v2761_v19 = vmul.f32 1.442695, %v2755_v15 }
0x10b3   :  { %v2752_v16 = vpop.xlane.xlu0 %2751 }
0x10b4   :  { %v2756_v53 = vsub.f32 %v2740_v34, %v2752_v16  ;;  %5871 = vrot.lane.b32.xlu0 %v8280_v17, %s7252_s9 }
0x10b6   :  { %v2763_v57 = vmul.f32 1.442695, %v2756_v53 }
0x10b8   :  { %5996 = vpow2.f32 %v2763_v57 }
0x10b9   :  { %5998 = vpow2.f32 %v2759_v1 }
0x10ba   :  { %6000 = vpow2.f32 %v2761_v19 }
0x10bb   :  { %v5857_v2 = vpop.permute.xlu1 %5856 }
0x10bc   :  { %v5858_v24 = vunpack.i.l.bf16 %v5857_v2  ;;  %v5859_v7 = vunpack.i.h.bf16 %v5857_v2 }
0x10be   :  { %v8370_v4 = vpop.eup %5996  ;;  %2584 = vmatpush.msra.mxu1 %v5858_v24 }
0x10bf   :  { %v2774_v8 = vsel %vm956_vm1, %v8370_v4, 0.0  ;;  %v5999_v17 = vpop.eup %5998 }
0x10c0   :  { %2585 = vmatpush.msra.mxu1 %v5859_v7  ;;  %2775 = vadd.xlane.f32.xlu1 %v2774_v8  ;;  %v2768_v0 = vsel %vm956_vm1, %v5999_v17, 0.0  ;;  %v6001_v21 = vpop.eup %6000  ;;  %v5889_v8 = vld [vmem:[#allocation34] ss:$0 sm:$0xff] }
0x10c1   :  { %v2771_v61 = vsel %vm956_vm1, %v6001_v21, 0.0 }
0x10c2   :  { %2586 = vmatpush.msra.mxu1 %v5863_v9 }
0x10c4   :  { %2587 = vmatpush.msra.mxu1 %v5864_v14 }
0x10c9   :  { %2769 = vadd.xlane.f32.xlu2 %v2768_v0 }
0x10de   :  { %2772 = vadd.xlane.f32.xlu0 %v2771_v61 }
0x10fb   :  { %v2530_v22 = vpop.xlane.xlu2 %2529 }
0x10fc   :  { %6002 = vrcp.f32 %v2530_v22  ;;  %v2155_v22 = vld [vmem:[%s9096_s22] sm:$0xff] }
0x1102   :  { %v6003_v27 = vpop.eup %6002 }
0x1103   :  { %v2544_v23 = vmul.f32 %v6003_v27, %v8346_v41  ;;  %v5867_v18 = vpop.permute.xlu2 %5866  ;;  %v2533_v12 = vpop.xlane.xlu0 %2532  ;;  %v2156_v27 = vld [vmem:[%s9096_s22 + $0x8] sm:$0xff] }
0x1104   :  { %v5868_v25 = vunpack.i.l.bf16 %v5867_v18  ;;  %6004 = vrcp.f32 %v2533_v12  ;;  %v5869_v28 = vunpack.i.h.bf16 %v5867_v18  ;;  %v2158_v18 = vld [vmem:[%s9096_s22 + $0x18] sm:$0xff] }
0x1105   :  { %5560 = vmatmul.msk.f32.vlgmr.msra.gmra.mxu1 %vm956_vm1, %v2544_v23  ;;  %v2157_v23 = vld [vmem:[%s9096_s22 + $0x10] sm:$0xff] }
0x1106   :  { %2821 = vmatpush.msrb.mxu1 %v5868_v25 }
0x1108   :  { %2822 = vmatpush.msrb.mxu1 %v5869_v28 }
0x110a   :  { %v6005_v26 = vpop.eup %6004 }
0x110b   :  { %v2536_v5 = vpop.xlane.xlu0 %2535  ;;  %v2545_v29 = vmul.f32 %v6005_v26, %v8350_v45  ;;  %v2358_v45 = vld [vmem:[%s9095_s16 + $0x8] sm:$0xff] }
0x110c   :  { %6006 = vrcp.f32 %v2536_v5  ;;  %2905 = vmatpush.msra.mxu0 %v2358_v45 }
0x110d   :  { %5561 = vmatmul.msk.f32.gmra.mxu1 %vm956_vm1, %v2545_v29 }
0x110e   :  { %2906 = vmatpush.msra.mxu0 %v2357_v11 }
0x1112   :  { %v6007_v31 = vpop.eup %6006 }
0x1113   :  { %v2539_v34 = vpop.xlane.xlu0 %2538  ;;  %v2546_v35 = vmul.f32 %v6007_v31, %v8354_v32 }
0x1114   :  { %6008 = vrcp.f32 %v2539_v34 }
0x1115   :  { %5562 = vmatmul.msk.f32.gmra.mxu1 %vm956_vm1, %v2546_v35 }
0x111a   :  { %v6009_v36 = vpop.eup %6008 }
0x111b   :  { %v2547_v46 = vmul.f32 %v6009_v36, %v8358_v56  ;;  %v2767_v39 = vpop.xlane.xlu1 %2766 }
0x111c   :  { %6010 = vrcp.f32 %v2767_v39 }
0x111d   :  { %5563 = vmatmul.msk.f32.gmra.mxu1 %vm956_vm1, %v2547_v46 }
0x1122   :  { %v6011_v40 = vpop.eup %6010 }
0x1123   :  { %v2781_v37 = vmul.f32 %v6011_v40, %v8364_v42 }
0x1126   :  { %v5872_v52 = vpop.permute.xlu0 %5871 }
0x1127   :  { %v5873_v41 = vunpack.i.l.bf16 %v5872_v52  ;;  %v5874_v55 = vunpack.i.h.bf16 %v5872_v52 }
0x1129   :  { %2823 = vmatpush.msrb.mxu1 %v5873_v41 }
0x112b   :  { %2824 = vmatpush.msrb.mxu1 %v5874_v55 }
0x112c   :  { %5585 = vmatmul.msk.f32.vlgmr.msrb.gmra.mxu1 %vm956_vm1, %v2781_v37 }
0x112d   :  { %3109 = vmatpush.msra.mxu1 %v3080_v44 }
0x1133   :  { %v2776_v51 = vpop.xlane.xlu1 %2775 }
0x113c   :  { %v2770_v47 = vpop.xlane.xlu2 %2769 }
0x113d   :  { %6012 = vrcp.f32 %v2770_v47 }
0x1143   :  { %v6013_v48 = vpop.eup %6012 }
0x1144   :  { %v2782_v50 = vmul.f32 %v6013_v48, %v5999_v17 }
0x1146   :  { %5586 = vmatmul.msk.f32.gmra.mxu1 %vm956_vm1, %v2782_v50 }
0x1151   :  { %v2773_v13 = vpop.xlane.xlu0 %2772 }
0x1152   :  { %6014 = vrcp.f32 %v2773_v13 }
0x1153   :  { %6016 = vrcp.f32 %v2776_v51 }
0x1158   :  { %v6015_v54 = vpop.eup %6014 }
0x1159   :  { %v2783_v32 = vmul.f32 %v6015_v54, %v6001_v21  ;;  %v6017_v49 = vpop.eup %6016 }
0x115a   :  { %v2784_v43 = vmul.f32 %v6017_v49, %v8370_v4 }
0x115b   :  { %5587 = vmatmul.msk.f32.gmra.mxu1 %vm956_vm1, %v2783_v32 }
0x1163   :  { %5588 = vmatmul.msk.f32.gmra.mxu1 %vm956_vm1, %v2784_v43 }
0x1182   :  { %v2589_v56 = vpop.f32.mrf.mxu1 }
0x1183   :  { %5593 = vmatmul.msk.f32.vlgmr.msra.gmra.mxu0 %vm1386_vm14, %v2589_v56  ;;  %v3079_v56 = vld [vmem:[%s9097_s1 + $0x10] sm:$0xff] }
0x1184   :  { %3110 = vmatpush.msra.mxu1 %v3079_v56 }
0x1186   :  { %3111 = vmatpush.msra.mxu1 %v3078_v59 }
0x118a   :  { %v2592_v10 = vpop.f32.mrf.mxu1 }
0x118b   :  { %5594 = vmatmul.msk.f32.gmra.mxu0 %vm1386_vm14, %v2592_v10  ;;  %v3077_v10 = vld [vmem:[%s9097_s1] sm:$0xff] }
0x118c   :  { %3112 = vmatpush.msra.mxu1 %v3077_v10  ;;  %v3173_v10 = vld [vmem:[%s9098_s7 + $0x58] sm:$0xff] }
0x1192   :  { %v2595_v42 = vpop.f32.mrf.mxu1 }
0x1193   :  { %5595 = vmatmul.msk.f32.gmra.mxu0 %vm1386_vm14, %v2595_v42 }
0x119a   :  { %v2598_v62 = vpop.f32.mrf.mxu1 }
0x119b   :  { %5596 = vmatmul.msk.f32.gmra.mxu0 %vm1386_vm14, %v2598_v62 }
0x11a9   :  { %v2826_v58 = vpop.f32.mrf.mxu1 }
0x11aa   :  { %5589 = vmatmul.msk.f32.vlgmr.msra.gmra.mxu2 %vm1386_vm14, %v2826_v58 }
0x11c3   :  { %v2829_v63 = vpop.f32.mrf.mxu1 }
0x11c4   :  { %5590 = vmatmul.msk.f32.gmra.mxu2 %vm1386_vm14, %v2829_v63 }
0x11d8   :  { %v2832_v16 = vpop.f32.mrf.mxu1 }
0x11d9   :  { %5591 = vmatmul.msk.f32.gmra.mxu2 %vm1386_vm14, %v2832_v16 }
0x11e0   :  { %v2835_v53 = vpop.f32.mrf.mxu1 }
0x11e1   :  { %5592 = vmatmul.msk.f32.gmra.mxu2 %vm1386_vm14, %v2835_v53 }
0x1200   :  { %v2908_v57 = vpop.f32.mrf.mxu0 }
0x1208   :  { %v2911_v1 = vpop.f32.mrf.mxu0 }
0x1210   :  { %v2914_v24 = vpop.f32.mrf.mxu0 }
0x1218   :  { %v2917_v4 = vpop.f32.mrf.mxu0 }
0x122d   :  { %v2867_v60 = vpop.f32.mrf.mxu2 }
0x122e   :  { %v2909_v15 = vadd.f32 %v2908_v57, %v2867_v60 }
0x1230   :  { %v2924_v61 = vadd.f32 %v5889_v8, %v2909_v15  ;;  %v3176_v15 = vld [vmem:[%s9098_s7 + $0x70] sm:$0xff] }
0x1247   :  { %v2870_v2 = vpop.f32.mrf.mxu2 }
0x1248   :  { %v2912_v17 = vadd.f32 %v2911_v1, %v2870_v2 }
0x124a   :  { %v2925_v21 = vadd.f32 %v5889_v8, %v2912_v17 }
0x125c   :  { %v2873_v3 = vpop.f32.mrf.mxu2 }
0x125d   :  { %v2915_v9 = vadd.f32 %v2914_v24, %v2873_v3 }
0x125f   :  { %v2926_v19 = vadd.f32 %v5889_v8, %v2915_v9  ;;  %v5890_v9 = vld [vmem:[#allocation32] ss:$0 sm:$0xff] }
0x1264   :  { %v2876_v7 = vpop.f32.mrf.mxu2 }
0x1265   :  { %v2918_v14 = vadd.f32 %v2917_v4, %v2876_v7 }
0x1267   :  { %v2927_v0 = vadd.f32 %v5889_v8, %v2918_v14 }
0x1269   :  { %2952 = vmatpush.msrb.mxu3 %v2927_v0  ;;  %v3177_v0 = vld [vmem:[%s9098_s7 + $0x78] sm:$0xff] }
0x126a   :  { %3182 = vmatpush.msrb.mxu2 %v3177_v0 }
0x126b   :  { %2953 = vmatpush.msrb.mxu3 %v2926_v19 }
0x126c   :  { %3183 = vmatpush.msrb.mxu2 %v3176_v15 }
0x126d   :  { %2954 = vmatpush.msrb.mxu3 %v2925_v21 }
0x126f   :  { %2955 = vmatpush.msrb.mxu3 %v2924_v61  ;;  %v5891_v61 = vld [vmem:[#allocation31] ss:$0 sm:$0xff] }
0x1270   :  { %5597 = vmatmul.msk.f32.vlgmr.msrb.gmra.mxu3 %vm956_vm1, %v2155_v22 }
0x1278   :  { %5598 = vmatmul.msk.f32.gmra.mxu3 %vm956_vm1, %v2156_v27  ;;  %v3175_v27 = vld [vmem:[%s9098_s7 + $0x68] sm:$0xff] }
0x1279   :  { %3184 = vmatpush.msrb.mxu2 %v3175_v27 }
0x1280   :  { %5599 = vmatmul.msk.f32.gmra.mxu3 %vm956_vm1, %v2157_v23 }
0x1288   :  { %5600 = vmatmul.msk.f32.gmra.mxu3 %vm956_vm1, %v2158_v18 }
0x12f3   :  { %v2957_v12 = vpop.f32.mrf.mxu3 }
0x12f4   :  { %v8412_v25 = vadd.f32 %v2957_v12, %v8219_v20 }
0x12f6   :  { %v2973_v28 = vsel %vm956_vm1, %v8412_v25, 0.0 }
0x12f7   :  { %2974 = vadd.xlane.f32.xlu1 %v2973_v28 }
0x12fb   :  { %v2960_v26 = vpop.f32.mrf.mxu3 }
0x12fc   :  { %v8417_v5 = vadd.f32 %v2960_v26, %v8204_v6  ;;  %v3174_v26 = vld [vmem:[%s9098_s7 + $0x60] sm:$0xff] }
0x12fd   :  { %3185 = vmatpush.msrb.mxu2 %v3174_v26 }
0x12fe   :  { %v2976_v29 = vsel %vm956_vm1, %v8417_v5, 0.0 }
0x12ff   :  { %2977 = vadd.xlane.f32.xlu2 %v2976_v29  ;;  %3186 = vmatpush.msrb.mxu2 %v3173_v10  ;;  %v5893_v10 = vld [vmem:[#allocation26] ss:$0 sm:$0xff] }
0x1303   :  { %v2963_v31 = vpop.f32.mrf.mxu3 }
0x1304   :  { %v8422_v34 = vadd.f32 %v2963_v31, %v8209_v33 }
0x1306   :  { %v2979_v20 = vsel %vm956_vm1, %v8422_v34, 0.0 }
0x1307   :  { %2980 = vadd.xlane.f32.xlu1 %v2979_v20 }
0x130b   :  { %v2966_v35 = vpop.f32.mrf.mxu3 }
0x130c   :  { %v8427_v36 = vadd.f32 %v2966_v35, %v8214_v38 }
0x130e   :  { %v2982_v6 = vsel %vm956_vm1, %v8427_v36, 0.0 }
0x130f   :  { %2983 = vadd.xlane.f32.xlu2 %v2982_v6 }
0x136a   :  { %v2975_v46 = vpop.xlane.xlu1 %2974 }
0x136b   :  { %v2985_v39 = vmul.f32 %v2975_v46, %v7835_v30 }
0x136d   :  { %v2989_v52 = vsub.f32 %v8412_v25, %v2985_v39 }
0x136f   :  { %v2993_v40 = vmul.f32 %v2989_v52, %v2989_v52 }
0x1371   :  { %v2997_v33 = vsel %vm956_vm1, %v2993_v40, 0.0 }
0x1372   :  { %v2978_v41 = vpop.xlane.xlu2 %2977  ;;  %2998 = vadd.xlane.f32.xlu1 %v2997_v33 }
0x1373   :  { %v2986_v55 = vmul.f32 %v2978_v41, %v7835_v30 }
0x1375   :  { %v8436_v37 = vsub.f32 %v8417_v5, %v2986_v55 }
0x1377   :  { %v2994_v38 = vmul.f32 %v8436_v37, %v8436_v37 }
0x1379   :  { %v3000_v47 = vsel %vm956_vm1, %v2994_v38, 0.0 }
0x137a   :  { %v2981_v48 = vpop.xlane.xlu1 %2980  ;;  %3001 = vadd.xlane.f32.xlu2 %v3000_v47 }
0x137b   :  { %v2987_v45 = vmul.f32 %v2981_v48, %v7835_v30 }
0x137d   :  { %v8443_v50 = vsub.f32 %v8422_v34, %v2987_v45 }
0x137f   :  { %v2995_v13 = vmul.f32 %v8443_v50, %v8443_v50 }
0x1381   :  { %v3003_v51 = vsel %vm956_vm1, %v2995_v13, 0.0 }
0x1382   :  { %3004 = vadd.xlane.f32.xlu0 %v3003_v51  ;;  %v2984_v54 = vpop.xlane.xlu2 %2983 }
0x1383   :  { %v2988_v32 = vmul.f32 %v2984_v54, %v7835_v30 }
0x1385   :  { %v8450_v49 = vsub.f32 %v8427_v36, %v2988_v32 }
0x1387   :  { %v2996_v43 = vmul.f32 %v8450_v49, %v8450_v49 }
0x1389   :  { %v3006_v11 = vsel %vm956_vm1, %v2996_v43, 0.0 }
0x138a   :  { %3007 = vadd.xlane.f32.xlu1 %v3006_v11 }
0x13e5   :  { %v2999_v42 = vpop.xlane.xlu1 %2998 }
0x13e6   :  { %v3009_v62 = vmul.f32 %v2999_v42, %v7835_v30  ;;  %v3172_v42 = vld [vmem:[%s9098_s7 + $0x50] sm:$0xff] }
0x13e7   :  { %3187 = vmatpush.msrb.mxu2 %v3172_v42 }
0x13e8   :  { %v3013_v58 = vadd.f32 1e-05, %v3009_v62  ;;  %v3171_v62 = vld [vmem:[%s9098_s7 + $0x48] sm:$0xff] }
0x13e9   :  { %3188 = vmatpush.msrb.mxu2 %v3171_v62 }
0x13ea   :  { %6018 = vrsqrt.f32 %v3013_v58  ;;  %vm3023_vm0 = vweird.f32 %v3013_v58 }
0x13ed   :  { %v3002_v63 = vpop.xlane.xlu2 %3001 }
0x13ee   :  { %v3010_v16 = vmul.f32 %v3002_v63, %v7835_v30  ;;  %v3169_v63 = vld [vmem:[%s9098_s7 + $0x38] sm:$0xff] }
0x13f0   :  { %v6019_v53 = vpop.eup %6018  ;;  %v3014_v57 = vadd.f32 1e-05, %v3010_v16  ;;  %v3167_v16 = vld [vmem:[%s9098_s7 + $0x28] sm:$0xff] }
0x13f1   :  { %v3018_v60 = vmul.f32 %v6019_v53, %v3013_v58  ;;  %vm3024_vm15 = vweird.f32 %v6019_v53  ;;  %v3170_v58 = vld [vmem:[%s9098_s7 + $0x40] sm:$0xff] }
0x13f2   :  { %6020 = vrsqrt.f32 %v3014_v57  ;;  %vm3025_vm2 = vmor %vm3023_vm0, %vm3024_vm15  ;;  %vm3033_vm4 = vweird.f32 %v3014_v57  ;;  %3189 = vmatpush.msrb.mxu2 %v3170_v58 }
0x13f3   :  { %v3019_v1 = vmul.f32 %v6019_v53, %v3018_v60  ;;  %v3164_v60 = vld [vmem:[%s9098_s7 + $0x10] sm:$0xff] }
0x13f4   :  { %3190 = vmatpush.msrb.mxu2 %v3169_v63 }
0x13f5   :  { %v3020_v2 = vmul.f32 0.5, %v3019_v1  ;;  %v3005_v24 = vpop.xlane.xlu0 %3004  ;;  %v3163_v1 = vld [vmem:[%s9098_s7 + $0x8] sm:$0xff] }
0x13f6   :  { %v3011_v3 = vmul.f32 %v3005_v24, %v7835_v30  ;;  %v5892_v24 = vld [vmem:[#allocation25] ss:$0 sm:$0xff] }
0x13f7   :  { %v3021_v4 = vsub.f32 1.5, %v3020_v2  ;;  %v3162_v2 = vld [vmem:[%s9098_s7] sm:$0xff] }
0x13f8   :  { %v6021_v7 = vpop.eup %6020  ;;  %v3015_v8 = vadd.f32 1e-05, %v3011_v3 }
0x13f9   :  { %v3022_v14 = vmul.f32 %v6019_v53, %v3021_v4  ;;  %v3028_v17 = vmul.f32 %v6021_v7, %v3014_v57  ;;  %vm3034_vm3 = vweird.f32 %v6021_v7  ;;  %v3165_v57 = vld [vmem:[%s9098_s7 + $0x18] sm:$0xff] }
0x13fa   :  { %6022 = vrsqrt.f32 %v3015_v8  ;;  %vm3035_vm5 = vmor %vm3033_vm4, %vm3034_vm3  ;;  %vm3043_vm7 = vweird.f32 %v3015_v8  ;;  %vm3496_vm3 = vcmask 523264  }
0x13fb   :  { %v3026_v19 = vsel %vm3025_vm2, %v6019_v53, %v3022_v14  ;;  %v3029_v21 = vmul.f32 %v6021_v7, %v3028_v17  ;;  %v3166_v53 = vld [vmem:[%s9098_s7 + $0x20] sm:$0xff] }
0x13fc   :  { %v3057_v22 = vmul.f32 %v3026_v19, %v2989_v52 }
0x13fd   :  { %v3030_v23 = vmul.f32 0.5, %v3029_v21  ;;  %v3008_v18 = vpop.xlane.xlu1 %3007 }
0x13fe   :  { %v3065_v12 = vmul.f32 %v5890_v9, %v3057_v22  ;;  %v3012_v28 = vmul.f32 %v3008_v18, %v7835_v30 }
0x13ff   :  { %v3031_v29 = vsub.f32 1.5, %v3030_v23 }
0x1400   :  { %v6023_v31 = vpop.eup %6022  ;;  %v3073_v20 = vadd.f32 %v5891_v61, %v3065_v12  ;;  %v3016_v35 = vadd.f32 1e-05, %v3012_v28 }
0x1401   :  { %v3032_v6 = vmul.f32 %v6021_v7, %v3031_v29  ;;  %v3038_v46 = vmul.f32 %v6023_v31, %v3015_v8  ;;  %vm3044_vm6 = vweird.f32 %v6023_v31 }
0x1402   :  { %6024 = vrsqrt.f32 %v3016_v35  ;;  %5601 = vmatmul.msk.f32.vlgmr.msra.gmra.mxu1 %vm956_vm1, %v3073_v20  ;;  %vm3045_vm8 = vmor %vm3043_vm7, %vm3044_vm6  ;;  %vm3053_vm10 = vweird.f32 %v3016_v35 }
0x1403   :  { %v3036_v39 = vsel %vm3035_vm5, %v6021_v7, %v3032_v6  ;;  %v3039_v52 = vmul.f32 %v6023_v31, %v3038_v46 }
0x1404   :  { %v3058_v40 = vmul.f32 %v3036_v39, %v8436_v37 }
0x1405   :  { %v3040_v30 = vmul.f32 0.5, %v3039_v52 }
0x1406   :  { %v3066_v33 = vmul.f32 %v5890_v9, %v3058_v40 }
0x1407   :  { %v3041_v41 = vsub.f32 1.5, %v3040_v30 }
0x1408   :  { %v6025_v55 = vpop.eup %6024  ;;  %v3074_v38 = vadd.f32 %v5891_v61, %v3066_v33 }
0x1409   :  { %v3042_v47 = vmul.f32 %v6023_v31, %v3041_v41  ;;  %v3048_v48 = vmul.f32 %v6025_v55, %v3016_v35  ;;  %vm3054_vm9 = vweird.f32 %v6025_v55 }
0x140a   :  { %5602 = vmatmul.msk.f32.gmra.mxu1 %vm956_vm1, %v3074_v38  ;;  %vm3055_vm11 = vmor %vm3053_vm10, %vm3054_vm9 }
0x140b   :  { %v3046_v45 = vsel %vm3045_vm8, %v6023_v31, %v3042_v47  ;;  %v3049_v13 = vmul.f32 %v6025_v55, %v3048_v48  ;;  %vm3689_vm8 = vcmask 64512  }
0x140c   :  { %v3059_v51 = vmul.f32 %v3046_v45, %v8443_v50 }
0x140d   :  { %v3050_v54 = vmul.f32 0.5, %v3049_v13 }
0x140e   :  { %v3067_v37 = vmul.f32 %v5890_v9, %v3059_v51 }
0x140f   :  { %v3051_v32 = vsub.f32 1.5, %v3050_v54 }
0x1410   :  { %v3075_v43 = vadd.f32 %v5891_v61, %v3067_v37 }
0x1411   :  { %v3052_v11 = vmul.f32 %v6025_v55, %v3051_v32 }
0x1412   :  { %5603 = vmatmul.msk.f32.gmra.mxu1 %vm956_vm1, %v3075_v43 }
0x1413   :  { %v3056_v44 = vsel %vm3055_vm11, %v6025_v55, %v3052_v11 }
0x1414   :  { %v3060_v56 = vmul.f32 %v3056_v44, %v8450_v49  ;;  %v3168_v49 = vld [vmem:[%s9098_s7 + $0x30] sm:$0xff] }
0x1415   :  { %3191 = vmatpush.msrb.mxu2 %v3168_v49 }
0x1416   :  { %v3068_v50 = vmul.f32 %v5890_v9, %v3060_v56 }
0x1417   :  { %3192 = vmatpush.msrb.mxu2 %v3167_v16 }
0x1418   :  { %v3076_v59 = vadd.f32 %v5891_v61, %v3068_v50 }
0x1419   :  { %3193 = vmatpush.msrb.mxu2 %v3166_v53 }
0x141a   :  { %5604 = vmatmul.msk.f32.gmra.mxu1 %vm956_vm1, %v3076_v59 }
0x141b   :  { %3194 = vmatpush.msrb.mxu2 %v3165_v57 }
0x141d   :  { %3195 = vmatpush.msrb.mxu2 %v3164_v60 }
0x141f   :  { %3196 = vmatpush.msrb.mxu2 %v3163_v1  ;;  %v3216_v1 = vld [vmem:[%s9099_s12] sm:$0xff] }
0x1421   :  { %3197 = vmatpush.msrb.mxu2 %v3162_v2  ;;  %v3226_v2 = vld [vmem:[%s9100_s27 + $0x18] sm:$0xff] }
0x147f   :  { %v3114_v3 = vpop.f32.mrf.mxu1 }
0x1480   :  { %v3115_v4 = vadd.f32 %v5892_v24, %v3114_v3  ;;  %v3221_v3 = vld [vmem:[%s9102_s11 + $0x10] sm:$0xff] }
0x1482   :  { %v3130_v7 = vmul.f32 0.044715, %v3115_v4  ;;  %v3126_v26 = vmul.f32 0.5, %v3115_v4 }
0x1484   :  { %v3134_v8 = vmul.f32 %v3130_v7, %v3115_v4  ;;  %v3219_v7 = vld [vmem:[%s9102_s11] sm:$0xff] }
0x1486   :  { %v3138_v9 = vmul.f32 %v3134_v8, %v3115_v4  ;;  %v3218_v8 = vld [vmem:[%s9103_s17] sm:$0xff] }
0x1487   :  { %v3117_v14 = vpop.f32.mrf.mxu1 }
0x1488   :  { %v3142_v17 = vadd.f32 %v3138_v9, %v3115_v4  ;;  %v3118_v0 = vadd.f32 %v5892_v24, %v3117_v14  ;;  %v3220_v4 = vld [vmem:[%s9102_s11 + $0x8] sm:$0xff]  ;;  %v3217_v14 = vld [vmem:[%s9104_s5] sm:$0xff] }
0x148a   :  { %v3146_v15 = vmul.f32 0.7978846, %v3142_v17  ;;  %v3131_v19 = vmul.f32 0.044715, %v3118_v0  ;;  %v3127_v33 = vmul.f32 0.5, %v3118_v0 }
0x148c   :  { %6026 = vtanh.f32 %v3146_v15  ;;  %v3135_v21 = vmul.f32 %v3131_v19, %v3118_v0  ;;  %v3229_v15 = vld [vmem:[%s9105_s23 + $0x10] sm:$0xff]  ;;  %v3228_v19 = vld [vmem:[%s9105_s23 + $0x8] sm:$0xff] }
0x148e   :  { %v3139_v61 = vmul.f32 %v3135_v21, %v3118_v0  ;;  %v3227_v21 = vld [vmem:[%s9105_s23] sm:$0xff] }
0x148f   :  { %v3120_v22 = vpop.f32.mrf.mxu1 }
0x1490   :  { %v3121_v27 = vadd.f32 %v5892_v24, %v3120_v22  ;;  %v3143_v23 = vadd.f32 %v3139_v61, %v3118_v0  ;;  %v3230_v0 = vld [vmem:[%s9105_s23 + $0x18] sm:$0xff]  ;;  %v3233_v22 = vld [vmem:[%s9106_s25 + $0x10] sm:$0xff] }
0x1491   :  { %v3234_v61 = vld [vmem:[%s9106_s25 + $0x18] sm:$0xff] }
0x1492   :  { %v6027_v18 = vpop.eup %6026  ;;  %v3132_v12 = vmul.f32 0.044715, %v3121_v27  ;;  %v3147_v28 = vmul.f32 0.7978846, %v3143_v23  ;;  %v3128_v51 = vmul.f32 0.5, %v3121_v27  ;;  %v3231_v23 = vld [vmem:[%s9106_s25] sm:$0xff] }
0x1493   :  { %v3154_v29 = vadd.f32 1.0, %v6027_v18 }
0x1494   :  { %6028 = vtanh.f32 %v3147_v28  ;;  %v3136_v31 = vmul.f32 %v3132_v12, %v3121_v27 }
0x1495   :  { %v3158_v20 = vmul.f32 %v3154_v29, %v3126_v26 }
0x1496   :  { %v3140_v35 = vmul.f32 %v3136_v31, %v3121_v27 }
0x1497   :  { %v3123_v6 = vpop.f32.mrf.mxu1  ;;  %3198 = vmatmul.f32.vlgmr.msrb.gmra.mxu2 %v3158_v20 }
0x1498   :  { %v3124_v46 = vadd.f32 %v5892_v24, %v3123_v6  ;;  %v3144_v39 = vadd.f32 %v3140_v35, %v3121_v27  ;;  %v3215_v24 = vld [vmem:[%s9101_s2] sm:$0xff]  ;;  %v3232_v27 = vld [vmem:[%s9106_s25 + $0x8] sm:$0xff] }
0x149a   :  { %v6029_v52 = vpop.eup %6028  ;;  %v3133_v40 = vmul.f32 0.044715, %v3124_v46  ;;  %v3148_v30 = vmul.f32 0.7978846, %v3144_v39  ;;  %v3129_v43 = vmul.f32 0.5, %v3124_v46  ;;  %v3473_v39 = vld [vmem:[%s9107_s15 + $0x78] sm:$0xff] }
0x149b   :  { %v3155_v41 = vadd.f32 1.0, %v6029_v52  ;;  %v3472_v52 = vld [vmem:[%s9107_s15 + $0x70] sm:$0xff] }
0x149c   :  { %6030 = vtanh.f32 %v3148_v30  ;;  %v3137_v55 = vmul.f32 %v3133_v40, %v3124_v46 }
0x149d   :  { %v3159_v38 = vmul.f32 %v3155_v41, %v3127_v33 }
0x149e   :  { %v3141_v47 = vmul.f32 %v3137_v55, %v3124_v46 }
0x149f   :  { %3201 = vmatmul.f32.gmra.mxu2 %v3159_v38 }
0x14a0   :  { %v3145_v48 = vadd.f32 %v3141_v47, %v3124_v46  ;;  %v7253_v46 = vmov 128.0  }
0x14a2   :  { %v6031_v45 = vpop.eup %6030  ;;  %v3149_v13 = vmul.f32 0.7978846, %v3145_v48 }
0x14a3   :  { %v3156_v54 = vadd.f32 1.0, %v6031_v45 }
0x14a4   :  { %6032 = vtanh.f32 %v3149_v13 }
0x14a5   :  { %v3160_v37 = vmul.f32 %v3156_v54, %v3128_v51  ;;  %6034 = vrcp.f32 %v7253_v46  ;;  %v3471_v51 = vld [vmem:[%s9107_s15 + $0x68] sm:$0xff]  ;;  %v3470_v54 = vld [vmem:[%s9107_s15 + $0x60] sm:$0xff]  ;;  %v3542_v46 = vld [vmem:[%s9108_s8 + $0x30] sm:$0xff] }
0x14a7   :  { %3204 = vmatmul.f32.gmra.mxu2 %v3160_v37  ;;  %v3469_v37 = vld [vmem:[%s9107_s15 + $0x58] sm:$0xff] }
0x14aa   :  { %v6033_v32 = vpop.eup %6032 }
0x14ab   :  { %v3157_v11 = vadd.f32 1.0, %v6033_v32  ;;  %v6035_v40 = vpop.eup %6034  ;;  %v3468_v32 = vld [vmem:[%s9107_s15 + $0x50] sm:$0xff] }
0x14ac   :  { %v3424_v30 = vmul.f32 128.0, %v6035_v40 }
0x14ad   :  { %v3161_v44 = vmul.f32 %v3157_v11, %v3129_v43  ;;  %v3467_v43 = vld [vmem:[%s9107_s15 + $0x48] sm:$0xff]  ;;  %v3466_v11 = vld [vmem:[%s9107_s15 + $0x40] sm:$0xff] }
0x14ae   :  { %v3425_v33 = vsub.f32 1.0, %v3424_v30  ;;  %v3538_v30 = vld [vmem:[%s9108_s8 + $0x10] sm:$0xff] }
0x14af   :  { %3207 = vmatmul.f32.gmra.mxu2 %v3161_v44  ;;  %v3465_v44 = vld [vmem:[%s9107_s15 + $0x38] sm:$0xff] }
0x14b0   :  { %v3426_v41 = vmul.f32 %v6035_v40, %v3425_v33  ;;  %v3539_v33 = vld [vmem:[%s9108_s8 + $0x18] sm:$0xff] }
0x14b2   :  { %v3427_v55 = vadd.f32 %v6035_v40, %v3426_v41  ;;  %v3536_v41 = vld [vmem:[%s9108_s8] sm:$0xff] }
0x151a   :  { %v3199_v56 = vpop.f32.mrf.mxu2 }
0x151b   :  { %v3200_v16 = vadd.f32 %v5893_v10, %v3199_v56  ;;  %v3464_v56 = vld [vmem:[%s9107_s15 + $0x30] sm:$0xff] }
0x151d   :  { %v3211_v60 = vadd.f32 %v3200_v16, %v8412_v25  ;;  %v3224_v25 = vld [vmem:[%s9100_s27 + $0x8] sm:$0xff] }
0x1522   :  { %v3202_v50 = vpop.f32.mrf.mxu2 }
0x1523   :  { %v3203_v63 = vadd.f32 %v5893_v10, %v3202_v50  ;;  %v3463_v50 = vld [vmem:[%s9107_s15 + $0x28] sm:$0xff] }
0x1525   :  { %v3212_v57 = vadd.f32 %v3203_v63, %v8417_v5  ;;  %v3223_v5 = vld [vmem:[%s9100_s27] sm:$0xff] }
0x152a   :  { %v3205_v59 = vpop.f32.mrf.mxu2 }
0x152b   :  { %v3206_v62 = vadd.f32 %v5893_v10, %v3205_v59  ;;  %v3462_v59 = vld [vmem:[%s9107_s15 + $0x20] sm:$0xff] }
0x152d   :  { %v3213_v53 = vadd.f32 %v3206_v62, %v8422_v34  ;;  %v3225_v34 = vld [vmem:[%s9100_s27 + $0x10] sm:$0xff]  ;;  %v3459_v62 = vld [vmem:[%s9107_s15 + $0x8] sm:$0xff] }
0x1532   :  { %v3208_v42 = vpop.f32.mrf.mxu2 }
0x1533   :  { %v3209_v58 = vadd.f32 %v5893_v10, %v3208_v42  ;;  %v3461_v10 = vld [vmem:[%s9107_s15 + $0x18] sm:$0xff]  ;;  %v3460_v42 = vld [vmem:[%s9107_s15 + $0x10] sm:$0xff] }
0x1535   :  { %v3214_v49 = vadd.f32 %v3209_v58, %v8427_v36  ;;  %v3222_v36 = vld [vmem:[%s9102_s11 + $0x18] sm:$0xff]  ;;  %v3458_v58 = vld [vmem:[%s9107_s15] sm:$0xff] }
0x1536   :  { %3319 = vmatpush.msra.mxu3 %v3222_v36  ;;  %v5895_v36 = vld [vmem:[#allocation38] ss:$0 sm:$0xff] }
0x1537   :  { %3250 = vmatpush.msra.mxu2 %v3214_v49  ;;  %3273 = vmatpush.msrb.mxu0 %v3214_v49 }
0x1538   :  { %3320 = vmatpush.msra.mxu3 %v3221_v3 }
0x1539   :  { %3251 = vmatpush.msra.mxu2 %v3213_v53  ;;  %3274 = vmatpush.msrb.mxu0 %v3213_v53 }
0x153a   :  { %3321 = vmatpush.msra.mxu3 %v3220_v4 }
0x153b   :  { %3252 = vmatpush.msra.mxu2 %v3212_v57  ;;  %3275 = vmatpush.msrb.mxu0 %v3212_v57 }
0x153c   :  { %3322 = vmatpush.msra.mxu3 %v3219_v7 }
0x153d   :  { %3253 = vmatpush.msra.mxu2 %v3211_v60  ;;  %3276 = vmatpush.msrb.mxu0 %v3211_v60 }
0x153e   :  { %5606 = vmatmul.msk.f32.vlgmr.msrb.gmra.mxu0 %vm956_vm1, %v3216_v1  ;;  %5605 = vmatmul.msk.f32.vlgmr.msra.gmra.mxu2 %vm956_vm1, %v3215_v24 }
0x153f   :  { %3389 = vmatpush.msrb.mxu2 %v3214_v49  ;;  %3296 = vmatpush.msra.mxu0 %v3226_v2 }
0x1540   :  { %3365 = vmatpush.msrb.mxu3 %v3230_v0 }
0x1541   :  { %3390 = vmatpush.msrb.mxu2 %v3213_v53  ;;  %3297 = vmatpush.msra.mxu0 %v3225_v34  ;;  %v5894_v34 = vld [vmem:[#allocation40] ss:$0 sm:$0xff] }
0x1542   :  { %3366 = vmatpush.msrb.mxu3 %v3229_v15 }
0x1543   :  { %3391 = vmatpush.msrb.mxu2 %v3212_v57  ;;  %3298 = vmatpush.msra.mxu0 %v3224_v25 }
0x1544   :  { %3367 = vmatpush.msrb.mxu3 %v3228_v19 }
0x1545   :  { %3392 = vmatpush.msrb.mxu2 %v3211_v60  ;;  %3299 = vmatpush.msra.mxu0 %v3223_v5 }
0x1546   :  { %5611 = vmatmul.msk.f32.vlgmr.msrb.gmra.mxu2 %vm956_vm1, %v3218_v8  ;;  %3368 = vmatpush.msrb.mxu3 %v3227_v21 }
0x1547   :  { %3342 = vmatpush.msrb.mxu0 %v3214_v49 }
0x1549   :  { %3343 = vmatpush.msrb.mxu0 %v3213_v53 }
0x154b   :  { %3344 = vmatpush.msrb.mxu0 %v3212_v57 }
0x154d   :  { %3345 = vmatpush.msrb.mxu0 %v3211_v60 }
0x15bb   :  { %v3278_v9 = vpop.f32.mrf.mxu0 }
0x15bc   :  { %5607 = vmatmul.msk.f32.vlgmr.msra.gmra.mxu0 %vm956_vm1, %v3278_v9  ;;  %v7254_v9 = vmov 64.0  }
0x15bd   :  { %3474 = vmatpush.msra.mxu0 %v3473_v39  ;;  %v3543_v39 = vld [vmem:[%s9108_s8 + $0x38] sm:$0xff] }
0x15bf   :  { %3475 = vmatpush.msra.mxu0 %v3472_v52  ;;  %v3540_v52 = vld [vmem:[%s9108_s8 + $0x20] sm:$0xff] }
0x15c1   :  { %v3255_v17 = vpop.f32.mrf.mxu2  ;;  %3476 = vmatpush.msra.mxu0 %v3471_v51 }
0x15c2   :  { %5608 = vmatmul.msk.f32.vlgmr.msra.gmra.mxu3 %vm956_vm1, %v3255_v17 }
0x15c3   :  { %3412 = vmatpush.msra.mxu3 %v3234_v61  ;;  %3477 = vmatpush.msra.mxu0 %v3470_v54 }
0x15c4   :  { %5609 = vmatmul.msk.f32.vlgmr.msrb.gmra.mxu0 %vm956_vm1, %v3217_v14 }
0x15c5   :  { %3413 = vmatpush.msra.mxu3 %v3233_v22  ;;  %3478 = vmatpush.msra.mxu0 %v3469_v37 }
0x15c7   :  { %3414 = vmatpush.msra.mxu3 %v3232_v27  ;;  %3479 = vmatpush.msra.mxu0 %v3468_v32 }
0x15c9   :  { %3415 = vmatpush.msra.mxu3 %v3231_v23  ;;  %v3394_v28 = vpop.f32.mrf.mxu2  ;;  %3480 = vmatpush.msra.mxu0 %v3467_v43 }
0x15cb   :  { %3481 = vmatpush.msra.mxu0 %v3466_v11 }
0x15cd   :  { %3482 = vmatpush.msra.mxu0 %v3465_v44  ;;  %v5896_v44 = vld [vmem:[#allocation46] ss:$0 sm:$0xff] }
0x15cf   :  { %3483 = vmatpush.msra.mxu0 %v3464_v56 }
0x15d1   :  { %3484 = vmatpush.msra.mxu0 %v3463_v50  ;;  %v5897_v50 = vld [vmem:[#allocation44] ss:$0 sm:$0xff] }
0x15d3   :  { %3485 = vmatpush.msra.mxu0 %v3462_v59 }
0x15d5   :  { %3486 = vmatpush.msra.mxu0 %v3461_v10 }
0x15d7   :  { %3487 = vmatpush.msra.mxu0 %v3460_v42 }
0x15d9   :  { %3488 = vmatpush.msra.mxu0 %v3459_v62  ;;  %v3552_v62 = vld [vmem:[#allocation52] sm:$0x3] }
0x15db   :  { %3489 = vmatpush.msra.mxu0 %v3458_v58  ;;  %v3554_v58 = vperm.slane %v3552_v62, 0 }
0x1639   :  { %v3301_v18 = vpop.f32.mrf.mxu0 }
0x1641   :  { %v3347_v12 = vpop.f32.mrf.mxu0 }
0x1642   :  { %5610 = vmatmul.msk.f32.vlgmr.msrb.gmra.mxu3 %vm956_vm1, %v3347_v12  ;;  %v3550_v12 = vld [vmem:[%s9108_s8 + $0x70] sm:$0xff] }
0x1643   :  { %3569 = vmatpush.msrb.mxu1 %v3550_v12 }
0x1645   :  { %v3324_v26 = vpop.f32.mrf.mxu3 }
0x1646   :  { %v3325_v31 = vadd.f32 %v3324_v26, %v3301_v18  ;;  %v3548_v26 = vld [vmem:[%s9108_s8 + $0x60] sm:$0xff] }
0x1647   :  { %3570 = vmatpush.msrb.mxu1 %v3548_v26 }
0x164a   :  { %5612 = vmatmul.msk.f32.vlgmr.msra.gmra.mxu3 %vm956_vm1, %v3394_v28  ;;  %vm3428_vm1 = vweird.f32 %v6035_v40  ;;  %v3551_v28 = vld [vmem:[%s9108_s8 + $0x78] sm:$0xff] }
0x164b   :  { %v3429_v38 = vsel %vm3428_vm1, %v6035_v40, %v3427_v55  ;;  %3589 = vmatpush.msra.mxu2 %v3551_v28  ;;  %v3541_v40 = vld [vmem:[%s9108_s8 + $0x28] sm:$0xff] }
0x164c   :  { %v3537_v55 = vld [vmem:[%s9108_s8 + $0x8] sm:$0xff] }
0x16c5   :  { %v3370_v29 = vpop.f32.mrf.mxu3 }
0x16c6   :  { %v3373_v20 = vadd.f32 %v3370_v29, %v3325_v31  ;;  %v3549_v29 = vld [vmem:[%s9108_s8 + $0x68] sm:$0xff]  ;;  %v3546_v31 = vld [vmem:[%s9108_s8 + $0x50] sm:$0xff] }
0x16c7   :  { %3590 = vmatpush.msra.mxu2 %v3549_v29  ;;  %3571 = vmatpush.msrb.mxu1 %v3546_v31  ;;  %v3601_v31 = vld [vmem:[%s9112_s0] sm:$0xff] }
0x16cd   :  { %v3417_v35 = vpop.f32.mrf.mxu3 }
0x16ce   :  { %v3420_v6 = vadd.f32 %v3417_v35, %v3373_v20  ;;  %v3547_v20 = vld [vmem:[%s9108_s8 + $0x58] sm:$0xff]  ;;  %v3544_v35 = vld [vmem:[%s9108_s8 + $0x40] sm:$0xff] }
0x16cf   :  { %3591 = vmatpush.msra.mxu2 %v3547_v20  ;;  %3572 = vmatpush.msrb.mxu1 %v3544_v35 }
0x16d0   :  { %3421 = vadd.xlane.f32.xlu2 %v3420_v6 }
0x16d1   :  { %3573 = vmatpush.msrb.mxu1 %v3542_v46 }
0x16d3   :  { %3574 = vmatpush.msrb.mxu1 %v3540_v52 }
0x16d5   :  { %3575 = vmatpush.msrb.mxu1 %v3538_v30 }
0x16d7   :  { %3576 = vmatpush.msrb.mxu1 %v3536_v41 }
0x1743   :  { %v3422_v47 = vpop.xlane.xlu2 %3421 }
0x1744   :  { %v3430_v48 = vmul.f32 %v3429_v38, %v3422_v47  ;;  %v8561_v47 = vld [vmem:[%s9110_s18] sm:$0xff] }
0x1745   :  { %5617 = vmatpush.xpose.msk.msrb.mxu3 %vm1287_vm13, %v8561_v47 }
0x1746   :  { %v3431_v45 = vsub.f32 %v3420_v6, %v3430_v48  ;;  %v3545_v6 = vld [vmem:[%s9108_s8 + $0x48] sm:$0xff] }
0x1747   :  { %3592 = vmatpush.msra.mxu2 %v3545_v6 }
0x1748   :  { %v3432_v13 = vmul.f32 %v3431_v45, %v3431_v45 }
0x1749   :  { %3593 = vmatpush.msra.mxu2 %v3543_v39 }
0x174a   :  { %3433 = vadd.xlane.f32.xlu0 %v3432_v13 }
0x174b   :  { %3594 = vmatpush.msra.mxu2 %v3541_v40 }
0x174d   :  { %3595 = vmatpush.msra.mxu2 %v3539_v33 }
0x174f   :  { %3596 = vmatpush.msra.mxu2 %v3537_v55 }
0x17bd   :  { %v3434_v63 = vpop.xlane.xlu0 %3433 }
0x17be   :  { %v3435_v49 = vmul.f32 %v3434_v63, %v3429_v38  ;;  %v3610_v38 = vld [vmem:[%s9109_s21] sm:$0xf] }
0x17bf   :  { %5615 = vmatpush.msk.msra.mxu1 %vm1300_vm12, %v3610_v38 }
0x17c0   :  { %v3436_v16 = vadd.f32 1e-05, %v3435_v49 }
0x17c2   :  { %6036 = vrsqrt.f32 %v3436_v16  ;;  %vm3443_vm0 = vweird.f32 %v3436_v16 }
0x17c3   :  { %6038 = vrcp.f32 %v7254_v9 }
0x17c8   :  { %v6037_v53 = vpop.eup %6036 }
0x17c9   :  { %v3438_v57 = vmul.f32 %v6037_v53, %v3436_v16  ;;  %vm3444_vm15 = vweird.f32 %v6037_v53  ;;  %v6039_v14 = vpop.eup %6038  ;;  %v3555_v16 = vperm.slane %v3552_v62, 1  ;;  %v3606_v62 = vld [vmem:[%s9112_s0 + $0x28] sm:$0xff] }
0x17ca   :  { %vm3445_vm2 = vmor %vm3443_vm0, %vm3444_vm15  ;;  %v3501_v17 = vmul.f32 64.0, %v6039_v14  ;;  %vm3505_vm4 = vweird.f32 %v6039_v14 }
0x17cb   :  { %v3439_v60 = vmul.f32 %v6037_v53, %v3438_v57 }
0x17cc   :  { %v3502_v0 = vsub.f32 1.0, %v3501_v17  ;;  %v3604_v17 = vld [vmem:[%s9112_s0 + $0x18] sm:$0xff] }
0x17cd   :  { %v3440_v1 = vmul.f32 0.5, %v3439_v60  ;;  %3856 = vmatpush.msrb.mxu0 %v3604_v17 }
0x17ce   :  { %v3503_v15 = vmul.f32 %v6039_v14, %v3502_v0  ;;  %v3603_v0 = vld [vmem:[%s9112_s0 + $0x10] sm:$0xff] }
0x17cf   :  { %v3441_v2 = vsub.f32 1.5, %v3440_v1  ;;  %3857 = vmatpush.msrb.mxu0 %v3603_v0 }
0x17d0   :  { %v3504_v19 = vadd.f32 %v6039_v14, %v3503_v15 }
0x17d1   :  { %v3442_v24 = vmul.f32 %v6037_v53, %v3441_v2 }
0x17d2   :  { %v8538_v21 = vsel %vm3505_vm4, %v6039_v14, %v3504_v19 }
0x17d3   :  { %v3446_v25 = vsel %vm3445_vm2, %v6037_v53, %v3442_v24 }
0x17d4   :  { %v3447_v5 = vmul.f32 %v3446_v25, %v3431_v45  ;;  %v8588_v25 = vld [vmem:[%s9111_s26] sm:$0xff] }
0x17d6   :  { %v3452_v3 = vmul.f32 %v5894_v34, %v3447_v5 }
0x17d8   :  { %v3457_v4 = vadd.f32 %v5895_v36, %v3452_v3 }
0x17da   :  { %3490 = vmatmul.f32.vlgmr.msra.gmra.mxu0 %v3457_v4  ;;  %v5622_v4 = vld [vmem:[%s9109_s21 + $0x4] sm:$0xf] }
0x17db   :  { %5623 = vmatpush.msk.msra.mxu3 %vm1300_vm12, %v5622_v4 }
0x1857   :  { %v8534_v7 = vpop.f32.mrf.mxu0 }
0x1858   :  { %v3497_v8 = vsel %vm3496_vm3, %v8534_v7, 0.0 }
0x1859   :  { %3498 = vadd.xlane.f32.xlu1 %v3497_v8 }
0x18cc   :  { %v3499_v61 = vpop.xlane.xlu1 %3498 }
0x18cd   :  { %v3507_v22 = vmul.f32 %v8538_v21, %v3499_v61 }
0x18cf   :  { %v3508_v27 = vsub.f32 %v8534_v7, %v3507_v22 }
0x18d1   :  { %v3509_v23 = vmul.f32 %v3508_v27, %v3508_v27 }
0x18d3   :  { %v3510_v18 = vsel %vm3496_vm3, %v3509_v23, 0.0 }
0x18d4   :  { %3511 = vadd.xlane.f32.xlu2 %v3510_v18  ;;  %v3602_v18 = vld [vmem:[%s9112_s0 + $0x8] sm:$0xff] }
0x1947   :  { %v3512_v48 = vpop.xlane.xlu2 %3511 }
0x1948   :  { %v3513_v45 = vmul.f32 %v3512_v48, %v8538_v21  ;;  %v5632_v48 = vld [vmem:[%s9109_s21 + $0x8] sm:$0xf] }
0x194a   :  { %v3514_v13 = vadd.f32 1e-05, %v3513_v45 }
0x194c   :  { %6040 = vrsqrt.f32 %v3514_v13  ;;  %vm3521_vm6 = vweird.f32 %v3514_v13 }
0x1952   :  { %v6041_v51 = vpop.eup %6040 }
0x1953   :  { %v3516_v54 = vmul.f32 %v6041_v51, %v3514_v13  ;;  %vm3522_vm5 = vweird.f32 %v6041_v51 }
0x1954   :  { %vm3523_vm7 = vmor %vm3521_vm6, %vm3522_vm5  ;;  %vm5341_vm6 = vcmask 1024  }
0x1955   :  { %v3517_v37 = vmul.f32 %v6041_v51, %v3516_v54 }
0x1957   :  { %v3518_v32 = vmul.f32 0.5, %v3517_v37 }
0x1959   :  { %v3519_v43 = vsub.f32 1.5, %v3518_v32 }
0x195b   :  { %v3520_v11 = vmul.f32 %v6041_v51, %v3519_v43 }
0x195d   :  { %v3524_v56 = vsel %vm3523_vm7, %v6041_v51, %v3520_v11 }
0x195e   :  { %v3525_v59 = vmul.f32 %v3524_v56, %v3508_v27 }
0x1960   :  { %v3530_v10 = vmul.f32 %v5896_v44, %v3525_v59 }
0x1962   :  { %v3535_v42 = vadd.f32 %v5897_v50, %v3530_v10 }
0x1964   :  { %5613 = vmatmul.msk.f32.vlgmr.msrb.gmra.mxu1 %vm3496_vm3, %v3535_v42  ;;  %5614 = vmatmul.msk.f32.vlgmr.msra.gmra.mxu2 %vm3496_vm3, %v3535_v42  ;;  %v5641_v42 = vld [vmem:[%s9109_s21 + $0xc] sm:$0xf] }
0x196c   :  { %5616 = vmatmul.msk.f32.vlgmr.msra.gmra.mxu1 %vm1287_vm13, %v8561_v47 }
0x19e1   :  { %v3578_v63 = vpop.f32.mrf.mxu1 }
0x19e2   :  { %v8571_v49 = vadd.f32 %v3578_v63, %v3554_v58  ;;  %v3605_v58 = vld [vmem:[%s9112_s0 + $0x20] sm:$0xff] }
0x19e4   :  { %3661 = vrot.lane.b32.xlu0 %v8571_v49, %s7237_s14  ;;  %v8581_v2 = vmul.f32 0.25, %v8571_v49 }
0x19e7   :  { %v3598_v53 = vpop.f32.mrf.mxu2 }
0x19e8   :  { %v8575_v57 = vadd.f32 %v3598_v53, %v3555_v16 }
0x19e9   :  { %v3634_v60 = vpop.f32.mrf.mxu1 }
0x19ea   :  { %3719 = vmatpush.msrb.mxu2 %v8575_v57  ;;  %5618 = vmatmul.msk.f32.vlgmr.msrb.gmra.mxu3 %vm1287_vm13, %v3634_v60 }
0x19f2   :  { %5624 = vmatmul.msk.f32.vlgmr.msra.gmra.mxu3 %vm1287_vm13, %v8561_v47 }
0x1a56   :  { %v3662_v1 = vpop.permute.xlu0 %3661 }
0x1a57   :  { %5619 = vmatpush.xpose.msk.msrb.mxu1 %vm1386_vm14, %v3662_v1 }
0x1a5a   :  { %5620 = vmatmul.msk.f32.vlgmr.msrb.gmra.mxu1 %vm1386_vm14, %v8581_v2 }
0x1a5b   :  { %5625 = vmatpush.xpose.msk.msra.mxu1 %vm1287_vm13, %v8561_v47 }
0x1a5f   :  { %3879 = vmatpush.msrb.mxu1 %v3602_v18 }
0x1a61   :  { %3880 = vmatpush.msrb.mxu1 %v3601_v31 }
0x1a6d   :  { %v3657_v24 = vpop.f32.mrf.mxu3 }
0x1a75   :  { %v3746_v23 = vpop.f32.mrf.mxu3 }
0x1a76   :  { %5626 = vmatmul.msk.f32.vlgmr.msra.gmra.mxu1 %vm1287_vm13, %v3746_v23 }
0x1ad7   :  { %v3685_v34 = vpop.f32.mrf.mxu1 }
0x1ad8   :  { %v3686_v5 = vadd.f32 %v3685_v34, %v3657_v24 }
0x1ada   :  { %v3688_v36 = vadd.f32 %v3686_v5, %v8588_v25 }
0x1adc   :  { %v3690_v3 = vsel %vm3689_vm8, %v3688_v36, -inf }
0x1add   :  { %3691 = vmax.xlane.f32.xlu1 %v3690_v3 }
0x1af3   :  { %v3769_v35 = vpop.f32.mrf.mxu1 }
0x1af6   :  { %3774 = vrot.lane.b32.xlu1 %v8571_v49, %s7252_s9 }
0x1afe   :  { %3813 = vrot.lane.b32.xlu1 %v8575_v57, %s7251_s10 }
0x1b06   :  { %3935 = vrot.lane.b32.xlu1 %v8571_v49, %s7255_s29 }
0x1b0e   :  { %3933 = vrot.lane.b32.xlu1 %v8581_v2, %s7249_s20 }
0x1b50   :  { %v3692_v8 = vpop.xlane.xlu1 %3691 }
0x1b51   :  { %v3693_v9 = vsub.f32 %v3688_v36, %v3692_v8 }
0x1b53   :  { %v3694_v14 = vmul.f32 1.442695, %v3693_v9 }
0x1b55   :  { %6042 = vpow2.f32 %v3694_v14 }
0x1b5b   :  { %v6043_v15 = vpop.eup %6042 }
0x1b5c   :  { %v3696_v19 = vsel %vm3689_vm8, %v6043_v15, 0.0 }
0x1b5d   :  { %3697 = vadd.xlane.f32.xlu2 %v3696_v19 }
0x1b68   :  { %v3775_v61 = vpop.permute.xlu1 %3774 }
0x1b69   :  { %5627 = vmatpush.xpose.msk.msra.mxu2 %vm1386_vm14, %v3775_v61 }
0x1b70   :  { %v3814_v22 = vpop.permute.xlu1 %3813 }
0x1b71   :  { %3834 = vmatpush.msrb.mxu3 %v3814_v22 }
0x1b73   :  { %5635 = vmatpush.xpose.msk.msra.mxu3 %vm1287_vm13, %v8561_v47 }
0x1b75   :  { %3772 = vrot.lane.b32.xlu2 %v8581_v2, %s7251_s10 }
0x1b78   :  { %v3936_v27 = vpop.permute.xlu1 %3935 }
0x1b79   :  { %5637 = vmatpush.xpose.msk.msra.mxu0 %vm1386_vm14, %v3936_v27  ;;  %v3608_v27 = vld [vmem:[%s9112_s0 + $0x38] sm:$0xff] }
0x1b80   :  { %v3934_v43 = vpop.permute.xlu1 %3933 }
0x1bd0   :  { %v3698_v12 = vpop.xlane.xlu2 %3697 }
0x1bd1   :  { %6044 = vrcp.f32 %v3698_v12 }
0x1bd7   :  { %v6045_v28 = vpop.eup %6044 }
0x1bd8   :  { %v3700_v26 = vmul.f32 %v6045_v28, %v6043_v15  ;;  %v3773_v29 = vpop.permute.xlu2 %3772  ;;  %v3607_v28 = vld [vmem:[%s9112_s0 + $0x30] sm:$0xff] }
0x1bda   :  { %5621 = vmatmul.msk.f32.vlgmr.msrb.gmra.mxu2 %vm3689_vm8, %v3700_v26 }
0x1bdb   :  { %5633 = vmatpush.msk.msrb.mxu2 %vm1300_vm12, %v5632_v48  ;;  %v4214_v48 = vld [vmem:[%s9113_s3 + $0x78] sm:$0xff] }
0x1be2   :  { %5628 = vmatmul.msk.f32.vlgmr.msra.gmra.mxu2 %vm1386_vm14, %v3773_v29 }
0x1be3   :  { %4016 = vmatpush.msra.mxu2 %v3606_v62  ;;  %v4297_v62 = vld [vmem:[%s9114_s4 + $0x78] sm:$0xff] }
0x1be5   :  { %4017 = vmatpush.msra.mxu2 %v3605_v58  ;;  %v4313_v58 = vld [vmem:[%s9114_s4 + $0xf8] sm:$0xff] }
0x1bea   :  { %5634 = vmatmul.msk.f32.vlgmr.msrb.gmra.mxu2 %vm1287_vm13, %v8561_v47 }
0x1c5d   :  { %v3721_v20 = vpop.f32.mrf.mxu2 }
0x1c5e   :  { %5631 = vmatmul.msk.f32.vlgmr.msrb.gmra.mxu1 %vm1386_vm14, %v3721_v20 }
0x1c65   :  { %v3797_v6 = vpop.f32.mrf.mxu2 }
0x1c66   :  { %v3798_v46 = vadd.f32 %v3797_v6, %v3769_v35  ;;  %v5898_v35 = vld [vmem:[#allocation50] ss:$0 sm:$0xff] }
0x1c68   :  { %v3800_v39 = vadd.f32 %v3798_v46, %v8588_v25 }
0x1c6a   :  { %v3801_v52 = vsel %vm3689_vm8, %v3800_v39, -inf }
0x1c6b   :  { %3802 = vmax.xlane.f32.xlu0 %v3801_v52 }
0x1c6d   :  { %v3907_v37 = vpop.f32.mrf.mxu2 }
0x1c7f   :  { %3973 = vrot.lane.b32.xlu0 %v8575_v57, %s7249_s20 }
0x1cdb   :  { %v3882_v3 = vpop.f32.mrf.mxu1 }
0x1cde   :  { %v3803_v40 = vpop.xlane.xlu0 %3802 }
0x1cdf   :  { %v3804_v30 = vsub.f32 %v3800_v39, %v3803_v40 }
0x1ce1   :  { %v3805_v33 = vmul.f32 1.442695, %v3804_v30 }
0x1ce3   :  { %6046 = vpow2.f32 %v3805_v33 }
0x1ce9   :  { %v6047_v41 = vpop.eup %6046 }
0x1cea   :  { %v3807_v55 = vsel %vm3689_vm8, %v6047_v41, 0.0 }
0x1ceb   :  { %3808 = vadd.xlane.f32.xlu2 %v3807_v55 }
0x1cf1   :  { %v3974_v38 = vpop.permute.xlu0 %3973 }
0x1cf2   :  { %3994 = vmatpush.msra.mxu1 %v3974_v38  ;;  %v4213_v38 = vld [vmem:[%s9113_s3 + $0x70] sm:$0xff] }
0x1d03   :  { %4073 = vrot.lane.b32.xlu2 %v8571_v49, %s7256_s28 }
0x1d5e   :  { %v3809_v45 = vpop.xlane.xlu2 %3808 }
0x1d5f   :  { %6048 = vrcp.f32 %v3809_v45  ;;  %v4211_v45 = vld [vmem:[%s9113_s3 + $0x60] sm:$0xff] }
0x1d65   :  { %v6049_v13 = vpop.eup %6048 }
0x1d66   :  { %v3811_v51 = vmul.f32 %v6049_v13, %v6047_v41  ;;  %v4074_v54 = vpop.permute.xlu2 %4073  ;;  %v4212_v13 = vld [vmem:[%s9113_s3 + $0x68] sm:$0xff] }
0x1d67   :  { %5646 = vmatpush.xpose.msk.msrb.mxu1 %vm1386_vm14, %v4074_v54  ;;  %v4210_v54 = vld [vmem:[%s9113_s3 + $0x58] sm:$0xff] }
0x1d68   :  { %5629 = vmatmul.msk.f32.vlgmr.msrb.gmra.mxu3 %vm3689_vm8, %v3811_v51  ;;  %v4209_v51 = vld [vmem:[%s9113_s3 + $0x50] sm:$0xff] }
0x1d69   :  { %5642 = vmatpush.msk.msrb.mxu3 %vm1300_vm12, %v5641_v42  ;;  %v4200_v42 = vld [vmem:[%s9113_s3 + $0x8] sm:$0xff] }
0x1d70   :  { %5636 = vmatmul.msk.f32.vlgmr.msra.gmra.mxu3 %vm1287_vm13, %v3907_v37  ;;  %v4207_v37 = vld [vmem:[%s9113_s3 + $0x40] sm:$0xff] }
0x1d71   :  { %4154 = vmatpush.msra.mxu3 %v3608_v27  ;;  %v4292_v27 = vld [vmem:[%s9114_s4 + $0x50] sm:$0xff] }
0x1d73   :  { %4155 = vmatpush.msra.mxu3 %v3607_v28  ;;  %v4290_v28 = vld [vmem:[%s9114_s4 + $0x40] sm:$0xff] }
0x1d78   :  { %5643 = vmatmul.msk.f32.vlgmr.msrb.gmra.mxu3 %vm1287_vm13, %v8561_v47 }
0x1d79   :  { %4338 = vmatpush.msrb.mxu3 %v4313_v58 }
0x1deb   :  { %v3836_v32 = vpop.f32.mrf.mxu3 }
0x1dec   :  { %5630 = vmatmul.msk.f32.vlgmr.msrb.gmra.mxu0 %vm1386_vm14, %v3836_v32  ;;  %v4208_v32 = vld [vmem:[%s9113_s3 + $0x48] sm:$0xff] }
0x1ded   :  { %5644 = vmatpush.xpose.msk.msrb.mxu0 %vm1287_vm13, %v8561_v47 }
0x1df3   :  { %v3930_v44 = vpop.f32.mrf.mxu3 }
0x1df4   :  { %5638 = vmatmul.msk.f32.vlgmr.msra.gmra.mxu0 %vm1386_vm14, %v3934_v43  ;;  %v4205_v43 = vld [vmem:[%s9113_s3 + $0x30] sm:$0xff] }
0x1df5   :  { %4232 = vmatpush.msra.mxu0 %v4213_v38  ;;  %v4299_v38 = vld [vmem:[%s9114_s4 + $0x88] sm:$0xff] }
0x1df7   :  { %4233 = vmatpush.msra.mxu0 %v4211_v45  ;;  %v4298_v45 = vld [vmem:[%s9114_s4 + $0x80] sm:$0xff] }
0x1df9   :  { %4234 = vmatpush.msra.mxu0 %v4209_v51 }
0x1dfb   :  { %4235 = vmatpush.msra.mxu0 %v4207_v37 }
0x1dfd   :  { %4236 = vmatpush.msra.mxu0 %v4205_v43 }
0x1e69   :  { %v3859_v11 = vpop.f32.mrf.mxu0 }
0x1e6a   :  { %v3883_v31 = vadd.f32 %v3882_v3, %v3859_v11  ;;  %v4206_v11 = vld [vmem:[%s9113_s3 + $0x38] sm:$0xff] }
0x1e71   :  { %v3958_v56 = vpop.f32.mrf.mxu0 }
0x1e72   :  { %v3959_v50 = vadd.f32 %v3958_v56, %v3930_v44  ;;  %v4203_v44 = vld [vmem:[%s9113_s3 + $0x20] sm:$0xff]  ;;  %v4204_v56 = vld [vmem:[%s9113_s3 + $0x28] sm:$0xff] }
0x1e73   :  { %4237 = vmatpush.msra.mxu0 %v4203_v44 }
0x1e74   :  { %v3961_v59 = vadd.f32 %v3959_v50, %v8588_v25  ;;  %v4201_v50 = vld [vmem:[%s9113_s3 + $0x10] sm:$0xff] }
0x1e75   :  { %4238 = vmatpush.msra.mxu0 %v4201_v50 }
0x1e76   :  { %v3962_v10 = vsel %vm3689_vm8, %v3961_v59, -inf }
0x1e77   :  { %3963 = vmax.xlane.f32.xlu1 %v3962_v10  ;;  %v4199_v10 = vld [vmem:[%s9113_s3] sm:$0xff] }
0x1e78   :  { %4239 = vmatpush.msra.mxu0 %v4199_v10 }
0x1e90   :  { %4111 = vrot.lane.b32.xlu1 %v8575_v57, %s7250_s13  ;;  %v4045_v57 = vpop.f32.mrf.mxu3 }
0x1e91   :  { %5645 = vmatmul.msk.f32.vlgmr.msrb.gmra.mxu0 %vm1287_vm13, %v4045_v57  ;;  %v4294_v57 = vld [vmem:[%s9114_s4 + $0x60] sm:$0xff] }
0x1eea   :  { %v3964_v63 = vpop.xlane.xlu1 %3963 }
0x1eeb   :  { %v3965_v49 = vsub.f32 %v3961_v59, %v3964_v63  ;;  %v4202_v59 = vld [vmem:[%s9113_s3 + $0x18] sm:$0xff]  ;;  %v4296_v63 = vld [vmem:[%s9114_s4 + $0x70] sm:$0xff] }
0x1eed   :  { %v3966_v16 = vmul.f32 1.442695, %v3965_v49  ;;  %v4312_v49 = vld [vmem:[%s9114_s4 + $0xf0] sm:$0xff] }
0x1eee   :  { %4339 = vmatpush.msrb.mxu3 %v4312_v49 }
0x1eef   :  { %6050 = vpow2.f32 %v3966_v16  ;;  %v4295_v16 = vld [vmem:[%s9114_s4 + $0x68] sm:$0xff] }
0x1ef5   :  { %v6051_v53 = vpop.eup %6050 }
0x1ef6   :  { %v3968_v60 = vsel %vm3689_vm8, %v6051_v53, 0.0 }
0x1ef7   :  { %3969 = vadd.xlane.f32.xlu0 %v3968_v60 }
0x1f02   :  { %v4112_v1 = vpop.permute.xlu1 %4111 }
0x1f03   :  { %4132 = vmatpush.msrb.mxu2 %v4112_v1 }
0x1f0b   :  { %4071 = vrot.lane.b32.xlu0 %v8581_v2, %s7250_s13 }
0x1f0e   :  { %v4068_v8 = vpop.f32.mrf.mxu0 }
0x1f6a   :  { %v3970_v24 = vpop.xlane.xlu0 %3969 }
0x1f6b   :  { %6052 = vrcp.f32 %v3970_v24  ;;  %v4310_v24 = vld [vmem:[%s9114_s4 + $0xe0] sm:$0xff] }
0x1f71   :  { %v6053_v34 = vpop.eup %6052 }
0x1f72   :  { %v3972_v5 = vmul.f32 %v6053_v34, %v6051_v53  ;;  %v4311_v53 = vld [vmem:[%s9114_s4 + $0xe8] sm:$0xff] }
0x1f73   :  { %4340 = vmatpush.msrb.mxu3 %v4311_v53 }
0x1f74   :  { %5639 = vmatmul.msk.f32.vlgmr.msra.gmra.mxu1 %vm3689_vm8, %v3972_v5 }
0x1f75   :  { %4252 = vmatpush.msra.mxu1 %v4214_v48  ;;  %4341 = vmatpush.msrb.mxu3 %v4310_v24  ;;  %v4282_v48 = vld [vmem:[%s9114_s4] sm:$0xff] }
0x1f77   :  { %4253 = vmatpush.msra.mxu1 %v4212_v13  ;;  %v4215_v13 = vld [vmem:[#allocation41] sm:$0x3] }
0x1f78   :  { %v4217_v51 = vperm.slane %v4215_v13, 0 }
0x1f79   :  { %4254 = vmatpush.msra.mxu1 %v4210_v54  ;;  %v4218_v54 = vperm.slane %v4215_v13, 1 }
0x1f7b   :  { %4255 = vmatpush.msra.mxu1 %v4208_v32 }
0x1f7d   :  { %v4072_v36 = vpop.permute.xlu0 %4071  ;;  %4256 = vmatpush.msra.mxu1 %v4206_v11 }
0x1f7e   :  { %5647 = vmatmul.msk.f32.vlgmr.msrb.gmra.mxu1 %vm1386_vm14, %v4072_v36 }
0x1f7f   :  { %4257 = vmatpush.msra.mxu1 %v4204_v56 }
0x1f81   :  { %4258 = vmatpush.msra.mxu1 %v4202_v59 }
0x1f83   :  { %4259 = vmatpush.msra.mxu1 %v4200_v42 }
0x1ff1   :  { %v3996_v4 = vpop.f32.mrf.mxu1 }
0x1ff2   :  { %5640 = vmatmul.msk.f32.vlgmr.msra.gmra.mxu2 %vm1386_vm14, %v3996_v4 }
0x1ff3   :  { %4318 = vmatpush.msra.mxu2 %v4297_v62 }
0x1ff5   :  { %4319 = vmatpush.msra.mxu2 %v4296_v63 }
0x1ff7   :  { %4320 = vmatpush.msra.mxu2 %v4295_v16 }
0x1ff9   :  { %4321 = vmatpush.msra.mxu2 %v4294_v57 }
0x1ffb   :  { %v4096_v9 = vpop.f32.mrf.mxu1 }
0x1ffc   :  { %v4097_v2 = vadd.f32 %v4096_v9, %v4068_v8 }
0x1ffe   :  { %v4099_v14 = vadd.f32 %v4097_v2, %v8588_v25  ;;  %v5899_v2 = vld [vmem:[#allocation49] ss:$0 sm:$0xff] }
0x2000   :  { %v4100_v17 = vsel %vm3689_vm8, %v4099_v14, -inf }
0x2001   :  { %4101 = vmax.xlane.f32.xlu0 %v4100_v17  ;;  %v5900_v17 = vld [vmem:[#allocation47] ss:$0 sm:$0xff] }
0x2074   :  { %v4102_v0 = vpop.xlane.xlu0 %4101 }
0x2075   :  { %v4103_v15 = vsub.f32 %v4099_v14, %v4102_v0  ;;  %v4019_v26 = vpop.f32.mrf.mxu2 }
0x2076   :  { %v4022_v20 = vadd.f32 %v4019_v26, %v3883_v31  ;;  %v4306_v26 = vld [vmem:[%s9114_s4 + $0xc0] sm:$0xff]  ;;  %v4305_v31 = vld [vmem:[%s9114_s4 + $0xb8] sm:$0xff] }
0x2077   :  { %v4104_v19 = vmul.f32 1.442695, %v4103_v15 }
0x2079   :  { %6054 = vpow2.f32 %v4104_v19 }
0x207f   :  { %v6055_v61 = vpop.eup %6054 }
0x2080   :  { %v4106_v22 = vsel %vm3689_vm8, %v6055_v61, 0.0 }
0x2081   :  { %4107 = vadd.xlane.f32.xlu2 %v4106_v22  ;;  %v4309_v22 = vld [vmem:[%s9114_s4 + $0xd8] sm:$0xff] }
0x2082   :  { %4342 = vmatpush.msrb.mxu3 %v4309_v22  ;;  %v4405_v22 = vld [vmem:[%s7676_s6 + $0x70] sm:$0xff] }
0x2083   :  { %4424 = vmatpush.msrb.mxu0 %v4405_v22 }
0x20f4   :  { %v4108_v23 = vpop.xlane.xlu2 %4107 }
0x20f5   :  { %6056 = vrcp.f32 %v4108_v23  ;;  %v4308_v23 = vld [vmem:[%s9114_s4 + $0xd0] sm:$0xff] }
0x20f6   :  { %4343 = vmatpush.msrb.mxu3 %v4308_v23  ;;  %v4404_v23 = vld [vmem:[%s7676_s6 + $0x68] sm:$0xff] }
0x20fb   :  { %v6057_v18 = vpop.eup %6056 }
0x20fc   :  { %v4110_v12 = vmul.f32 %v6057_v18, %v6055_v61  ;;  %v4293_v61 = vld [vmem:[%s9114_s4 + $0x58] sm:$0xff]  ;;  %v4291_v18 = vld [vmem:[%s9114_s4 + $0x48] sm:$0xff] }
0x20fd   :  { %4322 = vmatpush.msra.mxu2 %v4293_v61 }
0x20fe   :  { %5648 = vmatmul.msk.f32.vlgmr.msrb.gmra.mxu2 %vm3689_vm8, %v4110_v12  ;;  %v4307_v12 = vld [vmem:[%s9114_s4 + $0xc8] sm:$0xff] }
0x20ff   :  { %4323 = vmatpush.msra.mxu2 %v4292_v27  ;;  %4344 = vmatpush.msrb.mxu3 %v4307_v12  ;;  %v4403_v27 = vld [vmem:[%s7676_s6 + $0x60] sm:$0xff]  ;;  %v4402_v12 = vld [vmem:[%s7676_s6 + $0x58] sm:$0xff] }
0x2100   :  { %4425 = vmatpush.msrb.mxu0 %v4403_v27 }
0x2101   :  { %4324 = vmatpush.msra.mxu2 %v4291_v18  ;;  %4345 = vmatpush.msrb.mxu3 %v4306_v26  ;;  %v4401_v18 = vld [vmem:[%s7676_s6 + $0x50] sm:$0xff]  ;;  %v4400_v26 = vld [vmem:[%s7676_s6 + $0x48] sm:$0xff] }
0x2102   :  { %4426 = vmatpush.msrb.mxu0 %v4401_v18 }
0x2103   :  { %4325 = vmatpush.msra.mxu2 %v4290_v28  ;;  %4346 = vmatpush.msrb.mxu3 %v4305_v31  ;;  %v4399_v28 = vld [vmem:[%s7676_s6 + $0x40] sm:$0xff]  ;;  %v4398_v31 = vld [vmem:[%s7676_s6 + $0x38] sm:$0xff] }
0x2104   :  { %4427 = vmatpush.msrb.mxu0 %v4399_v28 }
0x2181   :  { %v4134_v29 = vpop.f32.mrf.mxu2 }
0x2182   :  { %5649 = vmatmul.msk.f32.vlgmr.msra.gmra.mxu3 %vm1386_vm14, %v4134_v29  ;;  %v4289_v29 = vld [vmem:[%s9114_s4 + $0x38] sm:$0xff] }
0x2183   :  { %4326 = vmatpush.msra.mxu2 %v4289_v29  ;;  %v4397_v29 = vld [vmem:[%s7676_s6 + $0x30] sm:$0xff] }
0x2184   :  { %4428 = vmatpush.msrb.mxu0 %v4397_v29 }
0x2205   :  { %v4157_v6 = vpop.f32.mrf.mxu3 }
0x2206   :  { %v4160_v46 = vadd.f32 %v4157_v6, %v4022_v20  ;;  %v4288_v20 = vld [vmem:[%s9114_s4 + $0x30] sm:$0xff]  ;;  %v4287_v6 = vld [vmem:[%s9114_s4 + $0x28] sm:$0xff] }
0x2207   :  { %4327 = vmatpush.msra.mxu2 %v4288_v20  ;;  %v4395_v20 = vld [vmem:[%s7676_s6 + $0x20] sm:$0xff] }
0x2208   :  { %v4165_v39 = vadd.f32 %v5898_v35, %v4160_v46  ;;  %v4304_v35 = vld [vmem:[%s9114_s4 + $0xb0] sm:$0xff]  ;;  %v4303_v46 = vld [vmem:[%s9114_s4 + $0xa8] sm:$0xff]  ;;  %4429 = vmatpush.msrb.mxu0 %v4395_v20 }
0x2209   :  { %4347 = vmatpush.msrb.mxu3 %v4304_v35  ;;  %4328 = vmatpush.msra.mxu2 %v4287_v6  ;;  %v4396_v35 = vld [vmem:[%s7676_s6 + $0x28] sm:$0xff]  ;;  %v4393_v6 = vld [vmem:[%s7676_s6 + $0x10] sm:$0xff] }
0x220a   :  { %v8662_v52 = vadd.f32 %v4165_v39, %v8534_v7  ;;  %v4286_v39 = vld [vmem:[%s9114_s4 + $0x20] sm:$0xff]  ;;  %4430 = vmatpush.msrb.mxu0 %v4393_v6  ;;  %v5671_v6 = vld [vmem:[%s7681_s19 + $0x8] sm:$0xf] }
0x220b   :  { %4348 = vmatpush.msrb.mxu3 %v4303_v46  ;;  %4329 = vmatpush.msra.mxu2 %v4286_v39  ;;  %v4394_v46 = vld [vmem:[%s7676_s6 + $0x18] sm:$0xff]  ;;  %v4391_v39 = vld [vmem:[%s7676_s6] sm:$0xff] }
0x220c   :  { %v4167_v40 = vsel %vm3496_vm3, %v8662_v52, 0.0  ;;  %4431 = vmatpush.msrb.mxu0 %v4391_v39 }
0x220d   :  { %4168 = vadd.xlane.f32.xlu1 %v4167_v40  ;;  %v4302_v40 = vld [vmem:[%s9114_s4 + $0xa0] sm:$0xff] }
0x220e   :  { %4349 = vmatpush.msrb.mxu3 %v4302_v40  ;;  %v4392_v40 = vld [vmem:[%s7676_s6 + $0x8] sm:$0xff] }
0x2280   :  { %v4169_v30 = vpop.xlane.xlu1 %4168 }
0x2281   :  { %v4170_v33 = vmul.f32 %v4169_v30, %v8538_v21  ;;  %v4285_v30 = vld [vmem:[%s9114_s4 + $0x18] sm:$0xff] }
0x2282   :  { %4330 = vmatpush.msra.mxu2 %v4285_v30  ;;  %v4465_v30 = vld [vmem:[%s7681_s19] sm:$0xf] }
0x2283   :  { %v8668_v41 = vsub.f32 %v8662_v52, %v4170_v33  ;;  %v4301_v33 = vld [vmem:[%s9114_s4 + $0x98] sm:$0xff] }
0x2284   :  { %4350 = vmatpush.msrb.mxu3 %v4301_v33 }
0x2285   :  { %v4172_v55 = vmul.f32 %v8668_v41, %v8668_v41 }
0x2287   :  { %v4173_v7 = vsel %vm3496_vm3, %v4172_v55, 0.0  ;;  %v4300_v55 = vld [vmem:[%s9114_s4 + $0x90] sm:$0xff] }
0x2288   :  { %4174 = vadd.xlane.f32.xlu0 %v4173_v7  ;;  %v4283_v7 = vld [vmem:[%s9114_s4 + $0x8] sm:$0xff]  ;;  %4351 = vmatpush.msrb.mxu3 %v4300_v55 }
0x228a   :  { %4352 = vmatpush.msrb.mxu3 %v4299_v38 }
0x228c   :  { %4353 = vmatpush.msrb.mxu3 %v4298_v45 }
0x22fb   :  { %v4175_v60 = vpop.xlane.xlu0 %4174 }
0x22fc   :  { %v4176_v1 = vmul.f32 %v4175_v60, %v8538_v21 }
0x22fe   :  { %v4177_v34 = vadd.f32 1e-05, %v4176_v1 }
0x2300   :  { %6058 = vrsqrt.f32 %v4177_v34  ;;  %vm4184_vm10 = vweird.f32 %v4177_v34 }
0x2306   :  { %v6059_v5 = vpop.eup %6058 }
0x2307   :  { %v4179_v36 = vmul.f32 %v6059_v5, %v4177_v34  ;;  %vm4185_vm9 = vweird.f32 %v6059_v5 }
0x2308   :  { %vm4186_vm11 = vmor %vm4184_vm10, %vm4185_vm9 }
0x2309   :  { %v4180_v3 = vmul.f32 %v6059_v5, %v4179_v36  ;;  %v5901_v36 = vld [vmem:[#allocation43] ss:$0 sm:$0xff] }
0x230b   :  { %v4181_v4 = vmul.f32 0.5, %v4180_v3 }
0x230d   :  { %v4182_v8 = vsub.f32 1.5, %v4181_v4 }
0x230f   :  { %v4183_v9 = vmul.f32 %v6059_v5, %v4182_v8 }
0x2311   :  { %v4187_v14 = vsel %vm4186_vm11, %v6059_v5, %v4183_v9 }
0x2312   :  { %v4188_v0 = vmul.f32 %v4187_v14, %v8668_v41  ;;  %v4284_v41 = vld [vmem:[%s9114_s4 + $0x10] sm:$0xff] }
0x2313   :  { %4331 = vmatpush.msra.mxu2 %v4284_v41 }
0x2314   :  { %v4193_v15 = vmul.f32 %v5899_v2, %v4188_v0 }
0x2315   :  { %4332 = vmatpush.msra.mxu2 %v4283_v7 }
0x2316   :  { %v4198_v19 = vadd.f32 %v5900_v17, %v4193_v15 }
0x2317   :  { %4333 = vmatpush.msra.mxu2 %v4282_v48 }
0x2318   :  { %5650 = vmatmul.msk.f32.vlgmr.msra.gmra.mxu0 %vm3496_vm3, %v4198_v19  ;;  %5651 = vmatmul.msk.f32.vlgmr.msra.gmra.mxu1 %vm3496_vm3, %v4198_v19 }
0x2319   :  { %5654 = vmatpush.msk.msra.mxu0 %vm1300_vm12, %v4465_v30 }
0x2395   :  { %v4241_v37 = vpop.f32.mrf.mxu0  ;;  %v4261_v32 = vpop.f32.mrf.mxu1 }
0x2396   :  { %v4242_v43 = vadd.f32 %v4241_v37, %v4217_v51  ;;  %v4262_v11 = vadd.f32 %v4261_v32, %v4218_v54  ;;  %v5902_v54 = vld [vmem:[#allocation58] ss:$0 sm:$0xff]  ;;  %v5903_v32 = vld [vmem:[#allocation56] ss:$0 sm:$0xff] }
0x2398   :  { %v4266_v44 = vmul.f32 0.044715, %v4242_v43  ;;  %v4267_v56 = vmul.f32 0.044715, %v4262_v11  ;;  %v4264_v60 = vmul.f32 0.5, %v4242_v43  ;;  %v4265_v57 = vmul.f32 0.5, %v4262_v11 }
0x239a   :  { %v4268_v50 = vmul.f32 %v4266_v44, %v4242_v43  ;;  %v4269_v59 = vmul.f32 %v4267_v56, %v4262_v11  ;;  %v5661_v56 = vld [vmem:[%s7681_s19 + $0x4] sm:$0xf] }
0x239c   :  { %v4270_v10 = vmul.f32 %v4268_v50, %v4242_v43  ;;  %v4271_v42 = vmul.f32 %v4269_v59, %v4262_v11  ;;  %v4407_v50 = vld [vmem:[#allocation64] sm:$0x3] }
0x239d   :  { %v4409_v59 = vperm.slane %v4407_v50, 0 }
0x239e   :  { %v4272_v62 = vadd.f32 %v4270_v10, %v4242_v43  ;;  %v4273_v58 = vadd.f32 %v4271_v42, %v4262_v11  ;;  %v4410_v10 = vperm.slane %v4407_v50, 1 }
0x23a0   :  { %v4274_v63 = vmul.f32 0.7978846, %v4272_v62  ;;  %v4275_v49 = vmul.f32 0.7978846, %v4273_v58 }
0x23a2   :  { %6060 = vtanh.f32 %v4274_v63 }
0x23a3   :  { %6062 = vtanh.f32 %v4275_v49 }
0x23a8   :  { %v6061_v16 = vpop.eup %6060 }
0x23a9   :  { %v6063_v53 = vpop.eup %6062  ;;  %v4278_v1 = vadd.f32 1.0, %v6061_v16 }
0x23aa   :  { %v4279_v24 = vadd.f32 1.0, %v6063_v53 }
0x23ab   :  { %v4280_v34 = vmul.f32 %v4278_v1, %v4264_v60 }
0x23ac   :  { %v4281_v5 = vmul.f32 %v4279_v24, %v4265_v57 }
0x23ad   :  { %4334 = vmatmul.f32.vlgmr.msra.gmra.mxu2 %v4280_v34 }
0x23ae   :  { %4354 = vmatmul.f32.vlgmr.msrb.gmra.mxu3 %v4281_v5 }
0x2430   :  { %v4335_v3 = vpop.f32.mrf.mxu2 }
0x2431   :  { %v4336_v4 = vadd.f32 %v5901_v36, %v4335_v3  ;;  %v4355_v8 = vpop.f32.mrf.mxu3 }
0x2433   :  { %v4356_v9 = vadd.f32 %v4355_v8, %v4336_v4 }
0x2435   :  { %v8726_v2 = vadd.f32 %v4356_v9, %v8662_v52  ;;  %v4406_v52 = vld [vmem:[%s7676_s6 + $0x78] sm:$0xff]  ;;  %s9115_s6 = sld [smem:[#allocation151_spill]] }
0x2436   :  { %4444 = vmatpush.msrb.mxu1 %v4406_v52 }
0x2437   :  { %v4359_v14 = vsel %vm3496_vm3, %v8726_v2, 0.0 }
0x2438   :  { %4360 = vadd.xlane.f32.xlu2 %v4359_v14  ;;  %4445 = vmatpush.msrb.mxu1 %v4404_v23 }
0x243a   :  { %4446 = vmatpush.msrb.mxu1 %v4402_v12 }
0x243b   :  { %v4457_v29 = vld [vmem:[%s9115_s6 + $0x8] sm:$0xff]  ;;  %v4456_v20 = vld [vmem:[%s9115_s6] sm:$0xff] }
0x243c   :  { %4447 = vmatpush.msrb.mxu1 %v4400_v26  ;;  %v4459_v26 = vld [vmem:[%s9115_s6 + $0x18] sm:$0xff] }
0x243e   :  { %4448 = vmatpush.msrb.mxu1 %v4398_v31  ;;  %v4458_v31 = vld [vmem:[%s9115_s6 + $0x10] sm:$0xff] }
0x2440   :  { %4449 = vmatpush.msrb.mxu1 %v4396_v35 }
0x2442   :  { %4450 = vmatpush.msrb.mxu1 %v4394_v46 }
0x2444   :  { %4451 = vmatpush.msrb.mxu1 %v4392_v40 }
0x2446   :  { %5656 = vmatpush.xpose.msk.msra.mxu1 %vm1287_vm13, %v8561_v47 }
0x24ab   :  { %v4361_v17 = vpop.xlane.xlu2 %4360 }
0x24ac   :  { %v4362_v0 = vmul.f32 %v4361_v17, %v8538_v21 }
0x24ae   :  { %v4363_v15 = vsub.f32 %v8726_v2, %v4362_v0 }
0x24b0   :  { %v4364_v19 = vmul.f32 %v4363_v15, %v4363_v15 }
0x24b2   :  { %v4365_v61 = vsel %vm3496_vm3, %v4364_v19, 0.0 }
0x24b3   :  { %4366 = vadd.xlane.f32.xlu0 %v4365_v61 }
0x2526   :  { %v4367_v33 = vpop.xlane.xlu0 %4366 }
0x2527   :  { %v4368_v41 = vmul.f32 %v4367_v33, %v8538_v21 }
0x2529   :  { %v4369_v55 = vadd.f32 1e-05, %v4368_v41 }
0x252b   :  { %6064 = vrsqrt.f32 %v4369_v55  ;;  %vm4376_vm15 = vweird.f32 %v4369_v55 }
0x2531   :  { %v6065_v7 = vpop.eup %6064 }
0x2532   :  { %v4371_v38 = vmul.f32 %v6065_v7, %v4369_v55  ;;  %vm4377_vm1 = vweird.f32 %v6065_v7 }
0x2533   :  { %vm4378_vm0 = vmor %vm4376_vm15, %vm4377_vm1 }
0x2534   :  { %v4372_v48 = vmul.f32 %v6065_v7, %v4371_v38 }
0x2536   :  { %v4373_v45 = vmul.f32 0.5, %v4372_v48 }
0x2538   :  { %v4374_v13 = vsub.f32 1.5, %v4373_v45 }
0x253a   :  { %v4375_v51 = vmul.f32 %v6065_v7, %v4374_v13  ;;  %v6094_v13 = vld [vmem:[%s9110_s18] sm:$0xff] }
0x253c   :  { %v4379_v37 = vsel %vm4378_vm0, %v6065_v7, %v4375_v51 }
0x253d   :  { %v4380_v43 = vmul.f32 %v4379_v37, %v4363_v15 }
0x253f   :  { %v4385_v11 = vmul.f32 %v5902_v54, %v4380_v43 }
0x2541   :  { %v4390_v44 = vadd.f32 %v5903_v32, %v4385_v11 }
0x2543   :  { %5652 = vmatmul.msk.f32.vlgmr.msrb.gmra.mxu0 %vm3496_vm3, %v4390_v44  ;;  %5653 = vmatmul.msk.f32.vlgmr.msrb.gmra.mxu1 %vm3496_vm3, %v4390_v44  ;;  %v5680_v44 = vld [vmem:[%s7681_s19 + $0xc] sm:$0xf]  ;;  %s9116_s19 = sld [smem:[#allocation143_spill]] }
0x2544   :  { %5664 = vmatpush.xpose.msk.msrb.mxu1 %vm1287_vm13, %v8561_v47  ;;  %5662 = vmatpush.msk.msrb.mxu0 %vm1300_vm12, %v5661_v56 }
0x254b   :  { %5655 = vmatmul.msk.f32.vlgmr.msra.gmra.mxu0 %vm1287_vm13, %v8561_v47 }
0x254c   :  { %4707 = vmatpush.msra.mxu0 %v4459_v26 }
0x254e   :  { %4708 = vmatpush.msra.mxu0 %v4458_v31 }
0x2553   :  { %5663 = vmatmul.msk.f32.vlgmr.msrb.gmra.mxu0 %vm1287_vm13, %v8561_v47 }
0x25c0   :  { %v4433_v42 = vpop.f32.mrf.mxu0  ;;  %v4453_v62 = vpop.f32.mrf.mxu1 }
0x25c1   :  { %v4434_v58 = vadd.f32 %v4433_v42, %v4409_v59  ;;  %v8764_v63 = vadd.f32 %v4453_v62, %v4410_v10 }
0x25c3   :  { %4570 = vmatpush.msra.mxu3 %v8764_v63  ;;  %4625 = vrot.lane.b32.xlu0 %v4434_v58, %s7252_s9  ;;  %v4464_v49 = vmul.f32 0.25, %v4434_v58 }
0x25c4   :  { %4513 = vrot.lane.b32.xlu2 %v4434_v58, %s7237_s14  ;;  %s9117_s14 = sld [smem:[#allocation145_spill]] }
0x25c5   :  { %4623 = vrot.lane.b32.xlu1 %v4464_v49, %s7251_s10 }
0x25c8   :  { %v4486_v16 = vpop.f32.mrf.mxu0 }
0x25c9   :  { %5657 = vmatmul.msk.f32.vlgmr.msra.gmra.mxu1 %vm1287_vm13, %v4486_v16 }
0x25ca   :  { %4730 = vmatpush.msra.mxu1 %v4457_v29 }
0x25cc   :  { %4731 = vmatpush.msra.mxu1 %v4456_v20 }
0x25d0   :  { %v4597_v60 = vpop.f32.mrf.mxu0 }
0x25d1   :  { %5665 = vmatmul.msk.f32.vlgmr.msrb.gmra.mxu1 %vm1287_vm13, %v4597_v60 }
0x261e   :  { %v4514_v53 = vpop.permute.xlu2 %4513 }
0x261f   :  { %5658 = vmatpush.xpose.msk.msrb.mxu2 %vm1386_vm14, %v4514_v53 }
0x2622   :  { %5659 = vmatmul.msk.f32.vlgmr.msrb.gmra.mxu2 %vm1386_vm14, %v4464_v49 }
0x2635   :  { %v4626_v1 = vpop.permute.xlu0 %4625 }
0x2636   :  { %5666 = vmatpush.xpose.msk.msra.mxu2 %vm1386_vm14, %v4626_v1  ;;  %v4460_v1 = vld [vmem:[%s9115_s6 + $0x20] sm:$0xff] }
0x2637   :  { %v4624_v57 = vpop.permute.xlu1 %4623 }
0x2639   :  { %5667 = vmatmul.msk.f32.vlgmr.msra.gmra.mxu2 %vm1386_vm14, %v4624_v57 }
0x263a   :  { %5672 = vmatpush.msk.msrb.mxu2 %vm1300_vm12, %v5671_v6 }
0x2641   :  { %5673 = vmatmul.msk.f32.vlgmr.msrb.gmra.mxu2 %vm1287_vm13, %v8561_v47 }
0x2646   :  { %v4509_v24 = vpop.f32.mrf.mxu1 }
0x264e   :  { %v4620_v4 = vpop.f32.mrf.mxu1 }
0x26a5   :  { %v4537_v34 = vpop.f32.mrf.mxu2 }
0x26a6   :  { %v4538_v5 = vadd.f32 %v4537_v34, %v4509_v24 }
0x26a8   :  { %v4540_v36 = vadd.f32 %v4538_v5, %v8588_v25 }
0x26aa   :  { %v4541_v3 = vsel %vm3689_vm8, %v4540_v36, -inf }
0x26ab   :  { %4542 = vmax.xlane.f32.xlu2 %v4541_v3 }
0x26bc   :  { %v4648_v8 = vpop.f32.mrf.mxu2 }
0x26bd   :  { %v4649_v9 = vadd.f32 %v4648_v8, %v4620_v4 }
0x26bf   :  { %v4651_v14 = vadd.f32 %v4649_v9, %v8588_v25 }
0x26c1   :  { %v4652_v17 = vsel %vm3689_vm8, %v4651_v14, -inf }
0x26c2   :  { %4653 = vmax.xlane.f32.xlu0 %v4652_v17 }
0x26c4   :  { %v4758_v38 = vpop.f32.mrf.mxu2 }
0x26d6   :  { %4664 = vrot.lane.b32.xlu0 %v8764_v63, %s7251_s10  ;;  %s9120_s10 = sld [smem:[#allocation105_spill]] }
0x271e   :  { %v4543_v0 = vpop.xlane.xlu2 %4542 }
0x271f   :  { %v4544_v15 = vsub.f32 %v4540_v36, %v4543_v0 }
0x2721   :  { %v4545_v19 = vmul.f32 1.442695, %v4544_v15 }
0x2723   :  { %6066 = vpow2.f32 %v4545_v19  ;;  %v4463_v19 = vld [vmem:[%s9115_s6 + $0x38] sm:$0xff] }
0x2729   :  { %v6067_v61 = vpop.eup %6066 }
0x272a   :  { %v4547_v22 = vsel %vm3689_vm8, %v6067_v61, 0.0 }
0x272b   :  { %4548 = vadd.xlane.f32.xlu1 %v4547_v22 }
0x2735   :  { %v4654_v52 = vpop.xlane.xlu0 %4653 }
0x2736   :  { %v4655_v27 = vsub.f32 %v4651_v14, %v4654_v52 }
0x2738   :  { %v4656_v23 = vmul.f32 1.442695, %v4655_v27 }
0x273a   :  { %6068 = vpow2.f32 %v4656_v23 }
0x2740   :  { %v6069_v18 = vpop.eup %6068 }
0x2741   :  { %v4658_v12 = vsel %vm3689_vm8, %v6069_v18, 0.0 }
0x2742   :  { %4659 = vadd.xlane.f32.xlu2 %v4658_v12  ;;  %v5904_v12 = vld [vmem:[#allocation62] ss:$0 sm:$0xff] }
0x2744   :  { %4784 = vrot.lane.b32.xlu1 %v4464_v49, %s7249_s20 }
0x2748   :  { %v4665_v28 = vpop.permute.xlu0 %4664 }
0x2749   :  { %4685 = vmatpush.msrb.mxu3 %v4665_v28 }
0x274c   :  { %4824 = vrot.lane.b32.xlu1 %v8764_v63, %s7249_s20  ;;  %s9118_s20 = sld [smem:[#allocation107_spill]] }
0x2754   :  { %4924 = vrot.lane.b32.xlu1 %v4434_v58, %s7256_s28 }
0x275a   :  { %4786 = vrot.lane.b32.xlu2 %v4434_v58, %s7255_s29  ;;  %v4461_v58 = vld [vmem:[%s9115_s6 + $0x28] sm:$0xff] }
0x275b   :  { %4867 = vmatpush.msra.mxu2 %v4461_v58  ;;  %v5145_v58 = vld [vmem:[%s9117_s14 + $0x60] sm:$0xff] }
0x275c   :  { %4922 = vrot.lane.b32.xlu1 %v4464_v49, %s7250_s13 }
0x275d   :  { %4868 = vmatpush.msra.mxu2 %v4460_v1 }
0x279e   :  { %v4549_v35 = vpop.xlane.xlu1 %4548 }
0x279f   :  { %6070 = vrcp.f32 %v4549_v35 }
0x27a5   :  { %v6071_v46 = vpop.eup %6070 }
0x27a6   :  { %v4551_v39 = vmul.f32 %v6071_v46, %v6067_v61 }
0x27a8   :  { %5660 = vmatmul.msk.f32.vlgmr.msra.gmra.mxu3 %vm3689_vm8, %v4551_v39 }
0x27a9   :  { %5674 = vmatpush.xpose.msk.msra.mxu3 %vm1287_vm13, %v8561_v47 }
0x27b5   :  { %v4660_v40 = vpop.xlane.xlu2 %4659 }
0x27b6   :  { %v4785_v30 = vpop.permute.xlu1 %4784  ;;  %6072 = vrcp.f32 %v4660_v40  ;;  %v5064_v40 = vld [vmem:[%s9116_s19 + $0x70] sm:$0xff] }
0x27bc   :  { %v6073_v33 = vpop.eup %6072 }
0x27bd   :  { %v4662_v41 = vmul.f32 %v6073_v33, %v6069_v18  ;;  %v4787_v55 = vpop.permute.xlu2 %4786  ;;  %v5062_v33 = vld [vmem:[%s9116_s19 + $0x60] sm:$0xff] }
0x27be   :  { %v4825_v7 = vpop.permute.xlu1 %4824  ;;  %5676 = vmatpush.xpose.msk.msrb.mxu0 %vm1386_vm14, %v4787_v55  ;;  %v5060_v55 = vld [vmem:[%s9116_s19 + $0x50] sm:$0xff] }
0x27bf   :  { %4845 = vmatpush.msrb.mxu1 %v4825_v7  ;;  %5668 = vmatmul.msk.f32.vlgmr.msrb.gmra.mxu3 %vm3689_vm8, %v4662_v41  ;;  %v5063_v41 = vld [vmem:[%s9116_s19 + $0x68] sm:$0xff]  ;;  %v5061_v7 = vld [vmem:[%s9116_s19 + $0x58] sm:$0xff] }
0x27c0   :  { %5681 = vmatpush.msk.msrb.mxu3 %vm1300_vm12, %v5680_v44  ;;  %v5164_v44 = vld [vmem:[%s9117_s14 + $0xf8] sm:$0xff] }
0x27c6   :  { %v4925_v45 = vpop.permute.xlu1 %4924 }
0x27c7   :  { %5675 = vmatmul.msk.f32.vlgmr.msra.gmra.mxu3 %vm1287_vm13, %v4758_v38  ;;  %v5058_v38 = vld [vmem:[%s9116_s19 + $0x40] sm:$0xff] }
0x27c8   :  { %5005 = vmatpush.msra.mxu3 %v4463_v19  ;;  %v5142_v19 = vld [vmem:[%s9117_s14 + $0x48] sm:$0xff] }
0x27ce   :  { %v4923_v60 = vpop.permute.xlu1 %4922 }
0x27cf   :  { %5682 = vmatmul.msk.f32.vlgmr.msrb.gmra.mxu3 %vm1287_vm13, %v6094_v13 }
0x282b   :  { %v4572_v48 = vpop.f32.mrf.mxu3 }
0x282c   :  { %5670 = vmatmul.msk.f32.vlgmr.msra.gmra.mxu1 %vm1386_vm14, %v4572_v48  ;;  %v5059_v48 = vld [vmem:[%s9116_s19 + $0x48] sm:$0xff] }
0x282d   :  { %5685 = vmatpush.xpose.msk.msra.mxu1 %vm1386_vm14, %v4925_v45  ;;  %v5056_v45 = vld [vmem:[%s9116_s19 + $0x30] sm:$0xff] }
0x2842   :  { %v4687_v47 = vpop.f32.mrf.mxu3 }
0x2843   :  { %5669 = vmatmul.msk.f32.vlgmr.msra.gmra.mxu0 %vm1386_vm14, %v4687_v47  ;;  %v5057_v47 = vld [vmem:[%s9116_s19 + $0x38] sm:$0xff] }
0x2844   :  { %5683 = vmatpush.xpose.msk.msra.mxu0 %vm1287_vm13, %v6094_v13  ;;  %v5054_v13 = vld [vmem:[%s9116_s19 + $0x20] sm:$0xff] }
0x284a   :  { %v4781_v54 = vpop.f32.mrf.mxu3 }
0x284b   :  { %5677 = vmatmul.msk.f32.vlgmr.msrb.gmra.mxu0 %vm1386_vm14, %v4785_v30  ;;  %v5065_v30 = vld [vmem:[%s9116_s19 + $0x78] sm:$0xff] }
0x284c   :  { %5083 = vmatpush.msrb.mxu0 %v5064_v40  ;;  %v5149_v40 = vld [vmem:[%s9117_s14 + $0x80] sm:$0xff] }
0x284e   :  { %5084 = vmatpush.msrb.mxu0 %v5062_v33 }
0x2850   :  { %5085 = vmatpush.msrb.mxu0 %v5060_v55 }
0x2852   :  { %v4896_v62 = vpop.f32.mrf.mxu3  ;;  %5086 = vmatpush.msrb.mxu0 %v5058_v38 }
0x2853   :  { %5684 = vmatmul.msk.f32.vlgmr.msra.gmra.mxu0 %vm1287_vm13, %v4896_v62 }
0x2854   :  { %5087 = vmatpush.msrb.mxu0 %v5056_v45 }
0x2856   :  { %5088 = vmatpush.msrb.mxu0 %v5054_v13 }
0x28a9   :  { %v4733_v57 = vpop.f32.mrf.mxu1 }
0x28c0   :  { %v4710_v51 = vpop.f32.mrf.mxu0 }
0x28c1   :  { %v4734_v23 = vadd.f32 %v4733_v57, %v4710_v51  ;;  %v5055_v51 = vld [vmem:[%s9116_s19 + $0x28] sm:$0xff] }
0x28c8   :  { %v4809_v37 = vpop.f32.mrf.mxu0 }
0x28c9   :  { %v4810_v32 = vadd.f32 %v4809_v37, %v4781_v54  ;;  %v5052_v54 = vld [vmem:[%s9116_s19 + $0x10] sm:$0xff]  ;;  %v5053_v37 = vld [vmem:[%s9116_s19 + $0x18] sm:$0xff] }
0x28ca   :  { %5089 = vmatpush.msrb.mxu0 %v5052_v54 }
0x28cb   :  { %v4812_v43 = vadd.f32 %v4810_v32, %v8588_v25  ;;  %v5050_v32 = vld [vmem:[%s9116_s19] sm:$0xff] }
0x28cc   :  { %5090 = vmatpush.msrb.mxu0 %v5050_v32 }
0x28cd   :  { %v4813_v11 = vsel %vm3689_vm8, %v4812_v43, -inf }
0x28ce   :  { %4814 = vmax.xlane.f32.xlu0 %v4813_v11  ;;  %v5148_v11 = vld [vmem:[%s9117_s14 + $0x78] sm:$0xff] }
0x28d0   :  { %v4919_v34 = vpop.f32.mrf.mxu0 }
0x2941   :  { %v4815_v56 = vpop.xlane.xlu0 %4814 }
0x2942   :  { %v4816_v50 = vsub.f32 %v4812_v43, %v4815_v56  ;;  %v5051_v43 = vld [vmem:[%s9116_s19 + $0x8] sm:$0xff]  ;;  %v5147_v56 = vld [vmem:[%s9117_s14 + $0x70] sm:$0xff] }
0x2944   :  { %v4817_v59 = vmul.f32 1.442695, %v4816_v50  ;;  %v5163_v50 = vld [vmem:[%s9117_s14 + $0xf0] sm:$0xff] }
0x2946   :  { %6074 = vpow2.f32 %v4817_v59 }
0x294c   :  { %v6075_v10 = vpop.eup %6074 }
0x294d   :  { %v4819_v42 = vsel %vm3689_vm8, %v6075_v10, 0.0 }
0x294e   :  { %4820 = vadd.xlane.f32.xlu2 %v4819_v42  ;;  %v5162_v42 = vld [vmem:[%s9117_s14 + $0xe8] sm:$0xff] }
0x29c1   :  { %v4821_v49 = vpop.xlane.xlu2 %4820 }
0x29c2   :  { %6076 = vrcp.f32 %v4821_v49  ;;  %v5161_v49 = vld [vmem:[%s9117_s14 + $0xe0] sm:$0xff] }
0x29c8   :  { %v6077_v16 = vpop.eup %6076 }
0x29c9   :  { %v4823_v53 = vmul.f32 %v6077_v16, %v6075_v10  ;;  %v5146_v10 = vld [vmem:[%s9117_s14 + $0x68] sm:$0xff] }
0x29cb   :  { %5678 = vmatmul.msk.f32.vlgmr.msrb.gmra.mxu1 %vm3689_vm8, %v4823_v53 }
0x29cc   :  { %5103 = vmatpush.msrb.mxu1 %v5065_v30  ;;  %v5066_v30 = vld [vmem:[#allocation53] sm:$0x3] }
0x29cd   :  { %v5068_v33 = vperm.slane %v5066_v30, 0 }
0x29ce   :  { %5104 = vmatpush.msrb.mxu1 %v5063_v41  ;;  %v5069_v41 = vperm.slane %v5066_v30, 1  ;;  %v5313_v30 = vld [vmem:[%s9120_s10 + $0x60] sm:$0xff] }
0x29d0   :  { %5105 = vmatpush.msrb.mxu1 %v5061_v7 }
0x29d2   :  { %5106 = vmatpush.msrb.mxu1 %v5059_v48 }
0x29d3   :  { %5686 = vmatmul.msk.f32.vlgmr.msra.gmra.mxu1 %vm1386_vm14, %v4923_v60 }
0x29d4   :  { %5107 = vmatpush.msrb.mxu1 %v5057_v47 }
0x29d6   :  { %5108 = vmatpush.msrb.mxu1 %v5055_v51 }
0x29d8   :  { %5109 = vmatpush.msrb.mxu1 %v5053_v37 }
0x29da   :  { %5110 = vmatpush.msrb.mxu1 %v5051_v43 }
0x2a48   :  { %v4847_v24 = vpop.f32.mrf.mxu1 }
0x2a49   :  { %5679 = vmatmul.msk.f32.vlgmr.msra.gmra.mxu2 %vm1386_vm14, %v4847_v24 }
0x2a50   :  { %v4947_v5 = vpop.f32.mrf.mxu1 }
0x2a51   :  { %v4948_v36 = vadd.f32 %v4947_v5, %v4919_v34  ;;  %v5905_v5 = vld [vmem:[#allocation61] ss:$0 sm:$0xff] }
0x2a53   :  { %v4950_v3 = vadd.f32 %v4948_v36, %v8588_v25 }
0x2a55   :  { %v4951_v4 = vsel %vm3689_vm8, %v4950_v3, -inf }
0x2a56   :  { %4952 = vmax.xlane.f32.xlu0 %v4951_v4 }
0x2a6a   :  { %4962 = vrot.lane.b32.xlu0 %v8764_v63, %s7250_s13  ;;  %v4462_v63 = vld [vmem:[%s9115_s6 + $0x30] sm:$0xff]  ;;  %s9119_s13 = sld [smem:[#allocation100_spill]] }
0x2a6b   :  { %5006 = vmatpush.msra.mxu3 %v4462_v63  ;;  %v5140_v63 = vld [vmem:[%s9117_s14 + $0x38] sm:$0xff] }
0x2a6d   :  { %5189 = vmatpush.msrb.mxu3 %v5164_v44 }
0x2a6f   :  { %5190 = vmatpush.msrb.mxu3 %v5163_v50 }
0x2a71   :  { %5191 = vmatpush.msrb.mxu3 %v5162_v42 }
0x2a73   :  { %5192 = vmatpush.msrb.mxu3 %v5161_v49 }
0x2ac9   :  { %v4953_v8 = vpop.xlane.xlu0 %4952 }
0x2aca   :  { %v4954_v9 = vsub.f32 %v4950_v3, %v4953_v8  ;;  %v5906_v3 = vld [vmem:[#allocation59] ss:$0 sm:$0xff] }
0x2acc   :  { %v4955_v14 = vmul.f32 1.442695, %v4954_v9  ;;  %v4870_v52 = vpop.f32.mrf.mxu2 }
0x2acd   :  { %v4873_v18 = vadd.f32 %v4870_v52, %v4734_v23  ;;  %v5156_v52 = vld [vmem:[%s9117_s14 + $0xb8] sm:$0xff]  ;;  %v5155_v23 = vld [vmem:[%s9117_s14 + $0xb0] sm:$0xff] }
0x2ace   :  { %6078 = vpow2.f32 %v4955_v14  ;;  %v5144_v14 = vld [vmem:[%s9117_s14 + $0x58] sm:$0xff] }
0x2ad4   :  { %v6079_v17 = vpop.eup %6078 }
0x2ad5   :  { %v4957_v0 = vsel %vm3689_vm8, %v6079_v17, 0.0 }
0x2ad6   :  { %4958 = vadd.xlane.f32.xlu1 %v4957_v0  ;;  %v5143_v0 = vld [vmem:[%s9117_s14 + $0x50] sm:$0xff] }
0x2adc   :  { %v4963_v15 = vpop.permute.xlu0 %4962 }
0x2add   :  { %4983 = vmatpush.msrb.mxu2 %v4963_v15  ;;  %v5159_v15 = vld [vmem:[%s9117_s14 + $0xd0] sm:$0xff] }
0x2adf   :  { %5169 = vmatpush.msra.mxu2 %v5148_v11 }
0x2ae1   :  { %5170 = vmatpush.msra.mxu2 %v5147_v56 }
0x2ae3   :  { %5171 = vmatpush.msra.mxu2 %v5146_v10 }
0x2ae5   :  { %5172 = vmatpush.msra.mxu2 %v5145_v58 }
0x2ae7   :  { %5173 = vmatpush.msra.mxu2 %v5144_v14  ;;  %v5272_v14 = vld [vmem:[%s9118_s20 + $0x30] sm:$0xff] }
0x2ae9   :  { %5174 = vmatpush.msra.mxu2 %v5143_v0 }
0x2aeb   :  { %5175 = vmatpush.msra.mxu2 %v5142_v19 }
0x2b49   :  { %v4959_v25 = vpop.xlane.xlu1 %4958 }
0x2b4a   :  { %6080 = vrcp.f32 %v4959_v25  ;;  %v5158_v25 = vld [vmem:[%s9117_s14 + $0xc8] sm:$0xff] }
0x2b50   :  { %v6081_v61 = vpop.eup %6080 }
0x2b51   :  { %v4961_v22 = vmul.f32 %v6081_v61, %v6079_v17  ;;  %v5160_v17 = vld [vmem:[%s9117_s14 + $0xd8] sm:$0xff]  ;;  %v5141_v61 = vld [vmem:[%s9117_s14 + $0x40] sm:$0xff] }
0x2b52   :  { %5193 = vmatpush.msrb.mxu3 %v5160_v17  ;;  %5176 = vmatpush.msra.mxu2 %v5141_v61  ;;  %v5268_v61 = vld [vmem:[%s9118_s20 + $0x10] sm:$0xff] }
0x2b53   :  { %5687 = vmatmul.msk.f32.vlgmr.msrb.gmra.mxu2 %vm3689_vm8, %v4961_v22  ;;  %v5157_v22 = vld [vmem:[%s9117_s14 + $0xc0] sm:$0xff] }
0x2b54   :  { %5194 = vmatpush.msrb.mxu3 %v5159_v15  ;;  %5177 = vmatpush.msra.mxu2 %v5140_v63  ;;  %v5270_v15 = vld [vmem:[%s9118_s20 + $0x20] sm:$0xff] }
0x2b56   :  { %5195 = vmatpush.msrb.mxu3 %v5158_v25  ;;  %v5269_v25 = vld [vmem:[%s9118_s20 + $0x18] sm:$0xff] }
0x2b58   :  { %5196 = vmatpush.msrb.mxu3 %v5157_v22  ;;  %v5267_v22 = vld [vmem:[%s9118_s20 + $0x8] sm:$0xff] }
0x2b5a   :  { %5197 = vmatpush.msrb.mxu3 %v5156_v52 }
0x2b5c   :  { %5198 = vmatpush.msrb.mxu3 %v5155_v23 }
0x2bd6   :  { %v4985_v27 = vpop.f32.mrf.mxu2 }
0x2bd7   :  { %5688 = vmatmul.msk.f32.vlgmr.msra.gmra.mxu3 %vm1386_vm14, %v4985_v27  ;;  %v5139_v27 = vld [vmem:[%s9117_s14 + $0x30] sm:$0xff] }
0x2bd8   :  { %5178 = vmatpush.msra.mxu2 %v5139_v27 }
0x2c5a   :  { %v5008_v28 = vpop.f32.mrf.mxu3 }
0x2c5b   :  { %v5011_v26 = vadd.f32 %v5008_v28, %v4873_v18  ;;  %v5138_v18 = vld [vmem:[%s9117_s14 + $0x28] sm:$0xff]  ;;  %v5137_v28 = vld [vmem:[%s9117_s14 + $0x20] sm:$0xff] }
0x2c5c   :  { %5179 = vmatpush.msra.mxu2 %v5138_v18 }
0x2c5d   :  { %v5016_v29 = vadd.f32 %v5904_v12, %v5011_v26  ;;  %v5154_v12 = vld [vmem:[%s9117_s14 + $0xa8] sm:$0xff]  ;;  %v5153_v26 = vld [vmem:[%s9117_s14 + $0xa0] sm:$0xff] }
0x2c5e   :  { %5199 = vmatpush.msrb.mxu3 %v5154_v12  ;;  %5180 = vmatpush.msra.mxu2 %v5137_v28  ;;  %v5908_v12 = vld [vmem:[#allocation7] ss:$0 sm:$0xff] }
0x2c5f   :  { %v8832_v31 = vadd.f32 %v5016_v29, %v8726_v2  ;;  %v5136_v29 = vld [vmem:[%s9117_s14 + $0x18] sm:$0xff] }
0x2c60   :  { %5200 = vmatpush.msrb.mxu3 %v5153_v26  ;;  %5181 = vmatpush.msra.mxu2 %v5136_v29  ;;  %v5909_v29 = vld [vmem:[#allocation5] ss:$0 sm:$0xff] }
0x2c61   :  { %v5018_v20 = vsel %vm3496_vm3, %v8832_v31, 0.0 }
0x2c62   :  { %5019 = vadd.xlane.f32.xlu2 %v5018_v20  ;;  %v5152_v20 = vld [vmem:[%s9117_s14 + $0x98] sm:$0xff] }
0x2c63   :  { %5201 = vmatpush.msrb.mxu3 %v5152_v20 }
0x2cd5   :  { %v5020_v35 = vpop.xlane.xlu2 %5019 }
0x2cd6   :  { %v5021_v6 = vmul.f32 %v5020_v35, %v8538_v21  ;;  %v5135_v35 = vld [vmem:[%s9117_s14 + $0x10] sm:$0xff] }
0x2cd7   :  { %5182 = vmatpush.msra.mxu2 %v5135_v35 }
0x2cd8   :  { %v8838_v46 = vsub.f32 %v8832_v31, %v5021_v6  ;;  %v5151_v6 = vld [vmem:[%s9117_s14 + $0x90] sm:$0xff] }
0x2cd9   :  { %5202 = vmatpush.msrb.mxu3 %v5151_v6  ;;  %v5242_v6 = vld [vmem:[%s9119_s13] sm:$0x3] }
0x2cda   :  { %v5023_v39 = vmul.f32 %v8838_v46, %v8838_v46 }
0x2cdc   :  { %v5024_v2 = vsel %vm3496_vm3, %v5023_v39, 0.0  ;;  %v5150_v39 = vld [vmem:[%s9117_s14 + $0x88] sm:$0xff] }
0x2cdd   :  { %5025 = vadd.xlane.f32.xlu2 %v5024_v2  ;;  %v5133_v2 = vld [vmem:[%s9117_s14] sm:$0xff]  ;;  %5203 = vmatpush.msrb.mxu3 %v5150_v39  ;;  %v5316_v39 = vld [vmem:[%s9120_s10 + $0x78] sm:$0xff] }
0x2cdf   :  { %5204 = vmatpush.msrb.mxu3 %v5149_v40  ;;  %v5314_v40 = vld [vmem:[%s9120_s10 + $0x68] sm:$0xff] }
0x2d50   :  { %v5026_v59 = vpop.xlane.xlu2 %5025 }
0x2d51   :  { %v5027_v62 = vmul.f32 %v5026_v59, %v8538_v21 }
0x2d53   :  { %v5028_v16 = vadd.f32 1e-05, %v5027_v62 }
0x2d55   :  { %6082 = vrsqrt.f32 %v5028_v16  ;;  %vm5035_vm13 = vweird.f32 %v5028_v16 }
0x2d5b   :  { %v6083_v53 = vpop.eup %6082 }
0x2d5c   :  { %v5030_v60 = vmul.f32 %v6083_v53, %v5028_v16  ;;  %vm5036_vm12 = vweird.f32 %v6083_v53  ;;  %v5907_v16 = vld [vmem:[#allocation55] ss:$0 sm:$0xff] }
0x2d5d   :  { %vm5037_vm14 = vmor %vm5035_vm13, %vm5036_vm12 }
0x2d5e   :  { %v5031_v1 = vmul.f32 %v6083_v53, %v5030_v60 }
0x2d60   :  { %v5032_v57 = vmul.f32 0.5, %v5031_v1 }
0x2d62   :  { %v5033_v24 = vsub.f32 1.5, %v5032_v57 }
0x2d64   :  { %v5034_v34 = vmul.f32 %v6083_v53, %v5033_v24 }
0x2d66   :  { %v5038_v36 = vsel %vm5037_vm14, %v6083_v53, %v5034_v34 }
0x2d67   :  { %v5039_v4 = vmul.f32 %v5038_v36, %v8838_v46  ;;  %v5134_v46 = vld [vmem:[%s9117_s14 + $0x8] sm:$0xff] }
0x2d68   :  { %5183 = vmatpush.msra.mxu2 %v5134_v46  ;;  %v5266_v46 = vld [vmem:[%s9118_s20] sm:$0xff] }
0x2d69   :  { %v5044_v8 = vmul.f32 %v5905_v5, %v5039_v4 }
0x2d6a   :  { %5184 = vmatpush.msra.mxu2 %v5133_v2  ;;  %v5315_v2 = vld [vmem:[%s9120_s10 + $0x70] sm:$0xff] }
0x2d6b   :  { %v5049_v9 = vadd.f32 %v5906_v3, %v5044_v8 }
0x2d6d   :  { %5689 = vmatmul.msk.f32.vlgmr.msrb.gmra.mxu0 %vm3496_vm3, %v5049_v9  ;;  %5690 = vmatmul.msk.f32.vlgmr.msrb.gmra.mxu1 %vm3496_vm3, %v5049_v9  ;;  %v5273_v9 = vld [vmem:[%s9118_s20 + $0x38] sm:$0xff] }
0x2d6e   :  { %5289 = vmatpush.msra.mxu1 %v5273_v9 }
0x2d70   :  { %5290 = vmatpush.msra.mxu1 %v5272_v14 }
0x2dea   :  { %v5092_v55 = vpop.f32.mrf.mxu0  ;;  %v5112_v7 = vpop.f32.mrf.mxu1 }
0x2deb   :  { %v5093_v38 = vadd.f32 %v5092_v55, %v5068_v33  ;;  %v5113_v48 = vadd.f32 %v5112_v7, %v5069_v41  ;;  %v5312_v33 = vld [vmem:[%s9120_s10 + $0x58] sm:$0xff]  ;;  %v5311_v41 = vld [vmem:[%s9120_s10 + $0x50] sm:$0xff]  ;;  %v5310_v55 = vld [vmem:[%s9120_s10 + $0x48] sm:$0xff] }
0x2dec   :  { %v5309_v7 = vld [vmem:[%s9120_s10 + $0x40] sm:$0xff] }
0x2ded   :  { %v5117_v45 = vmul.f32 0.044715, %v5093_v38  ;;  %v5118_v47 = vmul.f32 0.044715, %v5113_v48  ;;  %v5115_v59 = vmul.f32 0.5, %v5093_v38  ;;  %v5116_v42 = vmul.f32 0.5, %v5113_v48 }
0x2def   :  { %v5119_v13 = vmul.f32 %v5117_v45, %v5093_v38  ;;  %v5120_v51 = vmul.f32 %v5118_v47, %v5113_v48  ;;  %v5306_v45 = vld [vmem:[%s9120_s10 + $0x28] sm:$0xff]  ;;  %v5305_v47 = vld [vmem:[%s9120_s10 + $0x20] sm:$0xff] }
0x2df1   :  { %v5121_v54 = vmul.f32 %v5119_v13, %v5093_v38  ;;  %v5122_v37 = vmul.f32 %v5120_v51, %v5113_v48  ;;  %v5304_v13 = vld [vmem:[%s9120_s10 + $0x18] sm:$0xff]  ;;  %v5303_v51 = vld [vmem:[%s9120_s10 + $0x10] sm:$0xff] }
0x2df3   :  { %v5123_v32 = vadd.f32 %v5121_v54, %v5093_v38  ;;  %v5124_v43 = vadd.f32 %v5122_v37, %v5113_v48  ;;  %v5308_v38 = vld [vmem:[%s9120_s10 + $0x38] sm:$0xff]  ;;  %v5307_v48 = vld [vmem:[%s9120_s10 + $0x30] sm:$0xff]  ;;  %v5302_v37 = vld [vmem:[%s9120_s10 + $0x8] sm:$0xff] }
0x2df5   :  { %v5125_v11 = vmul.f32 0.7978846, %v5123_v32  ;;  %v5126_v44 = vmul.f32 0.7978846, %v5124_v43  ;;  %v5301_v32 = vld [vmem:[%s9120_s10] sm:$0xff] }
0x2df6   :  { %v5910_v43 = vld [vmem:[#allocation3] ss:$0 sm:$0xff] }
0x2df7   :  { %6084 = vtanh.f32 %v5125_v11 }
0x2df8   :  { %6086 = vtanh.f32 %v5126_v44 }
0x2dfd   :  { %v6085_v56 = vpop.eup %6084 }
0x2dfe   :  { %v6087_v50 = vpop.eup %6086  ;;  %v5129_v10 = vadd.f32 1.0, %v6085_v56  ;;  %v5911_v56 = vld [vmem:[#allocation2] ss:$0 sm:$0xff] }
0x2dff   :  { %v5130_v62 = vadd.f32 1.0, %v6087_v50 }
0x2e00   :  { %v5131_v58 = vmul.f32 %v5129_v10, %v5115_v59 }
0x2e01   :  { %v5132_v49 = vmul.f32 %v5130_v62, %v5116_v42 }
0x2e02   :  { %5185 = vmatmul.f32.vlgmr.msra.gmra.mxu2 %v5131_v58 }
0x2e03   :  { %5205 = vmatmul.f32.vlgmr.msrb.gmra.mxu3 %v5132_v49 }
0x2e85   :  { %v5186_v53 = vpop.f32.mrf.mxu2 }
0x2e86   :  { %v5187_v60 = vadd.f32 %v5907_v16, %v5186_v53  ;;  %v5206_v1 = vpop.f32.mrf.mxu3 }
0x2e88   :  { %v5207_v57 = vadd.f32 %v5206_v1, %v5187_v60 }
0x2e8a   :  { %v5209_v24 = vadd.f32 %v5207_v57, %v8832_v31  ;;  %v5271_v31 = vld [vmem:[%s9118_s20 + $0x28] sm:$0xff] }
0x2e8b   :  { %5291 = vmatpush.msra.mxu1 %v5271_v31 }
0x2e8c   :  { %v5210_v34 = vsel %vm3496_vm3, %v5209_v24, 0.0 }
0x2e8d   :  { %5211 = vadd.xlane.f32.xlu2 %v5210_v34  ;;  %5292 = vmatpush.msra.mxu1 %v5270_v15 }
0x2e8f   :  { %5293 = vmatpush.msra.mxu1 %v5269_v25 }
0x2e91   :  { %5294 = vmatpush.msra.mxu1 %v5268_v61 }
0x2e93   :  { %5295 = vmatpush.msra.mxu1 %v5267_v22 }
0x2e95   :  { %5296 = vmatpush.msra.mxu1 %v5266_v46 }
0x2f00   :  { %v5212_v5 = vpop.xlane.xlu2 %5211 }
0x2f01   :  { %v5213_v36 = vmul.f32 %v5212_v5, %v8538_v21 }
0x2f03   :  { %v5214_v3 = vsub.f32 %v5209_v24, %v5213_v36 }
0x2f05   :  { %v5215_v4 = vmul.f32 %v5214_v3, %v5214_v3 }
0x2f07   :  { %v5216_v8 = vsel %vm3496_vm3, %v5215_v4, 0.0 }
0x2f08   :  { %5217 = vadd.xlane.f32.xlu0 %v5216_v8 }
0x2f7b   :  { %v5218_v17 = vpop.xlane.xlu0 %5217 }
0x2f7c   :  { %v5219_v0 = vmul.f32 %v5218_v17, %v8538_v21 }
0x2f7e   :  { %v5220_v19 = vadd.f32 1e-05, %v5219_v0 }
0x2f80   :  { %6088 = vrsqrt.f32 %v5220_v19  ;;  %vm5227_vm4 = vweird.f32 %v5220_v19 }
0x2f86   :  { %v6089_v63 = vpop.eup %6088 }
0x2f87   :  { %v5222_v52 = vmul.f32 %v6089_v63, %v5220_v19  ;;  %vm5228_vm2 = vweird.f32 %v6089_v63 }
0x2f88   :  { %vm5229_vm5 = vmor %vm5227_vm4, %vm5228_vm2 }
0x2f89   :  { %v5223_v27 = vmul.f32 %v6089_v63, %v5222_v52 }
0x2f8b   :  { %v5224_v23 = vmul.f32 0.5, %v5223_v27 }
0x2f8d   :  { %v5225_v18 = vsub.f32 1.5, %v5224_v23 }
0x2f8f   :  { %v5226_v21 = vmul.f32 %v6089_v63, %v5225_v18 }
0x2f91   :  { %v5230_v28 = vsel %vm5229_vm5, %v6089_v63, %v5226_v21 }
0x2f92   :  { %v5231_v26 = vmul.f32 %v5230_v28, %v5214_v3 }
0x2f94   :  { %v5236_v20 = vmul.f32 %v5908_v12, %v5231_v26 }
0x2f96   :  { %v5241_v35 = vadd.f32 %v5909_v29, %v5236_v20 }
0x2f98   :  { %5261 = vmatpush.msra.mxu0 %v5241_v35 }
0x2f99   :  { %5691 = vmatmul.msk.f32.vlgmr.msra.gmra.mxu0 %vm3689_vm8, %v5242_v6 }
0x2f9a   :  { %5321 = vmatpush.msrb.mxu0 %v5316_v39 }
0x2f9c   :  { %5322 = vmatpush.msrb.mxu0 %v5315_v2 }
0x2f9e   :  { %5323 = vmatpush.msrb.mxu0 %v5314_v40 }
0x2fa0   :  { %5324 = vmatpush.msrb.mxu0 %v5313_v30 }
0x2fa2   :  { %5325 = vmatpush.msrb.mxu0 %v5312_v33 }
0x2fa4   :  { %5326 = vmatpush.msrb.mxu0 %v5311_v41 }
0x2fa6   :  { %5327 = vmatpush.msrb.mxu0 %v5310_v55 }
0x2fa8   :  { %5328 = vmatpush.msrb.mxu0 %v5309_v7 }
0x2faa   :  { %5329 = vmatpush.msrb.mxu0 %v5308_v38 }
0x2fac   :  { %5330 = vmatpush.msrb.mxu0 %v5307_v48 }
0x2fae   :  { %5331 = vmatpush.msrb.mxu0 %v5306_v45 }
0x2fb0   :  { %5332 = vmatpush.msrb.mxu0 %v5305_v47 }
0x2fb2   :  { %5333 = vmatpush.msrb.mxu0 %v5304_v13 }
0x2fb4   :  { %5334 = vmatpush.msrb.mxu0 %v5303_v51 }
0x2fb6   :  { %5335 = vmatpush.msrb.mxu0 %v5302_v37 }
0x2fb8   :  { %5336 = vmatpush.msrb.mxu0 %v5301_v32 }
0x3016   :  { %v5263_v54 = vpop.f32.mrf.mxu0 }
0x3017   :  { %5692 = vmatmul.msk.f32.vlgmr.msra.gmra.mxu1 %vm3496_vm3, %v5263_v54 }
0x3094   :  { %v5298_v11 = vpop.f32.mrf.mxu1 }
0x3095   :  { %v5299_v44 = vadd.f32 %v5910_v43, %v5298_v11 }
0x3097   :  { %5337 = vmatmul.f32.vlgmr.msrb.gmra.mxu0 %v5299_v44 }
0x3114   :  { %v5338_v50 = vpop.f32.mrf.mxu0 }
0x3115   :  { %v5339_v59 = vadd.f32 %v5911_v56, %v5338_v50 }
0x3117   :  { %5342 = vst.msk [vmem:[%s7686_s24] sm:$0x3] %vm5341_vm6, %v5339_v59 }
0x3118   :  { %5347 = vsyncpa [#allocation4], 1 }
0x3119   :  { %5348 = vsyncpa [#allocation6], 1 }
0x311a   :  { %5349 = vsyncpa [#allocation9], 1 }
0x311b   :  { %5350 = vsyncpa [#allocation12], 1 }
0x311c   :  { %5351 = vsyncpa [#allocation15], 1 }
0x311d   :  { %5352 = vsyncpa [#allocation18], 1 }
0x311e   :  { %5353 = vsyncpa [#allocation21], 1 }
0x311f   :  { %5354 = vsyncpa [#allocation24], 1 }
0x3120   :  { %5355 = vsyncpa [#allocation27], 1 }
0x3121   :  { %5356 = vsyncpa [#allocation30], 1 }
0x3122   :  { %5357 = vsyncpa [#allocation33], 1 }
0x3123   :  { %5358 = vsyncpa [#allocation36], 1 }
0x3124   :  { %5359 = vsyncpa [#allocation39], 1 }
0x3125   :  { %5360 = vsyncpa [#allocation42], 1 }
0x3126   :  { %5361 = vsyncpa [#allocation45], 1 }
0x3127   :  { %5362 = vsyncpa [#allocation48], 1 }
0x3128   :  { %5363 = vsyncpa [#allocation51], 1 }
0x3129   :  { %5364 = vsyncpa [#allocation54], 1 }
0x312a   :  { %5365 = vsyncpa [#allocation57], 1 }
0x312b   :  { %5366 = vsyncpa [#allocation60], 1 }
0x312c   :  { %5367 = vsyncpa [#allocation63], 1 }

</bundles_post_ra>
